<compile_context>
chip_gen: v6e
topology: v6e:2x2x1
jax: 0.10.0
libtpu: 0.0.40
codegen_flags: <defaults>
</compile_context>

<pallas_src>
import functools
import math

import jax
import jax.numpy as jnp
from jax import lax
from jax.experimental import pallas as pl
from jax.experimental.pallas import tpu as pltpu


def res_attention_kernel(xp_ref, w1_ref, b1_ref, w2_ref, b2_ref,
                         wd_ref, bd_ref, wu_ref, bu_ref,
                         o_ref, *, H, W, K, res_scale):
    """Nb batch elements per grid step: conv->ReLU->conv->CALayer->residual add."""
    Nb = xp_ref.shape[0]
    C = xp_ref.shape[-1]
    pad = K // 2
    HW = H * W

    xp = xp_ref[...]                              # (Nb, H+2p, W+2p, C), pre-padded input

    def im2col(padded):
        # (Nb, H+2p, W+2p, C) -> (Nb*H*W, K*K*C): concatenate the K*K shifted taps along
        # the channel axis so each conv becomes a single lane-friendly MXU matmul.
        taps = []
        for dh in range(K):
            for dw in range(K):
                taps.append(padded[:, dh:dh + H, dw:dw + W, :])      # (Nb, H, W, C)
        col = jnp.concatenate(taps, axis=-1)                         # (Nb, H, W, K*K*C)
        return col.reshape(Nb * HW, K * K * C)

    # ---- conv1 (same padding) + ReLU : one matmul ----
    y1 = jnp.dot(im2col(xp), w1_ref[...],
                 preferred_element_type=jnp.float32) + b1_ref[...]   # (Nb*HW, C)
    y1 = jnp.maximum(y1, 0.0)

    # ---- pad y1 in-value (no scratch round-trip), then conv2 : one matmul ----
    y1_4d = y1.reshape(Nb, H, W, C)
    zrow = jnp.zeros((Nb, pad, W, C), jnp.float32)
    y1p = jnp.concatenate([zrow, y1_4d, zrow], axis=1)               # (Nb, H+2p, W, C)
    zcol = jnp.zeros((Nb, H + 2 * pad, pad, C), jnp.float32)
    y1p = jnp.concatenate([zcol, y1p, zcol], axis=2)                 # (Nb, H+2p, W+2p, C)

    y2 = jnp.dot(im2col(y1p), w2_ref[...],
                 preferred_element_type=jnp.float32) + b2_ref[...]   # (Nb*HW, C)

    # ---- CALayer: single-reduction global avg pool -> 1x1 -> ReLU -> 1x1 -> sigmoid ----
    y2_3d = y2.reshape(Nb, HW, C)
    p = jnp.mean(y2_3d, axis=1)                                      # (Nb, C)
    z = jnp.maximum(
        jnp.dot(p, wd_ref[...], preferred_element_type=jnp.float32) + bd_ref[...], 0.0)
    s = jax.nn.sigmoid(
        jnp.dot(z, wu_ref[...], preferred_element_type=jnp.float32) + bu_ref[...])  # (Nb, C)

    # ---- residual: out = body(x) * res_scale + x (x sliced from the padded block) ----
    x_c = xp[:, pad:pad + H, pad:pad + W, :].reshape(Nb, HW, C)
    body = y2_3d * s[:, None, :]
    if res_scale != 1.0:
        body = body * res_scale
    out = body + x_c                                                 # (Nb, HW, C)

    # lane-dense store: last dim H*W*C is a multiple of 128.
    o_ref[...] = out.reshape(Nb, 1, HW * C).astype(o_ref.dtype)


def res_attention_block(x_nhwc, params, *, kernel_size=3, res_scale=1.0, block_n=1):
    N, H, W, C = x_nhwc.shape
    K = kernel_size
    pad = K // 2
    Hp, Wp = H + 2 * pad, W + 2 * pad
    HWC = H * W * C
    Nb = block_n
    assert N % Nb == 0, "block_n must divide the batch size"

    w1, b1, w2, b2, wd, bd, wu, bu = params
    Cr = wd.shape[1]

    # im2col weight layout: HWIO (K, K, Cin, Cout) -> 2D (K*K*Cin, Cout), matching the
    # dh-major / dw / cin tap-concatenation order used in the kernel.
    w1f = w1.reshape(K * K * C, C)
    w2f = w2.reshape(K * K * C, C)

    # Pre-pad the input once in the wrapper; the kernel slices the residual out of it,
    # so no separate unpadded-x DMA stream is needed.
    xp = jnp.pad(x_nhwc, ((0, 0), (pad, pad), (pad, pad), (0, 0)))

    kernel = functools.partial(res_attention_kernel,
                               H=H, W=W, K=K, res_scale=res_scale)

    out_flat = pl.pallas_call(
        kernel,
        out_shape=jax.ShapeDtypeStruct((N, 1, HWC), x_nhwc.dtype),
        grid_spec=pltpu.PrefetchScalarGridSpec(
            num_scalar_prefetch=0,
            grid=(N // Nb,),
            in_specs=[
                pl.BlockSpec((Nb, Hp, Wp, C), lambda n: (n, 0, 0, 0)),
                pl.BlockSpec((K * K * C, C), lambda n: (0, 0)),
                pl.BlockSpec((1, C), lambda n: (0, 0)),
                pl.BlockSpec((K * K * C, C), lambda n: (0, 0)),
                pl.BlockSpec((1, C), lambda n: (0, 0)),
                pl.BlockSpec((C, Cr), lambda n: (0, 0)),
                pl.BlockSpec((1, Cr), lambda n: (0, 0)),
                pl.BlockSpec((Cr, C), lambda n: (0, 0)),
                pl.BlockSpec((1, C), lambda n: (0, 0)),
            ],
            out_specs=pl.BlockSpec((Nb, 1, HWC), lambda n: (n, 0, 0)),
        ),
        # Batch elements are independent -> "parallel" (megacore sharding on v7x).
        # vmem_limit_bytes left at default: the per-step footprint here is well under the
        # scoped limit on all generations; set it explicitly (budgeting against v7x's
        # 64 MiB physical VMEM) when scaling H/W/C, and row-tile H with a halo for large
        # images.  TODO(synk): optional bf16 weight/activation cast for v6e/v7x.
        compiler_params=pltpu.CompilerParams(dimension_semantics=("parallel",)),
    )(xp, w1f, b1, w2f, b2, wd, bd, wu, bu)

    return out_flat.reshape(N, H, W, C)


def ref_forward(x_nhwc, params, *, kernel_size=3, res_scale=1.0):
    """Plain-JAX reference for correctness checking."""
    w1, b1, w2, b2, wd, bd, wu, bu = params
    dn = ('NHWC', 'HWIO', 'NHWC')
    y1 = lax.conv_general_dilated(x_nhwc, w1, (1, 1), 'SAME', dimension_numbers=dn) + b1
    y1 = jnp.maximum(y1, 0.0)
    y2 = lax.conv_general_dilated(y1, w2, (1, 1), 'SAME', dimension_numbers=dn) + b2
    p = jnp.mean(y2, axis=(1, 2))                       # (N, C)
    z = jnp.maximum(p @ wd + bd, 0.0)                   # (N, Cr)
    s = jax.nn.sigmoid(z @ wu + bu)                     # (N, C)
    return y2 * s[:, None, None, :] * res_scale + x_nhwc


def init_params(key, n_feats, kernel_size, reduction=16):
    C, K = n_feats, kernel_size
    Cr = max(C // reduction, 1)
    ks = jax.random.split(key, 8)
    sc_conv = 1.0 / math.sqrt(C * K * K)
    sc_d = 1.0 / math.sqrt(C)
    sc_u = 1.0 / math.sqrt(Cr)
    w1 = jax.random.uniform(ks[0], (K, K, C, C), jnp.float32, -sc_conv, sc_conv)
    b1 = jax.random.uniform(ks[1], (1, C), jnp.float32, -sc_conv, sc_conv)
    w2 = jax.random.uniform(ks[2], (K, K, C, C), jnp.float32, -sc_conv, sc_conv)
    b2 = jax.random.uniform(ks[3], (1, C), jnp.float32, -sc_conv, sc_conv)
    wd = jax.random.uniform(ks[4], (C, Cr), jnp.float32, -sc_d, sc_d)
    bd = jax.random.uniform(ks[5], (1, Cr), jnp.float32, -sc_d, sc_d)
    wu = jax.random.uniform(ks[6], (Cr, C), jnp.float32, -sc_u, sc_u)
    bu = jax.random.uniform(ks[7], (1, C), jnp.float32, -sc_u, sc_u)
    return (w1, b1, w2, b2, wd, bd, wu, bu)


if __name__ == "__main__":
    N, n_feats, H, W = 4, 16, 12, 12   # n_feats=16 so channel//16 = 1 in CALayer
    kernel_size = 3
    res_scale = 1.0
    block_n = 2                        # 2 batch elements per grid step -> grid of 2

    key = jax.random.PRNGKey(0)
    kx, kp = jax.random.split(key)
    x_nchw = jax.random.normal(kx, (N, n_feats, H, W), jnp.float32)   # PyTorch layout
    x_nhwc = jnp.transpose(x_nchw, (0, 2, 3, 1))                      # kernel layout
    params = init_params(kp, n_feats, kernel_size)

    out_nhwc = res_attention_block(x_nhwc, params, kernel_size=kernel_size,
                                   res_scale=res_scale, block_n=block_n)
    out_nhwc = jax.block_until_ready(out_nhwc)
    out_nchw = jnp.transpose(out_nhwc, (0, 3, 1, 2))                  # back to NCHW

    ref = ref_forward(x_nhwc, params, kernel_size=kernel_size, res_scale=res_scale)
    assert out_nchw.shape == x_nchw.shape
    assert jnp.allclose(out_nhwc, ref, rtol=1e-4, atol=1e-4), "mismatch vs reference"

    print("KERNEL_OK")
</pallas_src>

<mosaic_0001>
module attributes {stable_mosaic.version = 11 : i64} {
  func.func @res_attention_kernel(%arg0: i32, %arg1: memref<2x14x14x16xf32, #tpu.memory_space<vmem>>, %arg2: memref<144x16xf32, #tpu.memory_space<vmem>>, %arg3: memref<1x16xf32, #tpu.memory_space<vmem>>, %arg4: memref<144x16xf32, #tpu.memory_space<vmem>>, %arg5: memref<1x16xf32, #tpu.memory_space<vmem>>, %arg6: memref<16x1xf32, #tpu.memory_space<vmem>>, %arg7: memref<1x1xf32, #tpu.memory_space<vmem>>, %arg8: memref<1x16xf32, #tpu.memory_space<vmem>>, %arg9: memref<1x16xf32, #tpu.memory_space<vmem>>, %arg10: memref<2x1x2304xf32, #tpu.memory_space<vmem>>) attributes {dimension_semantics = [#tpu.dimension_semantics<parallel>], iteration_bounds = array<i64: 2>, scalar_prefetch = 0 : i64, scratch_operands = 0 : i64, tpu.core_type = #tpu.core_type<tc>, window_params = [{transform_indices = @transform_0, window_bounds = array<i64: 2, 14, 14, 16>}, {pipeline_mode = #tpu.pipeline_mode<synchronous>, transform_indices = @transform_1, window_bounds = array<i64: 144, 16>}, {pipeline_mode = #tpu.pipeline_mode<synchronous>, transform_indices = @transform_2, window_bounds = array<i64: 1, 16>}, {pipeline_mode = #tpu.pipeline_mode<synchronous>, transform_indices = @transform_3, window_bounds = array<i64: 144, 16>}, {pipeline_mode = #tpu.pipeline_mode<synchronous>, transform_indices = @transform_4, window_bounds = array<i64: 1, 16>}, {pipeline_mode = #tpu.pipeline_mode<synchronous>, transform_indices = @transform_5, window_bounds = array<i64: 16, 1>}, {pipeline_mode = #tpu.pipeline_mode<synchronous>, transform_indices = @transform_6, window_bounds = array<i64: 1, 1>}, {pipeline_mode = #tpu.pipeline_mode<synchronous>, transform_indices = @transform_7, window_bounds = array<i64: 1, 16>}, {pipeline_mode = #tpu.pipeline_mode<synchronous>, transform_indices = @transform_8, window_bounds = array<i64: 1, 16>}, {transform_indices = @transform_9, window_bounds = array<i64: 2, 1, 2304>}]} {
    %c0 = arith.constant 0 : index
    %c0_0 = arith.constant 0 : index
    %c0_1 = arith.constant 0 : index
    %c0_2 = arith.constant 0 : index
    %0 = vector.load %arg1[%c0, %c0_0, %c0_1, %c0_2] : memref<2x14x14x16xf32, #tpu.memory_space<vmem>>, vector<2x14x14x16xf32>
    %1 = vector.extract_strided_slice %0 {offsets = [0, 0, 0, 0], sizes = [2, 12, 12, 16], strides = [1, 1, 1, 1]} : vector<2x14x14x16xf32> to vector<2x12x12x16xf32>
    %2 = vector.extract_strided_slice %0 {offsets = [0, 0, 1, 0], sizes = [2, 12, 12, 16], strides = [1, 1, 1, 1]} : vector<2x14x14x16xf32> to vector<2x12x12x16xf32>
    %3 = vector.extract_strided_slice %0 {offsets = [0, 0, 2, 0], sizes = [2, 12, 12, 16], strides = [1, 1, 1, 1]} : vector<2x14x14x16xf32> to vector<2x12x12x16xf32>
    %4 = vector.extract_strided_slice %0 {offsets = [0, 1, 0, 0], sizes = [2, 12, 12, 16], strides = [1, 1, 1, 1]} : vector<2x14x14x16xf32> to vector<2x12x12x16xf32>
    %5 = vector.extract_strided_slice %0 {offsets = [0, 1, 1, 0], sizes = [2, 12, 12, 16], strides = [1, 1, 1, 1]} : vector<2x14x14x16xf32> to vector<2x12x12x16xf32>
    %6 = vector.extract_strided_slice %0 {offsets = [0, 1, 2, 0], sizes = [2, 12, 12, 16], strides = [1, 1, 1, 1]} : vector<2x14x14x16xf32> to vector<2x12x12x16xf32>
    %7 = vector.extract_strided_slice %0 {offsets = [0, 2, 0, 0], sizes = [2, 12, 12, 16], strides = [1, 1, 1, 1]} : vector<2x14x14x16xf32> to vector<2x12x12x16xf32>
    %8 = vector.extract_strided_slice %0 {offsets = [0, 2, 1, 0], sizes = [2, 12, 12, 16], strides = [1, 1, 1, 1]} : vector<2x14x14x16xf32> to vector<2x12x12x16xf32>
    %9 = vector.extract_strided_slice %0 {offsets = [0, 2, 2, 0], sizes = [2, 12, 12, 16], strides = [1, 1, 1, 1]} : vector<2x14x14x16xf32> to vector<2x12x12x16xf32>
    %10 = tpu.concatenate %1, %2, %3, %4, %5, %6, %7, %8, %9 in 3 : vector<2x12x12x16xf32>, vector<2x12x12x16xf32>, vector<2x12x12x16xf32>, vector<2x12x12x16xf32>, vector<2x12x12x16xf32>, vector<2x12x12x16xf32>, vector<2x12x12x16xf32>, vector<2x12x12x16xf32>, vector<2x12x12x16xf32> -> vector<2x12x12x144xf32>
    %11 = vector.shape_cast %10 : vector<2x12x12x144xf32> to vector<288x144xf32>
    %c0_3 = arith.constant 0 : index
    %c0_4 = arith.constant 0 : index
    %12 = vector.load %arg2[%c0_3, %c0_4] : memref<144x16xf32, #tpu.memory_space<vmem>>, vector<144x16xf32>
    %cst = arith.constant dense<0.000000e+00> : vector<288x16xf32>
    %13 = tpu.matmul %11, %12, %cst {dimension_numbers = #tpu.dot_dimension_numbers<[1], [0], [0], [1], [0, 0, 1, 1], [], []>} : vector<288x144xf32>, vector<144x16xf32>, vector<288x16xf32> -> vector<288x16xf32>
    %c0_5 = arith.constant 0 : index
    %c0_6 = arith.constant 0 : index
    %14 = vector.load %arg3[%c0_5, %c0_6] : memref<1x16xf32, #tpu.memory_space<vmem>>, vector<1x16xf32>
    %15 = vector.broadcast %14 : vector<1x16xf32> to vector<288x16xf32>
    %16 = arith.addf %13, %15 : vector<288x16xf32>
    %cst_7 = arith.constant 0.000000e+00 : f32
    %17 = vector.broadcast %cst_7 : f32 to vector<288x16xf32>
    %18 = arith.maximumf %16, %17 : vector<288x16xf32>
    %19 = vector.shape_cast %18 : vector<288x16xf32> to vector<2x12x12x16xf32>
    %cst_8 = arith.constant 0.000000e+00 : f32
    %20 = vector.broadcast %cst_8 : f32 to vector<2x1x12x16xf32>
    %21 = tpu.concatenate %20, %19, %20 in 1 : vector<2x1x12x16xf32>, vector<2x12x12x16xf32>, vector<2x1x12x16xf32> -> vector<2x14x12x16xf32>
    %cst_9 = arith.constant 0.000000e+00 : f32
    %22 = vector.broadcast %cst_9 : f32 to vector<2x14x1x16xf32>
    %23 = tpu.concatenate %22, %21, %22 in 2 : vector<2x14x1x16xf32>, vector<2x14x12x16xf32>, vector<2x14x1x16xf32> -> vector<2x14x14x16xf32>
    %24 = vector.extract_strided_slice %23 {offsets = [0, 0, 0, 0], sizes = [2, 12, 12, 16], strides = [1, 1, 1, 1]} : vector<2x14x14x16xf32> to vector<2x12x12x16xf32>
    %25 = vector.extract_strided_slice %23 {offsets = [0, 0, 1, 0], sizes = [2, 12, 12, 16], strides = [1, 1, 1, 1]} : vector<2x14x14x16xf32> to vector<2x12x12x16xf32>
    %26 = vector.extract_strided_slice %23 {offsets = [0, 0, 2, 0], sizes = [2, 12, 12, 16], strides = [1, 1, 1, 1]} : vector<2x14x14x16xf32> to vector<2x12x12x16xf32>
    %27 = vector.extract_strided_slice %23 {offsets = [0, 1, 0, 0], sizes = [2, 12, 12, 16], strides = [1, 1, 1, 1]} : vector<2x14x14x16xf32> to vector<2x12x12x16xf32>
    %28 = vector.extract_strided_slice %23 {offsets = [0, 1, 1, 0], sizes = [2, 12, 12, 16], strides = [1, 1, 1, 1]} : vector<2x14x14x16xf32> to vector<2x12x12x16xf32>
    %29 = vector.extract_strided_slice %23 {offsets = [0, 1, 2, 0], sizes = [2, 12, 12, 16], strides = [1, 1, 1, 1]} : vector<2x14x14x16xf32> to vector<2x12x12x16xf32>
    %30 = vector.extract_strided_slice %23 {offsets = [0, 2, 0, 0], sizes = [2, 12, 12, 16], strides = [1, 1, 1, 1]} : vector<2x14x14x16xf32> to vector<2x12x12x16xf32>
    %31 = vector.extract_strided_slice %23 {offsets = [0, 2, 1, 0], sizes = [2, 12, 12, 16], strides = [1, 1, 1, 1]} : vector<2x14x14x16xf32> to vector<2x12x12x16xf32>
    %32 = vector.extract_strided_slice %23 {offsets = [0, 2, 2, 0], sizes = [2, 12, 12, 16], strides = [1, 1, 1, 1]} : vector<2x14x14x16xf32> to vector<2x12x12x16xf32>
    %33 = tpu.concatenate %24, %25, %26, %27, %28, %29, %30, %31, %32 in 3 : vector<2x12x12x16xf32>, vector<2x12x12x16xf32>, vector<2x12x12x16xf32>, vector<2x12x12x16xf32>, vector<2x12x12x16xf32>, vector<2x12x12x16xf32>, vector<2x12x12x16xf32>, vector<2x12x12x16xf32>, vector<2x12x12x16xf32> -> vector<2x12x12x144xf32>
    %34 = vector.shape_cast %33 : vector<2x12x12x144xf32> to vector<288x144xf32>
    %c0_10 = arith.constant 0 : index
    %c0_11 = arith.constant 0 : index
    %35 = vector.load %arg4[%c0_10, %c0_11] : memref<144x16xf32, #tpu.memory_space<vmem>>, vector<144x16xf32>
    %cst_12 = arith.constant dense<0.000000e+00> : vector<288x16xf32>
    %36 = tpu.matmul %34, %35, %cst_12 {dimension_numbers = #tpu.dot_dimension_numbers<[1], [0], [0], [1], [0, 0, 1, 1], [], []>} : vector<288x144xf32>, vector<144x16xf32>, vector<288x16xf32> -> vector<288x16xf32>
    %c0_13 = arith.constant 0 : index
    %c0_14 = arith.constant 0 : index
    %37 = vector.load %arg5[%c0_13, %c0_14] : memref<1x16xf32, #tpu.memory_space<vmem>>, vector<1x16xf32>
    %38 = vector.broadcast %37 : vector<1x16xf32> to vector<288x16xf32>
    %39 = arith.addf %36, %38 : vector<288x16xf32>
    %40 = vector.shape_cast %39 : vector<288x16xf32> to vector<2x144x16xf32>
    %cst_15 = arith.constant dense<0.000000e+00> : vector<2x16xf32>
    %41 = vector.multi_reduction <add>, %40, %cst_15 [1] : vector<2x144x16xf32> to vector<2x16xf32>
    %cst_16 = arith.constant 1.440000e+02 : f32
    %42 = vector.broadcast %cst_16 : f32 to vector<2x16xf32>
    %43 = arith.divf %41, %42 : vector<2x16xf32>
    %c0_17 = arith.constant 0 : index
    %c0_18 = arith.constant 0 : index
    %44 = vector.load %arg6[%c0_17, %c0_18] : memref<16x1xf32, #tpu.memory_space<vmem>>, vector<16x1xf32>
    %cst_19 = arith.constant dense<0.000000e+00> : vector<2x1xf32>
    %45 = tpu.matmul %43, %44, %cst_19 {dimension_numbers = #tpu.dot_dimension_numbers<[1], [0], [0], [1], [0, 0, 1, 1], [], []>} : vector<2x16xf32>, vector<16x1xf32>, vector<2x1xf32> -> vector<2x1xf32>
    %c0_20 = arith.constant 0 : index
    %c0_21 = arith.constant 0 : index
    %46 = vector.load %arg7[%c0_20, %c0_21] : memref<1x1xf32, #tpu.memory_space<vmem>>, vector<1x1xf32>
    %47 = vector.broadcast %46 : vector<1x1xf32> to vector<2x1xf32>
    %48 = arith.addf %45, %47 : vector<2x1xf32>
    %cst_22 = arith.constant 0.000000e+00 : f32
    %49 = vector.broadcast %cst_22 : f32 to vector<2x1xf32>
    %50 = arith.maximumf %48, %49 : vector<2x1xf32>
    %c0_23 = arith.constant 0 : index
    %c0_24 = arith.constant 0 : index
    %51 = vector.load %arg8[%c0_23, %c0_24] : memref<1x16xf32, #tpu.memory_space<vmem>>, vector<1x16xf32>
    %cst_25 = arith.constant dense<0.000000e+00> : vector<2x16xf32>
    %52 = tpu.matmul %50, %51, %cst_25 {dimension_numbers = #tpu.dot_dimension_numbers<[1], [0], [0], [1], [0, 0, 1, 1], [], []>} : vector<2x1xf32>, vector<1x16xf32>, vector<2x16xf32> -> vector<2x16xf32>
    %c0_26 = arith.constant 0 : index
    %c0_27 = arith.constant 0 : index
    %53 = vector.load %arg9[%c0_26, %c0_27] : memref<1x16xf32, #tpu.memory_space<vmem>>, vector<1x16xf32>
    %54 = vector.broadcast %53 : vector<1x16xf32> to vector<2x16xf32>
    %55 = arith.addf %52, %54 : vector<2x16xf32>
    %56 = arith.negf %55 : vector<2x16xf32>
    %57 = math.exp %56 : vector<2x16xf32>
    %cst_28 = arith.constant 1.000000e+00 : f32
    %58 = vector.broadcast %cst_28 : f32 to vector<2x16xf32>
    %59 = arith.addf %58, %57 : vector<2x16xf32>
    %60 = arith.divf %58, %59 : vector<2x16xf32>
    %61 = vector.extract_strided_slice %0 {offsets = [0, 1, 1, 0], sizes = [2, 12, 12, 16], strides = [1, 1, 1, 1]} : vector<2x14x14x16xf32> to vector<2x12x12x16xf32>
    %62 = vector.shape_cast %61 : vector<2x12x12x16xf32> to vector<2x144x16xf32>
    %63 = vector.shape_cast %60 : vector<2x16xf32> to vector<2x1x16xf32>
    %64 = vector.broadcast %63 : vector<2x1x16xf32> to vector<2x144x16xf32>
    %65 = arith.mulf %40, %64 : vector<2x144x16xf32>
    %66 = arith.addf %65, %62 : vector<2x144x16xf32>
    %67 = vector.shape_cast %66 : vector<2x144x16xf32> to vector<2x1x2304xf32>
    %c0_29 = arith.constant 0 : index
    %c0_30 = arith.constant 0 : index
    %c0_31 = arith.constant 0 : index
    %68 = vector.load %arg10[%c0_29, %c0_30, %c0_31] : memref<2x1x2304xf32, #tpu.memory_space<vmem>>, vector<2x1x2304xf32>
    tpu.vector_store %arg10[%c0_29, %c0_30, %c0_31], %67 {strides = array<i32>} : memref<2x1x2304xf32, #tpu.memory_space<vmem>>, vector<2x1x2304xf32>,
    return
  }
  func.func @transform_0(%arg0: i32) -> (i32, i32, i32, i32) {
    %c0_i32 = arith.constant 0 : i32
    %c0_i32_0 = arith.constant 0 : i32
    %c0_i32_1 = arith.constant 0 : i32
    %c0_i32_2 = arith.constant 0 : i32
    return %arg0, %c0_i32, %c0_i32_0, %c0_i32_1 : i32, i32, i32, i32
  }
  func.func @transform_1(%arg0: i32) -> (i32, i32) {
    %c0_i32 = arith.constant 0 : i32
    %c0_i32_0 = arith.constant 0 : i32
    %c0_i32_1 = arith.constant 0 : i32
    return %c0_i32, %c0_i32_0 : i32, i32
  }
  func.func @transform_2(%arg0: i32) -> (i32, i32) {
    %c0_i32 = arith.constant 0 : i32
    %c0_i32_0 = arith.constant 0 : i32
    %c0_i32_1 = arith.constant 0 : i32
    return %c0_i32, %c0_i32_0 : i32, i32
  }
  func.func @transform_3(%arg0: i32) -> (i32, i32) {
    %c0_i32 = arith.constant 0 : i32
    %c0_i32_0 = arith.constant 0 : i32
    %c0_i32_1 = arith.constant 0 : i32
    return %c0_i32, %c0_i32_0 : i32, i32
  }
  func.func @transform_4(%arg0: i32) -> (i32, i32) {
    %c0_i32 = arith.constant 0 : i32
    %c0_i32_0 = arith.constant 0 : i32
    %c0_i32_1 = arith.constant 0 : i32
    return %c0_i32, %c0_i32_0 : i32, i32
  }
  func.func @transform_5(%arg0: i32) -> (i32, i32) {
    %c0_i32 = arith.constant 0 : i32
    %c0_i32_0 = arith.constant 0 : i32
    %c0_i32_1 = arith.constant 0 : i32
    return %c0_i32, %c0_i32_0 : i32, i32
  }
  func.func @transform_6(%arg0: i32) -> (i32, i32) {
    %c0_i32 = arith.constant 0 : i32
    %c0_i32_0 = arith.constant 0 : i32
    %c0_i32_1 = arith.constant 0 : i32
    return %c0_i32, %c0_i32_0 : i32, i32
  }
  func.func @transform_7(%arg0: i32) -> (i32, i32) {
    %c0_i32 = arith.constant 0 : i32
    %c0_i32_0 = arith.constant 0 : i32
    %c0_i32_1 = arith.constant 0 : i32
    return %c0_i32, %c0_i32_0 : i32, i32
  }
  func.func @transform_8(%arg0: i32) -> (i32, i32) {
    %c0_i32 = arith.constant 0 : i32
    %c0_i32_0 = arith.constant 0 : i32
    %c0_i32_1 = arith.constant 0 : i32
    return %c0_i32, %c0_i32_0 : i32, i32
  }
  func.func @transform_9(%arg0: i32) -> (i32, i32, i32) {
    %c0_i32 = arith.constant 0 : i32
    %c0_i32_0 = arith.constant 0 : i32
    %c0_i32_1 = arith.constant 0 : i32
    return %arg0, %c0_i32, %c0_i32_0 : i32, i32, i32
  }
}

</mosaic_0001>

<bundles_post_ra>
// kernel: tpu_custom_call.1
= control target key start
LH: loop header
LB: loop body
LE: loop exit
PB: predicated region body
PF: predicated region fallthrough
CT: control target
= control target key end

     0   :  { %s17633_s0 = inlined_call_operand.vmem [shape: f32[4,14,14,16], index: 0, kind: input, shape index: {}]   ;;  %s17634_s1 = inlined_call_operand.vmem [shape: f32[144,16], index: 1, kind: input, shape index: {}]   ;;  %s17635_s2 = inlined_call_operand.vmem [shape: f32[1,16], index: 2, kind: input, shape index: {}]   ;;  %s17636_s3 = inlined_call_operand.vmem [shape: f32[144,16], index: 3, kind: input, shape index: {}]   ;;  %s17637_s4 = inlined_call_operand.vmem [shape: f32[1,16], index: 4, kind: input, shape index: {}]   ;;  %s17638_s5 = inlined_call_operand.vmem [shape: f32[16,1], index: 5, kind: input, shape index: {}]   ;;  %s17639_s6 = inlined_call_operand.<no memory space> [shape: f32[1,1], index: 6, kind: input, shape index: {}]   ;;  %s17640_s7 = inlined_call_operand.vmem [shape: f32[1,16], index: 7, kind: input, shape index: {}]   ;;  %s17641_s8 = inlined_call_operand.vmem [shape: f32[1,16], index: 8, kind: input, shape index: {}]   ;;  %s17642_s9 = inlined_call_operand.hbm [shape: f32[4,1,2304], index: 9, kind: output, shape index: {}]  }
   0x1   :  { %v14_v0 = vstv %s17639_s6 }
   0x2   :  { %15 = vst [vmem:[#allocation2] sm:$0x1] %v14_v0 }
   0x3   :  { %16 = vsyncpa [#allocation4], 0 }
   0x4   :  { %18 = vsyncpa [#allocation4 + $0x1], 0  ;;  %s10055_s11 = smov 0   ;;  %s10057_s12 = smov 0  }
   0x5   :  { %s10059_s13 = smov 0   ;;  %s10061_s14 = smov 0  }
   0x6 LB: > { %s10076_s6 = sadd.s32 4294967295, %s9985_s14   ;;  %s9046_s15 = sadd.s32 4294967294, %s9985_s14   ;;  %s9985_s14 = sphi %s10061_s14, %s19567_s14   ;;  %s9981_s13 = sphi %s10059_s13, %s19566_s13   ;;  %s9977_s12 = sphi %s10057_s12, %s19565_s12   ;;  %s9973_s11 = sphi %s10055_s11, %s19564_s11  }
   0x7   : > { %s10080_s16 = sadd.s32 1, %s9985_s14   ;;  %s225_s17 = sadd.s32 1, %s9981_s13 }
   0x8   : > { %s222_s18 = ssub.s32 %s9985_s14, %s10080_s16  ;;  %p235_p0 = scmp.ne.s32.totalorder %s9981_s13, %s9977_s12 }
   0x9   : > { %p223_p1 = scmp.eq.s32.totalorder %s222_s18, 0  ;;  %p236_p2 = scmp.eq.s32.totalorder %s10076_s6, 1 }
   0xa   : > { %p241_p3 = scmp.ne.s32.totalorder %s9977_s12, %s9973_s11  ;;  %p242_p4 = scmp.eq.s32.totalorder %s9046_s15, 1 }
   0xb   : > { %s10091_s19 = scalar_select %p223_p1, %s9981_s13, %s225_s17  }
   0xc   : > { %p10093_p5 = por %p236_p2, %p235_p0  ;;  %p10097_p6 = por %p242_p4, %p241_p3 }
   0xd   : > { %p9049_p7 = scmp.ge.s32.totalorder %s9985_s14, 1  ;;  %p294_p8 = scmp.lt.s32.totalorder %s9985_s14, 3 }
   0xf   : > { %p295_p9 = pnand %p9049_p7, %p294_p8 }
  0x11   : > { %298 = sbr.rel (%p295_p9) target bundleno = 2906 (0xb5a), region = 56 }
  0x16   : > { %s9050_s22 = sshll.u32 %s10076_s6, 1  ;;  %vm443_vm0 = vcmask 1046528   ;;  %s9987_s27 = smov 16   ;;  %vm660_vm1 = vcmask 1045504   ;;  %vm1629_vm2 = vcmask 130048   ;;  %vm1678_vm3 = vcmask 261120  }
  0x17   : > { %p332_p10 = scmp.lt.s32.totalorder %s9050_s22, 3  ;;  %s18029_s28 = smov 32   ;;  %vm1727_vm4 = vcmask 392192   ;;  %vm1776_vm5 = vcmask 523264   ;;  %vm1825_vm6 = vcmask 654336   ;;  %vm1874_vm7 = vcmask 785408  }
  0x18   : > { %s9989_s29 = smov 48   ;;  %s9990_s30 = smov 64   ;;  %vm1923_vm8 = vcmask 916480   ;;  %vm2675_vm9 = vcmask 1040384   ;;  %vm2825_vm10 = vcmask 1044480   ;;  %vm9995_vm11 = vmmov 0  }
  0x19   : > { %s19569_s22 = smov (!%p332_p10, %s9050_s22), 3  ;;  %s9991_s10 = smov 80   ;;  %vm5033_vm12 = vcmask 1041409   ;;  %vm5116_vm13 = vcmask 7168   ;;  %vm5247_vm14 = vcmask 1042432   ;;  %vm5248_vm15 = vcmask 1046532  }
  0x1a   : > { %s9275_s23 = smul.u32 224, %s19569_s22  ;;  %s9992_s15 = smov 96  }
  0x1b   : > { %s9994_s17 = smov 112   ;;  %s19305_s24 = smov 32  }
  0x1c   : > { %s10107_s26 = scalar_lea.vmem %s17633_s0, %s9275_s23  ;;  %s328_s25 = sand.u32 1, %s9977_s12  }
  0x1d   : > { %v10110_v1 = vld [vmem:[%s10107_s26 + $0x18] sm:$0x3f]  ;;  %v10113_v2 = vld [vmem:[%s10107_s26 + $0x8] sm:$0x3f]  ;;  %v10116_v3 = vld [vmem:[%s10107_s26 + $0x10] sm:$0xff] }
  0x1e   : > { %v10119_v4 = vrot.slane %v10110_v1, 1  ;;  %v445_v5 = vrot.slane %v10113_v2, 1  ;;  %v447_v6 = vrot.slane %v10116_v3, 1  ;;  %v10124_v7 = vld [vmem:[%s10107_s26 + $0x28] sm:$0x3f]  ;;  %v10127_v8 = vld [vmem:[%s10107_s26 + $0x30] sm:$0xff] }
  0x1f   : > { %v10130_v9 = vrot.slane %v10124_v7, 1  ;;  %v10133_v10 = vld [vmem:[%s10107_s26 + $0x38] sm:$0x3f]  ;;  %v10136_v11 = vld [vmem:[%s10107_s26 + $0x40] sm:$0xff]  ;;  %v453_v14 = vrot.slane %v10127_v8, 1  ;;  %v10196_v31 = vld [vmem:[%s10107_s26 + $0x50] sm:$0xff] }
  0x20   : > { %v10139_v12 = vld [vmem:[%s10107_s26 + $0x60] sm:$0xff]  ;;  %522 = vrot.lane.b32.xlu1 %v10119_v4, %s9987_s27  ;;  %518 = vrot.lane.b32.xlu0 %v445_v5, %s9987_s27  ;;  %v10146_v13 = vsel %vm443_vm0, %v447_v6, %v10119_v4  ;;  %v10150_v15 = vrot.slane %v10133_v10, 1  ;;  %v10153_v16 = vld [vmem:[%s10107_s26 + $0x48] sm:$0x3f]  ;;  %v456_v18 = vrot.slane %v10136_v11, 1  ;;  %v459_v35 = vrot.slane %v10196_v31, 1 }
  0x21   : > { %v10156_v17 = vld [vmem:[%s10107_s26 + $0x68] sm:$0x3f]  ;;  %v10160_v19 = vrot.slane %v10153_v16, 1  ;;  %v462_v20 = vrot.slane %v10139_v12, 1  ;;  %v10167_v22 = vld [vmem:[%s10107_s26] sm:$0xff]  ;;  %v10222_v39 = vld [vmem:[%s10107_s26 + $0x70] sm:$0xff] }
  0x22   : > { %18162 = vst [vmem:[#allocation6_spill] sm:$0xff] %v10150_v15  ;;  %v10164_v21 = vrot.slane %v10156_v17, 1  ;;  %v10170_v23 = vld [vmem:[%s10107_s26 + $0x20] sm:$0xff]  ;;  %v444_v24 = vrot.slane %v10167_v22, 1  ;;  %v10180_v26 = vsel %vm443_vm0, %v453_v14, %v10150_v15  ;;  %v10199_v32 = vld [vmem:[%s10107_s26 + $0x58] sm:$0x3f] }
  0x23   : > { %18163 = vst [vmem:[#allocation7_spill] sm:$0xff] %v10160_v19  ;;  %v450_v25 = vrot.slane %v10170_v23, 1  ;;  %v10184_v27 = vsel %vm443_vm0, %v456_v18, %v10160_v19  ;;  %v10210_v36 = vrot.slane %v10199_v32, 1  ;;  %v10219_v38 = vld [vmem:[%s10107_s26 + $0x78] sm:$0x3f]  ;;  %v10228_v41 = vld [vmem:[%s10107_s26 + $0x80] sm:$0xff] }
  0x24   : > { %18164 = vst [vmem:[#allocation8_spill] sm:$0xff] %v10164_v21  ;;  %520 = vrot.lane.b32.xlu1 %v10146_v13, %s9987_s27  ;;  %526 = vrot.lane.b32.xlu0 %v10130_v9, %s9987_s27  ;;  %18165 = vst [vmem:[#allocation9_spill] sm:$0xff] %v10184_v27  ;;  %v10188_v28 = vsel %vm443_vm0, %v462_v20, %v10164_v21  ;;  %v446_v29 = vsel %vm443_vm0, %v444_v24, %v445_v5  ;;  %v10225_v40 = vld [vmem:[%s10107_s26 + $0x88] sm:$0x3f]  ;;  %v10231_v42 = vld [vmem:[%s10107_s26 + $0xa0] sm:$0xff]  ;;  %v10241_v44 = vrot.slane %v10219_v38, 1 }
  0x25   : > { %18166 = vst [vmem:[#allocation10_spill] sm:$0xff] %v10188_v28  ;;  %v10193_v30 = vsel %vm443_vm0, %v450_v25, %v10130_v9  ;;  %v9335_v33 = vpack.i.bf16 %v10188_v28, %v10184_v27  ;;  %18168 = vst [vmem:[#allocation12_spill] sm:$0xff] %v10210_v36  ;;  %v10216_v37 = vsel %vm443_vm0, %v459_v35, %v10210_v36  ;;  %v10234_v43 = vld [vmem:[%s10107_s26 + $0xa8] sm:$0x3f]  ;;  %v465_v45 = vrot.slane %v10222_v39, 1  ;;  %v10276_v56 = vld [vmem:[%s10107_s26 + $0x90] sm:$0xff] }
  0x26   : > { %18167 = vst [vmem:[#allocation11_spill] sm:$0xff] %v10193_v30  ;;  %v9330_v34 = vpack.i.bf16 %v10193_v30, %v446_v29  ;;  %18169 = vst [vmem:[#allocation13_spill] sm:$0xff] %v10216_v37  ;;  %v10245_v46 = vrot.slane %v10225_v40, 1  ;;  %v468_v47 = vrot.slane %v10228_v41, 1  ;;  %v474_v48 = vrot.slane %v10231_v42, 1  ;;  %v10295_v61 = vld [vmem:[%s10107_s26 + $0xb0] sm:$0xff] }
  0x27   : > { %18170 = vst [vmem:[#allocation14_spill] sm:$0xff] %v10241_v44  ;;  %v10250_v49 = vrot.slane %v10234_v43, 1  ;;  %v667_v50 = vrot.slane %v10170_v23, 2  ;;  %v10258_v51 = vrot.slane %v10124_v7, 2  ;;  %v10262_v52 = vsel %vm443_vm0, %v465_v45, %v10241_v44  ;;  %v10273_v55 = vld [vmem:[%s10107_s26 + $0x98] sm:$0x3f] }
  0x28   : > { %528 = vrot.lane.b32.xlu1 %v10180_v26, %s9987_s27  ;;  %530 = vrot.lane.b32.xlu0 %v10150_v15, %s9987_s27  ;;  %18171 = vst [vmem:[#allocation15_spill] sm:$0xff] %v10245_v46  ;;  %18174 = vst [vmem:[#allocation18_spill] sm:$0xff] %v10262_v52  ;;  %v10266_v53 = vsel %vm443_vm0, %v468_v47, %v10245_v46  ;;  %v10291_v59 = vrot.slane %v10273_v55, 1  ;;  %v471_v60 = vrot.slane %v10276_v56, 1  ;;  %v10298_v62 = vld [vmem:[%s10107_s26 + $0xb8] sm:$0x3f] }
  0x29   : > { %18172 = vst [vmem:[#allocation16_spill] sm:$0xff] %v10250_v49  ;;  %18173 = vst [vmem:[#allocation17_spill] sm:$0xff] %v10258_v51  ;;  %v10270_v54 = vsel %vm443_vm0, %v474_v48, %v10250_v49  ;;  %v10280_v57 = vsel %vm660_vm1, %v667_v50, %v10258_v51  ;;  %v10301_v63 = vld [vmem:[%s10107_s26 + $0xe0] sm:$0xff]  ;;  %v10304_v0 = vld [vmem:[%s10107_s26 + $0xe8] sm:$0x3f]  ;;  %v477_v14 = vrot.slane %v10295_v61, 1 }
  0x2a   : > { %18175 = vst [vmem:[#allocation19_spill] sm:$0xff] %v10266_v53  ;;  %18176 = vst [vmem:[#allocation20_spill] sm:$0xff] %v10270_v54  ;;  %9101 = vmatprep.mubr.msk.f32.mxu0 %vm1629_vm2, %v10280_v57  ;;  %v9340_v58 = vpack.i.bf16 %v10270_v54, %v10266_v53  ;;  %v10307_v5 = vld [vmem:[%s10107_s26 + $0x100] sm:$0xff]  ;;  %v10310_v6 = vld [vmem:[%s10107_s26 + $0x108] sm:$0x3f]  ;;  %v10317_v18 = vrot.slane %v10298_v62, 1  ;;  %v10322_v24 = vsel %vm443_vm0, %v471_v60, %v10291_v59 }
  0x2b   : > { %18177 = vst [vmem:[#allocation21_spill] sm:$0xff] %v10280_v57  ;;  %18178 = vst [vmem:[#allocation22_spill] sm:$0xff] %v10291_v59  ;;  %v480_v20 = vrot.slane %v10301_v63, 1  ;;  %v481_v25 = vrot.slane %v10304_v0, 1  ;;  %v486_v29 = vrot.slane %v10307_v5, 1  ;;  %v10343_v47 = vld [vmem:[%s10107_s26 + $0xf0] sm:$0xff] }
  0x2c   : > { %9336 = vrot.lane.b32.xlu1 %v9335_v33, %s9987_s27  ;;  %9331 = vrot.lane.b32.xlu0 %v9330_v34, %s9987_s27  ;;  %18179 = vst [vmem:[#allocation23_spill] sm:$0xff] %v10317_v18  ;;  %18180 = vst [vmem:[#allocation24_spill] sm:$0xff] %v10322_v24  ;;  %v10327_v33 = vrot.slane %v10310_v6, 1  ;;  %v10335_v34 = vsel %vm443_vm0, %v477_v14, %v10317_v18  ;;  %v10346_v48 = vld [vmem:[%s10107_s26 + $0xf8] sm:$0x3f] }
  0x2d   : > { %18182 = vst [vmem:[#allocation26_spill] sm:$0xff] %v10335_v34  ;;  %v482_v35 = vsel %vm443_vm0, %v480_v20, %v481_v25  ;;  %v10355_v60 = vrot.slane %v10346_v48, 1  ;;  %v10365_v20 = vld [vmem:[%s10107_s26 + $0x118] sm:$0x3f]  ;;  %v10371_v54 = vld [vmem:[%s10107_s26 + $0x128] sm:$0x3f] }
  0x2e   : > { %18181 = vst [vmem:[#allocation25_spill] sm:$0xff] %v10327_v33  ;;  %v10340_v45 = vsel %vm443_vm0, %v486_v29, %v10327_v33  ;;  %v10368_v29 = vld [vmem:[%s10107_s26 + $0x110] sm:$0xff]  ;;  %v10486_v30 = vld [vmem:[%s10107_s26 + $0x178] sm:$0x3f] }
  0x2f   : > { %18183 = vst [vmem:[#allocation27_spill] sm:$0xff] %v10340_v45  ;;  %v9345_v50 = vpack.i.bf16 %v10340_v45, %v482_v35  ;;  %18184 = vst [vmem:[#allocation28_spill] sm:$0xff] %v10355_v60  ;;  %v10374_v35 = vld [vmem:[%s10107_s26 + $0x120] sm:$0xff] }
  0x30   : > { %536 = vrot.lane.b32.xlu1 %v10216_v37, %s9987_s27  ;;  %534 = vrot.lane.b32.xlu0 %v10160_v19, %s9987_s27  ;;  %v10377_v45 = vld [vmem:[%s10107_s26 + $0x140] sm:$0xff]  ;;  %v10483_v37 = vld [vmem:[%s10107_s26 + $0x170] sm:$0xff] }
  0x31   : > { %v498_v53 = vrot.slane %v10377_v45, 1 }
  0x34   : > { %542 = vrot.lane.b32.xlu1 %v10164_v21, %s9987_s27  ;;  %538 = vrot.lane.b32.xlu0 %v10210_v36, %s9987_s27  ;;  %v10433_v21 = vld [vmem:[%s10107_s26 + $0x158] sm:$0x3f]  ;;  %v10439_v36 = vld [vmem:[%s10107_s26 + $0x168] sm:$0x3f] }
  0x35   : > { %v10460_v15 = vrot.slane %v10439_v36, 1 }
  0x37   : > { %18194 = vst [vmem:[#allocation38_spill] sm:$0xff] %v10460_v15 }
  0x38   : > { %546 = vrot.lane.b32.xlu1 %v10241_v44, %s9987_s27  ;;  %544 = vrot.lane.b32.xlu0 %v10262_v52, %s9987_s27  ;;  %v10436_v44 = vld [vmem:[%s10107_s26 + $0x160] sm:$0xff] }
  0x39   : > { %v504_v28 = vrot.slane %v10436_v44, 1 }
  0x3c   : > { %550 = vrot.lane.b32.xlu1 %v10245_v46, %s9987_s27  ;;  %9341 = vrot.lane.b32.xlu0 %v9340_v58, %s9987_s27  ;;  %v483_v58 = vrot.slane %v10343_v47, 1 }
  0x3e   : > { %v10362_v14 = vsel %vm443_vm0, %v483_v58, %v10355_v60  ;;  %v10386_v58 = vrot.slane %v10365_v20, 1 }
  0x3f   : > { %18185 = vst [vmem:[#allocation29_spill] sm:$0xff] %v10362_v14 }
  0x40   : > { %554 = vrot.lane.b32.xlu1 %v10291_v59, %s9987_s27  ;;  %552 = vrot.lane.b32.xlu0 %v10322_v24, %s9987_s27  ;;  %18186 = vst [vmem:[#allocation30_spill] sm:$0xff] %v10386_v58  ;;  %v492_v59 = vrot.slane %v10374_v35, 1  ;;  %v10414_v24 = vld [vmem:[%s10107_s26 + $0x138] sm:$0x3f] }
  0x44   : > { %560 = vrot.lane.b32.xlu1 %v10335_v34, %s9987_s27  ;;  %558 = vrot.lane.b32.xlu0 %v10250_v49, %s9987_s27  ;;  %v10390_v49 = vrot.slane %v10371_v54, 1 }
  0x46   : > { %18187 = vst [vmem:[#allocation31_spill] sm:$0xff] %v10390_v49 }
  0x48   : > { %9346 = vrot.lane.b32.xlu1 %v9345_v50, %s9987_s27  ;;  %562 = vrot.lane.b32.xlu0 %v10317_v18, %s9987_s27  ;;  %v10380_v50 = vld [vmem:[%s10107_s26 + $0x148] sm:$0x3f]  ;;  %v489_v18 = vrot.slane %v10368_v29, 1 }
  0x49   : > { %v10395_v46 = vrot.slane %v10380_v50, 1 }
  0x4b   : > { %18188 = vst [vmem:[#allocation32_spill] sm:$0xff] %v10395_v46  ;;  %v10411_v34 = vsel %vm443_vm0, %v498_v53, %v10395_v46  ;;  %v10430_v53 = vld [vmem:[%s10107_s26 + $0x150] sm:$0xff] }
  0x4c   : > { %568 = vrot.lane.b32.xlu1 %v10362_v14, %s9987_s27  ;;  %566 = vrot.lane.b32.xlu0 %v481_v25, %s9987_s27  ;;  %v10403_v25 = vsel %vm443_vm0, %v489_v18, %v10386_v58  ;;  %v10407_v14 = vsel %vm443_vm0, %v492_v59, %v10390_v49  ;;  %18191 = vst [vmem:[#allocation35_spill] sm:$0xff] %v10411_v34  ;;  %v10426_v59 = vrot.slane %v10414_v24, 1 }
  0x4d   : > { %18189 = vst [vmem:[#allocation33_spill] sm:$0xff] %v10403_v25  ;;  %18190 = vst [vmem:[#allocation34_spill] sm:$0xff] %v10407_v14  ;;  %v9350_v18 = vpack.i.bf16 %v10411_v34, %v10407_v14  ;;  %v501_v34 = vrot.slane %v10430_v53, 1  ;;  %v10452_v14 = vrot.slane %v10433_v21, 1 }
  0x4e   : > { %18192 = vst [vmem:[#allocation36_spill] sm:$0xff] %v10426_v59 }
  0x4f   : > { %18193 = vst [vmem:[#allocation37_spill] sm:$0xff] %v10452_v14 }
  0x50   : > { %574 = vrot.lane.b32.xlu1 %v10327_v33, %s9987_s27  ;;  %570 = vrot.lane.b32.xlu0 %v10355_v60, %s9987_s27  ;;  %v10417_v33 = vld [vmem:[%s10107_s26 + $0x130] sm:$0xff] }
  0x51   : > { %v495_v60 = vrot.slane %v10417_v33, 1 }
  0x53   : > { %v10457_v19 = vsel %vm443_vm0, %v495_v60, %v10426_v59  ;;  %v10472_v60 = vsel %vm443_vm0, %v501_v34, %v10452_v14 }
  0x54   : > { %578 = vrot.lane.b32.xlu1 %v10386_v58, %s9987_s27  ;;  %576 = vrot.lane.b32.xlu0 %v10403_v25, %s9987_s27  ;;  %v10442_v58 = vld [vmem:[%s10107_s26 + $0x180] sm:$0xff]  ;;  %v10445_v25 = vld [vmem:[%s10107_s26 + $0x188] sm:$0x3f]  ;;  %18196 = vst [vmem:[#allocation40_spill] sm:$0xff] %v10472_v60 }
  0x55   : > { %v510_v27 = vrot.slane %v10442_v58, 1 }
  0x58   : > { %582 = vrot.lane.b32.xlu1 %v10390_v49, %s9987_s27  ;;  %9351 = vrot.lane.b32.xlu0 %v9350_v18, %s9987_s27  ;;  %v10464_v49 = vrot.slane %v10445_v25, 1  ;;  %v10476_v18 = vsel %vm443_vm0, %v504_v28, %v10460_v15  ;;  %v507_v28 = vrot.slane %v10483_v37, 1 }
  0x59   : > { %18197 = vst [vmem:[#allocation41_spill] sm:$0xff] %v10476_v18 }
  0x5a   : > { %18195 = vst [vmem:[#allocation39_spill] sm:$0xff] %v10464_v49  ;;  %v10480_v52 = vsel %vm443_vm0, %v510_v27, %v10464_v49 }
  0x5b   : > { %18198 = vst [vmem:[#allocation42_spill] sm:$0xff] %v10480_v52  ;;  %v9355_v34 = vpack.i.bf16 %v10480_v52, %v10476_v18 }
  0x5c   : > { %586 = vrot.lane.b32.xlu1 %v10426_v59, %s9987_s27  ;;  %584 = vrot.lane.b32.xlu0 %v10457_v19, %s9987_s27  ;;  %v10496_v59 = vrot.slane %v10486_v30, 1 }
  0x5e   : > { %18199 = vst [vmem:[#allocation43_spill] sm:$0xff] %v10496_v59  ;;  %v10503_v27 = vsel %vm443_vm0, %v507_v28, %v10496_v59  ;;  %v661_v28 = vrot.slane %v10167_v22, 2  ;;  %v10536_v22 = vrot.slane %v10110_v1, 2 }
  0x5f   : > { %18200 = vst [vmem:[#allocation44_spill] sm:$0xff] %v10503_v27 }
  0x60   : > { %592 = vrot.lane.b32.xlu1 %v10472_v60, %s9987_s27  ;;  %590 = vrot.lane.b32.xlu0 %v10395_v46, %s9987_s27  ;;  %v10506_v60 = vld [vmem:[%s10107_s26 + $0x198] sm:$0x3f]  ;;  %v10509_v46 = vld [vmem:[%s10107_s26 + $0x190] sm:$0xff]  ;;  %18203 = vst [vmem:[#allocation47_spill] sm:$0xff] %v10536_v22 }
  0x61   : > { %v10516_v52 = vrot.slane %v10506_v60, 1 }
  0x63   : > { %18201 = vst [vmem:[#allocation45_spill] sm:$0xff] %v10516_v52 }
  0x64   : > { %9356 = vrot.lane.b32.xlu1 %v9355_v34, %s9987_s27  ;;  %594 = vrot.lane.b32.xlu0 %v10452_v14, %s9987_s27  ;;  %v513_v34 = vrot.slane %v10509_v46, 1  ;;  %v662_v14 = vrot.slane %v10113_v2, 2 }
  0x66   : > { %v10527_v18 = vsel %vm443_vm0, %v513_v34, %v10516_v52  ;;  %v670_v34 = vrot.slane %v10127_v8, 2 }
  0x67   : > { %18202 = vst [vmem:[#allocation46_spill] sm:$0xff] %v10527_v18 }
  0x68   : > { %600 = vrot.lane.b32.xlu1 %v10503_v27, %s9987_s27  ;;  %598 = vrot.lane.b32.xlu0 %v10460_v15, %s9987_s27  ;;  %v663_v15 = vsel %vm660_vm1, %v661_v28, %v662_v14  ;;  %v10543_v28 = vrot.slane %v10133_v10, 2 }
  0x69   : > { %v9360_v2 = vpack.i.bf16 %v10280_v57, %v663_v15  ;;  %v10551_v57 = vrot.slane %v10153_v16, 2 }
  0x6a   : > { %18204 = vst [vmem:[#allocation48_spill] sm:$0xff] %v10543_v28 }
  0x6b   : > { %18206 = vst [vmem:[#allocation50_spill] sm:$0xff] %v10551_v57 }
  0x6c   : > { %606 = vrot.lane.b32.xlu1 %v10464_v49, %s9987_s27  ;;  %602 = vrot.lane.b32.xlu0 %v10496_v59, %s9987_s27  ;;  %v664_v49 = vrot.slane %v10116_v3, 2  ;;  %v679_v59 = vrot.slane %v10139_v12, 2 }
  0x6e   : > { %v10548_v15 = vsel %vm660_vm1, %v664_v49, %v10536_v22 }
  0x6f   : > { %18205 = vst [vmem:[#allocation49_spill] sm:$0xff] %v10548_v15 }
  0x70   : > { %610 = vrot.lane.b32.xlu1 %v10516_v52, %s9987_s27  ;;  %608 = vrot.lane.b32.xlu0 %v10527_v18, %s9987_s27  ;;  %v673_v52 = vrot.slane %v10136_v11, 2 }
  0x72   : > { %v10567_v49 = vsel %vm660_vm1, %v673_v52, %v10551_v57 }
  0x73   : > { %18209 = vst [vmem:[#allocation53_spill] sm:$0xff] %v10567_v49 }
  0x74   : > { %735 = vrot.lane.b32.xlu1 %v662_v14, %s18029_s28  ;;  %9361 = vrot.lane.b32.xlu0 %v9360_v2, %s18029_s28  ;;  %v10555_v14 = vrot.slane %v10156_v17, 2  ;;  %v10563_v2 = vsel %vm660_vm1, %v670_v34, %v10543_v28  ;;  %v676_v34 = vrot.slane %v10196_v31, 2 }
  0x75   : > { %18208 = vst [vmem:[#allocation52_spill] sm:$0xff] %v10563_v2 }
  0x76   : > { %18207 = vst [vmem:[#allocation51_spill] sm:$0xff] %v10555_v14  ;;  %v10571_v18 = vsel %vm660_vm1, %v679_v59, %v10555_v14  ;;  %v10595_v59 = vrot.slane %v10219_v38, 2 }
  0x77   : > { %18210 = vst [vmem:[#allocation54_spill] sm:$0xff] %v10571_v18 }
  0x78   : > { %739 = vrot.lane.b32.xlu1 %v10536_v22, %s18029_s28  ;;  %737 = vrot.lane.b32.xlu0 %v10548_v15, %s18029_s28  ;;  %v9365_v22 = vpack.i.bf16 %v10571_v18, %v10567_v49  ;;  %v10581_v15 = vrot.slane %v10199_v32, 2  ;;  %18213 = vst [vmem:[#allocation57_spill] sm:$0xff] %v10595_v59  ;;  %v682_v18 = vrot.slane %v10222_v39, 2  ;;  %v691_v49 = vrot.slane %v10231_v42, 2 }
  0x7a   : > { %18211 = vst [vmem:[#allocation55_spill] sm:$0xff] %v10581_v15  ;;  %v10588_v52 = vsel %vm660_vm1, %v676_v34, %v10581_v15  ;;  %v10604_v34 = vrot.slane %v10234_v43, 2 }
  0x7b   : > { %18212 = vst [vmem:[#allocation56_spill] sm:$0xff] %v10588_v52 }
  0x7c   : > { %745 = vrot.lane.b32.xlu1 %v10563_v2, %s18029_s28  ;;  %743 = vrot.lane.b32.xlu0 %v10258_v51, %s18029_s28  ;;  %18215 = vst [vmem:[#allocation59_spill] sm:$0xff] %v10604_v34  ;;  %v10620_v51 = vsel %vm660_vm1, %v691_v49, %v10604_v34  ;;  %v10637_v49 = vrot.slane %v10298_v62, 2  ;;  %v10647_v2 = vrot.slane %v10310_v6, 2 }
  0x7d   : > { %18218 = vst [vmem:[#allocation62_spill] sm:$0xff] %v10620_v51 }
  0x7e   : > { %18220 = vst [vmem:[#allocation64_spill] sm:$0xff] %v10637_v49  ;;  %18222 = vst [vmem:[#allocation66_spill] sm:$0xff] %v10647_v2 }
  0x80   : > { %9366 = vrot.lane.b32.xlu1 %v9365_v22, %s18029_s28  ;;  %747 = vrot.lane.b32.xlu0 %v10543_v28, %s18029_s28  ;;  %v10599_v22 = vrot.slane %v10225_v40, 2  ;;  %v685_v28 = vrot.slane %v10228_v41, 2 }
  0x82   : > { %18214 = vst [vmem:[#allocation58_spill] sm:$0xff] %v10599_v22 }
  0x84   : > { %753 = vrot.lane.b32.xlu1 %v10588_v52, %s18029_s28  ;;  %751 = vrot.lane.b32.xlu0 %v10551_v57, %s18029_s28  ;;  %v10612_v57 = vsel %vm660_vm1, %v682_v18, %v10595_v59  ;;  %v10616_v52 = vsel %vm660_vm1, %v685_v28, %v10599_v22  ;;  %v10629_v18 = vrot.slane %v10273_v55, 2  ;;  %v694_v28 = vrot.slane %v10295_v61, 2 }
  0x85   : > { %18216 = vst [vmem:[#allocation60_spill] sm:$0xff] %v10612_v57  ;;  %18217 = vst [vmem:[#allocation61_spill] sm:$0xff] %v10616_v52 }
  0x86   : > { %18219 = vst [vmem:[#allocation63_spill] sm:$0xff] %v10629_v18 }
  0x88   : > { %759 = vrot.lane.b32.xlu1 %v10555_v14, %s18029_s28  ;;  %755 = vrot.lane.b32.xlu0 %v10581_v15, %s18029_s28  ;;  %v9370_v14 = vpack.i.bf16 %v10620_v51, %v10616_v52  ;;  %v688_v15 = vrot.slane %v10276_v56, 2  ;;  %v698_v52 = vrot.slane %v10304_v0, 2 }
  0x8a   : > { %v10642_v51 = vsel %vm660_vm1, %v688_v15, %v10629_v18 }
  0x8b   : > { %18221 = vst [vmem:[#allocation65_spill] sm:$0xff] %v10642_v51 }
  0x8c   : > { %763 = vrot.lane.b32.xlu1 %v10595_v59, %s18029_s28  ;;  %761 = vrot.lane.b32.xlu0 %v10612_v57, %s18029_s28  ;;  %v697_v59 = vrot.slane %v10301_v63, 2  ;;  %v703_v57 = vrot.slane %v10307_v5, 2  ;;  %v10659_v63 = vsel %vm660_vm1, %v694_v28, %v10637_v49  ;;  %v700_v28 = vrot.slane %v10343_v47, 2 }
  0x8d   : > { %18225 = vst [vmem:[#allocation69_spill] sm:$0xff] %v10659_v63 }
  0x8e   : > { %v699_v0 = vsel %vm660_vm1, %v697_v59, %v698_v52  ;;  %v10664_v15 = vsel %vm660_vm1, %v703_v57, %v10647_v2  ;;  %v10677_v59 = vrot.slane %v10346_v48, 2 }
  0x8f   : > { %18226 = vst [vmem:[#allocation70_spill] sm:$0xff] %v10664_v15 }
  0x90   : > { %767 = vrot.lane.b32.xlu1 %v10599_v22, %s18029_s28  ;;  %9371 = vrot.lane.b32.xlu0 %v9370_v14, %s18029_s28  ;;  %18229 = vst [vmem:[#allocation73_spill] sm:$0xff] %v10677_v59 }
  0x92   : > { %v10649_v22 = vpop.permute.xlu1 %522  ;;  %v10651_v14 = vpop.permute.xlu0 %518 }
  0x93   : > { %18223 = vst [vmem:[#allocation67_spill] sm:$0xff] %v10649_v22  ;;  %18224 = vst [vmem:[#allocation68_spill] sm:$0xff] %v10651_v14  ;;  %v9375_v14 = vpack.i.bf16 %v10664_v15, %v699_v0  ;;  %v706_v15 = vrot.slane %v10368_v29, 2 }
  0x94   : > { %771 = vrot.lane.b32.xlu1 %v10629_v18, %s18029_s28  ;;  %769 = vrot.lane.b32.xlu0 %v10642_v51, %s18029_s28 }
  0x96   : > { %v10666_v27 = vpop.permute.xlu1 %520  ;;  %v10668_v22 = vpop.permute.xlu0 %526 }
  0x97   : > { %18227 = vst [vmem:[#allocation71_spill] sm:$0xff] %v10666_v27  ;;  %18228 = vst [vmem:[#allocation72_spill] sm:$0xff] %v10668_v22  ;;  %v10688_v22 = vsel %vm660_vm1, %v700_v28, %v10677_v59  ;;  %v709_v28 = vrot.slane %v10374_v35, 2 }
  0x98   : > { %777 = vrot.lane.b32.xlu1 %v10659_v63, %s18029_s28  ;;  %775 = vrot.lane.b32.xlu0 %v10604_v34, %s18029_s28  ;;  %18232 = vst [vmem:[#allocation76_spill] sm:$0xff] %v10688_v22  ;;  %v10696_v34 = vrot.slane %v10365_v20, 2 }
  0x9a   : > { %v10679_v18 = vpop.permute.xlu1 %528  ;;  %v10681_v57 = vpop.permute.xlu0 %530  ;;  %18235 = vst [vmem:[#allocation79_spill] sm:$0xff] %v10696_v34 }
  0x9b   : > { %18230 = vst [vmem:[#allocation74_spill] sm:$0xff] %v10679_v18  ;;  %18231 = vst [vmem:[#allocation75_spill] sm:$0xff] %v10681_v57  ;;  %v715_v57 = vrot.slane %v10377_v45, 2 }
  0x9c   : > { %9376 = vrot.lane.b32.xlu1 %v9375_v14, %s18029_s28  ;;  %779 = vrot.lane.b32.xlu0 %v10637_v49, %s18029_s28  ;;  %v10702_v14 = vrot.slane %v10371_v54, 2 }
  0x9e   : > { %v10690_v27 = vpop.permute.xlu1 %9336  ;;  %v10692_v0 = vpop.permute.xlu0 %9331  ;;  %18236 = vst [vmem:[#allocation80_spill] sm:$0xff] %v10702_v14  ;;  %v10723_v49 = vsel %vm660_vm1, %v709_v28, %v10702_v14  ;;  %v10740_v28 = vrot.slane %v10414_v24, 2 }
  0x9f   : > { %18233 = vst [vmem:[#allocation77_spill] sm:$0xff] %v10690_v27  ;;  %18234 = vst [vmem:[#allocation78_spill] sm:$0xff] %v10692_v0  ;;  %v10707_v27 = vrot.slane %v10380_v50, 2 }
  0xa0   : > { %785 = vrot.lane.b32.xlu1 %v10688_v22, %s18029_s28  ;;  %783 = vrot.lane.b32.xlu0 %v698_v52, %s18029_s28  ;;  %v10719_v52 = vsel %vm660_vm1, %v706_v15, %v10696_v34  ;;  %18241 = vst [vmem:[#allocation85_spill] sm:$0xff] %v10723_v49  ;;  %18245 = vst [vmem:[#allocation89_spill] sm:$0xff] %v10740_v28 }
  0xa1   : > { %18237 = vst [vmem:[#allocation81_spill] sm:$0xff] %v10707_v27  ;;  %18240 = vst [vmem:[#allocation84_spill] sm:$0xff] %v10719_v52  ;;  %v10727_v22 = vsel %vm660_vm1, %v715_v57, %v10707_v27 }
  0xa2   : > { %v10709_v18 = vpop.permute.xlu1 %536  ;;  %v10711_v0 = vpop.permute.xlu0 %534  ;;  %18242 = vst [vmem:[#allocation86_spill] sm:$0xff] %v10727_v22  ;;  %v9380_v15 = vpack.i.bf16 %v10727_v22, %v10723_v49  ;;  %v10756_v22 = vrot.slane %v10433_v21, 2  ;;  %v721_v49 = vrot.slane %v10436_v44, 2 }
  0xa3   : > { %18238 = vst [vmem:[#allocation82_spill] sm:$0xff] %v10709_v18  ;;  %18239 = vst [vmem:[#allocation83_spill] sm:$0xff] %v10711_v0 }
  0xa4   : > { %791 = vrot.lane.b32.xlu1 %v10647_v2, %s18029_s28  ;;  %787 = vrot.lane.b32.xlu0 %v10677_v59, %s18029_s28  ;;  %v712_v2 = vrot.slane %v10417_v33, 2  ;;  %18249 = vst [vmem:[#allocation93_spill] sm:$0xff] %v10756_v22 }
  0xa6   : > { %v10729_v18 = vpop.permute.xlu1 %542  ;;  %v10731_v0 = vpop.permute.xlu0 %538 }
  0xa7   : > { %18243 = vst [vmem:[#allocation87_spill] sm:$0xff] %v10729_v18  ;;  %18244 = vst [vmem:[#allocation88_spill] sm:$0xff] %v10731_v0  ;;  %v10752_v18 = vsel %vm660_vm1, %v712_v2, %v10740_v28  ;;  %v718_v0 = vrot.slane %v10430_v53, 2 }
  0xa8   : > { %795 = vrot.lane.b32.xlu1 %v10696_v34, %s18029_s28  ;;  %793 = vrot.lane.b32.xlu0 %v10719_v52, %s18029_s28  ;;  %18248 = vst [vmem:[#allocation92_spill] sm:$0xff] %v10752_v18 }
  0xa9   : > { %v10776_v2 = vsel %vm660_vm1, %v718_v0, %v10756_v22 }
  0xaa   : > { %v10743_v57 = vpop.permute.xlu1 %546  ;;  %v10745_v59 = vpop.permute.xlu0 %544  ;;  %18254 = vst [vmem:[#allocation98_spill] sm:$0xff] %v10776_v2 }
  0xab   : > { %18246 = vst [vmem:[#allocation90_spill] sm:$0xff] %v10743_v57  ;;  %18247 = vst [vmem:[#allocation91_spill] sm:$0xff] %v10745_v59  ;;  %v10760_v57 = vrot.slane %v10439_v36, 2  ;;  %v727_v59 = vrot.slane %v10442_v58, 2 }
  0xac   : > { %799 = vrot.lane.b32.xlu1 %v10702_v14, %s18029_s28  ;;  %9381 = vrot.lane.b32.xlu0 %v9380_v15, %s18029_s28  ;;  %v10764_v14 = vrot.slane %v10445_v25, 2 }
  0xad   : > { %18250 = vst [vmem:[#allocation94_spill] sm:$0xff] %v10760_v57  ;;  %v10780_v52 = vsel %vm660_vm1, %v721_v49, %v10760_v57  ;;  %v724_v49 = vrot.slane %v10483_v37, 2 }
  0xae   : > { %18251 = vst [vmem:[#allocation95_spill] sm:$0xff] %v10764_v14  ;;  %v10766_v15 = vpop.permute.xlu1 %550  ;;  %v10768_v34 = vpop.permute.xlu0 %9341  ;;  %18255 = vst [vmem:[#allocation99_spill] sm:$0xff] %v10780_v52  ;;  %v10784_v63 = vsel %vm660_vm1, %v727_v59, %v10764_v14 }
  0xaf   : > { %18252 = vst [vmem:[#allocation96_spill] sm:$0xff] %v10766_v15  ;;  %18253 = vst [vmem:[#allocation97_spill] sm:$0xff] %v10768_v34  ;;  %v9385_v0 = vpack.i.bf16 %v10784_v63, %v10780_v52 }
  0xb0   : > { %803 = vrot.lane.b32.xlu1 %v10740_v28, %s18029_s28  ;;  %801 = vrot.lane.b32.xlu0 %v10752_v18, %s18029_s28  ;;  %18256 = vst [vmem:[#allocation100_spill] sm:$0xff] %v10784_v63  ;;  %v10798_v28 = vrot.slane %v10486_v30, 2 }
  0xb2   : > { %v10786_v15 = vpop.permute.xlu1 %554  ;;  %v10788_v34 = vpop.permute.xlu0 %552  ;;  %18259 = vst [vmem:[#allocation103_spill] sm:$0xff] %v10798_v28 }
  0xb3   : > { %18257 = vst [vmem:[#allocation101_spill] sm:$0xff] %v10786_v15  ;;  %18258 = vst [vmem:[#allocation102_spill] sm:$0xff] %v10788_v34  ;;  %v10809_v34 = vsel %vm660_vm1, %v724_v49, %v10798_v28 }
  0xb4   : > { %809 = vrot.lane.b32.xlu1 %v10776_v2, %s18029_s28  ;;  %807 = vrot.lane.b32.xlu0 %v10707_v27, %s18029_s28  ;;  %18262 = vst [vmem:[#allocation106_spill] sm:$0xff] %v10809_v34 }
  0xb6   : > { %v10800_v59 = vpop.permute.xlu1 %560  ;;  %v10802_v18 = vpop.permute.xlu0 %558 }
  0xb7   : > { %18260 = vst [vmem:[#allocation104_spill] sm:$0xff] %v10800_v59  ;;  %18261 = vst [vmem:[#allocation105_spill] sm:$0xff] %v10802_v18  ;;  %v10820_v18 = vrot.slane %v10506_v60, 2 }
  0xb8   : > { %9386 = vrot.lane.b32.xlu1 %v9385_v0, %s18029_s28  ;;  %811 = vrot.lane.b32.xlu0 %v10756_v22, %s18029_s28  ;;  %v730_v0 = vrot.slane %v10509_v46, 2 }
  0xb9   : > { %18265 = vst [vmem:[#allocation109_spill] sm:$0xff] %v10820_v18 }
  0xba   : > { %v10811_v15 = vpop.permute.xlu1 %9346  ;;  %v10813_v63 = vpop.permute.xlu0 %562  ;;  %v10833_v49 = vsel %vm660_vm1, %v730_v0, %v10820_v18 }
  0xbb   : > { %18263 = vst [vmem:[#allocation107_spill] sm:$0xff] %v10811_v15  ;;  %18264 = vst [vmem:[#allocation108_spill] sm:$0xff] %v10813_v63 }
  0xbc   : > { %817 = vrot.lane.b32.xlu1 %v10809_v34, %s18029_s28  ;;  %815 = vrot.lane.b32.xlu0 %v10760_v57, %s18029_s28  ;;  %18268 = vst [vmem:[#allocation112_spill] sm:$0xff] %v10833_v49 }
  0xbe   : > { %v10823_v59 = vpop.permute.xlu1 %568  ;;  %v10825_v22 = vpop.permute.xlu0 %566 }
  0xbf   : > { %18266 = vst [vmem:[#allocation110_spill] sm:$0xff] %v10823_v59  ;;  %18267 = vst [vmem:[#allocation111_spill] sm:$0xff] %v10825_v22  ;;  %v9390_v22 = vpack.i.bf16 %v10127_v8, %v10116_v3 }
  0xc0   : > { %823 = vrot.lane.b32.xlu1 %v10764_v14, %s18029_s28  ;;  %819 = vrot.lane.b32.xlu0 %v10798_v28, %s18029_s28 }
  0xc2   : > { %v10835_v63 = vpop.permute.xlu1 %574  ;;  %v10837_v15 = vpop.permute.xlu0 %570 }
  0xc3   : > { %18269 = vst [vmem:[#allocation113_spill] sm:$0xff] %v10835_v63  ;;  %18270 = vst [vmem:[#allocation114_spill] sm:$0xff] %v10837_v15  ;;  %v18351_v15 = vld [vmem:[#allocation33_spill] sm:$0xff] }
  0xc4   : > { %827 = vrot.lane.b32.xlu1 %v10820_v18, %s18029_s28  ;;  %825 = vrot.lane.b32.xlu0 %v10833_v49, %s18029_s28 }
  0xc6   : > { %v10845_v59 = vpop.permute.xlu1 %578  ;;  %v10847_v14 = vpop.permute.xlu0 %576 }
  0xc7   : > { %18271 = vst [vmem:[#allocation115_spill] sm:$0xff] %v10845_v59  ;;  %18272 = vst [vmem:[#allocation116_spill] sm:$0xff] %v10847_v14  ;;  %v18343_v14 = vld [vmem:[#allocation22_spill] sm:$0xff] }
  0xc8   : > { %883 = vrot.lane.b32.xlu1 %v10110_v1, %s9989_s29  ;;  %9391 = vrot.lane.b32.xlu0 %v9390_v22, %s9989_s29  ;;  %v9395_v1 = vpack.i.bf16 %v10222_v39, %v10196_v31 }
  0xca   : > { %v10852_v0 = vpop.permute.xlu1 %582  ;;  %v10854_v63 = vpop.permute.xlu0 %9351 }
  0xcb   : > { %18273 = vst [vmem:[#allocation117_spill] sm:$0xff] %v10852_v0  ;;  %18274 = vst [vmem:[#allocation118_spill] sm:$0xff] %v10854_v63 }
  0xcc   : > { %887 = vrot.lane.b32.xlu1 %v10124_v7, %s9989_s29  ;;  %885 = vrot.lane.b32.xlu0 %v10170_v23, %s9989_s29 }
  0xce   : > { %v10860_v3 = vpop.permute.xlu1 %586  ;;  %v10862_v8 = vpop.permute.xlu0 %584 }
  0xcf   : > { %18275 = vst [vmem:[#allocation119_spill] sm:$0xff] %v10860_v3  ;;  %18276 = vst [vmem:[#allocation120_spill] sm:$0xff] %v10862_v8  ;;  %v18330_v8 = vld [vmem:[#allocation12_spill] sm:$0xff] }
  0xd0   : > { %893 = vrot.lane.b32.xlu1 %v10136_v11, %s9989_s29  ;;  %891 = vrot.lane.b32.xlu0 %v10133_v10, %s9989_s29 }
  0xd2   : > { %v10870_v22 = vpop.permute.xlu1 %592  ;;  %v10872_v0 = vpop.permute.xlu0 %590 }
  0xd3   : > { %18277 = vst [vmem:[#allocation121_spill] sm:$0xff] %v10870_v22  ;;  %18278 = vst [vmem:[#allocation122_spill] sm:$0xff] %v10872_v0  ;;  %v18326_v22 = vld [vmem:[#allocation7_spill] sm:$0xff] }
  0xd4   : > { %9396 = vrot.lane.b32.xlu1 %v9395_v1, %s9989_s29  ;;  %895 = vrot.lane.b32.xlu0 %v10153_v16, %s9989_s29 }
  0xd6   : > { %v10877_v7 = vpop.permute.xlu1 %9356  ;;  %v10879_v23 = vpop.permute.xlu0 %594 }
  0xd7   : > { %18279 = vst [vmem:[#allocation123_spill] sm:$0xff] %v10877_v7  ;;  %18280 = vst [vmem:[#allocation124_spill] sm:$0xff] %v10879_v23 }
  0xd8   : > { %901 = vrot.lane.b32.xlu1 %v10139_v12, %s9989_s29  ;;  %899 = vrot.lane.b32.xlu0 %v10199_v32, %s9989_s29  ;;  %v9400_v12 = vpack.i.bf16 %v10295_v61, %v10276_v56  ;;  %v10932_v61 = vld [vmem:[%s10107_s26 + $0xc8] sm:$0x3f] }
  0xda   : > { %v10885_v10 = vpop.permute.xlu1 %600  ;;  %v10887_v11 = vpop.permute.xlu0 %598 }
  0xdb   : > { %18281 = vst [vmem:[#allocation125_spill] sm:$0xff] %v10885_v10  ;;  %18282 = vst [vmem:[#allocation126_spill] sm:$0xff] %v10887_v11  ;;  %v18320_v11 = vld [vmem:[#allocation13_spill] sm:$0xff]  ;;  %v18321_v10 = vld [vmem:[#allocation18_spill] sm:$0xff] }
  0xdc   : > { %907 = vrot.lane.b32.xlu1 %v10219_v38, %s9989_s29  ;;  %903 = vrot.lane.b32.xlu0 %v10156_v17, %s9989_s29 }
  0xde   : > { %v10893_v16 = vpop.permute.xlu1 %606  ;;  %v10895_v31 = vpop.permute.xlu0 %602 }
  0xdf   : > { %18283 = vst [vmem:[#allocation127_spill] sm:$0xff] %v10893_v16  ;;  %18284 = vst [vmem:[#allocation128_spill] sm:$0xff] %v10895_v31  ;;  %v9425_v31 = vpack.i.bf16 %v18321_v10, %v18320_v11 }
  0xe0   : > { %911 = vrot.lane.b32.xlu1 %v10225_v40, %s9989_s29  ;;  %909 = vrot.lane.b32.xlu0 %v10228_v41, %s9989_s29  ;;  %v10919_v40 = vld [vmem:[%s10107_s26 + $0xc0] sm:$0xff] }
  0xe2   : > { %v10903_v32 = vpop.permute.xlu1 %610  ;;  %v10905_v38 = vpop.permute.xlu0 %608 }
  0xe3   : > { %18285 = vst [vmem:[#allocation129_spill] sm:$0xff] %v10903_v32  ;;  %18286 = vst [vmem:[#allocation130_spill] sm:$0xff] %v10905_v38 }
  0xe4   : > { %915 = vrot.lane.b32.xlu1 %v10273_v55, %s9989_s29  ;;  %9401 = vrot.lane.b32.xlu0 %v9400_v12, %s9989_s29  ;;  %v9405_v55 = vpack.i.bf16 %v10368_v29, %v10343_v47 }
  0xe6   : > { %v10910_v17 = vpop.permute.xlu1 %735  ;;  %v10912_v39 = vpop.permute.xlu0 %9361 }
  0xe7   : > { %18287 = vst [vmem:[#allocation131_spill] sm:$0xff] %v10910_v17  ;;  %18288 = vst [vmem:[#allocation132_spill] sm:$0xff] %v10912_v39  ;;  %v18396_v39 = vld [vmem:[#allocation52_spill] sm:$0xff] }
  0xe8   : > { %919 = vrot.lane.b32.xlu1 %v10234_v43, %s9989_s29  ;;  %917 = vrot.lane.b32.xlu0 %v10231_v42, %s9989_s29 }
  0xea   : > { %v10921_v41 = vpop.permute.xlu1 %739  ;;  %v10923_v56 = vpop.permute.xlu0 %737 }
  0xeb   : > { %18289 = vst [vmem:[#allocation133_spill] sm:$0xff] %v10921_v41  ;;  %18290 = vst [vmem:[#allocation134_spill] sm:$0xff] %v10923_v56  ;;  %v18391_v56 = vld [vmem:[#allocation45_spill] sm:$0xff] }
  0xec   : > { %925 = vrot.lane.b32.xlu1 %v10919_v40, %s9989_s29  ;;  %923 = vrot.lane.b32.xlu0 %v10298_v62, %s9989_s29 }
  0xee   : > { %v10934_v43 = vpop.permute.xlu1 %745  ;;  %v10936_v42 = vpop.permute.xlu0 %743 }
  0xef   : > { %18291 = vst [vmem:[#allocation135_spill] sm:$0xff] %v10934_v43  ;;  %18292 = vst [vmem:[#allocation136_spill] sm:$0xff] %v10936_v42  ;;  %v18379_v43 = vld [vmem:[#allocation41_spill] sm:$0xff] }
  0xf0   : > { %9406 = vrot.lane.b32.xlu1 %v9405_v55, %s9989_s29  ;;  %927 = vrot.lane.b32.xlu0 %v10932_v61, %s9989_s29 }
  0xf2   : > { %v10941_v1 = vpop.permute.xlu1 %9366  ;;  %v10943_v12 = vpop.permute.xlu0 %747 }
  0xf3   : > { %18293 = vst [vmem:[#allocation137_spill] sm:$0xff] %v10941_v1  ;;  %18294 = vst [vmem:[#allocation138_spill] sm:$0xff] %v10943_v12  ;;  %v18373_v1 = vld [vmem:[#allocation32_spill] sm:$0xff]  ;;  %v18383_v12 = vld [vmem:[#allocation38_spill] sm:$0xff] }
  0xf4   : > { %933 = vrot.lane.b32.xlu1 %v10307_v5, %s9989_s29  ;;  %931 = vrot.lane.b32.xlu0 %v10346_v48, %s9989_s29  ;;  %v9410_v5 = vpack.i.bf16 %v10430_v53, %v10417_v33 }
  0xf6   : > { %v10949_v62 = vpop.permute.xlu1 %753  ;;  %v10951_v47 = vpop.permute.xlu0 %751 }
  0xf7   : > { %18295 = vst [vmem:[#allocation139_spill] sm:$0xff] %v10949_v62  ;;  %18296 = vst [vmem:[#allocation140_spill] sm:$0xff] %v10951_v47  ;;  %v18365_v47 = vld [vmem:[#allocation40_spill] sm:$0xff] }
  0xf8   : > { %939 = vrot.lane.b32.xlu1 %v10365_v20, %s9989_s29  ;;  %935 = vrot.lane.b32.xlu0 %v10310_v6, %s9989_s29  ;;  %v9440_v62 = vpack.i.bf16 %v18365_v47, %v10457_v19 }
  0xfa   : > { %v10957_v29 = vpop.permute.xlu1 %759  ;;  %v10959_v55 = vpop.permute.xlu0 %755 }
  0xfb   : > { %18297 = vst [vmem:[#allocation141_spill] sm:$0xff] %v10957_v29  ;;  %18298 = vst [vmem:[#allocation142_spill] sm:$0xff] %v10959_v55  ;;  %v18361_v29 = vld [vmem:[#allocation30_spill] sm:$0xff]  ;;  %v18366_v55 = vld [vmem:[#allocation31_spill] sm:$0xff] }
  0xfc   : > { %943 = vrot.lane.b32.xlu1 %v10371_v54, %s9989_s29  ;;  %941 = vrot.lane.b32.xlu0 %v10374_v35, %s9989_s29 }
  0xfe   : > { %v10967_v48 = vpop.permute.xlu1 %763  ;;  %v10969_v38 = vpop.permute.xlu0 %761 }
  0xff   : > { %18299 = vst [vmem:[#allocation143_spill] sm:$0xff] %v10967_v48  ;;  %18300 = vst [vmem:[#allocation144_spill] sm:$0xff] %v10969_v38 }
 0x100   : > { %947 = vrot.lane.b32.xlu1 %v10414_v24, %s9989_s29  ;;  %9411 = vrot.lane.b32.xlu0 %v9410_v5, %s9989_s29  ;;  %v9415_v24 = vpack.i.bf16 %v10509_v46, %v10483_v37 }
 0x102   : > { %v10974_v6 = vpop.permute.xlu1 %767  ;;  %v10976_v20 = vpop.permute.xlu0 %9371 }
 0x103   : > { %18301 = vst [vmem:[#allocation145_spill] sm:$0xff] %v10974_v6  ;;  %18302 = vst [vmem:[#allocation146_spill] sm:$0xff] %v10976_v20 }
 0x104   : > { %951 = vrot.lane.b32.xlu1 %v10380_v50, %s9989_s29  ;;  %949 = vrot.lane.b32.xlu0 %v10377_v45, %s9989_s29 }
 0x106   : > { %v10982_v54 = vpop.permute.xlu1 %771  ;;  %v10984_v33 = vpop.permute.xlu0 %769 }
 0x107   : > { %18303 = vst [vmem:[#allocation147_spill] sm:$0xff] %v10982_v54  ;;  %18304 = vst [vmem:[#allocation148_spill] sm:$0xff] %v10984_v33  ;;  %v18358_v33 = vld [vmem:[#allocation28_spill] sm:$0xff] }
 0x108   : > { %957 = vrot.lane.b32.xlu1 %v10436_v44, %s9989_s29  ;;  %955 = vrot.lane.b32.xlu0 %v10433_v21, %s9989_s29  ;;  %v11019_v44 = vld [vmem:[%s10107_s26 + $0x1a0] sm:$0xff] }
 0x10a   : > { %v10992_v35 = vpop.permute.xlu1 %777  ;;  %v10994_v50 = vpop.permute.xlu0 %775 }
 0x10b   : > { %18305 = vst [vmem:[#allocation149_spill] sm:$0xff] %v10992_v35  ;;  %18306 = vst [vmem:[#allocation150_spill] sm:$0xff] %v10994_v50  ;;  %v18352_v50 = vld [vmem:[#allocation23_spill] sm:$0xff] }
 0x10c   : > { %9416 = vrot.lane.b32.xlu1 %v9415_v24, %s9989_s29  ;;  %959 = vrot.lane.b32.xlu0 %v10439_v36, %s9989_s29  ;;  %v11016_v36 = vld [vmem:[%s10107_s26 + $0x1a8] sm:$0x3f] }
 0x10e   : > { %v10999_v45 = vpop.permute.xlu1 %9376  ;;  %v11001_v53 = vpop.permute.xlu0 %779 }
 0x10f   : > { %18307 = vst [vmem:[#allocation151_spill] sm:$0xff] %v10999_v45  ;;  %18308 = vst [vmem:[#allocation152_spill] sm:$0xff] %v11001_v53 }
 0x110   : > { %965 = vrot.lane.b32.xlu1 %v10442_v58, %s9989_s29  ;;  %963 = vrot.lane.b32.xlu0 %v10486_v30, %s9989_s29  ;;  %v9420_v30 = vpack.i.bf16 %v10180_v26, %v10146_v13  ;;  %v18317_v13 = vld [vmem:[#allocation11_spill] sm:$0xff] }
 0x112   : > { %v11007_v21 = vpop.permute.xlu1 %785  ;;  %v11009_v37 = vpop.permute.xlu0 %783 }
 0x113   : > { %18309 = vst [vmem:[#allocation153_spill] sm:$0xff] %v11007_v21  ;;  %18310 = vst [vmem:[#allocation154_spill] sm:$0xff] %v11009_v37  ;;  %v18350_v21 = vld [vmem:[#allocation29_spill] sm:$0xff] }
 0x114   : > { %971 = vrot.lane.b32.xlu1 %v10506_v60, %s9989_s29  ;;  %967 = vrot.lane.b32.xlu0 %v10445_v25, %s9989_s29  ;;  %v9435_v45 = vpack.i.bf16 %v18351_v15, %v18350_v21  ;;  %v18357_v21 = vld [vmem:[#allocation27_spill] sm:$0xff] }
 0x116   : > { %v11021_v46 = vpop.permute.xlu1 %791  ;;  %v11023_v58 = vpop.permute.xlu0 %787 }
 0x117   : > { %18311 = vst [vmem:[#allocation155_spill] sm:$0xff] %v11021_v46  ;;  %18312 = vst [vmem:[#allocation156_spill] sm:$0xff] %v11023_v58  ;;  %v18339_v46 = vld [vmem:[#allocation15_spill] sm:$0xff]  ;;  %v18346_v58 = vld [vmem:[#allocation16_spill] sm:$0xff] }
 0x118   : > { %975 = vrot.lane.b32.xlu1 %v11016_v36, %s9989_s29  ;;  %973 = vrot.lane.b32.xlu0 %v11019_v44, %s9989_s29 }
 0x11a   : > { %v11031_v60 = vpop.permute.xlu1 %795  ;;  %v11033_v25 = vpop.permute.xlu0 %793 }
 0x11b   : > { %18313 = vst [vmem:[#allocation157_spill] sm:$0xff] %v11031_v60  ;;  %18314 = vst [vmem:[#allocation158_spill] sm:$0xff] %v11033_v25 }
 0x11c   : > { %1033 = vrot.lane.b32.xlu1 %v10119_v4, %s9990_s30  ;;  %9421 = vrot.lane.b32.xlu0 %v9420_v30, %s9990_s30  ;;  %v18322_v4 = vld [vmem:[#allocation9_spill] sm:$0xff]  ;;  %v18323_v30 = vld [vmem:[#allocation6_spill] sm:$0xff] }
 0x11e   : > { %v11038_v5 = vpop.permute.xlu1 %799  ;;  %v11040_v24 = vpop.permute.xlu0 %9381 }
 0x11f   : > { %18315 = vst [vmem:[#allocation159_spill] sm:$0xff] %v11038_v5  ;;  %18316 = vst [vmem:[#allocation160_spill] sm:$0xff] %v11040_v24  ;;  %v18338_v24 = vld [vmem:[#allocation26_spill] sm:$0xff] }
 0x120   : > { %1037 = vrot.lane.b32.xlu1 %v10130_v9, %s9990_s30  ;;  %1035 = vrot.lane.b32.xlu0 %v18317_v13, %s9990_s30 }
 0x122   : > { %v11046_v16 = vpop.permute.xlu1 %803  ;;  %v11048_v32 = vpop.permute.xlu0 %801 }
 0x123   : > { %18318 = vst [vmem:[#allocation11_spill] sm:$0xff] %v11046_v16  ;;  %18319 = vst [vmem:[#allocation161_spill] sm:$0xff] %v11048_v32  ;;  %v18329_v32 = vld [vmem:[#allocation10_spill] sm:$0xff] }
 0x124   : > { %1043 = vrot.lane.b32.xlu1 %v18322_v4, %s9990_s30  ;;  %1041 = vrot.lane.b32.xlu0 %v18323_v30, %s9990_s30 }
 0x126   : > { %v11056_v7 = vpop.permute.xlu1 %809  ;;  %v11058_v0 = vpop.permute.xlu0 %807 }
 0x127   : > { %18324 = vst [vmem:[#allocation13_spill] sm:$0xff] %v11056_v7  ;;  %18325 = vst [vmem:[#allocation18_spill] sm:$0xff] %v11058_v0  ;;  %v18333_v0 = vld [vmem:[#allocation14_spill] sm:$0xff] }
 0x128   : > { %9426 = vrot.lane.b32.xlu1 %v9425_v31, %s9990_s30  ;;  %1045 = vrot.lane.b32.xlu0 %v18326_v22, %s9990_s30  ;;  %v18334_v31 = vld [vmem:[#allocation8_spill] sm:$0xff] }
 0x12a   : > { %v11063_v23 = vpop.permute.xlu1 %9386  ;;  %v11065_v5 = vpop.permute.xlu0 %811 }
 0x12b   : > { %18327 = vst [vmem:[#allocation9_spill] sm:$0xff] %v11063_v23  ;;  %18328 = vst [vmem:[#allocation6_spill] sm:$0xff] %v11065_v5  ;;  %v18337_v5 = vld [vmem:[#allocation24_spill] sm:$0xff] }
 0x12c   : > { %1051 = vrot.lane.b32.xlu1 %v18329_v32, %s9990_s30  ;;  %1049 = vrot.lane.b32.xlu0 %v18330_v8, %s9990_s30  ;;  %v9430_v63 = vpack.i.bf16 %v18338_v24, %v18337_v5 }
 0x12e   : > { %v11071_v16 = vpop.permute.xlu1 %817  ;;  %v11073_v7 = vpop.permute.xlu0 %815 }
 0x12f   : > { %18331 = vst [vmem:[#allocation7_spill] sm:$0xff] %v11071_v16  ;;  %18332 = vst [vmem:[#allocation10_spill] sm:$0xff] %v11073_v7  ;;  %v18340_v16 = vld [vmem:[#allocation19_spill] sm:$0xff] }
 0x130   : > { %1057 = vrot.lane.b32.xlu1 %v18333_v0, %s9990_s30  ;;  %1053 = vrot.lane.b32.xlu0 %v18334_v31, %s9990_s30 }
 0x132   : > { %v11079_v3 = vpop.permute.xlu1 %823  ;;  %v11081_v23 = vpop.permute.xlu0 %819 }
 0x133   : > { %18335 = vst [vmem:[#allocation12_spill] sm:$0xff] %v11079_v3  ;;  %18336 = vst [vmem:[#allocation14_spill] sm:$0xff] %v11081_v23  ;;  %v1025_v3 = vrot.slane %v10919_v40, 1  ;;  %v11098_v23 = vrot.slane %v10932_v61, 1 }
 0x134   : > { %1061 = vrot.lane.b32.xlu1 %v18339_v46, %s9990_s30  ;;  %1059 = vrot.lane.b32.xlu0 %v18340_v16, %s9990_s30 }
 0x136   : > { %v11089_v7 = vpop.permute.xlu1 %827  ;;  %v11091_v25 = vpop.permute.xlu0 %825 }
 0x137   : > { %18341 = vst [vmem:[#allocation8_spill] sm:$0xff] %v11089_v7  ;;  %18342 = vst [vmem:[#allocation24_spill] sm:$0xff] %v11091_v25  ;;  %v18347_v7 = vld [vmem:[#allocation20_spill] sm:$0xff]  ;;  %v11110_v25 = vsel %vm443_vm0, %v1025_v3, %v11098_v23 }
 0x138   : > { %1065 = vrot.lane.b32.xlu1 %v18343_v14, %s9990_s30  ;;  %9431 = vrot.lane.b32.xlu0 %v9430_v63, %s9990_s30 }
 0x13a   : > { %v11100_v60 = vpop.permute.xlu1 %883  ;;  %v11102_v59 = vpop.permute.xlu0 %9391 }
 0x13b   : > { %18344 = vst [vmem:[#allocation26_spill] sm:$0xff] %v11100_v60  ;;  %18345 = vst [vmem:[#allocation15_spill] sm:$0xff] %v11102_v59  ;;  %v11196_v60 = vrot.slane %v11016_v36, 1  ;;  %v18395_v59 = vld [vmem:[#allocation49_spill] sm:$0xff] }
 0x13c   : > { %1069 = vrot.lane.b32.xlu1 %v18346_v58, %s9990_s30  ;;  %1067 = vrot.lane.b32.xlu0 %v18347_v7, %s9990_s30 }
 0x13d   : > { %18388 = vst [vmem:[#allocation38_spill] sm:$0xff] %v11196_v60 }
 0x13e   : > { %v11112_v63 = vpop.permute.xlu1 %887  ;;  %v11114_v37 = vpop.permute.xlu0 %885 }
 0x13f   : > { %18348 = vst [vmem:[#allocation19_spill] sm:$0xff] %v11112_v63  ;;  %18349 = vst [vmem:[#allocation22_spill] sm:$0xff] %v11114_v37  ;;  %v18386_v37 = vld [vmem:[#allocation42_spill] sm:$0xff]  ;;  %v18387_v63 = vld [vmem:[#allocation43_spill] sm:$0xff] }
 0x140   : > { %1075 = vrot.lane.b32.xlu1 %v11110_v25, %s9990_s30  ;;  %1073 = vrot.lane.b32.xlu0 %v18352_v50, %s9990_s30 }
 0x142   : > { %v11122_v53 = vpop.permute.xlu1 %893  ;;  %v11124_v35 = vpop.permute.xlu0 %891 }
 0x143   : > { %18353 = vst [vmem:[#allocation16_spill] sm:$0xff] %v11122_v53  ;;  %18354 = vst [vmem:[#allocation20_spill] sm:$0xff] %v11124_v35  ;;  %v18374_v35 = vld [vmem:[#allocation35_spill] sm:$0xff] }
 0x144   : > { %9436 = vrot.lane.b32.xlu1 %v9435_v45, %s9990_s30  ;;  %1077 = vrot.lane.b32.xlu0 %v11098_v23, %s9990_s30  ;;  %v18362_v45 = vld [vmem:[#allocation25_spill] sm:$0xff] }
 0x146   : > { %v11129_v3 = vpop.permute.xlu1 %9396  ;;  %v11131_v6 = vpop.permute.xlu0 %895 }
 0x147   : > { %18355 = vst [vmem:[#allocation29_spill] sm:$0xff] %v11129_v3  ;;  %18356 = vst [vmem:[#allocation33_spill] sm:$0xff] %v11131_v6  ;;  %v18370_v3 = vld [vmem:[#allocation36_spill] sm:$0xff]  ;;  %v18378_v6 = vld [vmem:[#allocation46_spill] sm:$0xff] }
 0x148   : > { %1083 = vrot.lane.b32.xlu1 %v18357_v21, %s9990_s30  ;;  %1081 = vrot.lane.b32.xlu0 %v18358_v33, %s9990_s30  ;;  %v18367_v33 = vld [vmem:[#allocation34_spill] sm:$0xff] }
 0x14a   : > { %v11137_v54 = vpop.permute.xlu1 %901  ;;  %v11139_v20 = vpop.permute.xlu0 %899 }
 0x14b   : > { %18359 = vst [vmem:[#allocation23_spill] sm:$0xff] %v11137_v54  ;;  %18360 = vst [vmem:[#allocation27_spill] sm:$0xff] %v11139_v20 }
 0x14c   : > { %1089 = vrot.lane.b32.xlu1 %v18361_v29, %s9990_s30  ;;  %1085 = vrot.lane.b32.xlu0 %v18362_v45, %s9990_s30 }
 0x14e   : > { %v11145_v38 = vpop.permute.xlu1 %907  ;;  %v11147_v48 = vpop.permute.xlu0 %903 }
 0x14f   : > { %18363 = vst [vmem:[#allocation28_spill] sm:$0xff] %v11145_v38  ;;  %18364 = vst [vmem:[#allocation30_spill] sm:$0xff] %v11147_v48 }
 0x150   : > { %1093 = vrot.lane.b32.xlu1 %v18366_v55, %s9990_s30  ;;  %1091 = vrot.lane.b32.xlu0 %v18367_v33, %s9990_s30 }
 0x152   : > { %v11155_v20 = vpop.permute.xlu1 %911  ;;  %v11157_v54 = vpop.permute.xlu0 %909 }
 0x153   : > { %18368 = vst [vmem:[#allocation25_spill] sm:$0xff] %v11155_v20  ;;  %18369 = vst [vmem:[#allocation40_spill] sm:$0xff] %v11157_v54  ;;  %v18377_v54 = vld [vmem:[#allocation44_spill] sm:$0xff] }
 0x154   : > { %1097 = vrot.lane.b32.xlu1 %v18370_v3, %s9990_s30  ;;  %9441 = vrot.lane.b32.xlu0 %v9440_v62, %s9990_s30  ;;  %v9445_v42 = vpack.i.bf16 %v18378_v6, %v18377_v54  ;;  %v18380_v62 = vld [vmem:[#allocation37_spill] sm:$0xff]  ;;  %v9450_v6 = vpack.i.bf16 %v18396_v39, %v18395_v59 }
 0x155   : > { %v18402_v59 = vld [vmem:[#allocation17_spill] sm:$0xff] }
 0x156   : > { %v11162_v38 = vpop.permute.xlu1 %915  ;;  %v11164_v48 = vpop.permute.xlu0 %9401  ;;  %v18403_v39 = vld [vmem:[#allocation21_spill] sm:$0xff] }
 0x157   : > { %18371 = vst [vmem:[#allocation31_spill] sm:$0xff] %v11162_v38  ;;  %18372 = vst [vmem:[#allocation34_spill] sm:$0xff] %v11164_v48 }
 0x158   : > { %1101 = vrot.lane.b32.xlu1 %v18373_v1, %s9990_s30  ;;  %1099 = vrot.lane.b32.xlu0 %v18374_v35, %s9990_s30 }
 0x15a   : > { %v11170_v53 = vpop.permute.xlu1 %919  ;;  %v11172_v20 = vpop.permute.xlu0 %917 }
 0x15b   : > { %18375 = vst [vmem:[#allocation36_spill] sm:$0xff] %v11170_v53  ;;  %18376 = vst [vmem:[#allocation32_spill] sm:$0xff] %v11172_v20 }
 0x15c   : > { %1107 = vrot.lane.b32.xlu1 %v18379_v43, %s9990_s30  ;;  %1105 = vrot.lane.b32.xlu0 %v18380_v62, %s9990_s30 }
 0x15e   : > { %v11180_v38 = vpop.permute.xlu1 %925  ;;  %v11182_v48 = vpop.permute.xlu0 %923 }
 0x15f   : > { %18381 = vst [vmem:[#allocation35_spill] sm:$0xff] %v11180_v38  ;;  %18382 = vst [vmem:[#allocation44_spill] sm:$0xff] %v11182_v48  ;;  %v1028_v48 = vrot.slane %v11019_v44, 1 }
 0x160   : > { %9446 = vrot.lane.b32.xlu1 %v9445_v42, %s9990_s30  ;;  %1109 = vrot.lane.b32.xlu0 %v18383_v12, %s9990_s30 }
 0x162   : > { %v11187_v53 = vpop.permute.xlu1 %9406  ;;  %v11189_v20 = vpop.permute.xlu0 %927 }
 0x163   : > { %18384 = vst [vmem:[#allocation41_spill] sm:$0xff] %v11187_v53  ;;  %18385 = vst [vmem:[#allocation37_spill] sm:$0xff] %v11189_v20  ;;  %v18392_v53 = vld [vmem:[#allocation39_spill] sm:$0xff]  ;;  %v11209_v20 = vsel %vm443_vm0, %v1028_v48, %v11196_v60 }
 0x164   : > { %1115 = vrot.lane.b32.xlu1 %v18386_v37, %s9990_s30  ;;  %1113 = vrot.lane.b32.xlu0 %v18387_v63, %s9990_s30  ;;  %v18399_v48 = vld [vmem:[#allocation47_spill] sm:$0xff] }
 0x166   : > { %v11199_v38 = vpop.permute.xlu1 %933  ;;  %v11201_v42 = vpop.permute.xlu0 %931 }
 0x167   : > { %18389 = vst [vmem:[#allocation42_spill] sm:$0xff] %v11199_v38  ;;  %18390 = vst [vmem:[#allocation43_spill] sm:$0xff] %v11201_v42 }
 0x168   : > { %1121 = vrot.lane.b32.xlu1 %v18391_v56, %s9990_s30  ;;  %1117 = vrot.lane.b32.xlu0 %v18392_v53, %s9990_s30 }
 0x16a   : > { %v11211_v41 = vpop.permute.xlu1 %939  ;;  %v11213_v17 = vpop.permute.xlu0 %935 }
 0x16b   : > { %18393 = vst [vmem:[#allocation162_spill] sm:$0xff] %v11211_v41  ;;  %18394 = vst [vmem:[#allocation163_spill] sm:$0xff] %v11213_v17 }
 0x16c   : > { %1125 = vrot.lane.b32.xlu1 %v11196_v60, %s9990_s30  ;;  %1123 = vrot.lane.b32.xlu0 %v11209_v20, %s9990_s30 }
 0x16e   : > { %v11221_v42 = vpop.permute.xlu1 %943  ;;  %v11223_v38 = vpop.permute.xlu0 %941 }
 0x16f   : > { %18397 = vst [vmem:[#allocation49_spill] sm:$0xff] %v11221_v42  ;;  %18398 = vst [vmem:[#allocation164_spill] sm:$0xff] %v11223_v38  ;;  %v18406_v38 = vld [vmem:[#allocation53_spill] sm:$0xff] }
 0x170   : > { %1183 = vrot.lane.b32.xlu1 %v18399_v48, %s9991_s10  ;;  %9451 = vrot.lane.b32.xlu0 %v9450_v6, %s9991_s10  ;;  %v18407_v48 = vld [vmem:[#allocation48_spill] sm:$0xff] }
 0x171   : > { %v18408_v6 = vld [vmem:[#allocation56_spill] sm:$0xff] }
 0x172   : > { %v11228_v41 = vpop.permute.xlu1 %947  ;;  %v11230_v17 = vpop.permute.xlu0 %9411 }
 0x173   : > { %18400 = vst [vmem:[#allocation47_spill] sm:$0xff] %v11228_v41  ;;  %18401 = vst [vmem:[#allocation165_spill] sm:$0xff] %v11230_v17  ;;  %v18409_v41 = vld [vmem:[#allocation60_spill] sm:$0xff] }
 0x174   : > { %1187 = vrot.lane.b32.xlu1 %v18402_v59, %s9991_s10  ;;  %1185 = vrot.lane.b32.xlu0 %v18403_v39, %s9991_s10  ;;  %v9455_v60 = vpack.i.bf16 %v18409_v41, %v18408_v6  ;;  %v18412_v39 = vld [vmem:[#allocation50_spill] sm:$0xff] }
 0x176   : > { %v11236_v56 = vpop.permute.xlu1 %951  ;;  %v11238_v42 = vpop.permute.xlu0 %949 }
 0x177   : > { %18404 = vst [vmem:[#allocation21_spill] sm:$0xff] %v11236_v56  ;;  %18405 = vst [vmem:[#allocation166_spill] sm:$0xff] %v11238_v42 }
 0x178   : > { %1193 = vrot.lane.b32.xlu1 %v18406_v38, %s9991_s10  ;;  %1191 = vrot.lane.b32.xlu0 %v18407_v48, %s9991_s10  ;;  %v18415_v38 = vld [vmem:[#allocation54_spill] sm:$0xff]  ;;  %v18416_v48 = vld [vmem:[#allocation55_spill] sm:$0xff] }
 0x17a   : > { %v11246_v17 = vpop.permute.xlu1 %957  ;;  %v11248_v53 = vpop.permute.xlu0 %955 }
 0x17b   : > { %18410 = vst [vmem:[#allocation167_spill] sm:$0xff] %v11246_v17  ;;  %18411 = vst [vmem:[#allocation168_spill] sm:$0xff] %v11248_v53  ;;  %v18419_v53 = vld [vmem:[#allocation57_spill] sm:$0xff] }
 0x17c   : > { %9456 = vrot.lane.b32.xlu1 %v9455_v60, %s9991_s10  ;;  %1195 = vrot.lane.b32.xlu0 %v18412_v39, %s9991_s10  ;;  %v18420_v60 = vld [vmem:[#allocation51_spill] sm:$0xff] }
 0x17e   : > { %v11253_v56 = vpop.permute.xlu1 %9416  ;;  %v11255_v42 = vpop.permute.xlu0 %959 }
 0x17f   : > { %18413 = vst [vmem:[#allocation169_spill] sm:$0xff] %v11253_v56  ;;  %18414 = vst [vmem:[#allocation170_spill] sm:$0xff] %v11255_v42  ;;  %v18423_v42 = vld [vmem:[#allocation58_spill] sm:$0xff] }
 0x180   : > { %1201 = vrot.lane.b32.xlu1 %v18415_v38, %s9991_s10  ;;  %1199 = vrot.lane.b32.xlu0 %v18416_v48, %s9991_s10  ;;  %v18424_v38 = vld [vmem:[#allocation61_spill] sm:$0xff] }
 0x182   : > { %v11261_v41 = vpop.permute.xlu1 %965  ;;  %v11263_v17 = vpop.permute.xlu0 %963 }
 0x183   : > { %18417 = vst [vmem:[#allocation171_spill] sm:$0xff] %v11261_v41  ;;  %18418 = vst [vmem:[#allocation172_spill] sm:$0xff] %v11263_v17  ;;  %v18425_v41 = vld [vmem:[#allocation69_spill] sm:$0xff] }
 0x184   : > { %1207 = vrot.lane.b32.xlu1 %v18419_v53, %s9991_s10  ;;  %1203 = vrot.lane.b32.xlu0 %v18420_v60, %s9991_s10  ;;  %v9460_v48 = vpack.i.bf16 %v18425_v41, %v10642_v51  ;;  %v18428_v53 = vld [vmem:[#allocation63_spill] sm:$0xff]  ;;  %v18435_v51 = vld [vmem:[#allocation76_spill] sm:$0xff] }
 0x185   : > { %v18431_v41 = vld [vmem:[#allocation59_spill] sm:$0xff]  ;;  %v18436_v60 = vld [vmem:[#allocation84_spill] sm:$0xff] }
 0x186   : > { %v11269_v39 = vpop.permute.xlu1 %971  ;;  %v11271_v56 = vpop.permute.xlu0 %967  ;;  %v9465_v59 = vpack.i.bf16 %v18436_v60, %v18435_v51  ;;  %v18442_v51 = vld [vmem:[#allocation70_spill] sm:$0xff]  ;;  %v18443_v60 = vld [vmem:[#allocation73_spill] sm:$0xff] }
 0x187   : > { %18421 = vst [vmem:[#allocation173_spill] sm:$0xff] %v11269_v39  ;;  %18422 = vst [vmem:[#allocation174_spill] sm:$0xff] %v11271_v56  ;;  %v1175_v39 = vrot.slane %v10919_v40, 2  ;;  %v11288_v56 = vrot.slane %v10932_v61, 2 }
 0x188   : > { %1211 = vrot.lane.b32.xlu1 %v18423_v42, %s9991_s10  ;;  %1209 = vrot.lane.b32.xlu0 %v18424_v38, %s9991_s10 }
 0x189   : > { %18429 = vst [vmem:[#allocation177_spill] sm:$0xff] %v11288_v56 }
 0x18a   : > { %v11279_v17 = vpop.permute.xlu1 %975  ;;  %v11281_v6 = vpop.permute.xlu0 %973 }
 0x18b   : > { %18426 = vst [vmem:[#allocation175_spill] sm:$0xff] %v11279_v17  ;;  %18427 = vst [vmem:[#allocation176_spill] sm:$0xff] %v11281_v6  ;;  %v18432_v17 = vld [vmem:[#allocation62_spill] sm:$0xff]  ;;  %v11300_v6 = vsel %vm660_vm1, %v1175_v39, %v11288_v56 }
 0x18c   : > { %1215 = vrot.lane.b32.xlu1 %v18428_v53, %s9991_s10  ;;  %9461 = vrot.lane.b32.xlu0 %v9460_v48, %s9991_s10  ;;  %18433 = vst [vmem:[#allocation179_spill] sm:$0xff] %v11300_v6 }
 0x18e   : > { %v11290_v42 = vpop.permute.xlu1 %1033  ;;  %v11292_v38 = vpop.permute.xlu0 %9421 }
 0x18f   : > { %18430 = vst [vmem:[#allocation178_spill] sm:$0xff] %v11290_v42  ;;  %v18437_v42 = vld [vmem:[#allocation64_spill] sm:$0xff] }
 0x190   : > { %1219 = vrot.lane.b32.xlu1 %v18431_v41, %s9991_s10  ;;  %1217 = vrot.lane.b32.xlu0 %v18432_v17, %s9991_s10 }
 0x192   : > { %v11302_v48 = vpop.permute.xlu1 %1037  ;;  %v11304_v53 = vpop.permute.xlu0 %1035 }
 0x193   : > { %18434 = vst [vmem:[#allocation180_spill] sm:$0xff] %v11304_v53 }
 0x194   : > { %1225 = vrot.lane.b32.xlu1 %v11300_v6, %s9991_s10  ;;  %1223 = vrot.lane.b32.xlu0 %v18437_v42, %s9991_s10 }
 0x196   : > { %v11312_v41 = vpop.permute.xlu1 %1043  ;;  %v11314_v17 = vpop.permute.xlu0 %1041 }
 0x197   : > { %18438 = vst [vmem:[#allocation76_spill] sm:$0xff] %v11312_v41  ;;  %18439 = vst [vmem:[#allocation181_spill] sm:$0xff] %v11314_v17  ;;  %v18446_v17 = vld [vmem:[#allocation79_spill] sm:$0xff]  ;;  %v18450_v41 = vld [vmem:[#allocation80_spill] sm:$0xff] }
 0x198   : > { %9466 = vrot.lane.b32.xlu1 %v9465_v59, %s9991_s10  ;;  %1227 = vrot.lane.b32.xlu0 %v11288_v56, %s9991_s10  ;;  %v18447_v59 = vld [vmem:[#allocation66_spill] sm:$0xff] }
 0x19a   : > { %v11319_v39 = vpop.permute.xlu1 %9426  ;;  %v11321_v53 = vpop.permute.xlu0 %1045 }
 0x19b   : > { %18440 = vst [vmem:[#allocation182_spill] sm:$0xff] %v11319_v39  ;;  %18441 = vst [vmem:[#allocation183_spill] sm:$0xff] %v11321_v53 }
 0x19c   : > { %1233 = vrot.lane.b32.xlu1 %v18442_v51, %s9991_s10  ;;  %1231 = vrot.lane.b32.xlu0 %v18443_v60, %s9991_s10  ;;  %v18451_v51 = vld [vmem:[#allocation85_spill] sm:$0xff]  ;;  %v18452_v60 = vld [vmem:[#allocation92_spill] sm:$0xff] }
 0x19e   : > { %v11327_v6 = vpop.permute.xlu1 %1051  ;;  %v11329_v42 = vpop.permute.xlu0 %1049 }
 0x19f   : > { %18444 = vst [vmem:[#allocation73_spill] sm:$0xff] %v11327_v6  ;;  %18445 = vst [vmem:[#allocation184_spill] sm:$0xff] %v11329_v42  ;;  %v9470_v6 = vpack.i.bf16 %v10776_v2, %v18452_v60 }
 0x1a0   : > { %1239 = vrot.lane.b32.xlu1 %v18446_v17, %s9991_s10  ;;  %1235 = vrot.lane.b32.xlu0 %v18447_v59, %s9991_s10  ;;  %v18455_v17 = vld [vmem:[#allocation89_spill] sm:$0xff] }
 0x1a2   : > { %v11335_v56 = vpop.permute.xlu1 %1057  ;;  %v11337_v39 = vpop.permute.xlu0 %1053 }
 0x1a3   : > { %18448 = vst [vmem:[#allocation185_spill] sm:$0xff] %v11335_v56  ;;  %18449 = vst [vmem:[#allocation186_spill] sm:$0xff] %v11337_v39  ;;  %v17844_v39 = vmov 0.0  }
 0x1a4   : > { %1243 = vrot.lane.b32.xlu1 %v18450_v41, %s9991_s10  ;;  %1241 = vrot.lane.b32.xlu0 %v18451_v51, %s9991_s10  ;;  %v18458_v41 = vld [vmem:[#allocation86_spill] sm:$0xff] }
 0x1a5   : > { %2297 = vmatprep.subr.mxu0 %v17844_v39  ;;  %4692 = vmatprep.subr.mxu1 %v17844_v39 }
 0x1a6   : > { %v11345_v42 = vpop.permute.xlu1 %1061  ;;  %v11347_v53 = vpop.permute.xlu0 %1059 }
 0x1a7   : > { %18453 = vst [vmem:[#allocation187_spill] sm:$0xff] %v11345_v42  ;;  %18454 = vst [vmem:[#allocation188_spill] sm:$0xff] %v11347_v53  ;;  %v11478_v53 = vld [vmem:[%s10107_s26 + $0x70] sm:$0xff] }
 0x1a8   : > { %1247 = vrot.lane.b32.xlu1 %v18455_v17, %s9991_s10  ;;  %9471 = vrot.lane.b32.xlu0 %v9470_v6, %s9991_s10  ;;  %v18461_v17 = vld [vmem:[#allocation93_spill] sm:$0xff]  ;;  %v9475_v6 = vpack.i.bf16 %v10833_v49, %v10809_v34  ;;  %v11386_v49 = vrot.slane %v11016_v36, 2  ;;  %18490 = vst [vmem:[#allocation219_spill] sm:$0xff] %v11478_v53 }
 0x1aa   : > { %v11352_v59 = vpop.permute.xlu1 %1065  ;;  %v11354_v56 = vpop.permute.xlu0 %9431  ;;  %18467 = vst [vmem:[#allocation197_spill] sm:$0xff] %v11386_v49 }
 0x1ab   : > { %18456 = vst [vmem:[#allocation189_spill] sm:$0xff] %v11352_v59  ;;  %18457 = vst [vmem:[#allocation190_spill] sm:$0xff] %v11354_v56 }
 0x1ac   : > { %1251 = vrot.lane.b32.xlu1 %v10707_v27, %s9991_s10  ;;  %1249 = vrot.lane.b32.xlu0 %v18458_v41, %s9991_s10  ;;  %v18470_v41 = vld [vmem:[#allocation95_spill] sm:$0xff] }
 0x1ae   : > { %v11360_v2 = vpop.permute.xlu1 %1069  ;;  %v11362_v60 = vpop.permute.xlu0 %1067 }
 0x1af   : > { %18459 = vst [vmem:[#allocation191_spill] sm:$0xff] %v11360_v2  ;;  %18460 = vst [vmem:[#allocation192_spill] sm:$0xff] %v11362_v60  ;;  %v11469_v60 = vld [vmem:[%s10107_s26 + $0x58] sm:$0x3f] }
 0x1b0   : > { %1257 = vrot.lane.b32.xlu1 %v10780_v52, %s9991_s10  ;;  %1255 = vrot.lane.b32.xlu0 %v18461_v17, %s9991_s10  ;;  %v18466_v17 = vld [vmem:[#allocation100_spill] sm:$0xff]  ;;  %18487 = vst [vmem:[#allocation216_spill] sm:$0xff] %v11469_v60 }
 0x1b2   : > { %v11370_v51 = vpop.permute.xlu1 %1075  ;;  %v11372_v59 = vpop.permute.xlu0 %1073 }
 0x1b3   : > { %18462 = vst [vmem:[#allocation193_spill] sm:$0xff] %v11370_v51  ;;  %18463 = vst [vmem:[#allocation194_spill] sm:$0xff] %v11372_v59  ;;  %v11459_v51 = vld [vmem:[%s10107_s26 + $0x80] sm:$0xff] }
 0x1b4   : > { %9476 = vrot.lane.b32.xlu1 %v9475_v6, %s9991_s10  ;;  %1259 = vrot.lane.b32.xlu0 %v10760_v57, %s9991_s10  ;;  %v1178_v6 = vrot.slane %v11019_v44, 2  ;;  %18484 = vst [vmem:[#allocation213_spill] sm:$0xff] %v11459_v51 }
 0x1b6   : > { %v11377_v27 = vpop.permute.xlu1 %9436  ;;  %v11379_v52 = vpop.permute.xlu0 %1077 }
 0x1b7   : > { %18464 = vst [vmem:[#allocation195_spill] sm:$0xff] %v11377_v27  ;;  %18465 = vst [vmem:[#allocation196_spill] sm:$0xff] %v11379_v52 }
 0x1b8   : > { %1265 = vrot.lane.b32.xlu1 %v18466_v17, %s9991_s10  ;;  %1263 = vrot.lane.b32.xlu0 %v10798_v28, %s9991_s10  ;;  %v11399_v17 = vsel %vm660_vm1, %v1178_v6, %v11386_v49 }
 0x1b9   : > { %18471 = vst [vmem:[#allocation200_spill] sm:$0xff] %v11399_v17 }
 0x1ba   : > { %v11389_v34 = vpop.permute.xlu1 %1083  ;;  %v11391_v57 = vpop.permute.xlu0 %1081 }
 0x1bb   : > { %18468 = vst [vmem:[#allocation198_spill] sm:$0xff] %v11389_v34  ;;  %18469 = vst [vmem:[#allocation199_spill] sm:$0xff] %v11391_v57  ;;  %v11413_v57 = vld [vmem:[%s10107_s26 + $0x20] sm:$0xff]  ;;  %v11432_v34 = vld [vmem:[%s10107_s26 + $0x38] sm:$0x3f] }
 0x1bc   : > { %1271 = vrot.lane.b32.xlu1 %v10820_v18, %s9991_s10  ;;  %1267 = vrot.lane.b32.xlu0 %v18470_v41, %s9991_s10  ;;  %v11410_v18 = vld [vmem:[%s10107_s26 + $0x40] sm:$0xff] }
 0x1bd   : > { %18474 = vst [vmem:[#allocation203_spill] sm:$0xff] %v11410_v18  ;;  %v9480_v6 = vpack.i.bf16 %v11410_v18, %v11413_v57 }
 0x1be   : > { %v11401_v28 = vpop.permute.xlu1 %1089  ;;  %v11403_v27 = vpop.permute.xlu0 %1085 }
 0x1bf   : > { %18472 = vst [vmem:[#allocation201_spill] sm:$0xff] %v11401_v28  ;;  %18473 = vst [vmem:[#allocation202_spill] sm:$0xff] %v11403_v27  ;;  %v11422_v27 = vld [vmem:[%s10107_s26 + $0x28] sm:$0x3f] }
 0x1c0   : > { %1275 = vrot.lane.b32.xlu1 %v11386_v49, %s9991_s10  ;;  %1273 = vrot.lane.b32.xlu0 %v11399_v17, %s9991_s10 }
 0x1c2   : > { %v11417_v41 = vpop.permute.xlu1 %1093  ;;  %v11419_v28 = vpop.permute.xlu0 %1091 }
 0x1c3   : > { %18475 = vst [vmem:[#allocation204_spill] sm:$0xff] %v11417_v41  ;;  %18476 = vst [vmem:[#allocation205_spill] sm:$0xff] %v11419_v28  ;;  %v11437_v28 = vld [vmem:[%s10107_s26 + $0x30] sm:$0xff] }
 0x1c4   : > { %1331 = vrot.lane.b32.xlu1 %v11422_v27, %s9992_s15  ;;  %9481 = vrot.lane.b32.xlu0 %v9480_v6, %s9992_s15  ;;  %v11446_v6 = vld [vmem:[%s10107_s26 + $0x50] sm:$0xff] }
 0x1c5   : > { %18481 = vst [vmem:[#allocation210_spill] sm:$0xff] %v11446_v6 }
 0x1c6   : > { %v11427_v49 = vpop.permute.xlu1 %1097  ;;  %v11429_v17 = vpop.permute.xlu0 %9441 }
 0x1c7   : > { %18477 = vst [vmem:[#allocation206_spill] sm:$0xff] %v11427_v49  ;;  %18478 = vst [vmem:[#allocation207_spill] sm:$0xff] %v11429_v17  ;;  %v11451_v49 = vld [vmem:[%s10107_s26 + $0x48] sm:$0x3f]  ;;  %v11456_v17 = vld [vmem:[%s10107_s26 + $0x60] sm:$0xff] }
 0x1c8   : > { %1335 = vrot.lane.b32.xlu1 %v11432_v34, %s9992_s15  ;;  %1333 = vrot.lane.b32.xlu0 %v11437_v28, %s9992_s15  ;;  %18482 = vst [vmem:[#allocation211_spill] sm:$0xff] %v11451_v49  ;;  %18483 = vst [vmem:[#allocation212_spill] sm:$0xff] %v11456_v17 }
 0x1ca   : > { %v11441_v41 = vpop.permute.xlu1 %1101  ;;  %v11443_v59 = vpop.permute.xlu0 %1099 }
 0x1cb   : > { %18479 = vst [vmem:[#allocation208_spill] sm:$0xff] %v11441_v41  ;;  %18480 = vst [vmem:[#allocation209_spill] sm:$0xff] %v11443_v59  ;;  %v9485_v41 = vpack.i.bf16 %v11459_v51, %v11456_v17  ;;  %v11535_v17 = vld [vmem:[%s10107_s26 + $0xb8] sm:$0x3f] }
 0x1cc   : > { %1341 = vrot.lane.b32.xlu1 %v11446_v6, %s9992_s15  ;;  %1339 = vrot.lane.b32.xlu0 %v11451_v49, %s9992_s15  ;;  %18504 = vst [vmem:[#allocation233_spill] sm:$0xff] %v11535_v17 }
 0x1ce   : > { %v11463_v59 = vpop.permute.xlu1 %1107  ;;  %v11465_v52 = vpop.permute.xlu0 %1105 }
 0x1cf   : > { %18485 = vst [vmem:[#allocation214_spill] sm:$0xff] %v11463_v59  ;;  %18486 = vst [vmem:[#allocation215_spill] sm:$0xff] %v11465_v52  ;;  %v11483_v52 = vld [vmem:[%s10107_s26 + $0x68] sm:$0x3f] }
 0x1d0   : > { %9486 = vrot.lane.b32.xlu1 %v9485_v41, %s9992_s15  ;;  %1343 = vrot.lane.b32.xlu0 %v11469_v60, %s9992_s15  ;;  %18491 = vst [vmem:[#allocation220_spill] sm:$0xff] %v11483_v52  ;;  %v9829_v60 = vld [vmem:[%s10107_s26 + $0x110] sm:$0xff] }
 0x1d2   : > { %v11473_v2 = vpop.permute.xlu1 %9446  ;;  %v11475_v56 = vpop.permute.xlu0 %1109 }
 0x1d3   : > { %18488 = vst [vmem:[#allocation217_spill] sm:$0xff] %v11473_v2  ;;  %18489 = vst [vmem:[#allocation218_spill] sm:$0xff] %v11475_v56  ;;  %v11492_v2 = vld [vmem:[%s10107_s26 + $0x88] sm:$0x3f]  ;;  %v11497_v56 = vld [vmem:[%s10107_s26 + $0x78] sm:$0x3f] }
 0x1d4   : > { %1349 = vrot.lane.b32.xlu1 %v11478_v53, %s9992_s15  ;;  %1347 = vrot.lane.b32.xlu0 %v11483_v52, %s9992_s15  ;;  %18494 = vst [vmem:[#allocation223_spill] sm:$0xff] %v11492_v2  ;;  %18495 = vst [vmem:[#allocation224_spill] sm:$0xff] %v11497_v56  ;;  %v11525_v52 = vld [vmem:[%s10107_s26 + $0xa8] sm:$0x3f] }
 0x1d5   : > { %18503 = vst [vmem:[#allocation232_spill] sm:$0xff] %v11525_v52 }
 0x1d6   : > { %v11487_v41 = vpop.permute.xlu1 %1115  ;;  %v11489_v59 = vpop.permute.xlu0 %1113 }
 0x1d7   : > { %18492 = vst [vmem:[#allocation221_spill] sm:$0xff] %v11487_v41  ;;  %18493 = vst [vmem:[#allocation222_spill] sm:$0xff] %v11489_v59  ;;  %v11506_v41 = vld [vmem:[%s10107_s26 + $0x98] sm:$0x3f]  ;;  %v11511_v59 = vld [vmem:[%s10107_s26 + $0x90] sm:$0xff] }
 0x1d8   : > { %1355 = vrot.lane.b32.xlu1 %v11492_v2, %s9992_s15  ;;  %1351 = vrot.lane.b32.xlu0 %v11497_v56, %s9992_s15  ;;  %18498 = vst [vmem:[#allocation227_spill] sm:$0xff] %v11506_v41  ;;  %18499 = vst [vmem:[#allocation228_spill] sm:$0xff] %v11511_v59  ;;  %v11516_v2 = vld [vmem:[%s10107_s26 + $0xa0] sm:$0xff]  ;;  %v11558_v56 = vld [vmem:[%s10107_s26 + $0xd8] sm:$0x3f] }
 0x1d9   : > { %18500 = vst [vmem:[#allocation229_spill] sm:$0xff] %v11516_v2  ;;  %v9490_v53 = vpack.i.bf16 %v10919_v40, %v11516_v2  ;;  %v11540_v40 = vld [vmem:[%s10107_s26 + $0xb0] sm:$0xff]  ;;  %v9828_v2 = vld [vmem:[%s10107_s26 + $0x120] sm:$0xff] }
 0x1da   : > { %v11501_v51 = vpop.permute.xlu1 %1121  ;;  %v11503_v42 = vpop.permute.xlu0 %1117  ;;  %18505 = vst [vmem:[#allocation234_spill] sm:$0xff] %v11540_v40 }
 0x1db   : > { %18496 = vst [vmem:[#allocation225_spill] sm:$0xff] %v11501_v51  ;;  %18497 = vst [vmem:[#allocation226_spill] sm:$0xff] %v11503_v42 }
 0x1dc   : > { %1359 = vrot.lane.b32.xlu1 %v11506_v41, %s9992_s15  ;;  %1357 = vrot.lane.b32.xlu0 %v11511_v59, %s9992_s15 }
 0x1de   : > { %v11520_v51 = vpop.permute.xlu1 %1125  ;;  %v11522_v42 = vpop.permute.xlu0 %1123 }
 0x1df   : > { %18501 = vst [vmem:[#allocation230_spill] sm:$0xff] %v11520_v51  ;;  %18502 = vst [vmem:[#allocation231_spill] sm:$0xff] %v11522_v42  ;;  %v11545_v42 = vld [vmem:[%s10107_s26 + $0xd0] sm:$0xff] }
 0x1e0   : > { %1363 = vrot.lane.b32.xlu1 %v11525_v52, %s9992_s15  ;;  %9491 = vrot.lane.b32.xlu0 %v9490_v53, %s9992_s15  ;;  %v9827_v53 = vld [vmem:[%s10107_s26 + $0x100] sm:$0xff] }
 0x1e2   : > { %v11530_v59 = vpop.permute.xlu1 %1183  ;;  %v11532_v41 = vpop.permute.xlu0 %9451 }
 0x1e4   : > { %1367 = vrot.lane.b32.xlu1 %v11535_v17, %s9992_s15  ;;  %1365 = vrot.lane.b32.xlu0 %v11540_v40, %s9992_s15  ;;  %v9495_v17 = vpack.i.bf16 %v9828_v2, %v9827_v53  ;;  %v2106_v2 = vld [vmem:[%s17634_s1 + $0x70] sm:$0xff] }
 0x1e6   : > { %v11547_v51 = vpop.permute.xlu1 %1187  ;;  %v11549_v52 = vpop.permute.xlu0 %1185 }
 0x1e8   : > { %1373 = vrot.lane.b32.xlu1 %v11545_v42, %s9992_s15  ;;  %1371 = vrot.lane.b32.xlu0 %v10932_v61, %s9992_s15  ;;  %v2107_v61 = vld [vmem:[%s17634_s1 + $0x78] sm:$0xff] }
 0x1e9   : > { %2298 = vmatpush1.msra.mxu0 %v2107_v61  ;;  %v2105_v61 = vld [vmem:[%s17634_s1 + $0x68] sm:$0xff] }
 0x1ea   : > { %v11562_v40 = vpop.permute.xlu1 %1193  ;;  %v11564_v49 = vpop.permute.xlu0 %1191  ;;  %2299 = vmatprep.subr.mxu0 %v17844_v39 }
 0x1eb   : > { %18506 = vst [vmem:[#allocation235_spill] sm:$0xff] %v11562_v40  ;;  %18507 = vst [vmem:[#allocation236_spill] sm:$0xff] %v11564_v49  ;;  %2300 = vmatpush1.msra.mxu0 %v2106_v2  ;;  %v9832_v49 = vld [vmem:[%s10107_s26 + $0x118] sm:$0x3f]  ;;  %v9836_v40 = vld [vmem:[%s10107_s26 + $0x160] sm:$0xff] }
 0x1ec   : > { %9496 = vrot.lane.b32.xlu1 %v9495_v17, %s9992_s15  ;;  %1375 = vrot.lane.b32.xlu0 %v11558_v56, %s9992_s15  ;;  %v9830_v17 = vld [vmem:[%s10107_s26 + $0x108] sm:$0x3f] }
 0x1ed   : > { %2301 = vmatprep.subr.mxu0 %v17844_v39 }
 0x1ee   : > { %v11576_v53 = vpop.permute.xlu1 %9456  ;;  %v11578_v6 = vpop.permute.xlu0 %1195  ;;  %2302 = vmatpush1.msra.mxu0 %v2105_v61 }
 0x1ef   : > { %18508 = vst [vmem:[#allocation237_spill] sm:$0xff] %v11576_v53  ;;  %18509 = vst [vmem:[#allocation238_spill] sm:$0xff] %v11578_v6  ;;  %v2104_v53 = vld [vmem:[%s17634_s1 + $0x60] sm:$0xff]  ;;  %2303 = vmatprep.subr.mxu0 %v17844_v39 }
 0x1f0   : > { %1381 = vrot.lane.b32.xlu1 %v9829_v60, %s9992_s15  ;;  %1379 = vrot.lane.b32.xlu0 %v9830_v17, %s9992_s15  ;;  %v2103_v60 = vld [vmem:[%s17634_s1 + $0x58] sm:$0xff]  ;;  %v9831_v17 = vld [vmem:[%s10107_s26 + $0x128] sm:$0x3f] }
 0x1f1   : > { %2304 = vmatpush1.msra.mxu0 %v2104_v53  ;;  %v2102_v53 = vld [vmem:[%s17634_s1 + $0x50] sm:$0xff] }
 0x1f2   : > { %v11591_v2 = vpop.permute.xlu1 %1201  ;;  %v11593_v18 = vpop.permute.xlu0 %1199  ;;  %2305 = vmatprep.subr.mxu0 %v17844_v39 }
 0x1f3   : > { %18510 = vst [vmem:[#allocation239_spill] sm:$0xff] %v11591_v2  ;;  %18511 = vst [vmem:[#allocation240_spill] sm:$0xff] %v11593_v18  ;;  %2306 = vmatpush1.msra.mxu0 %v2103_v60  ;;  %v9833_v2 = vld [vmem:[%s10107_s26 + $0x138] sm:$0x3f]  ;;  %v2101_v60 = vld [vmem:[%s17634_s1 + $0x48] sm:$0xff] }
 0x1f4   : > { %1387 = vrot.lane.b32.xlu1 %v9831_v17, %s9992_s15  ;;  %1383 = vrot.lane.b32.xlu0 %v9832_v49, %s9992_s15  ;;  %v9834_v17 = vld [vmem:[%s10107_s26 + $0x130] sm:$0xff]  ;;  %v9835_v49 = vld [vmem:[%s10107_s26 + $0x140] sm:$0xff] }
 0x1f5   : > { %2307 = vmatprep.subr.mxu0 %v17844_v39  ;;  %v9500_v6 = vpack.i.bf16 %v9836_v40, %v9835_v49  ;;  %v2099_v49 = vld [vmem:[%s17634_s1 + $0x38] sm:$0xff] }
 0x1f6   : > { %v11604_v61 = vpop.permute.xlu1 %1207  ;;  %v11606_v18 = vpop.permute.xlu0 %1203  ;;  %2308 = vmatpush1.msra.mxu0 %v2102_v53 }
 0x1f7   : > { %18512 = vst [vmem:[#allocation241_spill] sm:$0xff] %v11604_v61  ;;  %18513 = vst [vmem:[#allocation242_spill] sm:$0xff] %v11606_v18  ;;  %2309 = vmatprep.subr.mxu0 %v17844_v39 }
 0x1f8   : > { %1391 = vrot.lane.b32.xlu1 %v9833_v2, %s9992_s15  ;;  %1389 = vrot.lane.b32.xlu0 %v9834_v17, %s9992_s15  ;;  %v2100_v2 = vld [vmem:[%s17634_s1 + $0x40] sm:$0xff]  ;;  %v9837_v17 = vld [vmem:[%s10107_s26 + $0x148] sm:$0x3f] }
 0x1f9   : > { %2310 = vmatpush1.msra.mxu0 %v2101_v60  ;;  %v9838_v60 = vld [vmem:[%s10107_s26 + $0x158] sm:$0x3f] }
 0x1fa   : > { %v11621_v61 = vpop.permute.xlu1 %1211  ;;  %v11623_v18 = vpop.permute.xlu0 %1209  ;;  %2311 = vmatprep.subr.mxu0 %v17844_v39 }
 0x1fb   : > { %18514 = vst [vmem:[#allocation243_spill] sm:$0xff] %v11623_v18  ;;  %2312 = vmatpush1.msra.mxu0 %v2100_v2  ;;  %v9842_v18 = vld [vmem:[%s10107_s26 + $0x180] sm:$0xff] }
 0x1fc   : > { %1395 = vrot.lane.b32.xlu1 %v9837_v17, %s9992_s15  ;;  %9501 = vrot.lane.b32.xlu0 %v9500_v6, %s9992_s15  ;;  %v9839_v6 = vld [vmem:[%s10107_s26 + $0x150] sm:$0xff] }
 0x1fd   : > { %2313 = vmatprep.subr.mxu0 %v17844_v39  ;;  %v2098_v17 = vld [vmem:[%s17634_s1 + $0x30] sm:$0xff] }
 0x1fe   : > { %v11633_v40 = vpop.permute.xlu1 %1215  ;;  %v11635_v53 = vpop.permute.xlu0 %9461  ;;  %2314 = vmatpush1.msra.mxu0 %v2099_v49  ;;  %v9505_v49 = vpack.i.bf16 %v11019_v44, %v9842_v18  ;;  %v2095_v18 = vld [vmem:[%s17634_s1 + $0x18] sm:$0xff] }
 0x1ff   : > { %18515 = vst [vmem:[#allocation244_spill] sm:$0xff] %v11633_v40  ;;  %18516 = vst [vmem:[#allocation245_spill] sm:$0xff] %v11635_v53  ;;  %2315 = vmatprep.subr.mxu0 %v17844_v39  ;;  %v9840_v53 = vld [vmem:[%s10107_s26 + $0x170] sm:$0xff] }
 0x200   : > { %1399 = vrot.lane.b32.xlu1 %v9838_v60, %s9992_s15  ;;  %1397 = vrot.lane.b32.xlu0 %v9839_v6, %s9992_s15  ;;  %v2097_v60 = vld [vmem:[%s17634_s1 + $0x28] sm:$0xff] }
 0x201   : > { %2316 = vmatpush1.msra.mxu0 %v2098_v17  ;;  %v9841_v6 = vld [vmem:[%s10107_s26 + $0x168] sm:$0x3f]  ;;  %v2096_v17 = vld [vmem:[%s17634_s1 + $0x20] sm:$0xff] }
 0x202   : > { %v11648_v2 = vpop.permute.xlu1 %1219  ;;  %v11650_v40 = vpop.permute.xlu0 %1217  ;;  %2317 = vmatprep.subr.mxu0 %v17844_v39 }
 0x203   : > { %18517 = vst [vmem:[#allocation246_spill] sm:$0xff] %v11648_v2  ;;  %18518 = vst [vmem:[#allocation247_spill] sm:$0xff] %v11650_v40  ;;  %2318 = vmatpush1.msra.mxu0 %v2097_v60 }
 0x204   : > { %1405 = vrot.lane.b32.xlu1 %v9840_v53, %s9992_s15  ;;  %1403 = vrot.lane.b32.xlu0 %v9841_v6, %s9992_s15  ;;  %v9843_v53 = vld [vmem:[%s10107_s26 + $0x178] sm:$0x3f]  ;;  %v2094_v6 = vld [vmem:[%s17634_s1 + $0x10] sm:$0xff] }
 0x205   : > { %2319 = vmatprep.subr.mxu0 %v17844_v39 }
 0x206   : > { %v11663_v40 = vpop.permute.xlu1 %1225  ;;  %v11665_v2 = vpop.permute.xlu0 %1223  ;;  %2320 = vmatpush1.msra.mxu0 %v2096_v17 }
 0x207   : > { %18519 = vst [vmem:[#allocation248_spill] sm:$0xff] %v11665_v2  ;;  %2321 = vmatprep.subr.mxu0 %v17844_v39 }
 0x208   : > { %9506 = vrot.lane.b32.xlu1 %v9505_v49, %s9992_s15  ;;  %1407 = vrot.lane.b32.xlu0 %v9843_v53, %s9992_s15  ;;  %v9844_v49 = vld [vmem:[%s10107_s26 + $0x190] sm:$0xff]  ;;  %v9845_v53 = vld [vmem:[%s10107_s26 + $0x188] sm:$0x3f] }
 0x209   : > { %2322 = vmatpush1.msra.mxu0 %v2095_v18  ;;  %v2093_v18 = vld [vmem:[%s17634_s1 + $0x8] sm:$0xff] }
 0x20a   : > { %v11677_v44 = vpop.permute.xlu1 %9466  ;;  %v11679_v60 = vpop.permute.xlu0 %1227  ;;  %2323 = vmatprep.subr.mxu0 %v17844_v39 }
 0x20b   : > { %18520 = vst [vmem:[#allocation249_spill] sm:$0xff] %v11677_v44  ;;  %2324 = vmatpush1.msra.mxu0 %v2094_v6 }
 0x20c   : > { %1413 = vrot.lane.b32.xlu1 %v9844_v49, %s9992_s15  ;;  %1411 = vrot.lane.b32.xlu0 %v9845_v53, %s9992_s15  ;;  %v9846_v49 = vld [vmem:[%s10107_s26 + $0x198] sm:$0x3f]  ;;  %v2092_v53 = vld [vmem:[%s17634_s1] sm:$0xff] }
 0x20d   : > { %2325 = vmatprep.subr.mxu0 %v17844_v39 }
 0x20e   : > { %v11690_v17 = vpop.permute.xlu1 %1233  ;;  %v11692_v44 = vpop.permute.xlu0 %1231  ;;  %2326 = vmatpush1.msra.mxu0 %v2093_v18  ;;  %v9510_v18 = vpack.i.bf16 %v18322_v4, %v18317_v13 }
 0x20f   : > { %18521 = vst [vmem:[#allocation250_spill] sm:$0xff] %v11690_v17  ;;  %18522 = vst [vmem:[#allocation251_spill] sm:$0xff] %v11692_v44  ;;  %v11706_v17 = vld [vmem:[%s10107_s26 + $0x1b8] sm:$0x3f]  ;;  %v11709_v44 = vld [vmem:[%s10107_s26 + $0x1b0] sm:$0xff]  ;;  %2327 = vmatprep.subr.mxu0 %v17844_v39 }
 0x210   : > { %1419 = vrot.lane.b32.xlu1 %v11016_v36, %s9992_s15  ;;  %1415 = vrot.lane.b32.xlu0 %v9846_v49, %s9992_s15  ;;  %v2109_v36 = vld [vmem:[%s17634_s1 + $0x88] sm:$0xff] }
 0x211   : > { %2328 = vmatpush1.msra.mxu0 %v2092_v53  ;;  %v2108_v53 = vld [vmem:[%s17634_s1 + $0x80] sm:$0xff] }
 0x212   : > { %v11711_v6 = vpop.permute.xlu1 %1239  ;;  %v11713_v2 = vpop.permute.xlu0 %1235  ;;  %2357 = vmatprep.subr.mxu0 %v17844_v39 }
 0x213   : > { %18523 = vst [vmem:[#allocation252_spill] sm:$0xff] %v11711_v6  ;;  %2358 = vmatpush2.msra.mxu0 %v2109_v36 }
 0x214   : > { %1423 = vrot.lane.b32.xlu1 %v11706_v17, %s9992_s15  ;;  %1421 = vrot.lane.b32.xlu0 %v11709_v44, %s9992_s15 }
 0x215   : > { %2359 = vmatprep.subr.mxu0 %v17844_v39 }
 0x216   : > { %v11726_v49 = vpop.permute.xlu1 %1243  ;;  %v11728_v6 = vpop.permute.xlu0 %1241  ;;  %2360 = vmatpush2.msra.mxu0 %v2108_v53 }
 0x217   : > { %18524 = vst [vmem:[#allocation253_spill] sm:$0xff] %v11726_v49  ;;  %18525 = vst [vmem:[#allocation254_spill] sm:$0xff] %v11728_v6  ;;  %9262 = vmatprep.subr.mxu0 %v17844_v39 }
 0x218   : > { %1481 = vrot.lane.b32.xlu1 %v10130_v9, %s9994_s17  ;;  %9511 = vrot.lane.b32.xlu0 %v9510_v18, %s9994_s17  ;;  %v9515_v9 = vpack.i.bf16 %v18340_v16, %v18329_v32 }
 0x21a   : > { %v11737_v13 = vpop.permute.xlu1 %1247  ;;  %v11739_v4 = vpop.permute.xlu0 %9471 }
 0x21b   : > { %18526 = vst [vmem:[#allocation255_spill] sm:$0xff] %v11737_v13  ;;  %18527 = vst [vmem:[#allocation256_spill] sm:$0xff] %v11739_v4  ;;  %v18563_v13 = vld [vmem:[#allocation67_spill] sm:$0xff] }
 0x21c   : > { %1485 = vrot.lane.b32.xlu1 %v18323_v30, %s9994_s17  ;;  %1483 = vrot.lane.b32.xlu0 %v10180_v26, %s9994_s17 }
 0x21e   : > { %v11746_v36 = vpop.permute.xlu1 %1251  ;;  %v11748_v6 = vpop.permute.xlu0 %1249 }
 0x21f   : > { %18528 = vst [vmem:[#allocation257_spill] sm:$0xff] %v11746_v36  ;;  %18529 = vst [vmem:[#allocation258_spill] sm:$0xff] %v11748_v6  ;;  %v9849_v6 = vld [vmem:[%s10107_s26 + $0x10] sm:$0xff] }
 0x220   : > { %1491 = vrot.lane.b32.xlu1 %v18320_v11, %s9994_s17  ;;  %1489 = vrot.lane.b32.xlu0 %v18326_v22, %s9994_s17 }
 0x222   : > { %v11756_v18 = vpop.permute.xlu1 %1257  ;;  %v11758_v53 = vpop.permute.xlu0 %1255 }
 0x223   : > { %18530 = vst [vmem:[#allocation259_spill] sm:$0xff] %v11756_v18  ;;  %18531 = vst [vmem:[#allocation260_spill] sm:$0xff] %v11758_v53  ;;  %v18561_v53 = vld [vmem:[#allocation78_spill] sm:$0xff] }
 0x224   : > { %9516 = vrot.lane.b32.xlu1 %v9515_v9, %s9994_s17  ;;  %1493 = vrot.lane.b32.xlu0 %v18330_v8, %s9994_s17  ;;  %v9525_v9 = vpack.i.bf16 %v18367_v33, %v18357_v21  ;;  %v9333_v18 = vunpack.i.l.bf16 %v18561_v53 }
 0x226   : > { %v11763_v26 = vpop.permute.xlu1 %9476  ;;  %v11765_v30 = vpop.permute.xlu0 %1259 }
 0x227   : > { %18532 = vst [vmem:[#allocation261_spill] sm:$0xff] %v11763_v26  ;;  %18533 = vst [vmem:[#allocation262_spill] sm:$0xff] %v11765_v30  ;;  %v18562_v30 = vld [vmem:[#allocation132_spill] sm:$0xff] }
 0x228   : > { %1499 = vrot.lane.b32.xlu1 %v18321_v10, %s9994_s17  ;;  %1497 = vrot.lane.b32.xlu0 %v18334_v31, %s9994_s17  ;;  %v9520_v10 = vpack.i.bf16 %v11110_v25, %v18347_v7 }
 0x22a   : > { %v11771_v22 = vpop.permute.xlu1 %1265  ;;  %v11773_v11 = vpop.permute.xlu0 %1263 }
 0x22b   : > { %18534 = vst [vmem:[#allocation263_spill] sm:$0xff] %v11771_v22  ;;  %18535 = vst [vmem:[#allocation264_spill] sm:$0xff] %v11773_v11 }
 0x22c   : > { %1505 = vrot.lane.b32.xlu1 %v18339_v46, %s9994_s17  ;;  %1501 = vrot.lane.b32.xlu0 %v18333_v0, %s9994_s17  ;;  %v1473_v0 = vrot.slane %v11545_v42, 1  ;;  %v1474_v46 = vrot.slane %v11558_v56, 1 }
 0x22e   : > { %v11779_v8 = vpop.permute.xlu1 %1271  ;;  %v11781_v16 = vpop.permute.xlu0 %1267 }
 0x22f   : > { %18536 = vst [vmem:[#allocation265_spill] sm:$0xff] %v11779_v8  ;;  %18537 = vst [vmem:[#allocation266_spill] sm:$0xff] %v11781_v16 }
 0x230   : > { %1509 = vrot.lane.b32.xlu1 %v18343_v14, %s9994_s17  ;;  %1507 = vrot.lane.b32.xlu0 %v18337_v5, %s9994_s17  ;;  %v1475_v14 = vsel %vm443_vm0, %v1473_v0, %v1474_v46 }
 0x232   : > { %v11789_v32 = vpop.permute.xlu1 %1275  ;;  %v11791_v31 = vpop.permute.xlu0 %1273 }
 0x233   : > { %18538 = vst [vmem:[#allocation267_spill] sm:$0xff] %v11789_v32  ;;  %18539 = vst [vmem:[#allocation268_spill] sm:$0xff] %v11791_v31 }
 0x234   : > { %1513 = vrot.lane.b32.xlu1 %v18346_v58, %s9994_s17  ;;  %9521 = vrot.lane.b32.xlu0 %v9520_v10, %s9994_s17 }
 0x236   : > { %v11798_v7 = vpop.permute.xlu1 %1331  ;;  %v11800_v25 = vpop.permute.xlu0 %9481 }
 0x238   : > { %1517 = vrot.lane.b32.xlu1 %v18352_v50, %s9994_s17  ;;  %1515 = vrot.lane.b32.xlu0 %v18338_v24, %s9994_s17 }
 0x23a   : > { %v11807_v5 = vpop.permute.xlu1 %1335  ;;  %v11809_v58 = vpop.permute.xlu0 %1333 }
 0x23c   : > { %1523 = vrot.lane.b32.xlu1 %v1475_v14, %s9994_s17  ;;  %1521 = vrot.lane.b32.xlu0 %v11098_v23, %s9994_s17 }
 0x23e   : > { %v11816_v10 = vpop.permute.xlu1 %1341  ;;  %v11818_v50 = vpop.permute.xlu0 %1339 }
 0x240   : > { %9526 = vrot.lane.b32.xlu1 %v9525_v9, %s9994_s17  ;;  %1525 = vrot.lane.b32.xlu0 %v1474_v46, %s9994_s17 }
 0x242   : > { %v11822_v24 = vpop.permute.xlu1 %9486  ;;  %v11824_v0 = vpop.permute.xlu0 %1343 }
 0x244   : > { %1531 = vrot.lane.b32.xlu1 %v18351_v15, %s9994_s17  ;;  %1529 = vrot.lane.b32.xlu0 %v18362_v45, %s9994_s17  ;;  %v9530_v15 = vpack.i.bf16 %v18379_v43, %v18374_v35  ;;  %v9535_v35 = vpack.i.bf16 %v11209_v20, %v18386_v37  ;;  %v18540_v20 = vld [vmem:[#allocation46_spill] sm:$0xff]  ;;  %v1476_v37 = vrot.slane %v11709_v44, 1 }
 0x246   : > { %v11830_v23 = vpop.permute.xlu1 %1349  ;;  %v11832_v21 = vpop.permute.xlu0 %1347 }
 0x248   : > { %1537 = vrot.lane.b32.xlu1 %v18366_v55, %s9994_s17  ;;  %1533 = vrot.lane.b32.xlu0 %v18361_v29, %s9994_s17 }
 0x24a   : > { %v11838_v33 = vpop.permute.xlu1 %1355  ;;  %v11840_v46 = vpop.permute.xlu0 %1351 }
 0x24c   : > { %1541 = vrot.lane.b32.xlu1 %v18370_v3, %s9994_s17  ;;  %1539 = vrot.lane.b32.xlu0 %v10457_v19, %s9994_s17 }
 0x24e   : > { %v11848_v45 = vpop.permute.xlu1 %1359  ;;  %v11850_v14 = vpop.permute.xlu0 %1357 }
 0x250   : > { %1545 = vrot.lane.b32.xlu1 %v18373_v1, %s9994_s17  ;;  %9531 = vrot.lane.b32.xlu0 %v9530_v15, %s9994_s17 }
 0x252   : > { %v11855_v29 = vpop.permute.xlu1 %1363  ;;  %v11857_v55 = vpop.permute.xlu0 %9491 }
 0x254   : > { %1549 = vrot.lane.b32.xlu1 %v18380_v62, %s9994_s17  ;;  %1547 = vrot.lane.b32.xlu0 %v18365_v47, %s9994_s17 }
 0x256   : > { %v11863_v19 = vpop.permute.xlu1 %1367  ;;  %v11865_v43 = vpop.permute.xlu0 %1365 }
 0x258   : > { %1555 = vrot.lane.b32.xlu1 %v18377_v54, %s9994_s17  ;;  %1553 = vrot.lane.b32.xlu0 %v18383_v12, %s9994_s17  ;;  %v18541_v54 = vld [vmem:[#allocation39_spill] sm:$0xff]  ;;  %v1477_v12 = vrot.slane %v11706_v17, 1 }
 0x25a   : > { %v11873_v1 = vpop.permute.xlu1 %1373  ;;  %v11875_v3 = vpop.permute.xlu0 %1371  ;;  %v1478_v39 = vsel %vm443_vm0, %v1476_v37, %v1477_v12 }
 0x25c   : > { %9536 = vrot.lane.b32.xlu1 %v9535_v35, %s9994_s17  ;;  %1557 = vrot.lane.b32.xlu0 %v18387_v63, %s9994_s17  ;;  %v18544_v63 = vld [vmem:[#allocation38_spill] sm:$0xff]  ;;  %v18545_v35 = vld [vmem:[#allocation45_spill] sm:$0xff] }
 0x25e   : > { %v11880_v47 = vpop.permute.xlu1 %9496  ;;  %v11882_v62 = vpop.permute.xlu0 %1375 }
 0x260   : > { %1563 = vrot.lane.b32.xlu1 %v18540_v20, %s9994_s17  ;;  %1561 = vrot.lane.b32.xlu0 %v18541_v54, %s9994_s17 }
 0x262   : > { %v11890_v9 = vpop.permute.xlu1 %1381  ;;  %v11892_v15 = vpop.permute.xlu0 %1379 }
 0x263   : > { %18542 = vst [vmem:[#allocation46_spill] sm:$0xff] %v11890_v9  ;;  %18543 = vst [vmem:[#allocation39_spill] sm:$0xff] %v11892_v15  ;;  %v18574_v9 = vld [vmem:[#allocation22_spill] sm:$0xff] }
 0x264   : > { %1569 = vrot.lane.b32.xlu1 %v18544_v63, %s9994_s17  ;;  %1565 = vrot.lane.b32.xlu0 %v18545_v35, %s9994_s17 }
 0x266   : > { %v11899_v20 = vpop.permute.xlu1 %1387  ;;  %v11901_v8 = vpop.permute.xlu0 %1383 }
 0x267   : > { %18546 = vst [vmem:[#allocation38_spill] sm:$0xff] %v11899_v20  ;;  %v9453_v20 = vunpack.i.l.bf16 %v11532_v41 }
 0x268   : > { %1573 = vrot.lane.b32.xlu1 %v1477_v12, %s9994_s17  ;;  %1571 = vrot.lane.b32.xlu0 %v1478_v39, %s9994_s17 }
 0x26a   : > { %v11905_v44 = vpop.permute.xlu1 %1391  ;;  %v11907_v17 = vpop.permute.xlu0 %1389 }
 0x26b   : > { %18547 = vst [vmem:[#allocation45_spill] sm:$0xff] %v11905_v44  ;;  %18548 = vst [vmem:[#allocation269_spill] sm:$0xff] %v11907_v17  ;;  %v18571_v44 = vld [vmem:[#allocation134_spill] sm:$0xff] }
 0x26e   : > { %v11909_v54 = vpop.permute.xlu1 %1395  ;;  %v11911_v63 = vpop.permute.xlu0 %9501 }
 0x26f   : > { %18549 = vst [vmem:[#allocation270_spill] sm:$0xff] %v11909_v54  ;;  %18550 = vst [vmem:[#allocation271_spill] sm:$0xff] %v11911_v63  ;;  %v9847_v54 = vld [vmem:[%s10107_s26 + $0x18] sm:$0x3f] }
 0x272   : > { %v11913_v35 = vpop.permute.xlu1 %1399  ;;  %v11915_v37 = vpop.permute.xlu0 %1397 }
 0x273   : > { %18551 = vst [vmem:[#allocation272_spill] sm:$0xff] %v11913_v35  ;;  %18552 = vst [vmem:[#allocation273_spill] sm:$0xff] %v11915_v37  ;;  %v9848_v37 = vld [vmem:[%s10107_s26 + $0x8] sm:$0x3f]  ;;  %v9423_v35 = vunpack.i.l.bf16 %v11292_v38 }
 0x276   : > { %v11917_v31 = vpop.permute.xlu1 %1405  ;;  %v11919_v12 = vpop.permute.xlu0 %1403 }
 0x277   : > { %18553 = vst [vmem:[#allocation274_spill] sm:$0xff] %v11917_v31  ;;  %18554 = vst [vmem:[#allocation275_spill] sm:$0xff] %v11919_v12  ;;  %v9363_v31 = vunpack.i.l.bf16 %v18562_v30  ;;  %v1633_v12 = vsel %vm1629_vm2, %v9847_v54, %v18563_v13  ;;  %v9334_v13 = vunpack.i.h.bf16 %v18561_v53  ;;  %v9850_v54 = vld [vmem:[%s10107_s26] sm:$0xff]  ;;  %v18572_v53 = vld [vmem:[#allocation26_spill] sm:$0xff] }
 0x278   : > { %v1630_v4 = vsel %vm1629_vm2, %v9850_v54, %v9333_v18  ;;  %v18573_v54 = vld [vmem:[#allocation19_spill] sm:$0xff] }
 0x27a   : > { %v11921_v39 = vpop.permute.xlu1 %9506  ;;  %v11923_v32 = vpop.permute.xlu0 %1407 }
 0x27b   : > { %18555 = vst [vmem:[#allocation276_spill] sm:$0xff] %v11921_v39  ;;  %18556 = vst [vmem:[#allocation277_spill] sm:$0xff] %v11923_v32  ;;  %v18564_v39 = vld [vmem:[#allocation15_spill] sm:$0xff] }
 0x27c   : > { %v9393_v32 = vunpack.i.l.bf16 %v18564_v39 }
 0x27e   : > { %v11925_v11 = vpop.permute.xlu1 %1413  ;;  %v11927_v22 = vpop.permute.xlu0 %1411 }
 0x27f   : > { %18557 = vst [vmem:[#allocation278_spill] sm:$0xff] %v11925_v11  ;;  %18558 = vst [vmem:[#allocation279_spill] sm:$0xff] %v11927_v22  ;;  %v18565_v11 = vld [vmem:[#allocation68_spill] sm:$0xff] }
 0x280   : > { %v1631_v22 = vsel %vm1629_vm2, %v9848_v37, %v18565_v11  ;;  %v18569_v11 = vld [vmem:[#allocation131_spill] sm:$0xff] }
 0x281   : > { %v1680_v37 = vsel %vm1678_vm3, %v1631_v22, %v18569_v11 }
 0x282   : > { %v11929_v16 = vpop.permute.xlu1 %1419  ;;  %v11931_v26 = vpop.permute.xlu0 %1415  ;;  %v1729_v49 = vsel %vm1727_vm4, %v1680_v37, %v18572_v53  ;;  %v18577_v37 = vld [vmem:[#allocation17_spill] sm:$0xff] }
 0x283   : > { %18559 = vst [vmem:[#allocation280_spill] sm:$0xff] %v11929_v16  ;;  %18560 = vst [vmem:[#allocation281_spill] sm:$0xff] %v11931_v26  ;;  %v18566_v16 = vld [vmem:[#allocation71_spill] sm:$0xff] }
 0x284   : > { %v1632_v26 = vsel %vm1629_vm2, %v9849_v6, %v18566_v16  ;;  %v1679_v6 = vsel %vm1678_vm3, %v1630_v4, %v9363_v31  ;;  %v18570_v16 = vld [vmem:[#allocation133_spill] sm:$0xff]  ;;  %v18575_v4 = vld [vmem:[#allocation178_spill] sm:$0xff] }
 0x285   : > { %v1682_v17 = vsel %vm1678_vm3, %v1633_v12, %v18570_v16  ;;  %v1728_v18 = vsel %vm1727_vm4, %v1679_v6, %v9393_v32  ;;  %v1778_v31 = vsel %vm1776_vm5, %v1729_v49, %v18575_v4 }
 0x286   : > { %v11946_v63 = vpop.permute.xlu1 %1423  ;;  %v11948_v36 = vpop.permute.xlu0 %1421  ;;  %v1731_v15 = vsel %vm1727_vm4, %v1682_v17, %v18573_v54  ;;  %v1777_v12 = vsel %vm1776_vm5, %v1728_v18, %v9423_v35  ;;  %v1827_v6 = vsel %vm1825_vm6, %v1778_v31, %v11530_v59  ;;  %v9364_v54 = vunpack.i.h.bf16 %v18562_v30  ;;  %v18580_v31 = vld [vmem:[#allocation48_spill] sm:$0xff] }
 0x287   : > { %18567 = vst [vmem:[#allocation78_spill] sm:$0xff] %v11946_v63  ;;  %18568 = vst [vmem:[#allocation132_spill] sm:$0xff] %v11948_v36  ;;  %v9483_v63 = vunpack.i.l.bf16 %v11800_v25  ;;  %v1681_v36 = vsel %vm1678_vm3, %v1632_v26, %v18571_v44  ;;  %v1826_v32 = vsel %vm1825_vm6, %v1777_v12, %v9453_v20  ;;  %v18576_v44 = vld [vmem:[#allocation52_spill] sm:$0xff] }
 0x288   : > { %v1730_v22 = vsel %vm1727_vm4, %v1681_v36, %v18574_v9  ;;  %v9054_v17 = vcombine.low %v18577_v37, %v18576_v44  ;;  %v1780_v36 = vsel %vm1776_vm5, %v1731_v15, %v11302_v48  ;;  %v18578_v9 = vld [vmem:[#allocation180_spill] sm:$0xff]  ;;  %v1876_v48 = vsel %vm1874_vm7, %v1827_v6, %v11798_v7 }
 0x289   : > { %v1779_v49 = vsel %vm1776_vm5, %v1730_v22, %v18578_v9  ;;  %v1875_v35 = vsel %vm1874_vm7, %v1826_v32, %v9483_v63  ;;  %v1829_v53 = vsel %vm1825_vm6, %v1780_v36, %v11547_v51  ;;  %v9394_v51 = vunpack.i.h.bf16 %v18564_v39  ;;  %v18579_v7 = vld [vmem:[#allocation72_spill] sm:$0xff]  ;;  %v18581_v32 = vld [vmem:[#allocation74_spill] sm:$0xff] }
 0x28a   : > { %v1482_v11 = vpop.permute.xlu1 %1481  ;;  %v11972_v16 = vpop.permute.xlu0 %9511  ;;  %v1828_v20 = vsel %vm1825_vm6, %v1779_v49, %v11549_v52  ;;  %v1878_v15 = vsel %vm1874_vm7, %v1829_v53, %v11807_v5  ;;  %v1635_v5 = vsel %vm1629_vm2, %v11422_v27, %v18579_v7  ;;  %v1636_v39 = vsel %vm1629_vm2, %v11437_v28, %v18581_v32  ;;  %v18583_v9 = vld [vmem:[#allocation138_spill] sm:$0xff]  ;;  %v18584_v28 = vld [vmem:[#allocation135_spill] sm:$0xff] }
 0x28b   : > { %v9513_v26 = vunpack.i.l.bf16 %v11972_v16  ;;  %v1877_v63 = vsel %vm1874_vm7, %v1828_v20, %v11809_v58  ;;  %v1925_v52 = vsel %vm1923_vm8, %v1876_v48, %v1482_v11  ;;  %v18582_v11 = vld [vmem:[#allocation75_spill] sm:$0xff]  ;;  %v9424_v36 = vunpack.i.h.bf16 %v11292_v38  ;;  %v18586_v38 = vld [vmem:[#allocation33_spill] sm:$0xff]  ;;  %v18587_v48 = vld [vmem:[#allocation16_spill] sm:$0xff] }
 0x28c   : > { %v1637_v37 = vsel %vm1629_vm2, %v11432_v34, %v18582_v11  ;;  %v1685_v20 = vsel %vm1678_vm3, %v1636_v39, %v18584_v28  ;;  %v18585_v34 = vld [vmem:[#allocation136_spill] sm:$0xff]  ;;  %v18593_v39 = vld [vmem:[#allocation235_spill] sm:$0xff] }
 0x28d   : > { %v1924_v18 = vsel %vm1923_vm8, %v1875_v35, %v9513_v26  ;;  %v1686_v49 = vsel %vm1678_vm3, %v1637_v37, %v18583_v9  ;;  %v9454_v35 = vunpack.i.h.bf16 %v11532_v41  ;;  %v18588_v41 = vld [vmem:[#allocation183_spill] sm:$0xff]  ;;  %v18594_v37 = vld [vmem:[#allocation236_spill] sm:$0xff]  ;;  %v18597_v9 = vld [vmem:[#allocation50_spill] sm:$0xff] }
 0x28e   : > { %v1486_v59 = vpop.permute.xlu1 %1485  ;;  %v1484_v22 = vpop.permute.xlu0 %1483  ;;  %2362 = vmatmul.mubr.f32.vlgmr.msra.gmra.mxu0 %v1924_v18  ;;  %v1684_v18 = vsel %vm1678_vm3, %v1635_v5, %v18585_v34  ;;  %v9514_v5 = vunpack.i.h.bf16 %v11972_v16 }
 0x28f   : > { %v1927_v4 = vsel %vm1923_vm8, %v1878_v15, %v1486_v59  ;;  %v1926_v30 = vsel %vm1923_vm8, %v1877_v63, %v1484_v22  ;;  %9102 = vmatprep.mubr.msk.f32.mxu0 %vm1629_vm2, %v9054_v17  ;;  %v1634_v17 = vsel %vm1629_vm2, %v11413_v57, %v9334_v13  ;;  %v1735_v13 = vsel %vm1727_vm4, %v1686_v49, %v18586_v38  ;;  %v18589_v22 = vld [vmem:[#allocation20_spill] sm:$0xff]  ;;  %v18599_v38 = vld [vmem:[#allocation55_spill] sm:$0xff] }
 0x290   : > { %v2025_v12 = vcombine.low %v1927_v4, %v18580_v31  ;;  %v2024_v58 = vcombine.high %v1926_v30, %v18576_v44  ;;  %v9053_v26 = vcombine.low %v1925_v52, %v1926_v30  ;;  %v1683_v27 = vsel %vm1678_vm3, %v1634_v17, %v9364_v54  ;;  %v18590_v30 = vld [vmem:[#allocation238_spill] sm:$0xff]  ;;  %v18591_v31 = vld [vmem:[#allocation76_spill] sm:$0xff] }
 0x291   : > { %v1732_v57 = vsel %vm1727_vm4, %v1683_v27, %v9394_v51  ;;  %v1734_v15 = vsel %vm1727_vm4, %v1685_v20, %v18587_v48  ;;  %v9484_v63 = vunpack.i.h.bf16 %v11800_v25  ;;  %v1733_v52 = vsel %vm1727_vm4, %v1684_v18, %v18589_v22  ;;  %v18596_v27 = vld [vmem:[#allocation56_spill] sm:$0xff] }
 0x292   : > { %v9056_v6 = vcombine.high %v18576_v44, %v2025_v12  ;;  %v1490_v53 = vpop.permute.xlu0 %1489  ;;  %2367 = vmatmul.mubr.f32.gmra.mxu0 %v9053_v26  ;;  %v1492_v54 = vpop.permute.xlu1 %1491  ;;  %v1784_v44 = vsel %vm1776_vm5, %v1735_v13, %v18588_v41  ;;  %v9055_v59 = vcombine.low %v2024_v58, %v1927_v4  ;;  %v1781_v51 = vsel %vm1776_vm5, %v1732_v57, %v9424_v36  ;;  %v18592_v26 = vld [vmem:[#allocation181_spill] sm:$0xff] }
 0x293   : > { %v1833_v7 = vsel %vm1825_vm6, %v1784_v44, %v18590_v30  ;;  %v1783_v12 = vsel %vm1776_vm5, %v1734_v15, %v18591_v31  ;;  %v1782_v32 = vsel %vm1776_vm5, %v1733_v52, %v18592_v26  ;;  %v1830_v58 = vsel %vm1825_vm6, %v1781_v51, %v9454_v35  ;;  %v18595_v36 = vld [vmem:[#allocation53_spill] sm:$0xff]  ;;  %v18605_v51 = vld [vmem:[#allocation82_spill] sm:$0xff]  ;;  %v18608_v31 = vld [vmem:[#allocation211_spill] sm:$0xff] }
 0x294   : > { %9103 = vmatprep.mubr.msk.f32.mxu0 %vm1629_vm2, %v9056_v6  ;;  %v1882_v25 = vsel %vm1874_vm7, %v1833_v7, %v11824_v0  ;;  %v1832_v11 = vsel %vm1825_vm6, %v1783_v12, %v18593_v39  ;;  %v1831_v17 = vsel %vm1825_vm6, %v1782_v32, %v18594_v37  ;;  %v9058_v49 = vcombine.low %v18597_v9, %v18596_v27  ;;  %v18598_v6 = vld [vmem:[#allocation77_spill] sm:$0xff]  ;;  %v18606_v30 = vld [vmem:[#allocation210_spill] sm:$0xff] }
 0x295   : > { %v9338_v0 = vunpack.i.l.bf16 %v18598_v6  ;;  %v1881_v28 = vsel %vm1874_vm7, %v1832_v11, %v11816_v10  ;;  %v1880_v35 = vsel %vm1874_vm7, %v1831_v17, %v11818_v50  ;;  %v1879_v20 = vsel %vm1874_vm7, %v1830_v58, %v9484_v63  ;;  %v18600_v15 = vld [vmem:[#allocation137_spill] sm:$0xff]  ;;  %v18601_v10 = vld [vmem:[#allocation203_spill] sm:$0xff]  ;;  %v18602_v63 = vld [vmem:[#allocation88_spill] sm:$0xff] }
 0x296   : > { %v1494_v4 = vpop.permute.xlu0 %1493  ;;  %2372 = vmatmul.mubr.f32.gmra.mxu0 %v9055_v59  ;;  %v1930_v34 = vsel %vm1923_vm8, %v1881_v28, %v1492_v54  ;;  %v1929_v18 = vsel %vm1923_vm8, %v1880_v35, %v1490_v53  ;;  %v12064_v57 = vpop.permute.xlu1 %9516  ;;  %v1928_v48 = vsel %vm1923_vm8, %v1879_v20, %v9514_v5  ;;  %v9368_v41 = vunpack.i.l.bf16 %v18600_v15  ;;  %v18603_v59 = vld [vmem:[#allocation216_spill] sm:$0xff]  ;;  %v18604_v53 = vld [vmem:[#allocation29_spill] sm:$0xff]  ;;  %v18607_v5 = vld [vmem:[#allocation83_spill] sm:$0xff] }
 0x297   : > { %v1931_v16 = vsel %vm1923_vm8, %v1882_v25, %v1494_v4  ;;  %9104 = vmatprep.mubr.msk.f32.mxu0 %vm1629_vm2, %v18595_v36  ;;  %v1638_v50 = vsel %vm1629_vm2, %v18601_v10, %v9338_v0  ;;  %v1641_v54 = vsel %vm1629_vm2, %v18603_v59, %v18602_v63  ;;  %v9398_v22 = vunpack.i.l.bf16 %v18604_v53  ;;  %v18609_v26 = vld [vmem:[#allocation142_spill] sm:$0xff]  ;;  %v18612_v36 = vld [vmem:[#allocation139_spill] sm:$0xff]  ;;  %v18615_v20 = vld [vmem:[#allocation237_spill] sm:$0xff] }
 0x298   : > { %v2031_v13 = vcombine.low %v1931_v16, %v18599_v38  ;;  %v9057_v52 = vcombine.low %v1929_v18, %v1930_v34  ;;  %v1640_v7 = vsel %vm1629_vm2, %v18606_v30, %v18605_v51  ;;  %v1639_v12 = vsel %vm1629_vm2, %v18608_v31, %v18607_v5  ;;  %v18610_v58 = vld [vmem:[#allocation30_spill] sm:$0xff]  ;;  %v18618_v59 = vld [vmem:[#allocation27_spill] sm:$0xff]  ;;  %v18620_v5 = vld [vmem:[#allocation184_spill] sm:$0xff] }
 0x299   : > { %v1690_v32 = vsel %vm1678_vm3, %v1641_v54, %v18609_v26  ;;  %v1687_v4 = vsel %vm1678_vm3, %v1638_v50, %v9368_v41  ;;  %v18611_v11 = vld [vmem:[#allocation182_spill] sm:$0xff]  ;;  %v2030_v17 = vcombine.high %v1930_v34, %v18596_v27  ;;  %v1689_v9 = vsel %vm1678_vm3, %v1640_v7, %v18612_v36  ;;  %v18617_v50 = vld [vmem:[#allocation23_spill] sm:$0xff] }
 0x29a   : > { %v1498_v44 = vpop.permute.xlu0 %1497  ;;  %2377 = vmatmul.mubr.f32.gmra.mxu0 %v1928_v48  ;;  %v9060_v25 = vcombine.high %v18596_v27, %v2031_v13  ;;  %v1739_v39 = vsel %vm1727_vm4, %v1690_v32, %v18610_v58  ;;  %v9428_v37 = vunpack.i.l.bf16 %v18611_v11  ;;  %v18614_v28 = vld [vmem:[#allocation186_spill] sm:$0xff]  ;;  %v9458_v18 = vunpack.i.l.bf16 %v18615_v20  ;;  %v1500_v38 = vpop.permute.xlu1 %1499  ;;  %v18622_v32 = vld [vmem:[#allocation240_spill] sm:$0xff] }
 0x29b   : > { %9105 = vmatprep.mubr.msk.f32.mxu0 %vm1629_vm2, %v9058_v49  ;;  %v18613_v49 = vld [vmem:[#allocation140_spill] sm:$0xff]  ;;  %v1788_v35 = vsel %vm1776_vm5, %v1739_v39, %v18614_v28  ;;  %v1736_v48 = vsel %vm1727_vm4, %v1687_v4, %v9398_v22  ;;  %v18616_v41 = vld [vmem:[#allocation242_spill] sm:$0xff]  ;;  %v9488_v34 = vunpack.i.l.bf16 %v11822_v24  ;;  %v9059_v10 = vcombine.low %v2030_v17, %v1931_v16  ;;  %v18619_v22 = vld [vmem:[#allocation73_spill] sm:$0xff] }
 0x29c   : > { %v1688_v0 = vsel %vm1678_vm3, %v1639_v12, %v18613_v49  ;;  %v1837_v27 = vsel %vm1825_vm6, %v1788_v35, %v18616_v41  ;;  %v1738_v63 = vsel %vm1727_vm4, %v1689_v9, %v18617_v50  ;;  %v9518_v51 = vunpack.i.l.bf16 %v12064_v57  ;;  %v18621_v12 = vld [vmem:[#allocation239_spill] sm:$0xff]  ;;  %v18624_v58 = vld [vmem:[#allocation60_spill] sm:$0xff] }
 0x29d   : > { %v1737_v54 = vsel %vm1727_vm4, %v1688_v0, %v18618_v59  ;;  %v1785_v30 = vsel %vm1776_vm5, %v1736_v48, %v9428_v37  ;;  %v1787_v7 = vsel %vm1776_vm5, %v1738_v63, %v18619_v22  ;;  %v18625_v39 = vld [vmem:[#allocation51_spill] sm:$0xff]  ;;  %v9339_v17 = vunpack.i.h.bf16 %v18598_v6  ;;  %v18628_v41 = vld [vmem:[#allocation224_spill] sm:$0xff] }
 0x29e   : > { %2382 = vmatmul.mubr.f32.gmra.mxu0 %v9057_v52  ;;  %v1502_v13 = vpop.permute.xlu0 %1501  ;;  %v1886_v52 = vsel %vm1874_vm7, %v1837_v27, %v11840_v46  ;;  %v1786_v31 = vsel %vm1776_vm5, %v1737_v54, %v18620_v5  ;;  %v1836_v26 = vsel %vm1825_vm6, %v1787_v7, %v18621_v12  ;;  %v18623_v46 = vld [vmem:[#allocation54_spill] sm:$0xff]  ;;  %v1834_v4 = vsel %vm1825_vm6, %v1785_v30, %v9458_v18  ;;  %v1506_v35 = vpop.permute.xlu1 %1505  ;;  %v18631_v59 = vld [vmem:[#allocation87_spill] sm:$0xff]  ;;  %v18632_v54 = vld [vmem:[#allocation220_spill] sm:$0xff] }
 0x29f   : > { %9106 = vmatprep.mubr.msk.f32.mxu0 %vm1629_vm2, %v9060_v25  ;;  %v1935_v16 = vsel %vm1923_vm8, %v1886_v52, %v1502_v13  ;;  %v1835_v25 = vsel %vm1825_vm6, %v1786_v31, %v18622_v32  ;;  %v9062_v37 = vcombine.low %v18625_v39, %v18624_v58  ;;  %v1885_v36 = vsel %vm1874_vm7, %v1836_v26, %v11830_v23  ;;  %v18626_v13 = vld [vmem:[#allocation57_spill] sm:$0xff]  ;;  %v18627_v23 = vld [vmem:[#allocation90_spill] sm:$0xff]  ;;  %v18634_v7 = vld [vmem:[#allocation91_spill] sm:$0xff] }
 0x2a0   : > { %v1884_v9 = vsel %vm1874_vm7, %v1835_v25, %v11832_v21  ;;  %v1883_v49 = vsel %vm1874_vm7, %v1834_v4, %v9488_v34  ;;  %v1934_v0 = vsel %vm1923_vm8, %v1885_v36, %v1500_v38  ;;  %v2037_v18 = vcombine.low %v1935_v16, %v18626_v13  ;;  %v18629_v34 = vld [vmem:[#allocation212_spill] sm:$0xff]  ;;  %v18633_v52 = vld [vmem:[#allocation25_spill] sm:$0xff]  ;;  %v18635_v5 = vld [vmem:[#allocation219_spill] sm:$0xff] }
 0x2a1   : > { %v1933_v28 = vsel %vm1923_vm8, %v1884_v9, %v1498_v44  ;;  %v1932_v48 = vsel %vm1923_vm8, %v1883_v49, %v9518_v51  ;;  %v9369_v6 = vunpack.i.h.bf16 %v18600_v15  ;;  %v1645_v21 = vsel %vm1629_vm2, %v18628_v41, %v18627_v23  ;;  %v18636_v12 = vld [vmem:[#allocation187_spill] sm:$0xff]  ;;  %v18637_v4 = vld [vmem:[#allocation144_spill] sm:$0xff]  ;;  %v18644_v41 = vld [vmem:[#allocation65_spill] sm:$0xff] }
 0x2a2   : > { %2387 = vmatmul.mubr.f32.gmra.mxu0 %v9059_v10  ;;  %v9061_v27 = vcombine.low %v1933_v28, %v1934_v0  ;;  %v1642_v38 = vsel %vm1629_vm2, %v18629_v34, %v9339_v17  ;;  %v18630_v10 = vld [vmem:[#allocation143_spill] sm:$0xff]  ;;  %v9399_v50 = vunpack.i.h.bf16 %v18604_v53  ;;  %v9064_v63 = vcombine.high %v18624_v58, %v2037_v18  ;;  %v1510_v25 = vpop.permute.xlu1 %1509  ;;  %v18638_v36 = vld [vmem:[#allocation40_spill] sm:$0xff]  ;;  %v18646_v34 = vld [vmem:[#allocation185_spill] sm:$0xff] }
 0x2a3   : > { %9107 = vmatprep.mubr.msk.f32.mxu0 %vm1629_vm2, %v18623_v46  ;;  %v1694_v44 = vsel %vm1678_vm3, %v1645_v21, %v18630_v10  ;;  %v1643_v15 = vsel %vm1629_vm2, %v18632_v54, %v18631_v59  ;;  %v9429_v30 = vunpack.i.h.bf16 %v18611_v11  ;;  %v2036_v22 = vcombine.high %v1934_v0, %v18624_v58  ;;  %v1508_v46 = vpop.permute.xlu0 %1507  ;;  %v18639_v0 = vld [vmem:[#allocation141_spill] sm:$0xff]  ;;  %v18640_v18 = vld [vmem:[#allocation188_spill] sm:$0xff]  ;;  %v18645_v21 = vld [vmem:[#allocation58_spill] sm:$0xff] }
 0x2a4   : > { %v1743_v51 = vsel %vm1727_vm4, %v1694_v44, %v18633_v52  ;;  %v1644_v31 = vsel %vm1629_vm2, %v18635_v5, %v18634_v7  ;;  %v1691_v53 = vsel %vm1678_vm3, %v1642_v38, %v9369_v6  ;;  %v9459_v32 = vunpack.i.h.bf16 %v18615_v20  ;;  %v18642_v6 = vld [vmem:[#allocation243_spill] sm:$0xff]  ;;  %v18650_v5 = vld [vmem:[#allocation146_spill] sm:$0xff] }
 0x2a5   : > { %v1792_v26 = vsel %vm1776_vm5, %v1743_v51, %v18636_v12  ;;  %v1693_v11 = vsel %vm1678_vm3, %v1644_v31, %v18637_v4  ;;  %v9489_v39 = vunpack.i.h.bf16 %v11822_v24  ;;  %v1740_v17 = vsel %vm1727_vm4, %v1691_v53, %v9399_v50  ;;  %v18647_v50 = vld [vmem:[#allocation241_spill] sm:$0xff]  ;;  %v18648_v59 = vld [vmem:[#allocation63_spill] sm:$0xff]  ;;  %v18653_v4 = vld [vmem:[#allocation96_spill] sm:$0xff] }
 0x2a6   : > { %2392 = vmatmul.mubr.f32.gmra.mxu0 %v1932_v48  ;;  %v1841_v58 = vsel %vm1825_vm6, %v1792_v26, %v11621_v61  ;;  %v1742_v9 = vsel %vm1727_vm4, %v1693_v11, %v18638_v36  ;;  %v9519_v49 = vunpack.i.h.bf16 %v12064_v57  ;;  %v1692_v28 = vsel %vm1678_vm3, %v1643_v15, %v18639_v0  ;;  %v12195_v52 = vpop.permute.xlu1 %1513  ;;  %v18651_v12 = vld [vmem:[#allocation101_spill] sm:$0xff]  ;;  %v18652_v26 = vld [vmem:[#allocation227_spill] sm:$0xff] }
 0x2a7   : > { %9108 = vmatprep.mubr.msk.f32.mxu0 %vm1629_vm2, %v9062_v37  ;;  %v9063_v37 = vcombine.low %v2036_v22, %v1935_v16  ;;  %v1890_v20 = vsel %vm1874_vm7, %v1841_v58, %v11848_v45  ;;  %v1789_v13 = vsel %vm1776_vm5, %v1740_v17, %v9429_v30  ;;  %v1791_v61 = vsel %vm1776_vm5, %v1742_v9, %v18640_v18  ;;  %v18641_v16 = vld [vmem:[#allocation28_spill] sm:$0xff]  ;;  %v18643_v45 = vld [vmem:[#allocation61_spill] sm:$0xff]  ;;  %v12197_v51 = vpop.permute.xlu0 %9521  ;;  %v18654_v11 = vld [vmem:[#allocation223_spill] sm:$0xff] }
 0x2a8   : > { %v1939_v24 = vsel %vm1923_vm8, %v1890_v20, %v1510_v25  ;;  %v1741_v48 = vsel %vm1727_vm4, %v1692_v28, %v18641_v16  ;;  %v1840_v23 = vsel %vm1825_vm6, %v1791_v61, %v18642_v6  ;;  %v1838_v57 = vsel %vm1825_vm6, %v1789_v13, %v9459_v32  ;;  %v18649_v22 = vld [vmem:[#allocation97_spill] sm:$0xff]  ;;  %v18659_v28 = vld [vmem:[#allocation190_spill] sm:$0xff]  ;;  %v18661_v61 = vld [vmem:[#allocation228_spill] sm:$0xff] }
 0x2a9   : > { %v1790_v38 = vsel %vm1776_vm5, %v1741_v48, %v18646_v34  ;;  %v1889_v10 = vsel %vm1874_vm7, %v1840_v23, %v11850_v14  ;;  %v1887_v44 = vsel %vm1874_vm7, %v1838_v57, %v9489_v39  ;;  %v2043_v54 = vcombine.low %v1939_v24, %v18648_v59  ;;  %v18655_v39 = vld [vmem:[#allocation147_spill] sm:$0xff]  ;;  %v18657_v9 = vld [vmem:[#allocation213_spill] sm:$0xff]  ;;  %v18660_v18 = vld [vmem:[#allocation102_spill] sm:$0xff] }
 0x2aa   : > { %2397 = vmatmul.mubr.f32.gmra.mxu0 %v9061_v27  ;;  %v9066_v27 = vcombine.low %v18645_v21, %v18644_v41  ;;  %v1938_v15 = vsel %vm1923_vm8, %v1889_v10, %v1508_v46  ;;  %v1936_v30 = vsel %vm1923_vm8, %v1887_v44, %v9519_v49  ;;  %v9343_v7 = vunpack.i.l.bf16 %v18649_v22  ;;  %v18658_v49 = vld [vmem:[#allocation36_spill] sm:$0xff]  ;;  %v18662_v6 = vld [vmem:[#allocation191_spill] sm:$0xff] }
 0x2ab   : > { %9109 = vmatprep.mubr.msk.f32.mxu0 %vm1629_vm2, %v9064_v63  ;;  %v1839_v63 = vsel %vm1825_vm6, %v1790_v38, %v18647_v50  ;;  %v9373_v31 = vunpack.i.l.bf16 %v18650_v5  ;;  %v1649_v32 = vsel %vm1629_vm2, %v18652_v26, %v18651_v12  ;;  %v2042_v25 = vcombine.high %v1938_v15, %v18644_v41  ;;  %v1516_v21 = vpop.permute.xlu0 %1515  ;;  %v18665_v38 = vld [vmem:[#allocation246_spill] sm:$0xff]  ;;  %v18666_v59 = vld [vmem:[#allocation32_spill] sm:$0xff]  ;;  %v18669_v12 = vld [vmem:[#allocation31_spill] sm:$0xff] }
 0x2ac   : > { %v1888_v14 = vsel %vm1874_vm7, %v1839_v63, %v11838_v33  ;;  %v1647_v58 = vsel %vm1629_vm2, %v18654_v11, %v18653_v4  ;;  %v1698_v33 = vsel %vm1678_vm3, %v1649_v32, %v18655_v39  ;;  %v9344_v36 = vunpack.i.h.bf16 %v18649_v22  ;;  %v18667_v22 = vld [vmem:[#allocation145_spill] sm:$0xff]  ;;  %v18670_v32 = vld [vmem:[#allocation247_spill] sm:$0xff] }
 0x2ad   : > { %v1937_v53 = vsel %vm1923_vm8, %v1888_v14, %v1506_v35  ;;  %v9068_v35 = vcombine.high %v18644_v41, %v2043_v54  ;;  %v1646_v20 = vsel %vm1629_vm2, %v18657_v9, %v9343_v7  ;;  %v1747_v0 = vsel %vm1727_vm4, %v1698_v33, %v18658_v49  ;;  %v1518_v41 = vpop.permute.xlu1 %1517  ;;  %v18672_v4 = vld [vmem:[#allocation69_spill] sm:$0xff]  ;;  %v18673_v11 = vld [vmem:[#allocation59_spill] sm:$0xff] }
 0x2ae   : > { %2402 = vmatmul.mubr.f32.gmra.mxu0 %v9063_v37  ;;  %v9065_v46 = vcombine.low %v1937_v53, %v1938_v15  ;;  %v18656_v37 = vld [vmem:[#allocation34_spill] sm:$0xff]  ;;  %v9433_v13 = vunpack.i.l.bf16 %v18659_v28  ;;  %v1648_v16 = vsel %vm1629_vm2, %v18661_v61, %v18660_v18  ;;  %v1695_v48 = vsel %vm1678_vm3, %v1646_v20, %v9373_v31  ;;  %v18668_v31 = vld [vmem:[#allocation192_spill] sm:$0xff]  ;;  %v18674_v33 = vld [vmem:[#allocation189_spill] sm:$0xff] }
 0x2af   : > { %9110 = vmatprep.mubr.msk.f32.mxu0 %vm1629_vm2, %v18643_v45  ;;  %v9403_v17 = vunpack.i.l.bf16 %v18656_v37  ;;  %v1796_v23 = vsel %vm1776_vm5, %v1747_v0, %v18662_v6  ;;  %v18663_v45 = vld [vmem:[#allocation245_spill] sm:$0xff]  ;;  %v9493_v44 = vunpack.i.l.bf16 %v11857_v55  ;;  %v9067_v50 = vcombine.low %v2042_v25, %v1939_v24  ;;  %v18675_v20 = vld [vmem:[#allocation244_spill] sm:$0xff]  ;;  %v1522_v61 = vpop.permute.xlu0 %1521 }
 0x2b0   : > { %v9463_v57 = vunpack.i.l.bf16 %v18663_v45  ;;  %v1845_v10 = vsel %vm1825_vm6, %v1796_v23, %v18665_v38  ;;  %v1696_v7 = vsel %vm1678_vm3, %v1647_v58, %v18667_v22  ;;  %v9070_v58 = vcombine.low %v18673_v11, %v18672_v4  ;;  %v18676_v0 = vld [vmem:[#allocation64_spill] sm:$0xff]  ;;  %v18679_v23 = vld [vmem:[#allocation234_spill] sm:$0xff]  ;;  %v18682_v38 = vld [vmem:[#allocation107_spill] sm:$0xff] }
 0x2b1   : > { %v1744_v63 = vsel %vm1727_vm4, %v1695_v48, %v9403_v17  ;;  %v1894_v15 = vsel %vm1874_vm7, %v1845_v10, %v11863_v19  ;;  %v1745_v26 = vsel %vm1727_vm4, %v1696_v7, %v18669_v12  ;;  %v18671_v19 = vld [vmem:[#allocation62_spill] sm:$0xff]  ;;  %v9374_v39 = vunpack.i.h.bf16 %v18650_v5  ;;  %v18677_v48 = vld [vmem:[#allocation229_spill] sm:$0xff]  ;;  %v18678_v6 = vld [vmem:[#allocation104_spill] sm:$0xff] }
 0x2b2   : > { %2407 = vmatmul.mubr.f32.gmra.mxu0 %v1936_v30  ;;  %v9523_v30 = vunpack.i.l.bf16 %v12197_v51  ;;  %v1793_v14 = vsel %vm1776_vm5, %v1744_v63, %v9433_v13  ;;  %v1943_v24 = vsel %vm1923_vm8, %v1894_v15, %v1518_v41  ;;  %v1794_v17 = vsel %vm1776_vm5, %v1745_v26, %v18674_v33  ;;  %v18680_v41 = vld [vmem:[#allocation105_spill] sm:$0xff]  ;;  %v18686_v22 = vld [vmem:[#allocation152_spill] sm:$0xff]  ;;  %v18691_v33 = vld [vmem:[#allocation35_spill] sm:$0xff] }
 0x2b3   : > { %9111 = vmatprep.mubr.msk.f32.mxu0 %vm1629_vm2, %v9066_v27  ;;  %v18664_v27 = vld [vmem:[#allocation148_spill] sm:$0xff]  ;;  %v1843_v49 = vsel %vm1825_vm6, %v1794_v17, %v18675_v20  ;;  %v2049_v13 = vcombine.low %v1943_v24, %v18676_v0  ;;  %v1650_v5 = vsel %vm1629_vm2, %v18677_v48, %v9344_v36  ;;  %v9404_v10 = vunpack.i.h.bf16 %v18656_v37  ;;  %v18685_v15 = vld [vmem:[#allocation149_spill] sm:$0xff] }
 0x2b4   : > { %v1697_v34 = vsel %vm1678_vm3, %v1648_v16, %v18664_v27  ;;  %v18681_v27 = vld [vmem:[#allocation232_spill] sm:$0xff]  ;;  %v9434_v7 = vunpack.i.h.bf16 %v18659_v28  ;;  %v1623_v26 = vrot.slane %v11545_v42, 2  ;;  %v9494_v42 = vunpack.i.h.bf16 %v11857_v55 }
 0x2b5   : > { %v1746_v54 = vsel %vm1727_vm4, %v1697_v34, %v18666_v59  ;;  %v1651_v34 = vsel %vm1629_vm2, %v18681_v27, %v18680_v41  ;;  %v18683_v36 = vld [vmem:[#allocation108_spill] sm:$0xff]  ;;  %v9524_v0 = vunpack.i.h.bf16 %v12197_v51 }
 0x2b6   : > { %2412 = vmatmul.mubr.f32.gmra.mxu0 %v9065_v46  ;;  %v1795_v53 = vsel %vm1776_vm5, %v1746_v54, %v18668_v31  ;;  %v1842_v46 = vsel %vm1825_vm6, %v1793_v14, %v9463_v57  ;;  %v1652_v57 = vsel %vm1629_vm2, %v18679_v23, %v18678_v6  ;;  %v18687_v14 = vld [vmem:[#allocation150_spill] sm:$0xff]  ;;  %v18690_v11 = vld [vmem:[#allocation196_spill] sm:$0xff]  ;;  %v18696_v6 = vld [vmem:[#allocation177_spill] sm:$0xff] }
 0x2b7   : > { %9112 = vmatprep.mubr.msk.f32.mxu0 %vm1629_vm2, %v9068_v35  ;;  %v1844_v25 = vsel %vm1825_vm6, %v1795_v53, %v18670_v32  ;;  %v1891_v9 = vsel %vm1874_vm7, %v1842_v46, %v9493_v44  ;;  %v1700_v31 = vsel %vm1678_vm3, %v1651_v34, %v18687_v14  ;;  %v18688_v53 = vld [vmem:[#allocation37_spill] sm:$0xff]  ;;  %v1624_v32 = vrot.slane %v11558_v56, 2  ;;  %v18697_v23 = vld [vmem:[#allocation179_spill] sm:$0xff] }
 0x2b8   : > { %v1893_v35 = vsel %vm1874_vm7, %v1844_v25, %v11865_v43  ;;  %v1940_v16 = vsel %vm1923_vm8, %v1891_v9, %v9523_v30  ;;  %v1892_v43 = vsel %vm1874_vm7, %v1843_v49, %v11855_v29  ;;  %v1699_v29 = vsel %vm1678_vm3, %v1650_v5, %v9374_v39  ;;  %v18689_v25 = vld [vmem:[#allocation151_spill] sm:$0xff]  ;;  %v1526_v39 = vpop.permute.xlu0 %1525  ;;  %v18692_v9 = vld [vmem:[#allocation44_spill] sm:$0xff] }
 0x2b9   : > { %v1942_v18 = vsel %vm1923_vm8, %v1893_v35, %v1516_v21  ;;  %v9348_v21 = vunpack.i.l.bf16 %v18682_v38  ;;  %v1941_v44 = vsel %vm1923_vm8, %v1892_v43, %v12195_v52  ;;  %v1701_v30 = vsel %vm1678_vm3, %v1652_v57, %v18685_v15  ;;  %v18695_v5 = vld [vmem:[#allocation248_spill] sm:$0xff]  ;;  %v18698_v43 = vld [vmem:[#allocation41_spill] sm:$0xff]  ;;  %v18699_v15 = vld [vmem:[#allocation110_spill] sm:$0xff] }
 0x2ba   : > { %2417 = vmatmul.mubr.f32.gmra.mxu0 %v9067_v50  ;;  %v18684_v50 = vld [vmem:[#allocation233_spill] sm:$0xff]  ;;  %v2048_v59 = vcombine.high %v1942_v18, %v18672_v4  ;;  %v9069_v54 = vcombine.low %v1941_v44, %v1942_v18  ;;  %v9072_v52 = vcombine.high %v18672_v4, %v2049_v13  ;;  %v1748_v46 = vsel %vm1727_vm4, %v1699_v29, %v9404_v10 }
 0x2bb   : > { %9113 = vmatprep.mubr.msk.f32.mxu0 %vm1629_vm2, %v18671_v19  ;;  %v1653_v63 = vsel %vm1629_vm2, %v18684_v50, %v18683_v36  ;;  %v9378_v19 = vunpack.i.l.bf16 %v18689_v25  ;;  %v9464_v4 = vunpack.i.h.bf16 %v18663_v45  ;;  %v1750_v17 = vsel %vm1727_vm4, %v1701_v30, %v18691_v33  ;;  %v18693_v13 = vld [vmem:[#allocation193_spill] sm:$0xff] }
 0x2bc   : > { %v1702_v37 = vsel %vm1678_vm3, %v1653_v63, %v18686_v22  ;;  %v9071_v35 = vcombine.low %v2048_v59, %v1943_v24  ;;  %v1749_v20 = vsel %vm1727_vm4, %v1700_v31, %v18692_v9  ;;  %v1797_v49 = vsel %vm1776_vm5, %v1748_v46, %v9434_v7  ;;  %v1530_v63 = vpop.permute.xlu0 %1529  ;;  %v9853_v22 = vld [vmem:[%s10107_s26 + $0xe8] sm:$0x3f]  ;;  %v9854_v7 = vld [vmem:[%s10107_s26 + $0xf8] sm:$0x3f] }
 0x2bd   : > { %v1751_v12 = vsel %vm1727_vm4, %v1702_v37, %v18688_v53  ;;  %v1799_v18 = vsel %vm1776_vm5, %v1750_v17, %v18693_v13  ;;  %v1846_v57 = vsel %vm1825_vm6, %v1797_v49, %v9464_v4  ;;  %v9408_v41 = vunpack.i.l.bf16 %v18698_v43  ;;  %v18700_v37 = vld [vmem:[#allocation111_spill] sm:$0xff] }
 0x2be   : > { %2422 = vmatmul.mubr.f32.gmra.mxu0 %v1940_v16  ;;  %v1800_v28 = vsel %vm1776_vm5, %v1751_v12, %v18690_v11  ;;  %v18694_v16 = vld [vmem:[#allocation194_spill] sm:$0xff]  ;;  %v1848_v24 = vsel %vm1825_vm6, %v1799_v18, %v11663_v40  ;;  %v1895_v34 = vsel %vm1874_vm7, %v1846_v57, %v9494_v42  ;;  %v9349_v59 = vunpack.i.h.bf16 %v18682_v38  ;;  %v18702_v31 = vld [vmem:[#allocation195_spill] sm:$0xff] }
 0x2bf   : > { %9114 = vmatprep.mubr.msk.f32.mxu0 %vm1629_vm2, %v9070_v58  ;;  %v1524_v58 = vpop.permute.xlu1 %1523  ;;  %v1849_v56 = vsel %vm1825_vm6, %v1800_v28, %v11679_v60  ;;  %v1798_v48 = vsel %vm1776_vm5, %v1749_v20, %v18694_v16  ;;  %v1625_v60 = vsel %vm660_vm1, %v1623_v26, %v1624_v32  ;;  %v1897_v27 = vsel %vm1874_vm7, %v1848_v24, %v11873_v1  ;;  %v18705_v28 = vld [vmem:[#allocation154_spill] sm:$0xff]  ;;  %v18709_v9 = vld [vmem:[#allocation163_spill] sm:$0xff] }
 0x2c0   : > { %v1898_v45 = vsel %vm1874_vm7, %v1849_v56, %v11882_v62  ;;  %v1847_v62 = vsel %vm1825_vm6, %v1798_v48, %v18695_v5  ;;  %v9074_v51 = vcombine.low %v18696_v6, %v1625_v60  ;;  %v1946_v10 = vsel %vm1923_vm8, %v1897_v27, %v1524_v58  ;;  %v18706_v58 = vld [vmem:[#allocation156_spill] sm:$0xff]  ;;  %v18707_v56 = vld [vmem:[#allocation42_spill] sm:$0xff]  ;;  %v1534_v5 = vpop.permute.xlu0 %1533 }
 0x2c1   : > { %v1947_v55 = vsel %vm1923_vm8, %v1898_v45, %v1526_v39  ;;  %v1896_v40 = vsel %vm1874_vm7, %v1847_v62, %v11875_v3  ;;  %v1944_v29 = vsel %vm1923_vm8, %v1895_v34, %v9524_v0  ;;  %v9852_v3 = vld [vmem:[%s10107_s26 + $0xf0] sm:$0xff]  ;;  %v9438_v53 = vunpack.i.l.bf16 %v18702_v31 }
 0x2c2   : > { %2427 = vmatmul.mubr.f32.gmra.mxu0 %v9069_v54  ;;  %v1945_v44 = vsel %vm1923_vm8, %v1896_v40, %v1522_v61  ;;  %v2055_v50 = vcombine.low %v1947_v55, %v1624_v32  ;;  %v9851_v54 = vld [vmem:[%s10107_s26 + $0xe0] sm:$0xff]  ;;  %v1656_v30 = vsel %vm1629_vm2, %v9852_v3, %v18699_v15  ;;  %v1655_v61 = vsel %vm1629_vm2, %v9853_v22, %v18700_v37  ;;  %v18710_v0 = vld [vmem:[#allocation198_spill] sm:$0xff]  ;;  %v18712_v62 = vld [vmem:[#allocation199_spill] sm:$0xff] }
 0x2c3   : > { %9115 = vmatprep.mubr.msk.f32.mxu0 %vm1629_vm2, %v9072_v52  ;;  %v12339_v36 = vpop.permute.xlu1 %9526  ;;  %v1654_v1 = vsel %vm1629_vm2, %v9851_v54, %v9348_v21  ;;  %v18701_v52 = vld [vmem:[#allocation114_spill] sm:$0xff]  ;;  %v18703_v21 = vld [vmem:[#allocation153_spill] sm:$0xff]  ;;  %v9073_v11 = vcombine.low %v1945_v44, %v1946_v10  ;;  %v1704_v4 = vsel %vm1678_vm3, %v1655_v61, %v18705_v28  ;;  %v2054_v49 = vcombine.high %v1946_v10, %v1625_v60  ;;  %v18715_v44 = vld [vmem:[#allocation251_spill] sm:$0xff] }
 0x2c4   : > { %v1657_v14 = vsel %vm1629_vm2, %v9854_v7, %v18701_v52  ;;  %v1703_v12 = vsel %vm1678_vm3, %v1654_v1, %v9378_v19  ;;  %v1705_v26 = vsel %vm1678_vm3, %v1656_v30, %v18703_v21  ;;  %v18704_v32 = vld [vmem:[#allocation249_spill] sm:$0xff]  ;;  %v9076_v17 = vcombine.high %v1625_v60, %v2055_v50  ;;  %v18711_v18 = vld [vmem:[#allocation202_spill] sm:$0xff]  ;;  %v18717_v54 = vld [vmem:[#allocation84_spill] sm:$0xff] }
 0x2c5   : > { %v9468_v46 = vunpack.i.l.bf16 %v18704_v32  ;;  %v1706_v39 = vsel %vm1678_vm3, %v1657_v14, %v18706_v58  ;;  %v1752_v33 = vsel %vm1727_vm4, %v1703_v12, %v9408_v41  ;;  %v1754_v42 = vsel %vm1727_vm4, %v1705_v26, %v18707_v56  ;;  %v18713_v57 = vld [vmem:[#allocation250_spill] sm:$0xff]  ;;  %v18722_v37 = vld [vmem:[#allocation39_spill] sm:$0xff] }
 0x2c6   : > { %2432 = vmatmul.mubr.f32.gmra.mxu0 %v9071_v35  ;;  %v18708_v35 = vld [vmem:[#allocation43_spill] sm:$0xff]  ;;  %v1755_v20 = vsel %vm1727_vm4, %v1706_v39, %v18709_v9  ;;  %v1801_v45 = vsel %vm1776_vm5, %v1752_v33, %v9438_v53  ;;  %v1803_v13 = vsel %vm1776_vm5, %v1754_v42, %v18710_v0  ;;  %v9498_v48 = vunpack.i.l.bf16 %v11880_v47  ;;  %v18718_v1 = vld [vmem:[#allocation66_spill] sm:$0xff]  ;;  %v18726_v42 = vld [vmem:[#allocation157_spill] sm:$0xff] }
 0x2c7   : > { %9116 = vmatprep.mubr.msk.f32.mxu0 %vm1629_vm2, %v18697_v23  ;;  %v1753_v19 = vsel %vm1727_vm4, %v1704_v4, %v18708_v35  ;;  %v1804_v16 = vsel %vm1776_vm5, %v1755_v20, %v18711_v18  ;;  %v1532_v24 = vpop.permute.xlu1 %1531  ;;  %v1850_v23 = vsel %vm1825_vm6, %v1801_v45, %v9468_v46  ;;  %v1852_v41 = vsel %vm1825_vm6, %v1803_v13, %v18713_v57  ;;  %v18721_v30 = vld [vmem:[#allocation46_spill] sm:$0xff]  ;;  %v18723_v21 = vld [vmem:[#allocation79_spill] sm:$0xff]  ;;  %v18727_v20 = vld [vmem:[#allocation113_spill] sm:$0xff] }
 0x2c8   : > { %v1802_v6 = vsel %vm1776_vm5, %v1753_v19, %v18712_v62  ;;  %v1853_v60 = vsel %vm1825_vm6, %v1804_v16, %v11713_v2  ;;  %v9528_v40 = vunpack.i.l.bf16 %v12339_v36  ;;  %v18714_v34 = vmov 0.0   ;;  %v18716_v2 = vld [vmem:[#allocation70_spill] sm:$0xff]  ;;  %v9855_v58 = vld [vmem:[%s10107_s26 + $0x118] sm:$0x3f]  ;;  %v18728_v45 = vld [vmem:[#allocation49_spill] sm:$0xff] }
 0x2c9   : > { %v1902_v27 = vsel %vm1874_vm7, %v1853_v60, %v11901_v8  ;;  %v2676_v10 = vrot.slane %v18714_v34, 7  ;;  %v1851_v50 = vsel %vm1825_vm6, %v1802_v6, %v18715_v44  ;;  %v9078_v8 = vcombine.low %v18718_v1, %v18717_v54  ;;  %v18725_v39 = vld [vmem:[#allocation115_spill] sm:$0xff]  ;;  %v9857_v9 = vld [vmem:[%s10107_s26 + $0x108] sm:$0x3f]  ;;  %v18729_v18 = vld [vmem:[#allocation116_spill] sm:$0xff]  ;;  %v1540_v6 = vpop.permute.xlu0 %1539 }
 0x2ca   : > { %2437 = vmatmul.mubr.f32.gmra.mxu0 %v1944_v29  ;;  %v1951_v29 = vsel %vm1923_vm8, %v1902_v27, %v1534_v5  ;;  %v1901_v22 = vsel %vm1874_vm7, %v1852_v41, %v18721_v30  ;;  %v1900_v61 = vsel %vm1874_vm7, %v1851_v50, %v18722_v37  ;;  %v9379_v28 = vunpack.i.h.bf16 %v18689_v25  ;;  %v9858_v13 = vld [vmem:[%s10107_s26 + $0x110] sm:$0xff]  ;;  %v18734_v44 = vld [vmem:[#allocation45_spill] sm:$0xff] }
 0x2cb   : > { %9117 = vmatprep.mubr.msk.f32.mxu0 %vm1629_vm2, %v9074_v51  ;;  %v9075_v51 = vcombine.low %v2054_v49, %v1947_v55  ;;  %v1899_v55 = vsel %vm1874_vm7, %v1850_v23, %v9498_v48  ;;  %v12398_v3 = vsel %vm2675_vm9, 0.0, %v2676_v10  ;;  %v12401_v15 = vsel %vm2825_vm10, %v2676_v10, 0.0  ;;  %v12411_v12 = vpop.permute.xlu1 %1537  ;;  %v18730_v48 = vld [vmem:[#allocation204_spill] sm:$0xff]  ;;  %v18731_v60 = vld [vmem:[#allocation158_spill] sm:$0xff]  ;;  %v18736_v1 = vld [vmem:[#allocation205_spill] sm:$0xff] }
 0x2cc   : > { %18719 = vst [vmem:[#allocation67_spill] sm:$0xff] %v12398_v3  ;;  %18720 = vst [vmem:[#allocation15_spill] sm:$0xff] %v12401_v15  ;;  %v2897_v7 = vrot.slane %v12398_v3, 1  ;;  %v2898_v52 = vrot.slane %v12401_v15, 1  ;;  %v1950_v14 = vsel %vm1923_vm8, %v1901_v22, %v1532_v24  ;;  %v1949_v53 = vsel %vm1923_vm8, %v1900_v61, %v1530_v63  ;;  %v18738_v22 = vld [vmem:[#allocation254_spill] sm:$0xff]  ;;  %v18739_v61 = vld [vmem:[#allocation85_spill] sm:$0xff] }
 0x2cd   : > { %v2061_v26 = vcombine.low %v1951_v29, %v18723_v21  ;;  %v1948_v46 = vsel %vm1923_vm8, %v1899_v55, %v9528_v40  ;;  %v1661_v63 = vsel %vm1629_vm2, %v9855_v58, %v18725_v39  ;;  %v9077_v33 = vcombine.low %v1949_v53, %v1950_v14  ;;  %v18733_v40 = vld [vmem:[#allocation164_spill] sm:$0xff]  ;;  %v18742_v53 = vld [vmem:[#allocation201_spill] sm:$0xff] }
 0x2ce   : > { %2442 = vmatmul.mubr.f32.gmra.mxu0 %v9073_v11  ;;  %v2899_v11 = vsel %vm443_vm0, %v2897_v7, %v2898_v52  ;;  %v1710_v35 = vsel %vm1678_vm3, %v1661_v63, %v18726_v42  ;;  %v9409_v25 = vunpack.i.h.bf16 %v18698_v43  ;;  %v1659_v49 = vsel %vm1629_vm2, %v9857_v9, %v18727_v20  ;;  %v18740_v7 = vld [vmem:[#allocation92_spill] sm:$0xff]  ;;  %v18745_v39 = vld [vmem:[#allocation89_spill] sm:$0xff] }
 0x2cf   : > { %9118 = vmatprep.mubr.msk.f32.mxu0 %vm1629_vm2, %v9076_v17  ;;  %v12418_v4 = vpack.i.bf16 %v2898_v52, %v2899_v11  ;;  %v9856_v17 = vld [vmem:[%s10107_s26 + $0x100] sm:$0xff]  ;;  %v9080_v19 = vcombine.high %v18717_v54, %v2061_v26  ;;  %v1759_v0 = vsel %vm1727_vm4, %v1710_v35, %v18728_v45  ;;  %v9439_v38 = vunpack.i.h.bf16 %v18702_v31  ;;  %v1542_v62 = vpop.permute.xlu1 %1541  ;;  %v18746_v35 = vld [vmem:[#allocation118_spill] sm:$0xff] }
 0x2d0   : > { %v1658_v56 = vsel %vm1629_vm2, %v9856_v17, %v9349_v59  ;;  %v2060_v59 = vcombine.high %v1950_v14, %v18717_v54  ;;  %v1660_v43 = vsel %vm1629_vm2, %v9858_v13, %v18729_v18  ;;  %v1808_v24 = vsel %vm1776_vm5, %v1759_v0, %v18730_v48  ;;  %v18741_v52 = vld [vmem:[#allocation80_spill] sm:$0xff]  ;;  %v18743_v26 = vld [vmem:[#allocation269_spill] sm:$0xff] }
 0x2d1   : > { %18724 = vst [vmem:[#allocation68_spill] sm:$0xff] %v12418_v4  ;;  %9541 = vrot.lane.b32.xlu0 %v12418_v4, %s9987_s27  ;;  %v1707_v16 = vsel %vm1678_vm3, %v1658_v56, %v9379_v28  ;;  %v9469_v5 = vunpack.i.h.bf16 %v18704_v32  ;;  %v1709_v31 = vsel %vm1678_vm3, %v1660_v43, %v18731_v60  ;;  %v9499_v57 = vunpack.i.h.bf16 %v11880_v47  ;;  %v18744_v28 = vld [vmem:[#allocation252_spill] sm:$0xff]  ;;  %v12483_v56 = vpop.permute.xlu0 %9531  ;;  %v18750_v43 = vld [vmem:[#allocation11_spill] sm:$0xff]  ;;  %v18751_v48 = vld [vmem:[#allocation165_spill] sm:$0xff] }
 0x2d2   : > { %2447 = vmatmul.mubr.f32.gmra.mxu0 %v9075_v51  ;;  %v18732_v51 = vld [vmem:[#allocation253_spill] sm:$0xff]  ;;  %v9079_v41 = vcombine.low %v2060_v59, %v1951_v29  ;;  %v1756_v27 = vsel %vm1727_vm4, %v1707_v16, %v9409_v25  ;;  %v1758_v10 = vsel %vm1727_vm4, %v1709_v31, %v18733_v40  ;;  %v9529_v50 = vunpack.i.h.bf16 %v12339_v36  ;;  %v18737_v29 = vld [vmem:[#allocation162_spill] sm:$0xff]  ;;  %v18748_v20 = vld [vmem:[#allocation160_spill] sm:$0xff] }
 0x2d3   : > { %9119 = vmatprep.mubr.msk.f32.mxu0 %vm1629_vm2, %v18716_v2  ;;  %v1857_v23 = vsel %vm1825_vm6, %v1808_v24, %v18732_v51  ;;  %v18735_v2 = vld [vmem:[#allocation155_spill] sm:$0xff]  ;;  %v1805_v54 = vsel %vm1776_vm5, %v1756_v27, %v9439_v38  ;;  %v9082_v14 = vcombine.low %v18741_v52, %v18740_v7  ;;  %v1546_v17 = vpop.permute.xlu1 %1545  ;;  %v9353_v25 = vunpack.i.l.bf16 %v18746_v35  ;;  %v9861_v60 = vld [vmem:[%s10107_s26 + $0x120] sm:$0xff]  ;;  %v18761_v52 = vld [vmem:[#allocation166_spill] sm:$0xff] }
 0x2d4   : > { %v1906_v32 = vsel %vm1874_vm7, %v1857_v23, %v18734_v44  ;;  %v1708_v55 = vsel %vm1678_vm3, %v1659_v49, %v18735_v2  ;;  %v1854_v36 = vsel %vm1825_vm6, %v1805_v54, %v9469_v5  ;;  %v9383_v49 = vunpack.i.l.bf16 %v18748_v20  ;;  %v9859_v0 = vld [vmem:[%s10107_s26 + $0x138] sm:$0x3f]  ;;  %v18753_v51 = vld [vmem:[#allocation21_spill] sm:$0xff]  ;;  %v9862_v27 = vld [vmem:[%s10107_s26 + $0x130] sm:$0xff] }
 0x2d5   : > { %v1955_v47 = vsel %vm1923_vm8, %v1906_v32, %v1542_v62  ;;  %v1757_v30 = vsel %vm1727_vm4, %v1708_v55, %v18737_v29  ;;  %v1903_v11 = vsel %vm1874_vm7, %v1854_v36, %v9499_v57  ;;  %v18749_v38 = vld [vmem:[#allocation119_spill] sm:$0xff]  ;;  %v9413_v24 = vunpack.i.l.bf16 %v18751_v48  ;;  %v9860_v62 = vld [vmem:[%s10107_s26 + $0x128] sm:$0x3f]  ;;  %v18755_v40 = vld [vmem:[#allocation120_spill] sm:$0xff] }
 0x2d6   : > { %2452 = vmatmul.mubr.f32.gmra.mxu0 %v1948_v46  ;;  %v1806_v21 = vsel %vm1776_vm5, %v1757_v30, %v18742_v53  ;;  %v2067_v63 = vcombine.low %v1955_v47, %v18745_v39  ;;  %v1952_v42 = vsel %vm1923_vm8, %v1903_v11, %v9529_v50  ;;  %v1665_v59 = vsel %vm1629_vm2, %v9859_v0, %v18749_v38  ;;  %v18754_v57 = vld [vmem:[#allocation207_spill] sm:$0xff]  ;;  %v18756_v32 = vld [vmem:[#allocation208_spill] sm:$0xff]  ;;  %v18759_v30 = vld [vmem:[#allocation257_spill] sm:$0xff] }
 0x2d7   : > { %9120 = vmatprep.mubr.msk.f32.mxu0 %vm1629_vm2, %v9078_v8  ;;  %v1807_v8 = vsel %vm1776_vm5, %v1758_v10, %v18736_v1  ;;  %v1855_v58 = vsel %vm1825_vm6, %v1806_v21, %v18744_v28  ;;  %v1714_v16 = vsel %vm1678_vm3, %v1665_v59, %v18750_v43  ;;  %v1662_v31 = vsel %vm1629_vm2, %v9861_v60, %v9353_v25  ;;  %v18757_v2 = vld [vmem:[#allocation256_spill] sm:$0xff]  ;;  %v1550_v54 = vpop.permute.xlu1 %1549  ;;  %v1548_v1 = vpop.permute.xlu0 %1547  ;;  %v18770_v59 = vld [vmem:[#allocation206_spill] sm:$0xff] }
 0x2d8   : > { %v1856_v37 = vsel %vm1825_vm6, %v1807_v8, %v18738_v22  ;;  %v9084_v5 = vcombine.high %v18740_v7, %v2067_v63  ;;  %v1763_v23 = vsel %vm1727_vm4, %v1714_v16, %v18753_v51  ;;  %v1664_v10 = vsel %vm1629_vm2, %v9862_v27, %v18755_v40  ;;  %v18758_v8 = vld [vmem:[#allocation161_spill] sm:$0xff]  ;;  %v18762_v53 = vld [vmem:[#allocation272_spill] sm:$0xff]  ;;  %v18765_v63 = vld [vmem:[#allocation47_spill] sm:$0xff] }
 0x2d9   : > { %v1905_v46 = vsel %vm1874_vm7, %v1856_v37, %v18743_v26  ;;  %v1711_v44 = vsel %vm1678_vm3, %v1662_v31, %v9383_v49  ;;  %v1812_v50 = vsel %vm1776_vm5, %v1763_v23, %v18756_v32  ;;  %v9473_v55 = vunpack.i.l.bf16 %v18757_v2  ;;  %v18760_v37 = vld [vmem:[#allocation271_spill] sm:$0xff]  ;;  %v18768_v49 = vld [vmem:[#allocation98_spill] sm:$0xff]  ;;  %v18775_v40 = vld [vmem:[#allocation124_spill] sm:$0xff] }
 0x2da   : > { %2457 = vmatmul.mubr.f32.gmra.mxu0 %v9077_v33  ;;  %v1954_v33 = vsel %vm1923_vm8, %v1905_v46, %v1540_v6  ;;  %v18752_v6 = vld [vmem:[#allocation117_spill] sm:$0xff]  ;;  %v1713_v29 = vsel %vm1678_vm3, %v1664_v10, %v18758_v8  ;;  %v1861_v22 = vsel %vm1825_vm6, %v1812_v50, %v18759_v30  ;;  %v9533_v26 = vunpack.i.l.bf16 %v12483_v56  ;;  %v18763_v46 = vld [vmem:[#allocation159_spill] sm:$0xff]  ;;  %v18774_v51 = vld [vmem:[#allocation270_spill] sm:$0xff] }
 0x2db   : > { %9121 = vmatprep.mubr.msk.f32.mxu0 %vm1629_vm2, %v9080_v19  ;;  %v18747_v19 = vld [vmem:[#allocation38_spill] sm:$0xff]  ;;  %v2066_v13 = vcombine.high %v1954_v33, %v18740_v7  ;;  %v1760_v7 = vsel %vm1727_vm4, %v1711_v44, %v9413_v24  ;;  %v1910_v21 = vsel %vm1874_vm7, %v1861_v22, %v18762_v53  ;;  %v9354_v38 = vunpack.i.h.bf16 %v18746_v35  ;;  %v18772_v24 = vld [vmem:[#allocation255_spill] sm:$0xff]  ;;  %v1554_v60 = vpop.permute.xlu0 %1553  ;;  %v18780_v53 = vld [vmem:[#allocation13_spill] sm:$0xff] }
 0x2dc   : > { %v1904_v9 = vsel %vm1874_vm7, %v1855_v58, %v18747_v19  ;;  %v18764_v58 = vld [vmem:[#allocation209_spill] sm:$0xff]  ;;  %v18767_v19 = vld [vmem:[#allocation86_spill] sm:$0xff]  ;;  %v9384_v31 = vunpack.i.h.bf16 %v18748_v20  ;;  %v9863_v27 = vld [vmem:[%s10107_s26 + $0x158] sm:$0x3f]  ;;  %v9414_v44 = vunpack.i.h.bf16 %v18751_v48 }
 0x2dd   : > { %v1953_v45 = vsel %vm1923_vm8, %v1904_v9, %v12411_v12  ;;  %v1663_v12 = vsel %vm1629_vm2, %v9860_v62, %v18752_v6  ;;  %v9083_v36 = vcombine.low %v2066_v13, %v1955_v47  ;;  %v1959_v47 = vsel %vm1923_vm8, %v1910_v21, %v1550_v54  ;;  %v18773_v62 = vld [vmem:[#allocation93_spill] sm:$0xff]  ;;  %v9865_v54 = vld [vmem:[%s10107_s26 + $0x150] sm:$0xff] }
 0x2de   : > { %2462 = vmatmul.mubr.f32.gmra.mxu0 %v9079_v41  ;;  %v9081_v18 = vcombine.low %v1953_v45, %v1954_v33  ;;  %v9443_v41 = vunpack.i.l.bf16 %v18754_v57  ;;  %v1712_v11 = vsel %vm1678_vm3, %v1663_v12, %v18763_v46  ;;  %v18769_v45 = vld [vmem:[#allocation81_spill] sm:$0xff]  ;;  %v2073_v6 = vcombine.low %v1959_v47, %v18773_v62  ;;  %v18790_v62 = vld [vmem:[#allocation260_spill] sm:$0xff] }
 0x2df   : > { %9122 = vmatprep.mubr.msk.f32.mxu0 %vm1629_vm2, %v18739_v61  ;;  %v9503_v61 = vunpack.i.l.bf16 %v18760_v37  ;;  %v1761_v33 = vsel %vm1727_vm4, %v1712_v11, %v18765_v63  ;;  %v9086_v0 = vcombine.low %v18769_v45, %v18768_v49  ;;  %v1669_v10 = vsel %vm1629_vm2, %v9863_v27, %v18775_v40  ;;  %v9866_v22 = vld [vmem:[%s10107_s26 + $0x148] sm:$0x3f]  ;;  %v1558_v63 = vpop.permute.xlu0 %1557  ;;  %v18785_v45 = vld [vmem:[#allocation168_spill] sm:$0xff] }
 0x2e0   : > { %v1809_v28 = vsel %vm1776_vm5, %v1760_v7, %v9443_v41  ;;  %v1810_v13 = vsel %vm1776_vm5, %v1761_v33, %v18770_v59  ;;  %v9088_v30 = vcombine.high %v18768_v49, %v2073_v6  ;;  %v18779_v7 = vld [vmem:[#allocation170_spill] sm:$0xff]  ;;  %v9534_v59 = vunpack.i.h.bf16 %v12483_v56 }
 0x2e1   : > { %v1858_v9 = vsel %vm1825_vm6, %v1809_v28, %v9473_v55  ;;  %v9864_v55 = vld [vmem:[%s10107_s26 + $0x140] sm:$0xff]  ;;  %v18782_v11 = vld [vmem:[#allocation218_spill] sm:$0xff] }
 0x2e2   : > { %2467 = vmatmul.mubr.f32.gmra.mxu0 %v1952_v42  ;;  %v18766_v42 = vld [vmem:[#allocation258_spill] sm:$0xff]  ;;  %v1907_v16 = vsel %vm1874_vm7, %v1858_v9, %v9503_v61  ;;  %v1666_v20 = vsel %vm1629_vm2, %v9864_v55, %v9354_v38  ;;  %v18784_v9 = vld [vmem:[#allocation167_spill] sm:$0xff]  ;;  %v18786_v38 = vld [vmem:[#allocation277_spill] sm:$0xff] }
 0x2e3   : > { %9123 = vmatprep.mubr.msk.f32.mxu0 %vm1629_vm2, %v9082_v14  ;;  %v1762_v14 = vsel %vm1727_vm4, %v1713_v29, %v18761_v52  ;;  %v1956_v35 = vsel %vm1923_vm8, %v1907_v16, %v9533_v26  ;;  %v18777_v29 = vld [vmem:[#allocation6_spill] sm:$0xff]  ;;  %v1715_v48 = vsel %vm1678_vm3, %v1666_v20, %v9384_v31  ;;  %v18788_v16 = vld [vmem:[#allocation215_spill] sm:$0xff] }
 0x2e4   : > { %v1811_v39 = vsel %vm1776_vm5, %v1762_v14, %v18764_v58  ;;  %v18778_v61 = vld [vmem:[#allocation122_spill] sm:$0xff]  ;;  %v9444_v14 = vunpack.i.h.bf16 %v18754_v57  ;;  %v9474_v58 = vunpack.i.h.bf16 %v18757_v2  ;;  %v1764_v33 = vsel %vm1727_vm4, %v1715_v48, %v9414_v44  ;;  %v18799_v48 = vld [vmem:[#allocation128_spill] sm:$0xff] }
 0x2e5   : > { %v1860_v25 = vsel %vm1825_vm6, %v1811_v39, %v18766_v42  ;;  %v18781_v26 = vld [vmem:[#allocation18_spill] sm:$0xff]  ;;  %v1556_v39 = vpop.permute.xlu1 %1555 }
 0x2e6   : > { %2472 = vmatmul.mubr.f32.gmra.mxu0 %v9081_v18  ;;  %v18771_v18 = vld [vmem:[#allocation273_spill] sm:$0xff]  ;;  %v18783_v42 = vld [vmem:[#allocation262_spill] sm:$0xff] }
 0x2e7   : > { %9124 = vmatprep.mubr.msk.f32.mxu0 %vm1629_vm2, %v9084_v5  ;;  %v1909_v43 = vsel %vm1874_vm7, %v1860_v25, %v18771_v18  ;;  %v1859_v5 = vsel %vm1825_vm6, %v1810_v13, %v18772_v24  ;;  %v9504_v25 = vunpack.i.h.bf16 %v18760_v37  ;;  %v1813_v13 = vsel %vm1776_vm5, %v1764_v33, %v9444_v14  ;;  %v18787_v18 = vld [vmem:[#allocation214_spill] sm:$0xff]  ;;  %v18789_v24 = vld [vmem:[#allocation259_spill] sm:$0xff] }
 0x2e8   : > { %v1958_v12 = vsel %vm1923_vm8, %v1909_v43, %v1548_v1  ;;  %v1908_v23 = vsel %vm1874_vm7, %v1859_v5, %v18774_v51  ;;  %v18776_v1 = vld [vmem:[#allocation121_spill] sm:$0xff]  ;;  %v1862_v56 = vsel %vm1825_vm6, %v1813_v13, %v9474_v58  ;;  %v18793_v31 = vld [vmem:[#allocation94_spill] sm:$0xff] }
 0x2e9   : > { %v1957_v41 = vsel %vm1923_vm8, %v1908_v23, %v1546_v17  ;;  %v2072_v32 = vcombine.high %v1958_v12, %v18768_v49  ;;  %v1668_v8 = vsel %vm1629_vm2, %v9865_v54, %v18776_v1  ;;  %v1718_v17 = vsel %vm1678_vm3, %v1669_v10, %v18777_v29  ;;  %v18794_v23 = vld [vmem:[#allocation123_spill] sm:$0xff]  ;;  %v18795_v27 = vld [vmem:[#allocation274_spill] sm:$0xff]  ;;  %v12621_v20 = vpop.permute.xlu1 %9536  ;;  %v18809_v13 = vld [vmem:[#allocation261_spill] sm:$0xff] }
 0x2ea   : > { %2477 = vmatmul.mubr.f32.gmra.mxu0 %v9083_v36  ;;  %v9085_v50 = vcombine.low %v1957_v41, %v1958_v12  ;;  %v1667_v36 = vsel %vm1629_vm2, %v9866_v22, %v18778_v61  ;;  %v1767_v52 = vsel %vm1727_vm4, %v1718_v17, %v18779_v7  ;;  %v1717_v21 = vsel %vm1678_vm3, %v1668_v8, %v18780_v53  ;;  %v18791_v12 = vld [vmem:[#allocation99_spill] sm:$0xff]  ;;  %v1562_v8 = vpop.permute.xlu0 %1561  ;;  %v18798_v17 = vld [vmem:[#allocation9_spill] sm:$0xff]  ;;  %v18803_v58 = vld [vmem:[#allocation14_spill] sm:$0xff] }
 0x2eb   : > { %9125 = vmatprep.mubr.msk.f32.mxu0 %vm1629_vm2, %v18767_v19  ;;  %v1716_v46 = vsel %vm1678_vm3, %v1667_v36, %v18781_v26  ;;  %v1816_v28 = vsel %vm1776_vm5, %v1767_v52, %v18782_v11  ;;  %v9087_v19 = vcombine.low %v2072_v32, %v1959_v47  ;;  %v1766_v49 = vsel %vm1727_vm4, %v1717_v21, %v18784_v9  ;;  %v18796_v10 = vld [vmem:[#allocation275_spill] sm:$0xff]  ;;  %v9867_v22 = vld [vmem:[%s10107_s26 + $0x160] sm:$0xff]  ;;  %v18802_v11 = vld [vmem:[#allocation126_spill] sm:$0xff] }
 0x2ec   : > { %v1865_v57 = vsel %vm1825_vm6, %v1816_v28, %v18783_v42  ;;  %v1815_v43 = vsel %vm1776_vm5, %v1766_v49, %v18787_v18  ;;  %v9358_v41 = vunpack.i.l.bf16 %v18794_v23  ;;  %v1911_v32 = vsel %vm1874_vm7, %v1862_v56, %v9504_v25  ;;  %v18797_v54 = vld [vmem:[#allocation103_spill] sm:$0xff]  ;;  %v18800_v7 = vld [vmem:[#allocation169_spill] sm:$0xff]  ;;  %v18804_v42 = vld [vmem:[#allocation174_spill] sm:$0xff] }
 0x2ed   : > { %v1914_v2 = vsel %vm1874_vm7, %v1865_v57, %v18786_v38  ;;  %v1864_v5 = vsel %vm1825_vm6, %v1815_v43, %v18789_v24  ;;  %v1960_v29 = vsel %vm1923_vm8, %v1911_v32, %v9534_v59  ;;  %v9868_v36 = vld [vmem:[%s10107_s26 + $0x178] sm:$0x3f]  ;;  %v9418_v52 = vunpack.i.l.bf16 %v18800_v7  ;;  %v9869_v53 = vld [vmem:[%s10107_s26 + $0x170] sm:$0xff]  ;;  %v18801_v21 = vld [vmem:[#allocation125_spill] sm:$0xff]  ;;  %v1564_v43 = vpop.permute.xlu1 %1563 }
 0x2ee   : > { %2482 = vmatmul.mubr.f32.gmra.mxu0 %v1956_v35  ;;  %v1963_v47 = vsel %vm1923_vm8, %v1914_v2, %v1558_v63  ;;  %v18792_v35 = vld [vmem:[#allocation106_spill] sm:$0xff]  ;;  %v1913_v40 = vsel %vm1874_vm7, %v1864_v5, %v18795_v27  ;;  %v1670_v61 = vsel %vm1629_vm2, %v9867_v22, %v9358_v41  ;;  %v1672_v26 = vsel %vm1629_vm2, %v9869_v53, %v18801_v21  ;;  %v18805_v25 = vld [vmem:[#allocation217_spill] sm:$0xff]  ;;  %v18806_v49 = vld [vmem:[#allocation7_spill] sm:$0xff] }
 0x2ef   : > { %9126 = vmatprep.mubr.msk.f32.mxu0 %vm1629_vm2, %v9086_v0  ;;  %v1765_v0 = vsel %vm1727_vm4, %v1716_v46, %v18785_v45  ;;  %v9090_v51 = vcombine.low %v18793_v31, %v18792_v35  ;;  %v2079_v1 = vcombine.low %v1963_v47, %v18797_v54  ;;  %v9870_v46 = vld [vmem:[%s10107_s26 + $0x168] sm:$0x3f]  ;;  %v1721_v45 = vsel %vm1678_vm3, %v1672_v26, %v18806_v49  ;;  %v18812_v56 = vld [vmem:[#allocation171_spill] sm:$0xff]  ;;  %v18813_v31 = vld [vmem:[#allocation172_spill] sm:$0xff] }
 0x2f0   : > { %v1814_v37 = vsel %vm1776_vm5, %v1765_v0, %v18788_v16  ;;  %v1671_v28 = vsel %vm1629_vm2, %v9870_v46, %v18802_v11  ;;  %v18807_v0 = vld [vmem:[#allocation10_spill] sm:$0xff]  ;;  %v9478_v18 = vunpack.i.l.bf16 %v18809_v13  ;;  %v1566_v16 = vpop.permute.xlu0 %1565  ;;  %v18814_v41 = vld [vmem:[#allocation281_spill] sm:$0xff]  ;;  %v18817_v54 = vld [vmem:[#allocation263_spill] sm:$0xff] }
 0x2f1   : > { %v1863_v6 = vsel %vm1825_vm6, %v1814_v37, %v18790_v62  ;;  %v9092_v63 = vcombine.high %v18792_v35, %v2079_v1  ;;  %v1720_v38 = vsel %vm1678_vm3, %v1671_v28, %v18807_v0  ;;  %v18808_v2 = vld [vmem:[#allocation226_spill] sm:$0xff]  ;;  %v18811_v62 = vld [vmem:[#allocation276_spill] sm:$0xff]  ;;  %v18823_v21 = vld [vmem:[#allocation279_spill] sm:$0xff] }
 0x2f2   : > { %2487 = vmatmul.mubr.f32.gmra.mxu0 %v9085_v50  ;;  %v1912_v44 = vsel %vm1874_vm7, %v1863_v6, %v18796_v10  ;;  %v1962_v50 = vsel %vm1923_vm8, %v1913_v40, %v1556_v39  ;;  %v18810_v24 = vld [vmem:[#allocation266_spill] sm:$0xff]  ;;  %v9508_v6 = vunpack.i.l.bf16 %v18811_v62  ;;  %v9538_v40 = vunpack.i.l.bf16 %v12621_v20  ;;  %v18819_v22 = vld [vmem:[#allocation100_spill] sm:$0xff] }
 0x2f3   : > { %9127 = vmatprep.mubr.msk.f32.mxu0 %vm1629_vm2, %v9088_v30  ;;  %v1961_v55 = vsel %vm1923_vm8, %v1912_v44, %v1554_v60  ;;  %v9388_v30 = vunpack.i.l.bf16 %v18798_v17  ;;  %v1673_v60 = vsel %vm1629_vm2, %v9868_v36, %v18799_v48  ;;  %v2078_v9 = vcombine.high %v1962_v50, %v18792_v35  ;;  %v18815_v44 = vld [vmem:[#allocation221_spill] sm:$0xff]  ;;  %v18820_v36 = vld [vmem:[#allocation112_spill] sm:$0xff]  ;;  %v18821_v48 = vld [vmem:[#allocation95_spill] sm:$0xff] }
 0x2f4   : > { %v9089_v14 = vcombine.low %v1961_v55, %v1962_v50  ;;  %v1722_v39 = vsel %vm1678_vm3, %v1673_v60, %v18803_v58  ;;  %v1770_v35 = vsel %vm1727_vm4, %v1721_v45, %v18812_v56  ;;  %v18816_v50 = vld [vmem:[#allocation222_spill] sm:$0xff]  ;;  %v9094_v60 = vcombine.low %v18821_v48, %v18820_v36  ;;  %v1570_v58 = vpop.permute.xlu1 %1569  ;;  %v18826_v45 = vld [vmem:[#allocation127_spill] sm:$0xff] }
 0x2f5   : > { %v1719_v33 = vsel %vm1678_vm3, %v1670_v61, %v9388_v30  ;;  %v1771_v57 = vsel %vm1727_vm4, %v1722_v39, %v18804_v42  ;;  %v1819_v32 = vsel %vm1776_vm5, %v1770_v35, %v18815_v44  ;;  %v18824_v39 = vld [vmem:[#allocation109_spill] sm:$0xff]  ;;  %v9479_v44 = vunpack.i.h.bf16 %v18809_v13 }
 0x2f6   : > { %2492 = vmatmul.mubr.f32.gmra.mxu0 %v9087_v19  ;;  %v9448_v19 = vunpack.i.l.bf16 %v18805_v25  ;;  %v1820_v59 = vsel %vm1776_vm5, %v1771_v57, %v18808_v2  ;;  %v1768_v37 = vsel %vm1727_vm4, %v1719_v33, %v9418_v52  ;;  %v1868_v1 = vsel %vm1825_vm6, %v1819_v32, %v18817_v54  ;;  %v18825_v42 = vld [vmem:[#allocation129_spill] sm:$0xff] }
 0x2f7   : > { %9128 = vmatprep.mubr.msk.f32.mxu0 %vm1629_vm2, %v18791_v12  ;;  %v1869_v5 = vsel %vm1825_vm6, %v1820_v59, %v18810_v24  ;;  %v9091_v12 = vcombine.low %v2078_v9, %v1963_v47  ;;  %v9359_v52 = vunpack.i.h.bf16 %v18794_v23  ;;  %v9871_v23 = vld [vmem:[%s10107_s26 + $0x198] sm:$0x3f]  ;;  %v9872_v9 = vld [vmem:[%s10107_s26 + $0x180] sm:$0xff]  ;;  %v9539_v48 = vunpack.i.h.bf16 %v12621_v20 }
 0x2f8   : > { %v1918_v27 = vsel %vm1874_vm7, %v1869_v5, %v18814_v41  ;;  %v1817_v10 = vsel %vm1776_vm5, %v1768_v37, %v9448_v19  ;;  %v1677_v57 = vsel %vm1629_vm2, %v9871_v23, %v18825_v42  ;;  %v9389_v19 = vunpack.i.h.bf16 %v18798_v17  ;;  %v18829_v37 = vld [vmem:[#allocation175_spill] sm:$0xff]  ;;  %v1574_v32 = vpop.permute.xlu1 %1573  ;;  %v18842_v42 = vld [vmem:[#allocation132_spill] sm:$0xff] }
 0x2f9   : > { %v1967_v47 = vsel %vm1923_vm8, %v1918_v27, %v1566_v16  ;;  %v1866_v61 = vsel %vm1825_vm6, %v1817_v10, %v9478_v18  ;;  %v1674_v49 = vsel %vm1629_vm2, %v9872_v9, %v9359_v52  ;;  %v9874_v18 = vld [vmem:[%s10107_s26 + $0x190] sm:$0xff]  ;;  %v9419_v17 = vunpack.i.h.bf16 %v18800_v7  ;;  %v18830_v27 = vld [vmem:[#allocation12_spill] sm:$0xff]  ;;  %v18843_v9 = vld [vmem:[#allocation265_spill] sm:$0xff] }
 0x2fa   : > { %2497 = vmatmul.mubr.f32.gmra.mxu0 %v1960_v29  ;;  %v18818_v29 = vld [vmem:[#allocation264_spill] sm:$0xff]  ;;  %v1915_v46 = vsel %vm1874_vm7, %v1866_v61, %v9508_v6  ;;  %v9449_v6 = vunpack.i.h.bf16 %v18805_v25  ;;  %v1723_v41 = vsel %vm1678_vm3, %v1674_v49, %v9389_v19  ;;  %v18831_v7 = vld [vmem:[#allocation230_spill] sm:$0xff]  ;;  %v18836_v52 = vld [vmem:[#allocation231_spill] sm:$0xff] }
 0x2fb   : > { %9129 = vmatprep.mubr.msk.f32.mxu0 %vm1629_vm2, %v9090_v51  ;;  %v1769_v51 = vsel %vm1727_vm4, %v1720_v38, %v18813_v31  ;;  %v1964_v33 = vsel %vm1923_vm8, %v1915_v46, %v9538_v40  ;;  %v18827_v38 = vld [vmem:[#allocation8_spill] sm:$0xff] }
 0x2fc   : > { %v1818_v55 = vsel %vm1776_vm5, %v1769_v51, %v18816_v50  ;;  %v1726_v2 = vsel %vm1678_vm3, %v1677_v57, %v18827_v38  ;;  %v9876_v31 = vld [vmem:[%s10107_s26 + $0x1b8] sm:$0x3f] }
 0x2fd   : > { %v1867_v30 = vsel %vm1825_vm6, %v1818_v55, %v18818_v29  ;;  %v1775_v24 = vsel %vm1727_vm4, %v1726_v2, %v18829_v37  ;;  %v1627_v51 = vrot.slane %v9876_v31, 2  ;;  %v18832_v25 = vld [vmem:[#allocation24_spill] sm:$0xff]  ;;  %v18833_v55 = vld [vmem:[#allocation267_spill] sm:$0xff] }
 0x2fe   : > { %2502 = vmatmul.mubr.f32.gmra.mxu0 %v9089_v14  ;;  %v18822_v14 = vld [vmem:[#allocation278_spill] sm:$0xff]  ;;  %v1916_v26 = vsel %vm1874_vm7, %v1867_v30, %v18823_v21  ;;  %v1824_v10 = vsel %vm1776_vm5, %v1775_v24, %v18831_v7  ;;  %v1772_v30 = vsel %vm1727_vm4, %v1723_v41, %v9419_v17  ;;  %v18837_v21 = vld [vmem:[#allocation173_spill] sm:$0xff]  ;;  %v18838_v46 = vld [vmem:[#allocation268_spill] sm:$0xff] }
 0x2ff   : > { %9130 = vmatprep.mubr.msk.f32.mxu0 %vm1629_vm2, %v9092_v63  ;;  %v1917_v53 = vsel %vm1874_vm7, %v1868_v1, %v18822_v14  ;;  %v1965_v28 = vsel %vm1923_vm8, %v1916_v26, %v1562_v8  ;;  %v2085_v63 = vcombine.low %v1967_v47, %v18824_v39  ;;  %v9873_v8 = vld [vmem:[%s10107_s26 + $0x188] sm:$0x3f]  ;;  %v1873_v54 = vsel %vm1825_vm6, %v1824_v10, %v18833_v55  ;;  %v18844_v38 = vld [vmem:[#allocation280_spill] sm:$0xff] }
 0x300   : > { %v1966_v11 = vsel %vm1923_vm8, %v1917_v53, %v1564_v43  ;;  %v1675_v0 = vsel %vm1629_vm2, %v9873_v8, %v18826_v45  ;;  %v18828_v43 = vld [vmem:[#allocation130_spill] sm:$0xff]  ;;  %v9509_v1 = vunpack.i.h.bf16 %v18811_v62  ;;  %v18840_v39 = vld [vmem:[#allocation197_spill] sm:$0xff]  ;;  %v12762_v37 = vld [vmem:[%s17635_s2] ss:$0 sm:$0xff] }
 0x301   : > { %v9093_v59 = vcombine.low %v1965_v28, %v1966_v11  ;;  %v1676_v16 = vsel %vm1629_vm2, %v9874_v18, %v18828_v43  ;;  %v9096_v5 = vcombine.high %v18820_v36, %v2085_v63  ;;  %v2084_v35 = vcombine.high %v1966_v11, %v18820_v36  ;;  %v18835_v36 = vld [vmem:[#allocation78_spill] sm:$0xff]  ;;  %v18839_v28 = vld [vmem:[#allocation200_spill] sm:$0xff] }
 0x302   : > { %2507 = vmatmul.mubr.f32.gmra.mxu0 %v9091_v12  ;;  %v9875_v12 = vld [vmem:[%s10107_s26 + $0x1b0] sm:$0xff]  ;;  %v1724_v40 = vsel %vm1678_vm3, %v1675_v0, %v18830_v27  ;;  %v1725_v50 = vsel %vm1678_vm3, %v1676_v16, %v18832_v25  ;;  %v1922_v13 = vsel %vm1874_vm7, %v1873_v54, %v18835_v36 }
 0x303   : > { %9131 = vmatprep.mubr.msk.f32.mxu0 %vm1629_vm2, %v18819_v22  ;;  %v1626_v56 = vrot.slane %v9875_v12, 2  ;;  %v9095_v29 = vcombine.low %v2084_v35, %v1967_v47  ;;  %v18834_v22 = vld [vmem:[#allocation176_spill] sm:$0xff]  ;;  %v1971_v62 = vsel %vm1923_vm8, %v1922_v13, %v1574_v32  ;;  %v1572_v47 = vpop.permute.xlu0 %1571  ;;  %v1773_v26 = vsel %vm1727_vm4, %v1724_v40, %v18837_v21 }
 0x304   : > { %v1774_v61 = vsel %vm1727_vm4, %v1725_v50, %v18834_v22  ;;  %v2091_v8 = vcombine.low %v1971_v62, %v1627_v51 }
 0x305   : > { %v1823_v14 = vsel %vm1776_vm5, %v1774_v61, %v18836_v52  ;;  %v1628_v53 = vsel %vm660_vm1, %v1626_v56, %v1627_v51 }
 0x306   : > { %2512 = vmatmul.mubr.f32.gmra.mxu0 %v1964_v33  ;;  %v1872_v11 = vsel %vm1825_vm6, %v1823_v14, %v18838_v46  ;;  %v9098_v63 = vcombine.low %v18840_v39, %v1628_v53  ;;  %v18841_v33 = vld [vmem:[#allocation225_spill] sm:$0xff]  ;;  %v9100_v16 = vcombine.high %v1628_v53, %v2091_v8 }
 0x307   : > { %9132 = vmatprep.mubr.msk.f32.mxu0 %vm1629_vm2, %v9094_v60  ;;  %v1821_v60 = vsel %vm1776_vm5, %v1772_v30, %v9449_v6  ;;  %v1822_v23 = vsel %vm1776_vm5, %v1773_v26, %v18841_v33  ;;  %v1921_v57 = vsel %vm1874_vm7, %v1872_v11, %v18842_v42 }
 0x308   : > { %v1870_v20 = vsel %vm1825_vm6, %v1821_v60, %v9479_v44  ;;  %v1871_v49 = vsel %vm1825_vm6, %v1822_v23, %v18843_v9  ;;  %v1970_v45 = vsel %vm1923_vm8, %v1921_v57, %v1572_v47 }
 0x309   : > { %v1919_v19 = vsel %vm1874_vm7, %v1870_v20, %v9509_v1  ;;  %v1920_v2 = vsel %vm1874_vm7, %v1871_v49, %v18844_v38  ;;  %v2090_v18 = vcombine.high %v1970_v45, %v1628_v53 }
 0x30a   : > { %2517 = vmatmul.mubr.f32.gmra.mxu0 %v9093_v59  ;;  %v1968_v0 = vsel %vm1923_vm8, %v1919_v19, %v9539_v48  ;;  %v1969_v59 = vsel %vm1923_vm8, %v1920_v2, %v1570_v58 }
 0x30b   : > { %9133 = vmatprep.mubr.msk.f32.mxu0 %vm1629_vm2, %v9096_v5  ;;  %v9097_v43 = vcombine.low %v1969_v59, %v1970_v45  ;;  %v9099_v17 = vcombine.low %v2090_v18, %v1971_v62 }
 0x30e   : > { %2522 = vmatmul.mubr.f32.gmra.mxu0 %v9095_v29 }
 0x30f   : > { %9134 = vmatprep.mubr.msk.f32.mxu0 %vm1629_vm2, %v18839_v28 }
 0x312   : > { %2527 = vmatmul.mubr.f32.gmra.mxu0 %v1968_v0 }
 0x313   : > { %9135 = vmatprep.mubr.msk.f32.mxu0 %vm1629_vm2, %v9098_v63 }
 0x316   : > { %2532 = vmatmul.mubr.f32.gmra.mxu0 %v9097_v43 }
 0x317   : > { %9136 = vmatprep.mubr.msk.f32.mxu0 %vm1629_vm2, %v9100_v16 }
 0x31a   : > { %2537 = vmatmul.mubr.f32.gmra.mxu0 %v9099_v17 }
 0x34e   : > { %v2363_v24 = vpop.f32.mrf.mxu0 }
 0x34f   : > { %v2364_v5 = vadd.f32 %v12762_v37, %v2363_v24 }
 0x350   : > { %v2365_v6 = vpop.f32.mrf.mxu0 }
 0x351   : > { %v2542_v58 = vmax.f32 %v2364_v5, 0.0 }
 0x352   : > { %v2368_v12 = vpop.f32.mrf.mxu0 }
 0x353   : > { %v2614_v56 = vcombine.high %v2542_v58, %v2542_v58  ;;  %v2369_v35 = vadd.f32 %v12762_v37, %v2368_v12 }
 0x354   : > { %v2370_v31 = vpop.f32.mrf.mxu0 }
 0x355   : > { %v2650_v51 = vcombine.low %v2542_v58, %v2614_v56  ;;  %v2543_v41 = vmax.f32 %v2369_v35, 0.0 }
 0x356   : > { %v2373_v27 = vpop.f32.mrf.mxu0 }
 0x357   : > { %v2678_v40 = vrot.slane %v2650_v51, 7  ;;  %v2679_v7 = vrot.slane %v2543_v41, 7  ;;  %v2374_v10 = vadd.f32 %v12762_v37, %v2373_v27  ;;  %v2615_v25 = vcombine.high %v2543_v41, %v2543_v41 }
 0x358   : > { %v2375_v44 = vpop.f32.mrf.mxu0 }
 0x359   : > { %v12768_v32 = vsel %vm2675_vm9, 0.0, %v2678_v40  ;;  %v2680_v50 = vsel %vm2675_vm9, %v2678_v40, %v2679_v7  ;;  %v2544_v55 = vmax.f32 %v2374_v10, 0.0 }
 0x35a   : > { %v12772_v54 = vsel %vm2825_vm10, %v2680_v50, 0.0  ;;  %v2378_v1 = vpop.f32.mrf.mxu0  ;;  %v2900_v29 = vrot.slane %v12768_v32, 1 }
 0x35b   : > { %v2616_v30 = vcombine.high %v2544_v55, %v2544_v55  ;;  %v2651_v22 = vcombine.low %v2615_v25, %v2544_v55  ;;  %v2379_v61 = vadd.f32 %v12762_v37, %v2378_v1  ;;  %v12777_v36 = vrot.slane %v12772_v54, 1 }
 0x35c   : > { %v2380_v13 = vpop.f32.mrf.mxu0 }
 0x35d   : > { %18845 = vst [vmem:[#allocation71_spill] sm:$0xff] %v12777_v36  ;;  %v2681_v48 = vrot.slane %v2651_v22, 7  ;;  %v2682_v60 = vrot.slane %v2616_v30, 7  ;;  %v2545_v52 = vmax.f32 %v2379_v61, 0.0  ;;  %2972 = vrot.lane.b32.xlu0 %v12777_v36, %s9987_s27  ;;  %v12783_v14 = vsel %vm443_vm0, %v2900_v29, %v12777_v36 }
 0x35e   : > { %18846 = vst [vmem:[#allocation131_spill] sm:$0xff] %v12783_v14  ;;  %v2383_v53 = vpop.f32.mrf.mxu0  ;;  %2970 = vrot.lane.b32.xlu1 %v12783_v14, %s9987_s27 }
 0x35f   : > { %v2683_v62 = vsel %vm2675_vm9, %v2681_v48, %v2682_v60  ;;  %v12789_v47 = vsel %vm2675_vm9, 0.0, %v2681_v48  ;;  %v2617_v21 = vcombine.high %v2545_v52, %v2545_v52  ;;  %v2384_v26 = vadd.f32 %v12762_v37, %v2383_v53 }
 0x360   : > { %v12793_v46 = vsel %vm2825_vm10, %v2683_v62, 0.0  ;;  %v2385_v11 = vpop.f32.mrf.mxu0  ;;  %v3110_v28 = vrot.slane %v12789_v47, 2  ;;  %v2903_v51 = vrot.slane %v12789_v47, 1 }
 0x361   : > { %18847 = vst [vmem:[#allocation133_spill] sm:$0xff] %v12793_v46  ;;  %v2652_v20 = vcombine.low %v2545_v52, %v2617_v21  ;;  %v2546_v39 = vmax.f32 %v2384_v26, 0.0  ;;  %v12797_v63 = vrot.slane %v12793_v46, 1  ;;  %v12800_v33 = vrot.slane %v12793_v46, 2 }
 0x362   : > { %v2388_v23 = vpop.f32.mrf.mxu0 }
 0x363   : > { %18848 = vst [vmem:[#allocation134_spill] sm:$0xff] %v12797_v63  ;;  %v2684_v42 = vrot.slane %v2652_v20, 7  ;;  %v2685_v57 = vrot.slane %v2546_v39, 7  ;;  %v2389_v19 = vadd.f32 %v12762_v37, %v2388_v23  ;;  %2976 = vrot.lane.b32.xlu0 %v12797_v63, %s9987_s27  ;;  %v12807_v49 = vsel %vm660_vm1, %v3110_v28, %v12800_v33 }
 0x364   : > { %v2390_v9 = vpop.f32.mrf.mxu0  ;;  %v2618_v8 = vcombine.high %v2546_v39, %v2546_v39  ;;  %9186 = vmatprep.mubr.msk.f32.mxu1 %vm1629_vm2, %v12807_v49  ;;  %v12840_v22 = vsel %vm443_vm0, %v2903_v51, %v12797_v63 }
 0x365   : > { %v2686_v45 = vsel %vm2675_vm9, %v2684_v42, %v2685_v57  ;;  %v2547_v0 = vmax.f32 %v2389_v19, 0.0  ;;  %v12835_v25 = vsel %vm2675_vm9, 0.0, %v2684_v42  ;;  %18853 = vst [vmem:[#allocation52_spill] sm:$0xff] %v12840_v22 }
 0x366   : > { %v12813_v38 = vsel %vm2825_vm10, %v2686_v45, 0.0  ;;  %v2393_v2 = vpop.f32.mrf.mxu0  ;;  %v2906_v52 = vrot.slane %v12835_v25, 1 }
 0x367   : > { %v2619_v59 = vcombine.high %v2547_v0, %v2547_v0  ;;  %v2653_v18 = vcombine.low %v2618_v8, %v2547_v0  ;;  %v2394_v43 = vadd.f32 %v12762_v37, %v2393_v2  ;;  %v12817_v17 = vrot.slane %v12813_v38, 1 }
 0x368   : > { %v2395_v16 = vpop.f32.mrf.mxu0 }
 0x369   : > { %18849 = vst [vmem:[#allocation26_spill] sm:$0xff] %v12817_v17  ;;  %v2687_v24 = vrot.slane %v2653_v18, 7  ;;  %v2688_v5 = vrot.slane %v2619_v59, 7  ;;  %v2548_v6 = vmax.f32 %v2394_v43, 0.0  ;;  %2980 = vrot.lane.b32.xlu0 %v12817_v17, %s9987_s27  ;;  %v12873_v8 = vsel %vm443_vm0, %v2906_v52, %v12817_v17 }
 0x36a   : > { %v2398_v58 = vpop.f32.mrf.mxu0  ;;  %18860 = vst [vmem:[#allocation138_spill] sm:$0xff] %v12873_v8 }
 0x36b   : > { %v2689_v12 = vsel %vm2675_vm9, %v2687_v24, %v2688_v5  ;;  %v12823_v56 = vsel %vm2675_vm9, 0.0, %v2687_v24  ;;  %v2620_v35 = vcombine.high %v2548_v6, %v2548_v6  ;;  %v2399_v31 = vadd.f32 %v12762_v37, %v2398_v58 }
 0x36c   : > { %18850 = vst [vmem:[#allocation19_spill] sm:$0xff] %v12823_v56  ;;  %v12828_v41 = vsel %vm2825_vm10, %v2689_v12, 0.0  ;;  %v2909_v27 = vrot.slane %v12823_v56, 1  ;;  %v2400_v40 = vpop.f32.mrf.mxu0 }
 0x36d   : > { %18851 = vst [vmem:[#allocation22_spill] sm:$0xff] %v12828_v41  ;;  %v12832_v7 = vrot.slane %v12828_v41, 1  ;;  %v2654_v10 = vcombine.low %v2548_v6, %v2620_v35  ;;  %v2549_v44 = vmax.f32 %v2399_v31, 0.0 }
 0x36e   : > { %v2403_v50 = vpop.f32.mrf.mxu0 }
 0x36f   : > { %18852 = vst [vmem:[#allocation178_spill] sm:$0xff] %v12832_v7  ;;  %v2690_v55 = vrot.slane %v2654_v10, 7  ;;  %v2691_v1 = vrot.slane %v2549_v44, 7  ;;  %v2404_v29 = vadd.f32 %v12762_v37, %v2403_v50  ;;  %v12844_v61 = vsel %vm443_vm0, %v2909_v27, %v12832_v7 }
 0x370   : > { %v2405_v30 = vpop.f32.mrf.mxu0  ;;  %18854 = vst [vmem:[#allocation17_spill] sm:$0xff] %v12844_v61  ;;  %v12852_v60 = vpack.i.bf16 %v12844_v61, %v12840_v22  ;;  %v2621_v53 = vcombine.high %v2549_v44, %v2549_v44 }
 0x371   : > { %v12847_v13 = vsel %vm2675_vm9, 0.0, %v2690_v55  ;;  %v2692_v48 = vsel %vm2675_vm9, %v2690_v55, %v2691_v1  ;;  %v2550_v21 = vmax.f32 %v2404_v29, 0.0 }
 0x372   : > { %18855 = vst [vmem:[#allocation180_spill] sm:$0xff] %v12847_v13  ;;  %18856 = vst [vmem:[#allocation72_spill] sm:$0xff] %v12852_v60  ;;  %v12856_v62 = vsel %vm2825_vm10, %v2692_v48, 0.0  ;;  %v2408_v26 = vpop.f32.mrf.mxu0  ;;  %v2912_v11 = vrot.slane %v12847_v13, 1  ;;  %9546 = vrot.lane.b32.xlu1 %v12852_v60, %s9987_s27 }
 0x373   : > { %18857 = vst [vmem:[#allocation48_spill] sm:$0xff] %v12856_v62  ;;  %v2409_v28 = vadd.f32 %v12762_v37, %v2408_v26  ;;  %v12863_v20 = vrot.slane %v12856_v62, 1  ;;  %v2622_v39 = vcombine.high %v2550_v21, %v2550_v21  ;;  %v2655_v23 = vcombine.low %v2621_v53, %v2550_v21 }
 0x374   : > { %v2410_v42 = vpop.f32.mrf.mxu0 }
 0x375   : > { %18858 = vst [vmem:[#allocation74_spill] sm:$0xff] %v12863_v20  ;;  %v2551_v57 = vmax.f32 %v2409_v28, 0.0  ;;  %v12867_v19 = vsel %vm443_vm0, %v2912_v11, %v12863_v20  ;;  %v2693_v45 = vrot.slane %v2655_v23, 7  ;;  %v2694_v0 = vrot.slane %v2622_v39, 7 }
 0x376   : > { %18859 = vst [vmem:[#allocation75_spill] sm:$0xff] %v12867_v19  ;;  %v2413_v9 = vpop.f32.mrf.mxu0  ;;  %2986 = vrot.lane.b32.xlu0 %v12867_v19, %s9987_s27  ;;  %2978 = vrot.lane.b32.xlu1 %v12873_v8, %s9987_s27 }
 0x377   : > { %v2623_v2 = vcombine.high %v2551_v57, %v2551_v57  ;;  %v2414_v59 = vadd.f32 %v12762_v37, %v2413_v9  ;;  %v2695_v5 = vsel %vm2675_vm9, %v2693_v45, %v2694_v0  ;;  %v12890_v1 = vsel %vm2675_vm9, 0.0, %v2693_v45 }
 0x378   : > { %v2415_v18 = vpop.f32.mrf.mxu0  ;;  %v12883_v27 = vsel %vm2825_vm10, %v2695_v5, 0.0  ;;  %18862 = vst [vmem:[#allocation136_spill] sm:$0xff] %v12890_v1  ;;  %v2915_v42 = vrot.slane %v12890_v1, 1 }
 0x379   : > { %v2656_v43 = vcombine.low %v2551_v57, %v2623_v2  ;;  %v2552_v16 = vmax.f32 %v2414_v59, 0.0  ;;  %18861 = vst [vmem:[#allocation135_spill] sm:$0xff] %v12883_v27  ;;  %v12893_v53 = vrot.slane %v12883_v27, 1 }
 0x37a   : > { %v2418_v24 = vpop.f32.mrf.mxu0  ;;  %2984 = vrot.lane.b32.xlu1 %v12832_v7, %s9987_s27 }
 0x37b   : > { %v2696_v6 = vrot.slane %v2656_v43, 7  ;;  %v2419_v58 = vadd.f32 %v12762_v37, %v2418_v24  ;;  %v2697_v12 = vrot.slane %v2552_v16, 7  ;;  %v2624_v31 = vcombine.high %v2552_v16, %v2552_v16  ;;  %18863 = vst [vmem:[#allocation33_spill] sm:$0xff] %v12893_v53 }
 0x37c   : > { %v2420_v35 = vpop.f32.mrf.mxu0 }
 0x37d   : > { %v2553_v51 = vmax.f32 %v2419_v58, 0.0  ;;  %v2698_v10 = vsel %vm2675_vm9, %v2696_v6, %v2697_v12  ;;  %v12917_v16 = vsel %vm2675_vm9, 0.0, %v2696_v6 }
 0x37e   : > { %v2423_v40 = vpop.f32.mrf.mxu0  ;;  %2988 = vrot.lane.b32.xlu1 %v12863_v20, %s9987_s27  ;;  %v12896_v21 = vsel %vm2825_vm10, %v2698_v10, 0.0  ;;  %18869 = vst [vmem:[#allocation181_spill] sm:$0xff] %v12917_v16 }
 0x37f   : > { %v2625_v44 = vcombine.high %v2553_v51, %v2553_v51  ;;  %v2657_v50 = vcombine.low %v2624_v31, %v2553_v51  ;;  %v2424_v55 = vadd.f32 %v12762_v37, %v2423_v40  ;;  %18864 = vst [vmem:[#allocation16_spill] sm:$0xff] %v12896_v21  ;;  %v12914_v18 = vrot.slane %v12896_v21, 1 }
 0x380   : > { %v2425_v29 = vpop.f32.mrf.mxu0  ;;  %v12924_v31 = vsel %vm443_vm0, %v2915_v42, %v12893_v53 }
 0x381   : > { %v2699_v30 = vrot.slane %v2657_v50, 7  ;;  %v2700_v48 = vrot.slane %v2625_v44, 7  ;;  %v2554_v52 = vmax.f32 %v2424_v55, 0.0  ;;  %18868 = vst [vmem:[#allocation76_spill] sm:$0xff] %v12914_v18  ;;  %18870 = vst [vmem:[#allocation235_spill] sm:$0xff] %v12924_v31  ;;  %v2918_v29 = vrot.slane %v12917_v16, 1 }
 0x382   : > { %v2428_v26 = vpop.f32.mrf.mxu0  ;;  %2992 = vrot.lane.b32.xlu1 %v12893_v53, %s9987_s27 }
 0x383   : > { %v2701_v11 = vsel %vm2675_vm9, %v2699_v30, %v2700_v48  ;;  %v12900_v28 = vsel %vm2675_vm9, 0.0, %v2699_v30  ;;  %v2626_v39 = vcombine.high %v2554_v52, %v2554_v52  ;;  %v2429_v23 = vadd.f32 %v12762_v37, %v2428_v26 }
 0x384   : > { %18865 = vst [vmem:[#allocation183_spill] sm:$0xff] %v12900_v28  ;;  %v12907_v57 = vsel %vm2825_vm10, %v2701_v11, 0.0  ;;  %v2921_v9 = vrot.slane %v12900_v28, 1  ;;  %v2430_v45 = vpop.f32.mrf.mxu0 }
 0x385   : > { %18866 = vst [vmem:[#allocation20_spill] sm:$0xff] %v12907_v57  ;;  %v12911_v0 = vrot.slane %v12907_v57, 1  ;;  %v2658_v2 = vcombine.low %v2554_v52, %v2626_v39  ;;  %v2555_v59 = vmax.f32 %v2429_v23, 0.0  ;;  %v12957_v45 = vsel %vm443_vm0, %v2918_v29, %v12914_v18 }
 0x386   : > { %v2433_v43 = vpop.f32.mrf.mxu0  ;;  %2996 = vrot.lane.b32.xlu1 %v12914_v18, %s9987_s27  ;;  %18877 = vst [vmem:[#allocation137_spill] sm:$0xff] %v12957_v45 }
 0x387   : > { %18867 = vst [vmem:[#allocation238_spill] sm:$0xff] %v12911_v0  ;;  %v2702_v24 = vrot.slane %v2658_v2, 7  ;;  %v2703_v5 = vrot.slane %v2555_v59, 7  ;;  %v2434_v58 = vadd.f32 %v12762_v37, %v2433_v43  ;;  %v2627_v12 = vcombine.high %v2555_v59, %v2555_v59 }
 0x388   : > { %v2435_v35 = vpop.f32.mrf.mxu0  ;;  %v12928_v51 = vsel %vm443_vm0, %v2921_v9, %v12911_v0 }
 0x389   : > { %18871 = vst [vmem:[#allocation236_spill] sm:$0xff] %v12928_v51  ;;  %v12931_v6 = vsel %vm2675_vm9, 0.0, %v2702_v24  ;;  %v2704_v40 = vsel %vm2675_vm9, %v2702_v24, %v2703_v5  ;;  %v2556_v10 = vmax.f32 %v2434_v58, 0.0  ;;  %v12936_v44 = vpack.i.bf16 %v12928_v51, %v12924_v31 }
 0x38a   : > { %18872 = vst [vmem:[#allocation53_spill] sm:$0xff] %v12931_v6  ;;  %v12939_v50 = vsel %vm2825_vm10, %v2704_v40, 0.0  ;;  %v2438_v55 = vpop.f32.mrf.mxu0  ;;  %v2924_v30 = vrot.slane %v12931_v6, 1 }
 0x38b   : > { %18873 = vst [vmem:[#allocation56_spill] sm:$0xff] %v12936_v44  ;;  %18874 = vst [vmem:[#allocation50_spill] sm:$0xff] %v12939_v50  ;;  %v2628_v48 = vcombine.high %v2556_v10, %v2556_v10  ;;  %v12943_v52 = vcombine.low %v2627_v12, %v2556_v10  ;;  %v2439_v26 = vadd.f32 %v12762_v37, %v2438_v55  ;;  %9551 = vrot.lane.b32.xlu0 %v12936_v44, %s9987_s27 }
 0x38c   : > { %v12949_v11 = vrot.slane %v12939_v50, 1  ;;  %v2440_v39 = vpop.f32.mrf.mxu0 }
 0x38d   : > { %v2557_v23 = vmax.f32 %v2439_v26, 0.0  ;;  %v2705_v2 = vrot.slane %v12943_v52, 7  ;;  %v2706_v59 = vrot.slane %v2628_v48, 7 }
 0x38e   : > { %18875 = vst [vmem:[#allocation77_spill] sm:$0xff] %v12949_v11  ;;  %v12953_v42 = vsel %vm443_vm0, %v2924_v30, %v12949_v11  ;;  %v2443_v9 = vpop.f32.mrf.mxu0 }
 0x38f   : > { %18876 = vst [vmem:[#allocation55_spill] sm:$0xff] %v12953_v42  ;;  %3002 = vrot.lane.b32.xlu1 %v12953_v42, %s9987_s27  ;;  %v2629_v43 = vcombine.high %v2557_v23, %v2557_v23  ;;  %v2444_v24 = vadd.f32 %v12762_v37, %v2443_v9  ;;  %2994 = vrot.lane.b32.xlu0 %v12957_v45, %s9987_s27  ;;  %v13020_v51 = vsel %vm2675_vm9, 0.0, %v2705_v2 }
 0x390   : > { %v2445_v5 = vpop.f32.mrf.mxu0  ;;  %v2707_v40 = vsel %vm2675_vm9, %v2705_v2, %v2706_v59  ;;  %18885 = vst [vmem:[#allocation211_spill] sm:$0xff] %v13020_v51 }
 0x391   : > { %v12965_v58 = vcombine.low %v2557_v23, %v2629_v43  ;;  %v2558_v12 = vmax.f32 %v2444_v24, 0.0  ;;  %v12973_v26 = vsel %vm2825_vm10, %v2707_v40, 0.0 }
 0x392   : > { %v2448_v35 = vpop.f32.mrf.mxu0 }
 0x393   : > { %v17850_v10 = vrot.slane %v12965_v58, 7  ;;  %v2709_v55 = vrot.slane %v2558_v12, 7  ;;  %v2449_v29 = vadd.f32 %v12762_v37, %v2448_v35  ;;  %3000 = vrot.lane.b32.xlu0 %v12911_v0, %s9987_s27  ;;  %v2630_v48 = vcombine.high %v2558_v12, %v2558_v12 }
 0x394   : > { %v2450_v30 = vpop.f32.mrf.mxu0 }
 0x395   : > { %v2559_v52 = vmax.f32 %v2449_v29, 0.0  ;;  %v2710_v23 = vsel %vm2675_vm9, %v17850_v10, %v2709_v55  ;;  %v12982_v29 = vrot.slane %v12973_v26, 1 }
 0x396   : > { %v2453_v39 = vpop.f32.mrf.mxu0  ;;  %v12985_v40 = vsel %vm2825_vm10, %v2710_v23, 0.0 }
 0x397   : > { %v2631_v9 = vcombine.high %v2559_v52, %v2559_v52  ;;  %v2661_v59 = vcombine.low %v2630_v48, %v2559_v52  ;;  %v2454_v43 = vadd.f32 %v12762_v37, %v2453_v39  ;;  %3004 = vrot.lane.b32.xlu0 %v12949_v11, %s9987_s27  ;;  %18878 = vst [vmem:[#allocation203_spill] sm:$0xff] %v12982_v29  ;;  %v12999_v10 = vrot.slane %v12985_v40, 1 }
 0x398   : > { %v2455_v24 = vpop.f32.mrf.mxu0 }
 0x399   : > { %v2711_v5 = vrot.slane %v2661_v59, 7  ;;  %v2712_v35 = vrot.slane %v2631_v9, 7  ;;  %v2560_v12 = vmax.f32 %v2454_v43, 0.0  ;;  %18881 = vst [vmem:[#allocation29_spill] sm:$0xff] %v12999_v10 }
 0x39a   : > { %v2458_v30 = vpop.f32.mrf.mxu0 }
 0x39b   : > { %v2713_v55 = vsel %vm2675_vm9, %v2711_v5, %v2712_v35  ;;  %v12989_v48 = vsel %vm2675_vm9, 0.0, %v2711_v5  ;;  %v2632_v52 = vcombine.high %v2560_v12, %v2560_v12  ;;  %v2459_v39 = vadd.f32 %v12762_v37, %v2458_v30  ;;  %3008 = vrot.lane.b32.xlu0 %v12982_v29, %s9987_s27 }
 0x39c   : > { %18879 = vst [vmem:[#allocation88_spill] sm:$0xff] %v12989_v48  ;;  %v12995_v9 = vsel %vm2825_vm10, %v2713_v55, 0.0  ;;  %v3459_v59 = vrot.slane %v12989_v48, 1  ;;  %v2460_v43 = vpop.f32.mrf.mxu0 }
 0x39d   : > { %18880 = vst [vmem:[#allocation216_spill] sm:$0xff] %v12995_v9  ;;  %v2662_v23 = vcombine.low %v2560_v12, %v2632_v52  ;;  %v2561_v24 = vmax.f32 %v2459_v39, 0.0  ;;  %v13002_v5 = vrot.slane %v12995_v9, 1 }
 0x39e   : > { %v2463_v35 = vpop.f32.mrf.mxu0 }
 0x39f   : > { %18882 = vst [vmem:[#allocation82_spill] sm:$0xff] %v13002_v5  ;;  %v2714_v4 = vrot.slane %v2662_v23, 7  ;;  %v2715_v30 = vrot.slane %v2561_v24, 7  ;;  %v2464_v42 = vadd.f32 %v12762_v37, %v2463_v35  ;;  %3012 = vrot.lane.b32.xlu0 %v12999_v10, %s9987_s27  ;;  %v13009_v43 = vsel %vm443_vm0, %v3459_v59, %v13002_v5 }
 0x3a0   : > { %v2465_v55 = vpop.f32.mrf.mxu0  ;;  %18883 = vst [vmem:[#allocation210_spill] sm:$0xff] %v13009_v43  ;;  %v2633_v12 = vcombine.high %v2561_v24, %v2561_v24 }
 0x3a1   : > { %v2716_v52 = vsel %vm2675_vm9, %v2714_v4, %v2715_v30  ;;  %v2562_v39 = vmax.f32 %v2464_v42, 0.0 }
 0x3a2   : > { %v13013_v9 = vsel %vm2825_vm10, %v2716_v52, 0.0  ;;  %v2468_v48 = vpop.f32.mrf.mxu0 }
 0x3a3   : > { %v2634_v23 = vcombine.high %v2562_v39, %v2562_v39  ;;  %v2663_v11 = vcombine.low %v2633_v12, %v2562_v39  ;;  %v2469_v35 = vadd.f32 %v12762_v37, %v2468_v48  ;;  %v13017_v0 = vrot.slane %v13013_v9, 1 }
 0x3a4   : > { %v2470_v55 = vpop.f32.mrf.mxu0  ;;  %v2927_v39 = vrot.slane %v13020_v51, 1 }
 0x3a5   : > { %18884 = vst [vmem:[#allocation83_spill] sm:$0xff] %v13017_v0  ;;  %v2717_v59 = vrot.slane %v2663_v11, 7  ;;  %v2718_v24 = vrot.slane %v2634_v23, 7  ;;  %v2563_v5 = vmax.f32 %v2469_v35, 0.0  ;;  %3016 = vrot.lane.b32.xlu0 %v13017_v0, %s9987_s27 }
 0x3a6   : > { %v2473_v42 = vpop.f32.mrf.mxu0  ;;  %v13045_v31 = vsel %vm443_vm0, %v2927_v39, %v12982_v29 }
 0x3a7   : > { %v2719_v30 = vsel %vm2675_vm9, %v2717_v59, %v2718_v24  ;;  %v13026_v12 = vsel %vm2675_vm9, 0.0, %v2717_v59  ;;  %v2635_v48 = vcombine.high %v2563_v5, %v2563_v5  ;;  %v2474_v52 = vadd.f32 %v12762_v37, %v2473_v42  ;;  %18891 = vst [vmem:[#allocation140_spill] sm:$0xff] %v13045_v31 }
 0x3a8   : > { %18886 = vst [vmem:[#allocation142_spill] sm:$0xff] %v13026_v12  ;;  %v13031_v2 = vsel %vm2825_vm10, %v2719_v30, 0.0  ;;  %v2936_v11 = vrot.slane %v13026_v12, 1  ;;  %v2475_v23 = vpop.f32.mrf.mxu0  ;;  %v18889_v59 = vrot.slane %v12965_v58, 7 }
 0x3a9   : > { %18887 = vst [vmem:[#allocation30_spill] sm:$0xff] %v13031_v2  ;;  %v13035_v35 = vrot.slane %v13031_v2, 1  ;;  %v2664_v55 = vcombine.low %v2563_v5, %v2635_v48  ;;  %v2564_v43 = vmax.f32 %v2474_v52, 0.0 }
 0x3aa   : > { %v2478_v24 = vpop.f32.mrf.mxu0  ;;  %v13040_v18 = vsel %vm2675_vm9, 0.0, %v18889_v59 }
 0x3ab   : > { %18888 = vst [vmem:[#allocation182_spill] sm:$0xff] %v13035_v35  ;;  %18890 = vst [vmem:[#allocation139_spill] sm:$0xff] %v13040_v18  ;;  %v2720_v42 = vrot.slane %v2664_v55, 7  ;;  %v2721_v44 = vrot.slane %v2564_v43, 7  ;;  %v2479_v53 = vadd.f32 %v12762_v37, %v2478_v24  ;;  %v13049_v23 = vsel %vm443_vm0, %v2936_v11, %v13035_v35 }
 0x3ac   : > { %v2480_v30 = vpop.f32.mrf.mxu0  ;;  %18892 = vst [vmem:[#allocation186_spill] sm:$0xff] %v13049_v23  ;;  %v9555_v48 = vpack.i.bf16 %v13049_v23, %v13045_v31  ;;  %v2930_v59 = vrot.slane %v13040_v18, 1  ;;  %v13063_v11 = vsel %vm2675_vm9, 0.0, %v2714_v4 }
 0x3ad   : > { %v13052_v5 = vsel %vm2675_vm9, 0.0, %v2720_v42  ;;  %v2722_v58 = vsel %vm2675_vm9, %v2720_v42, %v2721_v44  ;;  %v2565_v55 = vmax.f32 %v2479_v53, 0.0  ;;  %v2636_v42 = vcombine.high %v2564_v43, %v2564_v43 }
 0x3ae   : > { %v13058_v52 = vsel %vm2825_vm10, %v2722_v58, 0.0  ;;  %v2483_v24 = vpop.f32.mrf.mxu0  ;;  %v2939_v39 = vrot.slane %v13052_v5, 1  ;;  %9556 = vrot.lane.b32.xlu1 %v9555_v48, %s9987_s27  ;;  %v13078_v4 = vsel %vm443_vm0, %v2930_v59, %v12999_v10  ;;  %v2933_v48 = vrot.slane %v13063_v11, 1 }
 0x3af   : > { %18893 = vst [vmem:[#allocation237_spill] sm:$0xff] %v13058_v52  ;;  %v2484_v30 = vadd.f32 %v12762_v37, %v2483_v24  ;;  %v13068_v44 = vrot.slane %v13058_v52, 1  ;;  %v2637_v29 = vcombine.high %v2565_v55, %v2565_v55  ;;  %v2665_v31 = vcombine.low %v2636_v42, %v2565_v55  ;;  %18896 = vst [vmem:[#allocation27_spill] sm:$0xff] %v13078_v4 }
 0x3b0   : > { %v2485_v23 = vpop.f32.mrf.mxu0 }
 0x3b1   : > { %18894 = vst [vmem:[#allocation242_spill] sm:$0xff] %v13068_v44  ;;  %v2566_v58 = vmax.f32 %v2484_v30, 0.0  ;;  %v13072_v53 = vsel %vm443_vm0, %v2939_v39, %v13068_v44  ;;  %v2723_v30 = vrot.slane %v2665_v31, 7  ;;  %v2724_v55 = vrot.slane %v2637_v29, 7 }
 0x3b2   : > { %18895 = vst [vmem:[#allocation23_spill] sm:$0xff] %v13072_v53  ;;  %v2488_v45 = vpop.f32.mrf.mxu0  ;;  %3022 = vrot.lane.b32.xlu0 %v13072_v53, %s9987_s27  ;;  %3010 = vrot.lane.b32.xlu1 %v13078_v4, %s9987_s27  ;;  %v13086_v53 = vsel %vm443_vm0, %v2933_v48, %v13017_v0 }
 0x3b3   : > { %v2638_v24 = vcombine.high %v2566_v58, %v2566_v58  ;;  %v2489_v43 = vadd.f32 %v12762_v37, %v2488_v45  ;;  %18897 = vst [vmem:[#allocation73_spill] sm:$0xff] %v13086_v53  ;;  %v2725_v4 = vsel %vm2675_vm9, %v2723_v30, %v2724_v55 }
 0x3b4   : > { %v2490_v23 = vpop.f32.mrf.mxu0 }
 0x3b5   : > { %v2567_v39 = vmax.f32 %v2489_v43, 0.0  ;;  %v2666_v42 = vcombine.low %v2566_v58, %v2638_v24 }
 0x3b6   : > { %v2493_v19 = vpop.f32.mrf.mxu0  ;;  %3014 = vrot.lane.b32.xlu1 %v13086_v53, %s9987_s27 }
 0x3b7   : > { %v2494_v59 = vadd.f32 %v12762_v37, %v2493_v19  ;;  %v2639_v45 = vcombine.high %v2567_v39, %v2567_v39  ;;  %v2726_v23 = vrot.slane %v2666_v42, 7  ;;  %v2727_v43 = vrot.slane %v2567_v39, 7 }
 0x3b8   : > { %v2495_v10 = vpop.f32.mrf.mxu0  ;;  %v13096_v19 = vsel %vm2675_vm9, 0.0, %v2723_v30 }
 0x3b9   : > { %v2568_v20 = vmax.f32 %v2494_v59, 0.0  ;;  %18898 = vst [vmem:[#allocation184_spill] sm:$0xff] %v13096_v19  ;;  %v13099_v10 = vsel %vm2825_vm10, %v2725_v4, 0.0  ;;  %v2728_v39 = vsel %vm2675_vm9, %v2726_v23, %v2727_v43  ;;  %v2942_v4 = vrot.slane %v13096_v19, 1 }
 0x3ba   : > { %v2498_v31 = vpop.f32.mrf.mxu0  ;;  %3020 = vrot.lane.b32.xlu1 %v13035_v35, %s9987_s27  ;;  %18899 = vst [vmem:[#allocation239_spill] sm:$0xff] %v13099_v10 }
 0x3bb   : > { %v2640_v29 = vcombine.high %v2568_v20, %v2568_v20  ;;  %v2667_v58 = vcombine.low %v2639_v45, %v2568_v20  ;;  %v2499_v24 = vadd.f32 %v12762_v37, %v2498_v31 }
 0x3bc   : > { %v2500_v48 = vpop.f32.mrf.mxu0 }
 0x3bd   : > { %v2729_v59 = vrot.slane %v2667_v58, 7  ;;  %v2730_v0 = vrot.slane %v2640_v29, 7  ;;  %v2569_v55 = vmax.f32 %v2499_v24, 0.0  ;;  %v13115_v58 = vrot.slane %v13099_v10, 1 }
 0x3be   : > { %v2503_v42 = vpop.f32.mrf.mxu0  ;;  %3024 = vrot.lane.b32.xlu1 %v13068_v44, %s9987_s27  ;;  %v13124_v44 = vsel %vm2675_vm9, 0.0, %v2726_v23 }
 0x3bf   : > { %v2731_v20 = vsel %vm2675_vm9, %v2729_v59, %v2730_v0  ;;  %v13104_v45 = vsel %vm2675_vm9, 0.0, %v2729_v59  ;;  %v2641_v31 = vcombine.high %v2569_v55, %v2569_v55  ;;  %v2504_v35 = vadd.f32 %v12762_v37, %v2503_v42  ;;  %18902 = vst [vmem:[#allocation60_spill] sm:$0xff] %v13115_v58  ;;  %18905 = vst [vmem:[#allocation90_spill] sm:$0xff] %v13124_v44 }
 0x3c0   : > { %18900 = vst [vmem:[#allocation240_spill] sm:$0xff] %v13104_v45  ;;  %v13111_v30 = vsel %vm2825_vm10, %v2731_v20, 0.0  ;;  %v2948_v29 = vrot.slane %v13104_v45, 1  ;;  %v2505_v43 = vpop.f32.mrf.mxu0  ;;  %v13118_v0 = vsel %vm2825_vm10, %v2728_v39, 0.0  ;;  %v13131_v39 = vsel %vm443_vm0, %v2942_v4, %v13115_v58 }
 0x3c1   : > { %18901 = vst [vmem:[#allocation54_spill] sm:$0xff] %v13111_v30  ;;  %18903 = vst [vmem:[#allocation51_spill] sm:$0xff] %v13118_v0  ;;  %v13121_v24 = vrot.slane %v13111_v30, 1  ;;  %v2668_v48 = vcombine.low %v2569_v55, %v2641_v31  ;;  %v2570_v59 = vmax.f32 %v2504_v35, 0.0  ;;  %v13138_v23 = vrot.slane %v13118_v0, 1 }
 0x3c2   : > { %v2508_v42 = vpop.f32.mrf.mxu0  ;;  %3028 = vrot.lane.b32.xlu1 %v13115_v58, %s9987_s27  ;;  %18906 = vst [vmem:[#allocation224_spill] sm:$0xff] %v13131_v39 }
 0x3c3   : > { %18904 = vst [vmem:[#allocation57_spill] sm:$0xff] %v13121_v24  ;;  %v2732_v20 = vrot.slane %v2668_v48, 7  ;;  %v2733_v53 = vrot.slane %v2570_v59, 7  ;;  %v2509_v7 = vadd.f32 %v12762_v37, %v2508_v42  ;;  %v2642_v43 = vcombine.high %v2570_v59, %v2570_v59  ;;  %18908 = vst [vmem:[#allocation143_spill] sm:$0xff] %v13138_v23 }
 0x3c4   : > { %v2510_v61 = vpop.f32.mrf.mxu0  ;;  %v13135_v35 = vsel %vm443_vm0, %v2948_v29, %v13121_v24  ;;  %v2945_v42 = vrot.slane %v13124_v44, 1 }
 0x3c5   : > { %18907 = vst [vmem:[#allocation212_spill] sm:$0xff] %v13135_v35  ;;  %v13141_v55 = vsel %vm2675_vm9, 0.0, %v2732_v20  ;;  %v2734_v31 = vsel %vm2675_vm9, %v2732_v20, %v2733_v53  ;;  %v2571_v48 = vmax.f32 %v2509_v7, 0.0  ;;  %v9560_v61 = vpack.i.bf16 %v13135_v35, %v13131_v39 }
 0x3c6   : > { %18909 = vst [vmem:[#allocation87_spill] sm:$0xff] %v13141_v55  ;;  %v13147_v59 = vsel %vm2825_vm10, %v2734_v31, 0.0  ;;  %v2513_v4 = vpop.f32.mrf.mxu0  ;;  %v2951_v29 = vrot.slane %v13141_v55, 1  ;;  %3032 = vrot.lane.b32.xlu1 %v13138_v23, %s9987_s27 }
 0x3c7   : > { %18910 = vst [vmem:[#allocation220_spill] sm:$0xff] %v13147_v59  ;;  %v2643_v58 = vcombine.high %v2571_v48, %v2571_v48  ;;  %v2669_v17 = vcombine.low %v2642_v43, %v2571_v48  ;;  %v2514_v60 = vadd.f32 %v12762_v37, %v2513_v4  ;;  %9561 = vrot.lane.b32.xlu0 %v9560_v61, %s9987_s27  ;;  %v13156_v7 = vrot.slane %v13147_v59, 1 }
 0x3c8   : > { %v2515_v53 = vpop.f32.mrf.mxu0  ;;  %v13164_v43 = vsel %vm443_vm0, %v2945_v42, %v13138_v23 }
 0x3c9   : > { %18911 = vst [vmem:[#allocation25_spill] sm:$0xff] %v13156_v7  ;;  %v2572_v20 = vmax.f32 %v2514_v60, 0.0  ;;  %v13160_v31 = vsel %vm443_vm0, %v2951_v29, %v13156_v7  ;;  %18913 = vst [vmem:[#allocation219_spill] sm:$0xff] %v13164_v43  ;;  %v2735_v48 = vrot.slane %v2669_v17, 7  ;;  %v2736_v4 = vrot.slane %v2643_v58, 7 }
 0x3ca   : > { %18912 = vst [vmem:[#allocation91_spill] sm:$0xff] %v13160_v31  ;;  %v2518_v35 = vpop.f32.mrf.mxu0  ;;  %3038 = vrot.lane.b32.xlu1 %v13160_v31, %s9987_s27 }
 0x3cb   : > { %v2644_v61 = vcombine.high %v2572_v20, %v2572_v20  ;;  %v2519_v39 = vadd.f32 %v12762_v37, %v2518_v35  ;;  %3030 = vrot.lane.b32.xlu0 %v13164_v43, %s9987_s27  ;;  %v2737_v63 = vsel %vm2675_vm9, %v2735_v48, %v2736_v4 }
 0x3cc   : > { %v2520_v60 = vpop.f32.mrf.mxu0  ;;  %v13176_v43 = vsel %vm2825_vm10, %v2737_v63, 0.0 }
 0x3cd   : > { %v2670_v53 = vcombine.low %v2572_v20, %v2644_v61  ;;  %v2573_v29 = vmax.f32 %v2519_v39, 0.0  ;;  %18914 = vst [vmem:[#allocation187_spill] sm:$0xff] %v13176_v43  ;;  %v13186_v63 = vrot.slane %v13176_v43, 1 }
 0x3ce   : > { %v2523_v36 = vpop.f32.mrf.mxu0 }
 0x3cf   : > { %v2738_v22 = vrot.slane %v2670_v53, 7  ;;  %v2739_v42 = vrot.slane %v2573_v29, 7  ;;  %v2524_v17 = vadd.f32 %v12762_v37, %v2523_v36  ;;  %3036 = vrot.lane.b32.xlu0 %v13121_v24, %s9987_s27  ;;  %v2645_v35 = vcombine.high %v2573_v29, %v2573_v29  ;;  %18916 = vst [vmem:[#allocation40_spill] sm:$0xff] %v13186_v63 }
 0x3d0   : > { %v2525_v58 = vpop.f32.mrf.mxu0  ;;  %v13183_v36 = vsel %vm2675_vm9, 0.0, %v2735_v48  ;;  %v3104_v24 = vrot.slane %v12398_v3, 2 }
 0x3d1   : > { %v2574_v23 = vmax.f32 %v2524_v17, 0.0  ;;  %v2740_v20 = vsel %vm2675_vm9, %v2738_v22, %v2739_v42  ;;  %18915 = vst [vmem:[#allocation144_spill] sm:$0xff] %v13183_v36 }
 0x3d2   : > { %v2528_v31 = vpop.f32.mrf.mxu0  ;;  %v13189_v58 = vsel %vm2825_vm10, %v2740_v20, 0.0 }
 0x3d3   : > { %v2646_v39 = vcombine.high %v2574_v23, %v2574_v23  ;;  %v2671_v61 = vcombine.low %v2645_v35, %v2574_v23  ;;  %v2529_v4 = vadd.f32 %v12762_v37, %v2528_v31  ;;  %3040 = vrot.lane.b32.xlu0 %v13156_v7, %s9987_s27  ;;  %18917 = vst [vmem:[#allocation141_spill] sm:$0xff] %v13189_v58  ;;  %v13207_v7 = vrot.slane %v13189_v58, 1 }
 0x3d4   : > { %v2530_v60 = vpop.f32.mrf.mxu0 }
 0x3d5   : > { %v2741_v53 = vrot.slane %v2671_v61, 7  ;;  %v2742_v29 = vrot.slane %v2646_v39, 7  ;;  %v2575_v17 = vmax.f32 %v2529_v4, 0.0  ;;  %v2954_v39 = vrot.slane %v13183_v36, 1  ;;  %18921 = vst [vmem:[#allocation61_spill] sm:$0xff] %v13207_v7 }
 0x3d6   : > { %v2533_v42 = vpop.f32.mrf.mxu0 }
 0x3d7   : > { %v2743_v23 = vsel %vm2675_vm9, %v2741_v53, %v2742_v29  ;;  %v13193_v31 = vsel %vm2675_vm9, 0.0, %v2741_v53  ;;  %v2647_v35 = vcombine.high %v2575_v17, %v2575_v17  ;;  %v2534_v48 = vadd.f32 %v12762_v37, %v2533_v42  ;;  %3044 = vrot.lane.b32.xlu0 %v13186_v63, %s9987_s27 }
 0x3d8   : > { %18918 = vst [vmem:[#allocation188_spill] sm:$0xff] %v13193_v31  ;;  %v13200_v61 = vsel %vm2825_vm10, %v2743_v23, 0.0  ;;  %v2960_v20 = vrot.slane %v13193_v31, 1  ;;  %v2535_v4 = vpop.f32.mrf.mxu0  ;;  %v13214_v23 = vsel %vm2675_vm9, 0.0, %v2738_v22 }
 0x3d9   : > { %18919 = vst [vmem:[#allocation28_spill] sm:$0xff] %v13200_v61  ;;  %v13204_v60 = vrot.slane %v13200_v61, 1  ;;  %v2672_v29 = vcombine.low %v2575_v17, %v2647_v35  ;;  %v2576_v53 = vmax.f32 %v2534_v48, 0.0  ;;  %18922 = vst [vmem:[#allocation65_spill] sm:$0xff] %v13214_v23  ;;  %v13218_v17 = vsel %vm443_vm0, %v2954_v39, %v13186_v63 }
 0x3da   : > { %v2538_v42 = vpop.f32.mrf.mxu0  ;;  %18923 = vst [vmem:[#allocation58_spill] sm:$0xff] %v13218_v17  ;;  %v13225_v48 = vrot.slane %v12401_v15, 2  ;;  %v2957_v46 = vrot.slane %v13214_v23, 1 }
 0x3db   : > { %18920 = vst [vmem:[#allocation243_spill] sm:$0xff] %v13204_v60  ;;  %v2744_v8 = vrot.slane %v2672_v29, 7  ;;  %v2745_v14 = vrot.slane %v2576_v53, 7  ;;  %v2539_v34 = vadd.f32 %v12762_v37, %v2538_v42  ;;  %3048 = vrot.lane.b32.xlu0 %v13207_v7, %s9987_s27  ;;  %v13222_v35 = vsel %vm443_vm0, %v2960_v20, %v13204_v60 }
 0x3dc   : > { %v2540_v4 = vpop.f32.mrf.mxu0  ;;  %18924 = vst [vmem:[#allocation185_spill] sm:$0xff] %v13222_v35  ;;  %18925 = vst [vmem:[#allocation241_spill] sm:$0xff] %v13225_v48  ;;  %v2648_v29 = vcombine.high %v2576_v53, %v2576_v53  ;;  %v9565_v39 = vpack.i.bf16 %v13222_v35, %v13218_v17  ;;  %v13320_v35 = vrot.slane %v12883_v27, 2  ;;  %v13351_v17 = vpop.permute.xlu1 %2970 }
 0x3dd   : > { %v13228_v37 = vsel %vm2675_vm9, 0.0, %v2744_v8  ;;  %v2746_v42 = vsel %vm2675_vm9, %v2744_v8, %v2745_v14  ;;  %v2577_v22 = vmax.f32 %v2539_v34, 0.0  ;;  %v13248_v8 = vsel %vm660_vm1, %v3104_v24, %v13225_v48  ;;  %18942 = vst [vmem:[#allocation148_spill] sm:$0xff] %v13351_v17 }
 0x3de   : > { %18926 = vst [vmem:[#allocation63_spill] sm:$0xff] %v13228_v37  ;;  %v13232_v4 = vsel %vm2825_vm10, %v2746_v42, 0.0  ;;  %v2963_v63 = vrot.slane %v13228_v37, 1  ;;  %9566 = vrot.lane.b32.xlu1 %v9565_v39, %s9987_s27  ;;  %18930 = vst [vmem:[#allocation227_spill] sm:$0xff] %v13248_v8 }
 0x3df   : > { %18927 = vst [vmem:[#allocation97_spill] sm:$0xff] %v13232_v4  ;;  %v2649_v20 = vcombine.high %v2577_v22, %v2577_v22  ;;  %v2673_v3 = vcombine.low %v2648_v29, %v2577_v22  ;;  %v13238_v15 = vrot.slane %v13232_v4, 1  ;;  %v9570_v29 = vpack.i.bf16 %v13225_v48, %v13248_v8  ;;  %18938 = vst [vmem:[#allocation102_spill] sm:$0xff] %v13320_v35 }
 0x3e0   : > { %v13349_v8 = vrot.slane %v12896_v21, 2 }
 0x3e1   : > { %18928 = vst [vmem:[#allocation146_spill] sm:$0xff] %v13238_v15  ;;  %v2747_v53 = vrot.slane %v2673_v3, 7  ;;  %v2748_v14 = vrot.slane %v2649_v20, 7  ;;  %v13244_v34 = vsel %vm443_vm0, %v2963_v63, %v13238_v15  ;;  %v13260_v3 = vsel %vm443_vm0, %v2957_v46, %v13207_v7 }
 0x3e2   : > { %18929 = vst [vmem:[#allocation101_spill] sm:$0xff] %v13244_v34  ;;  %3054 = vrot.lane.b32.xlu0 %v13244_v34, %s9987_s27  ;;  %18932 = vst [vmem:[#allocation223_spill] sm:$0xff] %v13260_v3  ;;  %3046 = vrot.lane.b32.xlu1 %v13260_v3, %s9987_s27  ;;  %v13279_v46 = vrot.slane %v12772_v54, 2 }
 0x3e3   : > { %v2749_v42 = vsel %vm2675_vm9, %v2747_v53, %v2748_v14  ;;  %v13256_v22 = vsel %vm2675_vm9, 0.0, %v2747_v53  ;;  %v3116_v53 = vrot.slane %v12823_v56, 2  ;;  %v13285_v14 = vrot.slane %v12828_v41, 2  ;;  %18941 = vst [vmem:[#allocation245_spill] sm:$0xff] %v13349_v8 }
 0x3e4   : > { %18931 = vst [vmem:[#allocation96_spill] sm:$0xff] %v13256_v22  ;;  %v13263_v63 = vsel %vm2825_vm10, %v2749_v42, 0.0  ;;  %v3462_v24 = vrot.slane %v13256_v22, 1  ;;  %v3113_v22 = vrot.slane %v12835_v25, 2 }
 0x3e5   : > { %18933 = vst [vmem:[#allocation147_spill] sm:$0xff] %v13263_v63  ;;  %v13269_v39 = vrot.slane %v13263_v63, 1  ;;  %v13294_v42 = vsel %vm660_vm1, %v3116_v53, %v13285_v14  ;;  %v13307_v63 = vrot.slane %v12907_v57, 2  ;;  %v13311_v53 = vrot.slane %v12856_v62, 2 }
 0x3e6   : > { %9571 = vrot.lane.b32.xlu0 %v9570_v29, %s18029_s28  ;;  %3052 = vrot.lane.b32.xlu1 %v13204_v60, %s9987_s27  ;;  %v3107_v29 = vrot.slane %v12768_v32, 2  ;;  %v3122_v60 = vrot.slane %v12890_v1, 2 }
 0x3e7   : > { %18934 = vst [vmem:[#allocation34_spill] sm:$0xff] %v13269_v39  ;;  %v13274_v20 = vsel %vm443_vm0, %v3462_v24, %v13269_v39  ;;  %v3128_v39 = vrot.slane %v12900_v28, 2  ;;  %18936 = vst [vmem:[#allocation36_spill] sm:$0xff] %v13307_v63 }
 0x3e8   : > { %18935 = vst [vmem:[#allocation213_spill] sm:$0xff] %v13274_v20  ;;  %v13298_v24 = vsel %vm660_vm1, %v3107_v29, %v13279_v46  ;;  %v13301_v20 = vrot.slane %v12813_v38, 2  ;;  %18937 = vst [vmem:[#allocation190_spill] sm:$0xff] %v13311_v53  ;;  %v9575_v29 = vpack.i.bf16 %v13294_v42, %v12807_v49  ;;  %v13339_v48 = vsel %vm660_vm1, %v3122_v60, %v13320_v35 }
 0x3e9   : > { %v13329_v3 = vsel %vm660_vm1, %v3128_v39, %v13307_v63  ;;  %v3125_v39 = vrot.slane %v12917_v16, 2  ;;  %vm15298_vm0 = vmor %vm5247_vm14, %vm5248_vm15 }
 0x3ea   : > { %3179 = vrot.lane.b32.xlu0 %v13279_v46, %s18029_s28  ;;  %3056 = vrot.lane.b32.xlu1 %v13238_v15, %s9987_s27  ;;  %v3119_v15 = vrot.slane %v12847_v13, 2  ;;  %18939 = vst [vmem:[#allocation228_spill] sm:$0xff] %v13329_v3  ;;  %v13335_v7 = vsel %vm660_vm1, %v3113_v22, %v13301_v20  ;;  %v13360_v22 = vpop.permute.xlu1 %9546 }
 0x3eb   : > { %v13358_v60 = vsel %vm660_vm1, %v3125_v39, %v13349_v8  ;;  %18944 = vst [vmem:[#allocation32_spill] sm:$0xff] %v13360_v22  ;;  %v13377_v39 = vrot.slane %v12939_v50, 2  ;;  %v3143_v22 = vrot.slane %v13026_v12, 2 }
 0x3ec   : > { %v13325_v34 = vsel %vm660_vm1, %v3119_v15, %v13311_v53  ;;  %v9580_v15 = vpack.i.bf16 %v13329_v3, %v13339_v48  ;;  %18943 = vst [vmem:[#allocation246_spill] sm:$0xff] %v13358_v60 }
 0x3ed   : > { %18948 = vst [vmem:[#allocation247_spill] sm:$0xff] %v13377_v39 }
 0x3ee   : > { %3183 = vrot.lane.b32.xlu0 %v12800_v33, %s18029_s28  ;;  %3177 = vrot.lane.b32.xlu1 %v13298_v24, %s18029_s28  ;;  %v13372_v17 = vpop.permute.xlu1 %2978 }
 0x3ef   : > { %18947 = vst [vmem:[#allocation31_spill] sm:$0xff] %v13372_v17  ;;  %v13391_v17 = vrot.slane %v12973_v26, 2 }
 0x3f1   : > { %18951 = vst [vmem:[#allocation59_spill] sm:$0xff] %v13391_v17 }
 0x3f2   : > { %3187 = vrot.lane.b32.xlu0 %v13301_v20, %s18029_s28  ;;  %9576 = vrot.lane.b32.xlu1 %v9575_v29, %s18029_s28  ;;  %v13345_v29 = vpop.permute.xlu0 %9541 }
 0x3f3   : > { %18940 = vst [vmem:[#allocation191_spill] sm:$0xff] %v13345_v29 }
 0x3f6   : > { %3193 = vrot.lane.b32.xlu0 %v13325_v34, %s18029_s28  ;;  %3185 = vrot.lane.b32.xlu1 %v13335_v7, %s18029_s28  ;;  %v13364_v29 = vpop.permute.xlu0 %2972 }
 0x3f7   : > { %18945 = vst [vmem:[#allocation145_spill] sm:$0xff] %v13364_v29  ;;  %v13383_v29 = vrot.slane %v13031_v2, 2 }
 0x3f9   : > { %18949 = vst [vmem:[#allocation62_spill] sm:$0xff] %v13383_v29 }
 0x3fa   : > { %9581 = vrot.lane.b32.xlu0 %v9580_v15, %s18029_s28  ;;  %3191 = vrot.lane.b32.xlu1 %v13285_v14, %s18029_s28  ;;  %v13370_v15 = vpop.permute.xlu0 %2976 }
 0x3fb   : > { %18946 = vst [vmem:[#allocation192_spill] sm:$0xff] %v13370_v15  ;;  %v3131_v15 = vrot.slane %v12931_v6, 2 }
 0x3fd   : > { %v13402_v2 = vsel %vm660_vm1, %v3131_v15, %v13377_v39 }
 0x3fe   : > { %3201 = vrot.lane.b32.xlu0 %v13358_v60, %s18029_s28  ;;  %3195 = vrot.lane.b32.xlu1 %v13311_v53, %s18029_s28  ;;  %v13385_v3 = vpop.permute.xlu0 %2980  ;;  %v13394_v53 = vpop.permute.xlu1 %2984  ;;  %18954 = vst [vmem:[#allocation64_spill] sm:$0xff] %v13402_v2 }
 0x3ff   : > { %18950 = vst [vmem:[#allocation69_spill] sm:$0xff] %v13385_v3  ;;  %18952 = vst [vmem:[#allocation189_spill] sm:$0xff] %v13394_v53  ;;  %v13406_v3 = vsel %vm660_vm1, %v3143_v22, %v13383_v29  ;;  %v3137_v22 = vrot.slane %v13040_v18, 2 }
 0x400   : > { %18955 = vst [vmem:[#allocation229_spill] sm:$0xff] %v13406_v3 }
 0x402   : > { %3207 = vrot.lane.b32.xlu0 %v13307_v63, %s18029_s28  ;;  %3199 = vrot.lane.b32.xlu1 %v13320_v35, %s18029_s28  ;;  %v3134_v63 = vrot.slane %v13020_v51, 2  ;;  %v13398_v12 = vpop.permute.xlu0 %2986  ;;  %v3146_v35 = vrot.slane %v13052_v5, 2 }
 0x403   : > { %18953 = vst [vmem:[#allocation244_spill] sm:$0xff] %v13398_v12 }
 0x404   : > { %v13415_v53 = vsel %vm660_vm1, %v3134_v63, %v13391_v17  ;;  %v3155_v63 = vrot.slane %v13104_v45, 2 }
 0x405   : > { %18956 = vst [vmem:[#allocation104_spill] sm:$0xff] %v13415_v53  ;;  %v9585_v15 = vpack.i.bf16 %v13406_v3, %v13415_v53  ;;  %v13436_v3 = vrot.slane %v13058_v52, 2 }
 0x406   : > { %3211 = vrot.lane.b32.xlu0 %v13377_v39, %s18029_s28  ;;  %3203 = vrot.lane.b32.xlu1 %v13349_v8, %s18029_s28  ;;  %v13411_v8 = vrot.slane %v12985_v40, 2  ;;  %v13421_v12 = vpop.permute.xlu0 %9551  ;;  %v13424_v39 = vpop.permute.xlu1 %2988 }
 0x407   : > { %18957 = vst [vmem:[#allocation234_spill] sm:$0xff] %v13421_v12  ;;  %18958 = vst [vmem:[#allocation105_spill] sm:$0xff] %v13424_v39  ;;  %v3149_v12 = vrot.slane %v13096_v19, 2  ;;  %v13455_v52 = vsel %vm660_vm1, %v3146_v35, %v13436_v3 }
 0x408   : > { %18961 = vst [vmem:[#allocation108_spill] sm:$0xff] %v13436_v3  ;;  %v13446_v39 = vsel %vm660_vm1, %v3137_v22, %v13411_v8  ;;  %18965 = vst [vmem:[#allocation150_spill] sm:$0xff] %v13455_v52 }
 0x409   : > { %18963 = vst [vmem:[#allocation149_spill] sm:$0xff] %v13446_v39 }
 0x40a   : > { %3215 = vrot.lane.b32.xlu0 %v13391_v17, %s18029_s28  ;;  %3209 = vrot.lane.b32.xlu1 %v13402_v2, %s18029_s28  ;;  %v13428_v2 = vrot.slane %v13013_v9, 2  ;;  %v13432_v17 = vrot.slane %v13111_v30, 2  ;;  %v3140_v30 = vrot.slane %v13063_v11, 2  ;;  %v13451_v45 = vpop.permute.xlu0 %2994 }
 0x40b   : > { %18964 = vst [vmem:[#allocation152_spill] sm:$0xff] %v13451_v45 }
 0x40c   : > { %18959 = vst [vmem:[#allocation232_spill] sm:$0xff] %v13428_v2  ;;  %18960 = vst [vmem:[#allocation107_spill] sm:$0xff] %v13432_v17  ;;  %v13459_v19 = vsel %vm660_vm1, %v3155_v63, %v13432_v17  ;;  %v13467_v22 = vsel %vm660_vm1, %v3140_v30, %v13428_v2  ;;  %v3152_v63 = vrot.slane %v13124_v44, 2 }
 0x40d   : > { %18966 = vst [vmem:[#allocation37_spill] sm:$0xff] %v13459_v19 }
 0x40e   : > { %3219 = vrot.lane.b32.xlu0 %v13411_v8, %s18029_s28  ;;  %9586 = vrot.lane.b32.xlu1 %v9585_v15, %s18029_s28  ;;  %v13442_v15 = vrot.slane %v13099_v10, 2  ;;  %v13461_v10 = vpop.permute.xlu1 %2992 }
 0x40f   : > { %18967 = vst [vmem:[#allocation151_spill] sm:$0xff] %v13461_v10  ;;  %v13479_v10 = vrot.slane %v13118_v0, 2 }
 0x410   : > { %18962 = vst [vmem:[#allocation233_spill] sm:$0xff] %v13442_v15  ;;  %v13471_v45 = vsel %vm660_vm1, %v3149_v12, %v13442_v15 }
 0x411   : > { %18968 = vst [vmem:[#allocation196_spill] sm:$0xff] %v13471_v45  ;;  %v9590_v35 = vpack.i.bf16 %v13459_v19, %v13471_v45  ;;  %18969 = vst [vmem:[#allocation35_spill] sm:$0xff] %v13479_v10  ;;  %v13490_v12 = vsel %vm660_vm1, %v3152_v63, %v13479_v10  ;;  %v13507_v63 = vrot.slane %v13147_v59, 2  ;;  %v3161_v59 = vrot.slane %v13183_v36, 2 }
 0x412   : > { %3223 = vrot.lane.b32.xlu0 %v13428_v2, %s18029_s28  ;;  %3217 = vrot.lane.b32.xlu1 %v13446_v39, %s18029_s28  ;;  %v13484_v30 = vpop.permute.xlu1 %2996  ;;  %18972 = vst [vmem:[#allocation194_spill] sm:$0xff] %v13490_v12 }
 0x413   : > { %18971 = vst [vmem:[#allocation193_spill] sm:$0xff] %v13484_v30  ;;  %18976 = vst [vmem:[#allocation41_spill] sm:$0xff] %v13507_v63 }
 0x416   : > { %3229 = vrot.lane.b32.xlu0 %v13455_v52, %s18029_s28  ;;  %3221 = vrot.lane.b32.xlu1 %v13467_v22, %s18029_s28  ;;  %v13482_v52 = vpop.permute.xlu0 %3000  ;;  %v13494_v19 = vpop.permute.xlu1 %3002 }
 0x417   : > { %18970 = vst [vmem:[#allocation44_spill] sm:$0xff] %v13482_v52  ;;  %18973 = vst [vmem:[#allocation248_spill] sm:$0xff] %v13494_v19  ;;  %v3167_v19 = vrot.slane %v13193_v31, 2 }
 0x41a   : > { %9591 = vrot.lane.b32.xlu0 %v9590_v35, %s18029_s28  ;;  %3227 = vrot.lane.b32.xlu1 %v13383_v29, %s18029_s28  ;;  %v13498_v35 = vpop.permute.xlu0 %3004 }
 0x41b   : > { %18974 = vst [vmem:[#allocation177_spill] sm:$0xff] %v13498_v35 }
 0x41e   : > { %3237 = vrot.lane.b32.xlu0 %v13490_v12, %s18029_s28  ;;  %3231 = vrot.lane.b32.xlu1 %v13436_v3, %s18029_s28  ;;  %v13513_v12 = vrot.slane %v13200_v61, 2  ;;  %v13515_v35 = vpop.permute.xlu0 %3008 }
 0x41f   : > { %18978 = vst [vmem:[#allocation111_spill] sm:$0xff] %v13515_v35 }
 0x420   : > { %v13502_v52 = vpop.permute.xlu1 %9556  ;;  %18977 = vst [vmem:[#allocation110_spill] sm:$0xff] %v13513_v12  ;;  %v13534_v31 = vsel %vm660_vm1, %v3167_v19, %v13513_v12 }
 0x421   : > { %18975 = vst [vmem:[#allocation179_spill] sm:$0xff] %v13502_v52  ;;  %v13521_v52 = vrot.slane %v13176_v43, 2  ;;  %18982 = vst [vmem:[#allocation249_spill] sm:$0xff] %v13534_v31  ;;  %v13539_v43 = vrot.slane %v13189_v58, 2  ;;  %v3164_v58 = vrot.slane %v13214_v23, 2 }
 0x422   : > { %3243 = vrot.lane.b32.xlu0 %v13432_v17, %s18029_s28  ;;  %3235 = vrot.lane.b32.xlu1 %v13442_v15, %s18029_s28  ;;  %v3158_v17 = vrot.slane %v13141_v55, 2  ;;  %v13541_v35 = vpop.permute.xlu0 %3012  ;;  %v19025_v55 = vld [vmem:[#allocation26_spill] sm:$0xff]  ;;  %v19028_v15 = vld [vmem:[#allocation17_spill] sm:$0xff] }
 0x423   : > { %18979 = vst [vmem:[#allocation114_spill] sm:$0xff] %v13521_v52  ;;  %18983 = vst [vmem:[#allocation154_spill] sm:$0xff] %v13539_v43 }
 0x424   : > { %v13524_v44 = vpop.permute.xlu1 %3010  ;;  %v13530_v61 = vsel %vm660_vm1, %v3158_v17, %v13507_v63  ;;  %18984 = vst [vmem:[#allocation156_spill] sm:$0xff] %v13541_v35  ;;  %v13549_v17 = vrot.slane %v13232_v4, 2  ;;  %v13569_v4 = vsel %vm660_vm1, %v3164_v58, %v13539_v43 }
 0x425   : > { %18980 = vst [vmem:[#allocation195_spill] sm:$0xff] %v13524_v44  ;;  %18981 = vst [vmem:[#allocation153_spill] sm:$0xff] %v13530_v61  ;;  %v13545_v44 = vsel %vm660_vm1, %v3161_v59, %v13521_v52 }
 0x426   : > { %3247 = vrot.lane.b32.xlu0 %v13507_v63, %s18029_s28  ;;  %3239 = vrot.lane.b32.xlu1 %v13479_v10, %s18029_s28  ;;  %18985 = vst [vmem:[#allocation42_spill] sm:$0xff] %v13545_v44  ;;  %v3170_v10 = vrot.slane %v13228_v37, 2  ;;  %18986 = vst [vmem:[#allocation43_spill] sm:$0xff] %v13549_v17  ;;  %v9595_v19 = vpack.i.bf16 %v13534_v31, %v13545_v44  ;;  %v13559_v35 = vpop.permute.xlu0 %3016  ;;  %v9600_v31 = vpack.i.bf16 %v12835_v25, %v12768_v32  ;;  %v4488_v37 = vld [vmem:[%s17636_s3 + $0x8] sm:$0xff] }
 0x427   : > { %18988 = vst [vmem:[#allocation198_spill] sm:$0xff] %v13559_v35  ;;  %18990 = vst [vmem:[#allocation199_spill] sm:$0xff] %v13569_v4  ;;  %v19012_v35 = vld [vmem:[#allocation52_spill] sm:$0xff] }
 0x428   : > { %v13556_v63 = vpop.permute.xlu1 %3014  ;;  %v13563_v59 = vsel %vm660_vm1, %v3170_v10, %v13549_v17 }
 0x429   : > { %18987 = vst [vmem:[#allocation163_spill] sm:$0xff] %v13556_v63  ;;  %18989 = vst [vmem:[#allocation202_spill] sm:$0xff] %v13563_v59 }
 0x42a   : > { %3251 = vrot.lane.b32.xlu0 %v13521_v52, %s18029_s28  ;;  %3245 = vrot.lane.b32.xlu1 %v13530_v61, %s18029_s28 }
 0x42c   : > { %v13577_v63 = vpop.permute.xlu1 %3020 }
 0x42d   : > { %18992 = vst [vmem:[#allocation251_spill] sm:$0xff] %v13577_v63 }
 0x42e   : > { %3255 = vrot.lane.b32.xlu0 %v13539_v43, %s18029_s28  ;;  %9596 = vrot.lane.b32.xlu1 %v9595_v19, %s18029_s28  ;;  %v13575_v19 = vpop.permute.xlu0 %3022 }
 0x42f   : > { %18991 = vst [vmem:[#allocation250_spill] sm:$0xff] %v13575_v19  ;;  %v9605_v19 = vpack.i.bf16 %v12917_v16, %v12847_v13 }
 0x430   : > { %v13586_v58 = vpop.permute.xlu1 %3024 }
 0x431   : > { %18994 = vst [vmem:[#allocation84_spill] sm:$0xff] %v13586_v58 }
 0x432   : > { %3261 = vrot.lane.b32.xlu0 %v13563_v59, %s18029_s28  ;;  %3253 = vrot.lane.b32.xlu1 %v13569_v4, %s18029_s28 }
 0x434   : > { %v13598_v63 = vpop.permute.xlu1 %3028 }
 0x435   : > { %18997 = vst [vmem:[#allocation39_spill] sm:$0xff] %v13598_v63  ;;  %v19001_v63 = vmov 0.0  }
 0x436   : > { %9601 = vrot.lane.b32.xlu0 %v9600_v31, %s9989_s29  ;;  %3259 = vrot.lane.b32.xlu1 %v13513_v12, %s18029_s28  ;;  %v4495_v12 = vld [vmem:[%s17636_s3 + $0x40] sm:$0xff] }
 0x439   : > { %v13582_v10 = vpop.permute.xlu0 %9561 }
 0x43a   : > { %18993 = vst [vmem:[#allocation70_spill] sm:$0xff] %v13582_v10  ;;  %3319 = vrot.lane.b32.xlu0 %v12789_v47, %s9989_s29  ;;  %3263 = vrot.lane.b32.xlu1 %v13549_v17, %s18029_s28  ;;  %v18998_v10 = vld [vmem:[#allocation133_spill] sm:$0xff]  ;;  %v13611_v17 = vpop.permute.xlu1 %3032  ;;  %s16763_s28 = smul.u32 36, %s328_s25 }
 0x43b   : > { %19000 = vst [vmem:[#allocation115_spill] sm:$0xff] %v13611_v17 }
 0x43c   : > { %s16812_s18 = scalar_lea.vmem [#allocation3], %s16763_s28 }
 0x43d   : > { %v13590_v43 = vpop.permute.xlu0 %3030 }
 0x43e   : > { %18995 = vst [vmem:[#allocation66_spill] sm:$0xff] %v13590_v43  ;;  %3325 = vrot.lane.b32.xlu0 %v12813_v38, %s9989_s29  ;;  %3317 = vrot.lane.b32.xlu1 %v12772_v54, %s9989_s29  ;;  %v4502_v43 = vld [vmem:[%s17636_s3 + $0x78] sm:$0xff]  ;;  %v13634_v17 = vpop.permute.xlu1 %3038 }
 0x43f   : > { %4693 = vmatpush1.msra.mxu1 %v4502_v43  ;;  %v4500_v43 = vld [vmem:[%s17636_s3 + $0x68] sm:$0xff]  ;;  %19003 = vst [vmem:[#allocation113_spill] sm:$0xff] %v13634_v17  ;;  %v4497_v17 = vld [vmem:[%s17636_s3 + $0x50] sm:$0xff] }
 0x440   : > { %4694 = vmatprep.subr.mxu1 %v19001_v63 }
 0x441   : > { %v13596_v31 = vpop.permute.xlu0 %3036 }
 0x442   : > { %18996 = vst [vmem:[#allocation46_spill] sm:$0xff] %v13596_v31  ;;  %3329 = vrot.lane.b32.xlu0 %v12828_v41, %s9989_s29  ;;  %3321 = vrot.lane.b32.xlu1 %v18998_v10, %s9989_s29  ;;  %v4501_v31 = vld [vmem:[%s17636_s3 + $0x70] sm:$0xff] }
 0x443   : > { %4695 = vmatpush1.msra.mxu1 %v4501_v31  ;;  %v4498_v31 = vld [vmem:[%s17636_s3 + $0x58] sm:$0xff] }
 0x444   : > { %4696 = vmatprep.subr.mxu1 %v19001_v63 }
 0x445   : > { %v13604_v58 = vpop.permute.xlu0 %3040  ;;  %4697 = vmatpush1.msra.mxu1 %v4500_v43  ;;  %v9610_v43 = vpack.i.bf16 %v13040_v18, %v12931_v6 }
 0x446   : > { %18999 = vst [vmem:[#allocation79_spill] sm:$0xff] %v13604_v58  ;;  %3333 = vrot.lane.b32.xlu0 %v12856_v62, %s9989_s29  ;;  %3327 = vrot.lane.b32.xlu1 %v12823_v56, %s9989_s29 }
 0x447   : > { %4698 = vmatprep.subr.mxu1 %v19001_v63 }
 0x449   : > { %v13619_v58 = vpop.permute.xlu0 %3044 }
 0x44a   : > { %19002 = vst [vmem:[#allocation157_spill] sm:$0xff] %v13619_v58  ;;  %3337 = vrot.lane.b32.xlu0 %v12883_v27, %s9989_s29  ;;  %9606 = vrot.lane.b32.xlu1 %v9605_v19, %s9989_s29  ;;  %v4499_v58 = vld [vmem:[%s17636_s3 + $0x60] sm:$0xff] }
 0x44b   : > { %4699 = vmatpush1.msra.mxu1 %v4499_v58 }
 0x44c   : > { %4700 = vmatprep.subr.mxu1 %v19001_v63 }
 0x44d   : > { %v13642_v19 = vpop.permute.xlu0 %3048  ;;  %4701 = vmatpush1.msra.mxu1 %v4498_v31 }
 0x44e   : > { %3343 = vrot.lane.b32.xlu0 %v12900_v28, %s9989_s29  ;;  %19004 = vst [vmem:[#allocation49_spill] sm:$0xff] %v13642_v19  ;;  %3335 = vrot.lane.b32.xlu1 %v12890_v1, %s9989_s29  ;;  %v4496_v19 = vld [vmem:[%s17636_s3 + $0x48] sm:$0xff] }
 0x44f   : > { %4702 = vmatprep.subr.mxu1 %v19001_v63 }
 0x450   : > { %v13652_v58 = vpop.permute.xlu1 %9566  ;;  %4703 = vmatpush1.msra.mxu1 %v4497_v17 }
 0x451   : > { %19005 = vst [vmem:[#allocation116_spill] sm:$0xff] %v13652_v58  ;;  %4704 = vmatprep.subr.mxu1 %v19001_v63  ;;  %v9620_v58 = vpack.i.bf16 %v13335_v7, %v13298_v24  ;;  %v4490_v24 = vld [vmem:[%s17636_s3 + $0x18] sm:$0xff] }
 0x452   : > { %9611 = vrot.lane.b32.xlu0 %v9610_v43, %s9989_s29  ;;  %3341 = vrot.lane.b32.xlu1 %v12896_v21, %s9989_s29 }
 0x453   : > { %4705 = vmatpush1.msra.mxu1 %v4496_v19  ;;  %v4494_v19 = vld [vmem:[%s17636_s3 + $0x38] sm:$0xff] }
 0x454   : > { %v13661_v31 = vpop.permute.xlu0 %3054  ;;  %4706 = vmatprep.subr.mxu1 %v19001_v63  ;;  %v13667_v43 = vpop.permute.xlu1 %3046 }
 0x455   : > { %19006 = vst [vmem:[#allocation204_spill] sm:$0xff] %v13661_v31  ;;  %19007 = vst [vmem:[#allocation158_spill] sm:$0xff] %v13667_v43  ;;  %4707 = vmatpush1.msra.mxu1 %v4495_v12  ;;  %v4493_v31 = vld [vmem:[%s17636_s3 + $0x30] sm:$0xff]  ;;  %v4492_v12 = vld [vmem:[%s17636_s3 + $0x28] sm:$0xff] }
 0x456   : > { %3351 = vrot.lane.b32.xlu0 %v13020_v51, %s9989_s29  ;;  %4708 = vmatprep.subr.mxu1 %v19001_v63 }
 0x457   : > { %3345 = vrot.lane.b32.xlu1 %v12907_v57, %s9989_s29  ;;  %4709 = vmatpush1.msra.mxu1 %v4494_v19 }
 0x458   : > { %v13674_v17 = vpop.permute.xlu0 %9571  ;;  %v13682_v43 = vpop.permute.xlu1 %3052  ;;  %4710 = vmatprep.subr.mxu1 %v19001_v63 }
 0x459   : > { %19008 = vst [vmem:[#allocation253_spill] sm:$0xff] %v13682_v43  ;;  %4711 = vmatpush1.msra.mxu1 %v4493_v31  ;;  %v4491_v43 = vld [vmem:[%s17636_s3 + $0x20] sm:$0xff] }
 0x45a   : > { %3357 = vrot.lane.b32.xlu0 %v12985_v40, %s9989_s29  ;;  %4712 = vmatprep.subr.mxu1 %v19001_v63 }
 0x45b   : > { %3349 = vrot.lane.b32.xlu1 %v12939_v50, %s9989_s29  ;;  %4713 = vmatpush1.msra.mxu1 %v4492_v12  ;;  %v4489_v12 = vld [vmem:[%s17636_s3 + $0x10] sm:$0xff] }
 0x45c   : > { %v13694_v19 = vpop.permute.xlu0 %3179  ;;  %v13700_v31 = vpop.permute.xlu1 %3056  ;;  %4714 = vmatprep.subr.mxu1 %v19001_v63 }
 0x45d   : > { %19009 = vst [vmem:[#allocation164_spill] sm:$0xff] %v13700_v31  ;;  %4715 = vmatpush1.msra.mxu1 %v4491_v43  ;;  %v19011_v31 = vld [vmem:[#allocation138_spill] sm:$0xff] }
 0x45e   : > { %9621 = vrot.lane.b32.xlu0 %v9620_v58, %s9991_s10  ;;  %4716 = vmatprep.subr.mxu1 %v19001_v63  ;;  %v19010_v58 = vld [vmem:[#allocation131_spill] sm:$0xff] }
 0x45f   : > { %3353 = vrot.lane.b32.xlu1 %v12973_v26, %s9989_s29  ;;  %4717 = vmatpush1.msra.mxu1 %v4490_v24  ;;  %v9615_v4 = vpack.i.bf16 %v19011_v31, %v19010_v58  ;;  %v4487_v24 = vld [vmem:[%s17636_s3] sm:$0xff] }
 0x460   : > { %v13709_v59 = vpop.permute.xlu0 %3183  ;;  %v13717_v43 = vpop.permute.xlu1 %3177  ;;  %4718 = vmatprep.subr.mxu1 %v19001_v63 }
 0x461   : > { %4719 = vmatpush1.msra.mxu1 %v4489_v12  ;;  %v19014_v12 = vld [vmem:[#allocation71_spill] sm:$0xff] }
 0x462   : > { %3469 = vrot.lane.b32.xlu0 %v19012_v35, %s9990_s30  ;;  %4720 = vmatprep.subr.mxu1 %v19001_v63  ;;  %v19013_v35 = vld [vmem:[#allocation134_spill] sm:$0xff] }
 0x463   : > { %9616 = vrot.lane.b32.xlu1 %v9615_v4, %s9990_s30  ;;  %4721 = vmatpush1.msra.mxu1 %v4488_v37  ;;  %v4504_v4 = vld [vmem:[%s17636_s3 + $0x88] sm:$0xff]  ;;  %v4503_v37 = vld [vmem:[%s17636_s3 + $0x80] sm:$0xff] }
 0x464   : > { %v13726_v44 = vpop.permute.xlu0 %3187  ;;  %v13732_v58 = vpop.permute.xlu1 %9576  ;;  %4722 = vmatprep.subr.mxu1 %v19001_v63 }
 0x465   : > { %4723 = vmatpush1.msra.mxu1 %v4487_v24  ;;  %v9625_v24 = vpack.i.bf16 %v12823_v56, %v12789_v47  ;;  %v9139_v56 = vcombine.low %v12800_v33, %v13335_v7 }
 0x466   : > { %3471 = vrot.lane.b32.xlu0 %v19013_v35, %s9990_s30  ;;  %4752 = vmatprep.subr.mxu1 %v19001_v63 }
 0x467   : > { %3467 = vrot.lane.b32.xlu1 %v19014_v12, %s9990_s30  ;;  %4753 = vmatpush2.msra.mxu1 %v4504_v4 }
 0x468   : > { %v13742_v23 = vpop.permute.xlu0 %3193  ;;  %v13748_v52 = vpop.permute.xlu1 %3185  ;;  %4754 = vmatprep.subr.mxu1 %v19001_v63 }
 0x469   : > { %19015 = vst [vmem:[#allocation45_spill] sm:$0xff] %v13742_v23  ;;  %4755 = vmatpush2.msra.mxu1 %v4503_v37  ;;  %v19020_v37 = vld [vmem:[#allocation72_spill] sm:$0xff]  ;;  %v19085_v23 = vld [vmem:[#allocation191_spill] sm:$0xff] }
 0x46a   : > { %3619 = vrot.lane.b32.xlu0 %v12807_v49, %s9991_s10  ;;  %9269 = vmatprep.subr.mxu1 %v19001_v63 }
 0x46b   : > { %9626 = vrot.lane.b32.xlu1 %v9625_v24, %s9992_s15 }
 0x46c   : > { %v13756_v12 = vpop.permute.xlu0 %9581  ;;  %v13759_v36 = vpop.permute.xlu1 %3191 }
 0x46d   : > { %19016 = vst [vmem:[#allocation155_spill] sm:$0xff] %v13756_v12  ;;  %19017 = vst [vmem:[#allocation205_spill] sm:$0xff] %v13759_v36  ;;  %v19086_v36 = vld [vmem:[#allocation59_spill] sm:$0xff] }
 0x46e   : > { %3621 = vrot.lane.b32.xlu0 %v12800_v33, %s9991_s10 }
 0x46f   : > { %3617 = vrot.lane.b32.xlu1 %v13279_v46, %s9991_s10 }
 0x470   : > { %v13765_v49 = vpop.permute.xlu0 %3201  ;;  %v13767_v4 = vpop.permute.xlu1 %3195 }
 0x471   : > { %19018 = vst [vmem:[#allocation162_spill] sm:$0xff] %v13765_v49  ;;  %19019 = vst [vmem:[#allocation254_spill] sm:$0xff] %v13767_v4  ;;  %v19047_v49 = vld [vmem:[#allocation235_spill] sm:$0xff] }
 0x472   : > { %3763 = vrot.lane.b32.xlu0 %v12835_v25, %s9992_s15 }
 0x473   : > { %9631 = vrot.lane.b32.xlu1 %v19020_v37, %s9994_s17 }
 0x474   : > { %v13773_v24 = vpop.permute.xlu0 %3207  ;;  %v13775_v63 = vpop.permute.xlu1 %3199 }
 0x475   : > { %19021 = vst [vmem:[#allocation85_spill] sm:$0xff] %v13773_v24  ;;  %19022 = vst [vmem:[#allocation92_spill] sm:$0xff] %v13775_v63  ;;  %v19063_v63 = vld [vmem:[#allocation245_spill] sm:$0xff] }
 0x476   : > { %3899 = vrot.lane.b32.xlu0 %v19013_v35, %s9994_s17 }
 0x477   : > { %3761 = vrot.lane.b32.xlu1 %v18998_v10, %s9992_s15 }
 0x478   : > { %v13781_v46 = vpop.permute.xlu0 %3211  ;;  %v13783_v61 = vpop.permute.xlu1 %3203 }
 0x479   : > { %19023 = vst [vmem:[#allocation80_spill] sm:$0xff] %v13781_v46  ;;  %19024 = vst [vmem:[#allocation201_spill] sm:$0xff] %v13783_v61 }
 0x47a   : > { %3903 = vrot.lane.b32.xlu0 %v19025_v55, %s9994_s17 }
 0x47b   : > { %3765 = vrot.lane.b32.xlu1 %v12813_v38, %s9992_s15 }
 0x47c   : > { %v13789_v37 = vpop.permute.xlu0 %3215  ;;  %v13791_v24 = vpop.permute.xlu1 %3209 }
 0x47d   : > { %19026 = vst [vmem:[#allocation269_spill] sm:$0xff] %v13789_v37  ;;  %19027 = vst [vmem:[#allocation252_spill] sm:$0xff] %v13791_v24 }
 0x47e   : > { %3477 = vrot.lane.b32.xlu0 %v19028_v15, %s9990_s30  ;;  %v19033_v15 = vld [vmem:[#allocation178_spill] sm:$0xff] }
 0x47f   : > { %3901 = vrot.lane.b32.xlu1 %v19011_v31, %s9994_s17 }
 0x480   : > { %v13797_v35 = vpop.permute.xlu0 %3219  ;;  %v13799_v46 = vpop.permute.xlu1 %9586 }
 0x481   : > { %19029 = vst [vmem:[#allocation89_spill] sm:$0xff] %v13797_v35  ;;  %19030 = vst [vmem:[#allocation118_spill] sm:$0xff] %v13799_v46 }
 0x482   : > { %3625 = vrot.lane.b32.xlu0 %v13301_v20, %s9991_s10 }
 0x483   : > { %3475 = vrot.lane.b32.xlu1 %v19025_v55, %s9990_s30 }
 0x484   : > { %v13805_v0 = vpop.permute.xlu0 %3223  ;;  %v13807_v37 = vpop.permute.xlu1 %3217 }
 0x485   : > { %19031 = vst [vmem:[#allocation38_spill] sm:$0xff] %v13805_v0  ;;  %19032 = vst [vmem:[#allocation160_spill] sm:$0xff] %v13807_v37 }
 0x486   : > { %3629 = vrot.lane.b32.xlu0 %v13285_v14, %s9991_s10 }
 0x487   : > { %3479 = vrot.lane.b32.xlu1 %v19033_v15, %s9990_s30 }
 0x488   : > { %v13813_v31 = vpop.permute.xlu0 %3229  ;;  %v13815_v35 = vpop.permute.xlu1 %3221 }
 0x489   : > { %19034 = vst [vmem:[#allocation119_spill] sm:$0xff] %v13813_v31  ;;  %19035 = vst [vmem:[#allocation11_spill] sm:$0xff] %v13815_v35  ;;  %v19040_v35 = vld [vmem:[#allocation74_spill] sm:$0xff] }
 0x48a   : > { %3771 = vrot.lane.b32.xlu0 %v12847_v13, %s9992_s15  ;;  %v9573_v13 = vunpack.i.l.bf16 %v13674_v17 }
 0x48b   : > { %3627 = vrot.lane.b32.xlu1 %v13294_v42, %s9991_s10 }
 0x48c   : > { %v13821_v55 = vpop.permute.xlu0 %9591  ;;  %v13823_v0 = vpop.permute.xlu1 %3227 }
 0x48d   : > { %19036 = vst [vmem:[#allocation165_spill] sm:$0xff] %v13821_v55  ;;  %19037 = vst [vmem:[#allocation117_spill] sm:$0xff] %v13823_v0  ;;  %v9640_v55 = vpack.i.bf16 %v13358_v60, %v13325_v34 }
 0x48e   : > { %3907 = vrot.lane.b32.xlu0 %v19033_v15, %s9994_s17  ;;  %v19043_v15 = vld [vmem:[#allocation75_spill] sm:$0xff] }
 0x48f   : > { %3769 = vrot.lane.b32.xlu1 %v12828_v41, %s9992_s15  ;;  %v19088_v41 = vld [vmem:[#allocation67_spill] sm:$0xff] }
 0x490   : > { %v13829_v37 = vpop.permute.xlu0 %3237  ;;  %v13831_v31 = vpop.permute.xlu1 %3231 }
 0x491   : > { %19038 = vst [vmem:[#allocation21_spill] sm:$0xff] %v13829_v37  ;;  %19039 = vst [vmem:[#allocation207_spill] sm:$0xff] %v13831_v31  ;;  %v19045_v31 = vld [vmem:[#allocation137_spill] sm:$0xff] }
 0x492   : > { %3911 = vrot.lane.b32.xlu0 %v19040_v35, %s9994_s17  ;;  %v9635_v24 = vpack.i.bf16 %v19045_v31, %v19043_v15 }
 0x493   : > { %3773 = vrot.lane.b32.xlu1 %v12856_v62, %s9992_s15 }
 0x494   : > { %v13837_v46 = vpop.permute.xlu0 %3243  ;;  %v13841_v0 = vpop.permute.xlu1 %3235 }
 0x495   : > { %19041 = vst [vmem:[#allocation120_spill] sm:$0xff] %v13837_v46  ;;  %19042 = vst [vmem:[#allocation208_spill] sm:$0xff] %v13841_v0 }
 0x496   : > { %9641 = vrot.lane.b32.xlu0 %v9640_v55, %s9991_s10  ;;  %v19050_v55 = vld [vmem:[#allocation33_spill] sm:$0xff] }
 0x497   : > { %3909 = vrot.lane.b32.xlu1 %v19043_v15, %s9994_s17 }
 0x498   : > { %v13846_v37 = vpop.permute.xlu0 %3247  ;;  %v13850_v3 = vpop.permute.xlu1 %3239 }
 0x499   : > { %19044 = vst [vmem:[#allocation256_spill] sm:$0xff] %v13846_v37  ;;  %19046 = vst [vmem:[#allocation161_spill] sm:$0xff] %v13850_v3  ;;  %v19058_v3 = vld [vmem:[#allocation56_spill] sm:$0xff] }
 0x49a   : > { %3485 = vrot.lane.b32.xlu0 %v19047_v49, %s9990_s30  ;;  %v9645_v49 = vpack.i.bf16 %v12900_v28, %v12890_v1  ;;  %v19070_v1 = vld [vmem:[#allocation228_spill] sm:$0xff] }
 0x49b   : > { %9636 = vrot.lane.b32.xlu1 %v9635_v24, %s9990_s30 }
 0x49c   : > { %v13855_v46 = vpop.permute.xlu0 %3251  ;;  %v13857_v0 = vpop.permute.xlu1 %3245 }
 0x49d   : > { %19048 = vst [vmem:[#allocation257_spill] sm:$0xff] %v13855_v46  ;;  %19049 = vst [vmem:[#allocation271_spill] sm:$0xff] %v13857_v0  ;;  %v19055_v0 = vld [vmem:[#allocation102_spill] sm:$0xff] }
 0x49e   : > { %3487 = vrot.lane.b32.xlu0 %v19050_v55, %s9990_s30 }
 0x49f   : > { %3483 = vrot.lane.b32.xlu1 %v19040_v35, %s9990_s30  ;;  %v19056_v35 = vld [vmem:[#allocation190_spill] sm:$0xff] }
 0x4a0   : > { %v13863_v37 = vpop.permute.xlu0 %3255  ;;  %v13865_v15 = vpop.permute.xlu1 %9596 }
 0x4a1   : > { %19051 = vst [vmem:[#allocation166_spill] sm:$0xff] %v13863_v37  ;;  %19052 = vst [vmem:[#allocation272_spill] sm:$0xff] %v13865_v15 }
 0x4a2   : > { %3635 = vrot.lane.b32.xlu0 %v13339_v48, %s9991_s10 }
 0x4a3   : > { %9646 = vrot.lane.b32.xlu1 %v9645_v49, %s9992_s15 }
 0x4a4   : > { %v13872_v24 = vpop.permute.xlu0 %3261  ;;  %v13874_v46 = vpop.permute.xlu1 %3253 }
 0x4a5   : > { %19053 = vst [vmem:[#allocation159_spill] sm:$0xff] %v13872_v24  ;;  %19054 = vst [vmem:[#allocation209_spill] sm:$0xff] %v13874_v46 }
 0x4a6   : > { %3637 = vrot.lane.b32.xlu0 %v19055_v0, %s9991_s10 }
 0x4a7   : > { %3633 = vrot.lane.b32.xlu1 %v19056_v35, %s9991_s10 }
 0x4a8   : > { %v13880_v37 = vpop.permute.xlu0 %9601  ;;  %v13882_v15 = vpop.permute.xlu1 %3259 }
 0x4a9   : > { %19057 = vst [vmem:[#allocation47_spill] sm:$0xff] %v13882_v15  ;;  %v19060_v15 = vld [vmem:[#allocation76_spill] sm:$0xff] }
 0x4aa   : > { %3779 = vrot.lane.b32.xlu0 %v12917_v16, %s9992_s15 }
 0x4ab   : > { %9651 = vrot.lane.b32.xlu1 %v19058_v3, %s9994_s17 }
 0x4ac   : > { %v13888_v49 = vpop.permute.xlu0 %3319  ;;  %v13890_v24 = vpop.permute.xlu1 %3263 }
 0x4ad   : > { %19059 = vst [vmem:[#allocation258_spill] sm:$0xff] %v13890_v24  ;;  %v19061_v24 = vld [vmem:[#allocation236_spill] sm:$0xff] }
 0x4ae   : > { %3915 = vrot.lane.b32.xlu0 %v19050_v55, %s9994_s17 }
 0x4af   : > { %3777 = vrot.lane.b32.xlu1 %v12883_v27, %s9992_s15 }
 0x4b0   : > { %v13896_v46 = vpop.permute.xlu0 %3325  ;;  %v13898_v28 = vpop.permute.xlu1 %3317 }
 0x4b2   : > { %3919 = vrot.lane.b32.xlu0 %v19060_v15, %s9994_s17 }
 0x4b3   : > { %3781 = vrot.lane.b32.xlu1 %v12896_v21, %s9992_s15  ;;  %v19066_v21 = vld [vmem:[#allocation36_spill] sm:$0xff] }
 0x4b4   : > { %v13904_v3 = vpop.permute.xlu0 %3329  ;;  %v13906_v16 = vpop.permute.xlu1 %3321 }
 0x4b6   : > { %3493 = vrot.lane.b32.xlu0 %v19061_v24, %s9990_s30  ;;  %v19067_v24 = vld [vmem:[#allocation238_spill] sm:$0xff] }
 0x4b7   : > { %3917 = vrot.lane.b32.xlu1 %v19045_v31, %s9994_s17 }
 0x4b8   : > { %v13912_v55 = vpop.permute.xlu0 %3333  ;;  %v13914_v45 = vpop.permute.xlu1 %3327 }
 0x4b9   : > { %19062 = vst [vmem:[#allocation86_spill] sm:$0xff] %v13912_v55  ;;  %v9543_v55 = vunpack.i.l.bf16 %v19085_v23 }
 0x4ba   : > { %3641 = vrot.lane.b32.xlu0 %v19063_v63, %s9991_s10  ;;  %v19075_v63 = vld [vmem:[#allocation77_spill] sm:$0xff] }
 0x4bb   : > { %3491 = vrot.lane.b32.xlu1 %v19060_v15, %s9990_s30 }
 0x4bc   : > { %v13920_v61 = vpop.permute.xlu0 %3337  ;;  %v13922_v27 = vpop.permute.xlu1 %9606 }
 0x4bd   : > { %19064 = vst [vmem:[#allocation98_spill] sm:$0xff] %v13920_v61  ;;  %19065 = vst [vmem:[#allocation81_spill] sm:$0xff] %v13922_v27 }
 0x4be   : > { %3645 = vrot.lane.b32.xlu0 %v19066_v21, %s9991_s10 }
 0x4bf   : > { %3495 = vrot.lane.b32.xlu1 %v19067_v24, %s9990_s30 }
 0x4c0   : > { %v13928_v31 = vpop.permute.xlu0 %3343  ;;  %v13930_v30 = vpop.permute.xlu1 %3335 }
 0x4c1   : > { %19068 = vst [vmem:[#allocation206_spill] sm:$0xff] %v13928_v31  ;;  %19069 = vst [vmem:[#allocation273_spill] sm:$0xff] %v13930_v30 }
 0x4c2   : > { %3787 = vrot.lane.b32.xlu0 %v12931_v6, %s9992_s15 }
 0x4c3   : > { %3643 = vrot.lane.b32.xlu1 %v19070_v1, %s9991_s10 }
 0x4c4   : > { %v13936_v15 = vpop.permute.xlu0 %9611  ;;  %v13938_v12 = vpop.permute.xlu1 %3341 }
 0x4c5   : > { %19071 = vst [vmem:[#allocation255_spill] sm:$0xff] %v13936_v15  ;;  %19072 = vst [vmem:[#allocation93_spill] sm:$0xff] %v13938_v12  ;;  %v19077_v15 = vld [vmem:[#allocation64_spill] sm:$0xff] }
 0x4c6   : > { %3923 = vrot.lane.b32.xlu0 %v19067_v24, %s9994_s17  ;;  %v9660_v12 = vpack.i.bf16 %v13446_v39, %v19077_v15  ;;  %v19079_v24 = vld [vmem:[#allocation55_spill] sm:$0xff] }
 0x4c7   : > { %3785 = vrot.lane.b32.xlu1 %v12907_v57, %s9992_s15  ;;  %v19080_v57 = vld [vmem:[#allocation27_spill] sm:$0xff] }
 0x4c8   : > { %v13944_v21 = vpop.permute.xlu0 %3351 }
 0x4c9   : > { %19073 = vst [vmem:[#allocation270_spill] sm:$0xff] %v13944_v21  ;;  %v13946_v31 = vpop.permute.xlu1 %3345 }
 0x4ca   : > { %19074 = vst [vmem:[#allocation124_spill] sm:$0xff] %v13946_v31  ;;  %3927 = vrot.lane.b32.xlu0 %v19075_v63, %s9994_s17  ;;  %v9655_v31 = vpack.i.bf16 %v19080_v57, %v19079_v24 }
 0x4cb   : > { %3789 = vrot.lane.b32.xlu1 %v12939_v50, %s9992_s15  ;;  %v19082_v50 = vld [vmem:[#allocation140_spill] sm:$0xff] }
 0x4cc   : > { %v13952_v6 = vpop.permute.xlu0 %3357 }
 0x4cd   : > { %19076 = vst [vmem:[#allocation121_spill] sm:$0xff] %v13952_v6  ;;  %v13956_v1 = vpop.permute.xlu1 %3349 }
 0x4ce   : > { %19078 = vst [vmem:[#allocation6_spill] sm:$0xff] %v13956_v1  ;;  %9661 = vrot.lane.b32.xlu0 %v9660_v12, %s9991_s10  ;;  %v19083_v12 = vld [vmem:[#allocation203_spill] sm:$0xff] }
 0x4cf   : > { %3925 = vrot.lane.b32.xlu1 %v19079_v24, %s9994_s17  ;;  %v19084_v24 = vld [vmem:[#allocation88_spill] sm:$0xff] }
 0x4d0   : > { %v13961_v21 = vpop.permute.xlu0 %9621 }
 0x4d1   : > { %v13965_v30 = vpop.permute.xlu1 %3353 }
 0x4d2   : > { %19081 = vst [vmem:[#allocation122_spill] sm:$0xff] %v13965_v30  ;;  %3501 = vrot.lane.b32.xlu0 %v19082_v50, %s9990_s30  ;;  %v9665_v30 = vpack.i.bf16 %v19084_v24, %v13020_v51 }
 0x4d3   : > { %9656 = vrot.lane.b32.xlu1 %v9655_v31, %s9990_s30 }
 0x4d4   : > { %v13970_v6 = vpop.permute.xlu0 %3469 }
 0x4d5   : > { %v13972_v1 = vpop.permute.xlu1 %9616 }
 0x4d6   : > { %3503 = vrot.lane.b32.xlu0 %v19083_v12, %s9990_s30  ;;  %v9618_v4 = vunpack.i.l.bf16 %v13972_v1 }
 0x4d7   : > { %3499 = vrot.lane.b32.xlu1 %v19075_v63, %s9990_s30  ;;  %v9603_v63 = vunpack.i.l.bf16 %v13880_v37 }
 0x4d8   : > { %v3472_v39 = vpop.permute.xlu0 %3471 }
 0x4d9   : > { %v3468_v15 = vpop.permute.xlu1 %3467 }
 0x4da   : > { %3651 = vrot.lane.b32.xlu0 %v13415_v53, %s9991_s10  ;;  %v19087_v53 = vld [vmem:[#allocation247_spill] sm:$0xff] }
 0x4db   : > { %9666 = vrot.lane.b32.xlu1 %v9665_v30, %s9992_s15  ;;  %v4035_v30 = vsel %vm1629_vm2, %v19088_v41, %v9543_v55 }
 0x4dc   : > { %v3620_v31 = vpop.permute.xlu0 %3619  ;;  %v13996_v62 = vsel %vm1678_vm3, %v4035_v30, %v9573_v13  ;;  %v9623_v13 = vunpack.i.l.bf16 %v13961_v21 }
 0x4dd   : > { %v13985_v61 = vpop.permute.xlu1 %9626  ;;  %19089 = vst [vmem:[#allocation170_spill] sm:$0xff] %v13996_v62  ;;  %v4127_v2 = vsel %vm1727_vm4, %v13996_v62, %v9603_v63 }
 0x4de   : > { %3653 = vrot.lane.b32.xlu0 %v19086_v36, %s9991_s10  ;;  %v19090_v36 = vld [vmem:[#allocation210_spill] sm:$0xff]  ;;  %v4175_v29 = vsel %vm1776_vm5, %v4127_v2, %v9618_v4  ;;  %v9574_v2 = vunpack.i.h.bf16 %v13674_v17 }
 0x4df   : > { %3649 = vrot.lane.b32.xlu1 %v19087_v53, %s9991_s10  ;;  %v9670_v60 = vpack.i.bf16 %v19090_v36, %v19082_v50  ;;  %v9628_v53 = vunpack.i.l.bf16 %v13985_v61  ;;  %v4223_v63 = vsel %vm1825_vm6, %v4175_v29, %v9623_v13  ;;  %v19092_v29 = vld [vmem:[#allocation29_spill] sm:$0xff]  ;;  %v19093_v13 = vld [vmem:[#allocation15_spill] sm:$0xff] }
 0x4e0   : > { %v3622_v51 = vpop.permute.xlu0 %3621 }
 0x4e1   : > { %v3618_v0 = vpop.permute.xlu1 %3617  ;;  %v4271_v4 = vsel %vm1874_vm7, %v4223_v63, %v9628_v53 }
 0x4e2   : > { %3795 = vrot.lane.b32.xlu0 %v13040_v18, %s9992_s15  ;;  %v9544_v18 = vunpack.i.h.bf16 %v19085_v23 }
 0x4e3   : > { %9671 = vrot.lane.b32.xlu1 %v9670_v60, %s9994_s17 }
 0x4e4   : > { %v3764_v55 = vpop.permute.xlu0 %3763  ;;  %v4036_v53 = vsel %vm1629_vm2, %v19093_v13, %v9544_v18 }
 0x4e5   : > { %v14008_v30 = vpop.permute.xlu1 %9631 }
 0x4e6   : > { %3931 = vrot.lane.b32.xlu0 %v19083_v12, %s9994_s17  ;;  %v9633_v50 = vunpack.i.l.bf16 %v14008_v30  ;;  %v19091_v12 = vld [vmem:[#allocation145_spill] sm:$0xff] }
 0x4e7   : > { %3793 = vrot.lane.b32.xlu1 %v12973_v26, %s9992_s15  ;;  %v4038_v23 = vsel %vm1629_vm2, %v12772_v54, %v19091_v12  ;;  %v19095_v12 = vld [vmem:[#allocation216_spill] sm:$0xff] }
 0x4e8   : > { %v3900_v60 = vpop.permute.xlu0 %3899  ;;  %v4319_v62 = vsel %vm1923_vm8, %v4271_v4, %v9633_v50  ;;  %v4084_v17 = vsel %vm1678_vm3, %v4038_v23, %v13694_v19  ;;  %v14033_v50 = vsel %vm1678_vm3, %v4036_v53, %v9574_v2 }
 0x4e9   : > { %v3762_v27 = vpop.permute.xlu1 %3761  ;;  %4757 = vmatmul.mubr.f32.vlgmr.msra.gmra.mxu1 %v4319_v62  ;;  %v4130_v33 = vsel %vm1727_vm4, %v4084_v17, %v13906_v16  ;;  %v19094_v62 = vld [vmem:[#allocation148_spill] sm:$0xff]  ;;  %v4128_v18 = vsel %vm1727_vm4, %v14033_v50, %v13898_v28 }
 0x4ea   : > { %3935 = vrot.lane.b32.xlu0 %v19092_v29, %s9994_s17  ;;  %9187 = vmatprep.mubr.msk.f32.mxu1 %vm1629_vm2, %v9139_v56  ;;  %v4037_v63 = vsel %vm1629_vm2, %v12768_v32, %v19094_v62  ;;  %v4178_v56 = vsel %vm1776_vm5, %v4130_v33, %v3472_v39  ;;  %v4176_v2 = vsel %vm1776_vm5, %v4128_v18, %v3468_v15  ;;  %v19096_v17 = vld [vmem:[#allocation32_spill] sm:$0xff]  ;;  %v9578_v33 = vunpack.i.l.bf16 %v13732_v58 }
 0x4eb   : > { %3797 = vrot.lane.b32.xlu1 %v12985_v40, %s9992_s15  ;;  %v4083_v19 = vsel %vm1678_vm3, %v4037_v63, %v13717_v43  ;;  %v4226_v16 = vsel %vm1825_vm6, %v4178_v56, %v3622_v51  ;;  %v4224_v23 = vsel %vm1825_vm6, %v4176_v2, %v3618_v0  ;;  %v9548_v53 = vunpack.i.l.bf16 %v19096_v17 }
 0x4ec   : > { %v3904_v54 = vpop.permute.xlu0 %3903  ;;  %v4129_v32 = vsel %vm1727_vm4, %v4083_v19, %v13888_v49  ;;  %v4272_v43 = vsel %vm1874_vm7, %v4224_v23, %v3762_v27  ;;  %v9604_v27 = vunpack.i.h.bf16 %v13880_v37  ;;  %v9619_v63 = vunpack.i.h.bf16 %v13972_v1 }
 0x4ed   : > { %v3766_v4 = vpop.permute.xlu1 %3765  ;;  %v4177_v39 = vsel %vm1776_vm5, %v4129_v32, %v13970_v6  ;;  %v9629_v19 = vunpack.i.h.bf16 %v13985_v61  ;;  %v14091_v2 = vrot.slane %v19095_v12, 2  ;;  %v9675_v61 = vpack.i.bf16 %v19093_v13, %v19088_v41 }
 0x4ee   : > { %3361 = vrot.lane.b32.xlu0 %v19095_v12, %s9989_s29  ;;  %v4274_v28 = vsel %vm1874_vm7, %v4226_v16, %v3766_v4  ;;  %v4225_v49 = vsel %vm1825_vm6, %v4177_v39, %v3620_v31  ;;  %v9624_v16 = vunpack.i.h.bf16 %v13961_v21  ;;  %v9634_v4 = vunpack.i.h.bf16 %v14008_v30 }
 0x4ef   : > { %v4322_v15 = vsel %vm1923_vm8, %v4274_v28, %v3904_v54  ;;  %3933 = vrot.lane.b32.xlu1 %v19080_v57, %s9994_s17  ;;  %v4273_v62 = vsel %vm1874_vm7, %v4225_v49, %v3764_v55  ;;  %v4320_v57 = vsel %vm1923_vm8, %v4272_v43, %v3900_v60  ;;  %v4039_v55 = vsel %vm1629_vm2, %v12789_v47, %v9548_v53  ;;  %v19097_v28 = vld [vmem:[#allocation82_spill] sm:$0xff]  ;;  %v19099_v53 = vld [vmem:[#allocation192_spill] sm:$0xff] }
 0x4f0   : > { %v14062_v51 = vpop.permute.xlu0 %3477  ;;  %v4420_v0 = vcombine.low %v4322_v15, %v13301_v20  ;;  %v4085_v37 = vsel %vm1678_vm3, %v4039_v55, %v9578_v33  ;;  %v3609_v23 = vrot.slane %v19084_v24, 2  ;;  %v9143_v43 = vcombine.low %v13285_v14, %v13325_v34 }
 0x4f1   : > { %v3902_v6 = vpop.permute.xlu1 %3901  ;;  %v4131_v1 = vsel %vm1727_vm4, %v4085_v37, %v9604_v27  ;;  %v4040_v14 = vsel %vm1629_vm2, %v18998_v10, %v19099_v53 }
 0x4f2   : > { %3509 = vrot.lane.b32.xlu0 %v19090_v36, %s9990_s30  ;;  %v4321_v54 = vsel %vm1923_vm8, %v4273_v62, %v3902_v6  ;;  %v9141_v36 = vcombine.high %v13335_v7, %v4420_v0  ;;  %v4179_v60 = vsel %vm1776_vm5, %v4131_v1, %v9619_v63  ;;  %v14113_v41 = vsel %vm660_vm1, %v3609_v23, %v14091_v2  ;;  %v19101_v6 = vld [vmem:[#allocation31_spill] sm:$0xff] }
 0x4f3   : > { %v4419_v31 = vcombine.high %v4321_v54, %v13335_v7  ;;  %v9138_v18 = vcombine.low %v4320_v57, %v4321_v54  ;;  %3359 = vrot.lane.b32.xlu1 %v19084_v24, %s9989_s29  ;;  %v4086_v0 = vsel %vm1678_vm3, %v4040_v14, %v13709_v59  ;;  %v4041_v27 = vsel %vm1629_vm2, %v12835_v25, %v19101_v6  ;;  %v19103_v54 = vld [vmem:[#allocation23_spill] sm:$0xff] }
 0x4f4   : > { %v3626_v20 = vpop.permute.xlu0 %3625  ;;  %v4132_v10 = vsel %vm1727_vm4, %v4086_v0, %v13896_v46  ;;  %v4087_v59 = vsel %vm1678_vm3, %v4041_v27, %v13748_v52  ;;  %v19111_v0 = vld [vmem:[#allocation19_spill] sm:$0xff] }
 0x4f5   : > { %v3476_v56 = vpop.permute.xlu1 %3475  ;;  %4762 = vmatmul.mubr.f32.gmra.mxu1 %v9138_v18  ;;  %v9140_v7 = vcombine.low %v4419_v31, %v4322_v15  ;;  %v4133_v25 = vsel %vm1727_vm4, %v4087_v59, %v13914_v45 }
 0x4f6   : > { %3657 = vrot.lane.b32.xlu0 %v13411_v8, %s9991_s10  ;;  %9188 = vmatprep.mubr.msk.f32.mxu1 %vm1629_vm2, %v9141_v36  ;;  %v4181_v46 = vsel %vm1776_vm5, %v4133_v25, %v14062_v51 }
 0x4f7   : > { %3507 = vrot.lane.b32.xlu1 %v19092_v29, %s9990_s30  ;;  %v4227_v29 = vsel %vm1825_vm6, %v4179_v60, %v9624_v16 }
 0x4f8   : > { %v3630_v47 = vpop.permute.xlu0 %3629  ;;  %v4275_v30 = vsel %vm1874_vm7, %v4227_v29, %v9629_v19  ;;  %v19104_v19 = vld [vmem:[#allocation142_spill] sm:$0xff] }
 0x4f9   : > { %v3480_v32 = vpop.permute.xlu1 %3479  ;;  %4767 = vmatmul.mubr.f32.gmra.mxu1 %v9140_v7  ;;  %v4323_v39 = vsel %vm1923_vm8, %v4275_v30, %v9634_v4  ;;  %v19105_v29 = vld [vmem:[#allocation30_spill] sm:$0xff] }
 0x4fa   : > { %3661 = vrot.lane.b32.xlu0 %v14091_v2, %s9991_s10  ;;  %9189 = vmatprep.mubr.msk.f32.mxu1 %vm1629_vm2, %v13294_v42  ;;  %v19098_v42 = vld [vmem:[#allocation69_spill] sm:$0xff] }
 0x4fb   : > { %3511 = vrot.lane.b32.xlu1 %v19097_v28, %s9990_s30  ;;  %v4042_v24 = vsel %vm1629_vm2, %v12813_v38, %v19098_v42  ;;  %v19100_v38 = vld [vmem:[#allocation68_spill] sm:$0xff]  ;;  %v9579_v42 = vunpack.i.h.bf16 %v13732_v58  ;;  %v19112_v58 = vld [vmem:[#allocation229_spill] sm:$0xff] }
 0x4fc   : > { %v3772_v21 = vpop.permute.xlu0 %3771  ;;  %v4088_v49 = vsel %vm1678_vm3, %v4042_v24, %v13726_v44  ;;  %v19102_v44 = vld [vmem:[#allocation73_spill] sm:$0xff] }
 0x4fd   : > { %v3628_v15 = vpop.permute.xlu1 %3627  ;;  %4772 = vmatmul.mubr.f32.gmra.mxu1 %v4323_v39  ;;  %v4134_v33 = vsel %vm1727_vm4, %v4088_v49, %v13904_v3  ;;  %v9690_v63 = vpack.i.bf16 %v19103_v54, %v19102_v44  ;;  %v4180_v3 = vsel %vm1776_vm5, %v4132_v10, %v3476_v56  ;;  %v19110_v49 = vld [vmem:[#allocation83_spill] sm:$0xff] }
 0x4fe   : > { %9676 = vrot.lane.b32.xlu0 %v9675_v61, %s9992_s15  ;;  %9190 = vmatprep.mubr.msk.f32.mxu1 %vm1629_vm2, %v9143_v43  ;;  %v4182_v57 = vsel %vm1776_vm5, %v4134_v33, %v3480_v32  ;;  %v4229_v36 = vsel %vm1825_vm6, %v4181_v46, %v3628_v15  ;;  %v4228_v52 = vsel %vm1825_vm6, %v4180_v3, %v3626_v20  ;;  %v9549_v15 = vunpack.i.h.bf16 %v19096_v17  ;;  %v19114_v3 = vld [vmem:[#allocation62_spill] sm:$0xff]  ;;  %v19115_v46 = vld [vmem:[#allocation232_spill] sm:$0xff] }
 0x4ff   : > { %3659 = vrot.lane.b32.xlu1 %v14113_v41, %s9991_s10  ;;  %v4230_v18 = vsel %vm1825_vm6, %v4182_v57, %v3630_v47  ;;  %v4277_v1 = vsel %vm1874_vm7, %v4229_v36, %v3772_v21  ;;  %v9685_v20 = vpack.i.bf16 %v13052_v5, %v13063_v11  ;;  %v19106_v21 = vld [vmem:[#allocation150_spill] sm:$0xff] }
 0x500   : > { %v3908_v13 = vpop.permute.xlu0 %3907  ;;  %v9695_v30 = vpack.i.bf16 %v19106_v21, %v13467_v22  ;;  %v19109_v22 = vld [vmem:[#allocation81_spill] sm:$0xff]  ;;  %v4043_v33 = vsel %vm1629_vm2, %v19111_v0, %v9549_v15 }
 0x501   : > { %v3770_v62 = vpop.permute.xlu1 %3769  ;;  %v9608_v53 = vunpack.i.l.bf16 %v19109_v22  ;;  %v4089_v17 = vsel %vm1678_vm3, %v4043_v33, %v9579_v42  ;;  %v19125_v42 = vld [vmem:[#allocation98_spill] sm:$0xff] }
 0x502   : > { %9681 = vrot.lane.b32.xlu0 %v19100_v38, %s9994_s17  ;;  %v19113_v38 = vld [vmem:[#allocation184_spill] sm:$0xff]  ;;  %v19128_v33 = vld [vmem:[#allocation86_spill] sm:$0xff] }
 0x503   : > { %3801 = vrot.lane.b32.xlu1 %v19095_v12, %s9992_s15  ;;  %v4276_v12 = vsel %vm1874_vm7, %v4228_v52, %v3770_v62  ;;  %v9700_v6 = vpack.i.bf16 %v19113_v38, %v19104_v19  ;;  %v4135_v27 = vsel %vm1727_vm4, %v4089_v17, %v9608_v53  ;;  %v19116_v52 = vld [vmem:[#allocation246_spill] sm:$0xff] }
 0x504   : > { %v3912_v31 = vpop.permute.xlu0 %3911  ;;  %v4324_v47 = vsel %vm1923_vm8, %v4276_v12, %v3908_v13  ;;  %v19108_v13 = vld [vmem:[#allocation182_spill] sm:$0xff] }
 0x505   : > { %v3774_v55 = vpop.permute.xlu1 %3773 }
 0x506   : > { %9691 = vrot.lane.b32.xlu0 %v9690_v63, %s9990_s30  ;;  %v4278_v37 = vsel %vm1874_vm7, %v4230_v18, %v3774_v55 }
 0x507   : > { %v4326_v56 = vsel %vm1923_vm8, %v4278_v37, %v3912_v31  ;;  %3939 = vrot.lane.b32.xlu1 %v19097_v28, %s9994_s17  ;;  %v19117_v37 = vld [vmem:[#allocation102_spill] sm:$0xff] }
 0x508   : > { %v14157_v45 = vpop.permute.xlu0 %9641  ;;  %v4426_v51 = vcombine.low %v4326_v56, %v19056_v35  ;;  %v9147_v12 = vcombine.low %v19117_v37, %v19116_v52 }
 0x509   : > { %v3910_v60 = vpop.permute.xlu1 %3909  ;;  %v9643_v63 = vunpack.i.l.bf16 %v14157_v45 }
 0x50a   : > { %3367 = vrot.lane.b32.xlu0 %v19104_v19, %s9989_s29  ;;  %v4325_v7 = vsel %vm1923_vm8, %v4277_v1, %v3910_v60  ;;  %v9145_v35 = vcombine.high %v13325_v34, %v4426_v51  ;;  %v19119_v51 = vld [vmem:[#allocation48_spill] sm:$0xff] }
 0x50b   : > { %v4425_v16 = vcombine.high %v4325_v7, %v13325_v34  ;;  %v9142_v4 = vcombine.low %v4324_v47, %v4325_v7  ;;  %9686 = vrot.lane.b32.xlu1 %v9685_v20, %s9989_s29  ;;  %v19107_v34 = vld [vmem:[#allocation186_spill] sm:$0xff]  ;;  %v19120_v20 = vld [vmem:[#allocation224_spill] sm:$0xff]  ;;  %v19121_v7 = vld [vmem:[#allocation189_spill] sm:$0xff] }
 0x50c   : > { %v14169_v32 = vpop.permute.xlu0 %3485  ;;  %v9705_v47 = vpack.i.bf16 %v19120_v20, %v19107_v34 }
 0x50d   : > { %v14172_v61 = vpop.permute.xlu1 %9636  ;;  %4777 = vmatmul.mubr.f32.gmra.mxu1 %v9142_v4  ;;  %v9144_v28 = vcombine.low %v4425_v16, %v4326_v56  ;;  %v19118_v56 = vld [vmem:[#allocation105_spill] sm:$0xff]  ;;  %v19122_v16 = vld [vmem:[#allocation22_spill] sm:$0xff] }
 0x50e   : > { %3369 = vrot.lane.b32.xlu0 %v19105_v29, %s9989_s29  ;;  %9191 = vmatprep.mubr.msk.f32.mxu1 %vm1629_vm2, %v9145_v35  ;;  %v9638_v14 = vunpack.i.l.bf16 %v14172_v61  ;;  %v4046_v1 = vsel %vm1629_vm2, %v19119_v51, %v19118_v56  ;;  %v4044_v4 = vsel %vm1629_vm2, %v19122_v16, %v19121_v7  ;;  %v19123_v35 = vld [vmem:[#allocation254_spill] sm:$0xff]  ;;  %v19132_v51 = vld [vmem:[#allocation245_spill] sm:$0xff]  ;;  %v9609_v16 = vunpack.i.h.bf16 %v19109_v22 }
 0x50f   : > { %3365 = vrot.lane.b32.xlu1 %v13013_v9, %s9989_s29 }
 0x510   : > { %v3488_v23 = vpop.permute.xlu0 %3487  ;;  %v4183_v10 = vsel %vm1776_vm5, %v4135_v27, %v9638_v14  ;;  %v19129_v27 = vld [vmem:[#allocation45_spill] sm:$0xff] }
 0x511   : > { %v3484_v39 = vpop.permute.xlu1 %3483  ;;  %4782 = vmatmul.mubr.f32.gmra.mxu1 %v9144_v28  ;;  %v4231_v25 = vsel %vm1825_vm6, %v4183_v10, %v9643_v63  ;;  %v4092_v28 = vsel %vm1678_vm3, %v4046_v1, %v19123_v35  ;;  %v19133_v1 = vld [vmem:[#allocation155_spill] sm:$0xff] }
 0x512   : > { %3517 = vrot.lane.b32.xlu0 %v19107_v34, %s9990_s30  ;;  %9192 = vmatprep.mubr.msk.f32.mxu1 %vm1629_vm2, %v13339_v48  ;;  %v4138_v53 = vsel %vm1727_vm4, %v4092_v28, %v19125_v42  ;;  %v19127_v34 = vld [vmem:[#allocation180_spill] sm:$0xff]  ;;  %v9639_v28 = vunpack.i.h.bf16 %v14172_v61 }
 0x513   : > { %9696 = vrot.lane.b32.xlu1 %v9695_v30, %s9991_s10  ;;  %v19124_v30 = vld [vmem:[#allocation205_spill] sm:$0xff] }
 0x514   : > { %v3636_v43 = vpop.permute.xlu0 %3635  ;;  %v4090_v15 = vsel %vm1678_vm3, %v4044_v4, %v19124_v30 }
 0x515   : > { %v14188_v24 = vpop.permute.xlu1 %9646  ;;  %v4136_v17 = vsel %vm1727_vm4, %v4090_v15, %v19128_v33  ;;  %v19135_v15 = vld [vmem:[#allocation237_spill] sm:$0xff]  ;;  %v9644_v33 = vunpack.i.h.bf16 %v14157_v45 }
 0x516   : > { %3519 = vrot.lane.b32.xlu0 %v19108_v13, %s9990_s30  ;;  %v9648_v57 = vunpack.i.l.bf16 %v14188_v24 }
 0x517   : > { %3515 = vrot.lane.b32.xlu1 %v19110_v49, %s9990_s30  ;;  %v19126_v49 = vld [vmem:[#allocation244_spill] sm:$0xff] }
 0x518   : > { %v3638_v48 = vpop.permute.xlu0 %3637  ;;  %v4279_v55 = vsel %vm1874_vm7, %v4231_v25, %v9648_v57  ;;  %v4045_v0 = vsel %vm1629_vm2, %v19127_v34, %v19126_v49  ;;  %v4184_v57 = vsel %vm1776_vm5, %v4136_v17, %v3484_v39  ;;  %v19130_v25 = vld [vmem:[#allocation273_spill] sm:$0xff]  ;;  %v9649_v34 = vunpack.i.h.bf16 %v14188_v24 }
 0x519   : > { %v3634_v62 = vpop.permute.xlu1 %3633  ;;  %v4091_v10 = vsel %vm1678_vm3, %v4045_v0, %v19129_v27  ;;  %v19137_v27 = vld [vmem:[#allocation228_spill] sm:$0xff] }
 0x51a   : > { %3667 = vrot.lane.b32.xlu0 %v19112_v58, %s9991_s10 }
 0x51b   : > { %9701 = vrot.lane.b32.xlu1 %v9700_v6, %s9992_s15  ;;  %v4186_v6 = vsel %vm1776_vm5, %v4138_v53, %v3488_v23 }
 0x51c   : > { %v3780_v44 = vpop.permute.xlu0 %3779  ;;  %v4234_v63 = vsel %vm1825_vm6, %v4186_v6, %v3638_v48 }
 0x51d   : > { %v14208_v59 = vpop.permute.xlu1 %9651 }
 0x51e   : > { %3669 = vrot.lane.b32.xlu0 %v19114_v3, %s9991_s10  ;;  %v9653_v31 = vunpack.i.l.bf16 %v14208_v59  ;;  %v9654_v17 = vunpack.i.h.bf16 %v14208_v59  ;;  %v19139_v59 = vld [vmem:[#allocation36_spill] sm:$0xff] }
 0x51f   : > { %3665 = vrot.lane.b32.xlu1 %v19115_v46, %s9991_s10  ;;  %v4137_v46 = vsel %vm1727_vm4, %v4091_v10, %v19130_v25  ;;  %v19140_v25 = vld [vmem:[#allocation60_spill] sm:$0xff] }
 0x520   : > { %v3916_v18 = vpop.permute.xlu0 %3915  ;;  %v4327_v36 = vsel %vm1923_vm8, %v4279_v55, %v9653_v31  ;;  %v4232_v55 = vsel %vm1825_vm6, %v4184_v57, %v3634_v62  ;;  %v4185_v23 = vsel %vm1776_vm5, %v4137_v46, %v14169_v32  ;;  %v19138_v57 = vld [vmem:[#allocation64_spill] sm:$0xff]  ;;  %v19141_v46 = vld [vmem:[#allocation193_spill] sm:$0xff] }
 0x521   : > { %v3778_v60 = vpop.permute.xlu1 %3777  ;;  %4787 = vmatmul.mubr.f32.gmra.mxu1 %v4327_v36  ;;  %v4233_v56 = vsel %vm1825_vm6, %v4185_v23, %v3636_v43  ;;  %v19143_v23 = vld [vmem:[#allocation239_spill] sm:$0xff] }
 0x522   : > { %3811 = vrot.lane.b32.xlu0 %v13052_v5, %s9992_s15  ;;  %9193 = vmatprep.mubr.msk.f32.mxu1 %vm1629_vm2, %v9147_v12  ;;  %v4280_v37 = vsel %vm1874_vm7, %v4232_v55, %v3778_v60  ;;  %v4281_v7 = vsel %vm1874_vm7, %v4233_v56, %v3780_v44  ;;  %v19134_v60 = vld [vmem:[#allocation242_spill] sm:$0xff]  ;;  %v19136_v44 = vld [vmem:[#allocation136_spill] sm:$0xff] }
 0x523   : > { %9706 = vrot.lane.b32.xlu1 %v9705_v47, %s9994_s17  ;;  %v9583_v47 = vunpack.i.l.bf16 %v19133_v1  ;;  %v4328_v4 = vsel %vm1923_vm8, %v4280_v37, %v3916_v18  ;;  %v19142_v55 = vld [vmem:[#allocation16_spill] sm:$0xff] }
 0x524   : > { %v3920_v14 = vpop.permute.xlu0 %3919 }
 0x525   : > { %v3782_v31 = vpop.permute.xlu1 %3781 }
 0x526   : > { %3947 = vrot.lane.b32.xlu0 %v19108_v13, %s9994_s17  ;;  %v4282_v36 = vsel %vm1874_vm7, %v4234_v63, %v3782_v31  ;;  %v19131_v13 = vld [vmem:[#allocation234_spill] sm:$0xff]  ;;  %v9151_v63 = vcombine.low %v19139_v59, %v19138_v57 }
 0x527   : > { %v4330_v39 = vsel %vm1923_vm8, %v4282_v36, %v3920_v14  ;;  %3809 = vrot.lane.b32.xlu1 %v19105_v29, %s9992_s15  ;;  %v9553_v12 = vunpack.i.l.bf16 %v19131_v13  ;;  %v4050_v36 = vsel %vm1629_vm2, %v19142_v55, %v19141_v46 }
 0x528   : > { %v14260_v48 = vpop.permute.xlu0 %3493  ;;  %v4432_v62 = vcombine.low %v4330_v39, %v19132_v51  ;;  %v19146_v51 = vld [vmem:[#allocation201_spill] sm:$0xff] }
 0x529   : > { %v3918_v32 = vpop.permute.xlu1 %3917  ;;  %v4047_v53 = vsel %vm1629_vm2, %v19136_v44, %v9553_v12  ;;  %v19145_v12 = vld [vmem:[#allocation135_spill] sm:$0xff] }
 0x52a   : > { %3951 = vrot.lane.b32.xlu0 %v19134_v60, %s9994_s17  ;;  %v4329_v35 = vsel %vm1923_vm8, %v4281_v7, %v3918_v32  ;;  %v9149_v14 = vcombine.high %v19116_v52, %v4432_v62  ;;  %v4093_v22 = vsel %vm1678_vm3, %v4047_v53, %v9583_v47  ;;  %v4096_v62 = vsel %vm1678_vm3, %v4050_v36, %v19146_v51  ;;  %v19147_v47 = vld [vmem:[#allocation92_spill] sm:$0xff] }
 0x52b   : > { %v4431_v43 = vcombine.high %v4329_v35, %v19116_v52  ;;  %v9146_v30 = vcombine.low %v4328_v4, %v4329_v35  ;;  %3813 = vrot.lane.b32.xlu1 %v19135_v15, %s9992_s15  ;;  %v4139_v61 = vsel %vm1727_vm4, %v4093_v22, %v9609_v16  ;;  %v19148_v32 = vld [vmem:[#allocation124_spill] sm:$0xff] }
 0x52c   : > { %v3642_v42 = vpop.permute.xlu0 %3641  ;;  %v4187_v18 = vsel %vm1776_vm5, %v4139_v61, %v9639_v28  ;;  %v19149_v4 = vld [vmem:[#allocation196_spill] sm:$0xff]  ;;  %v19151_v28 = vld [vmem:[#allocation181_spill] sm:$0xff] }
 0x52d   : > { %v3492_v49 = vpop.permute.xlu1 %3491  ;;  %4792 = vmatmul.mubr.f32.gmra.mxu1 %v9146_v30  ;;  %v9148_v52 = vcombine.low %v4431_v43, %v4330_v39  ;;  %v4235_v10 = vsel %vm1825_vm6, %v4187_v18, %v9644_v33  ;;  %v19144_v39 = vld [vmem:[#allocation151_spill] sm:$0xff]  ;;  %v19150_v35 = vld [vmem:[#allocation152_spill] sm:$0xff]  ;;  %v19152_v30 = vld [vmem:[#allocation93_spill] sm:$0xff] }
 0x52e   : > { %3375 = vrot.lane.b32.xlu0 %v19113_v38, %s9989_s29  ;;  %9194 = vmatprep.mubr.msk.f32.mxu1 %vm1629_vm2, %v9149_v14  ;;  %v4283_v24 = vsel %vm1874_vm7, %v4235_v10, %v9649_v34  ;;  %v4048_v56 = vsel %vm1629_vm2, %v19145_v12, %v19144_v39  ;;  %v4049_v43 = vsel %vm1629_vm2, %v19151_v28, %v19150_v35  ;;  %v19153_v14 = vld [vmem:[#allocation162_spill] sm:$0xff]  ;;  %v19158_v12 = vld [vmem:[#allocation233_spill] sm:$0xff]  ;;  %v9554_v28 = vunpack.i.h.bf16 %v19131_v13 }
 0x52f   : > { %3949 = vrot.lane.b32.xlu1 %v19103_v54, %s9994_s17  ;;  %v4331_v45 = vsel %vm1923_vm8, %v4283_v24, %v9654_v17  ;;  %v4094_v7 = vsel %vm1678_vm3, %v4048_v56, %v19147_v47  ;;  %v4095_v22 = vsel %vm1678_vm3, %v4049_v43, %v19153_v14  ;;  %v19154_v34 = vld [vmem:[#allocation206_spill] sm:$0xff]  ;;  %v9584_v43 = vunpack.i.h.bf16 %v19133_v1  ;;  %v19168_v1 = vld [vmem:[#allocation91_spill] sm:$0xff] }
 0x530   : > { %v3646_v0 = vpop.permute.xlu0 %3645  ;;  %v4140_v44 = vsel %vm1727_vm4, %v4094_v7, %v19152_v30 }
 0x531   : > { %v3496_v6 = vpop.permute.xlu1 %3495  ;;  %4797 = vmatmul.mubr.f32.gmra.mxu1 %v9148_v52  ;;  %v4188_v61 = vsel %vm1776_vm5, %v4140_v44, %v3492_v49  ;;  %v4141_v52 = vsel %vm1727_vm4, %v4095_v22, %v19154_v34  ;;  %v19163_v44 = vld [vmem:[#allocation255_spill] sm:$0xff] }
 0x532   : > { %3523 = vrot.lane.b32.xlu0 %v19134_v60, %s9990_s30  ;;  %9195 = vmatprep.mubr.msk.f32.mxu1 %vm1629_vm2, %v19137_v27  ;;  %v4142_v60 = vsel %vm1727_vm4, %v4096_v62, %v19148_v32  ;;  %v4189_v33 = vsel %vm1776_vm5, %v4141_v52, %v14260_v48  ;;  %v4236_v49 = vsel %vm1825_vm6, %v4188_v61, %v3642_v42  ;;  %v19161_v32 = vld [vmem:[#allocation87_spill] sm:$0xff] }
 0x533   : > { %3373 = vrot.lane.b32.xlu1 %v19135_v15, %s9989_s29  ;;  %v4190_v53 = vsel %vm1776_vm5, %v4142_v60, %v3496_v6  ;;  %v19164_v22 = vld [vmem:[#allocation143_spill] sm:$0xff] }
 0x534   : > { %v3788_v54 = vpop.permute.xlu0 %3787  ;;  %v4238_v17 = vsel %vm1825_vm6, %v4190_v53, %v3646_v0  ;;  %v19156_v0 = vld [vmem:[#allocation247_spill] sm:$0xff]  ;;  %v9613_v53 = vunpack.i.l.bf16 %v19163_v44 }
 0x535   : > { %v3644_v31 = vpop.permute.xlu1 %3643  ;;  %4802 = vmatmul.mubr.f32.gmra.mxu1 %v4331_v45  ;;  %v19155_v45 = vld [vmem:[#allocation108_spill] sm:$0xff]  ;;  %v19167_v52 = vld [vmem:[#allocation183_spill] sm:$0xff] }
 0x536   : > { %3527 = vrot.lane.b32.xlu0 %v19140_v25, %s9990_s30  ;;  %9196 = vmatprep.mubr.msk.f32.mxu1 %vm1629_vm2, %v9151_v63  ;;  %v4237_v6 = vsel %vm1825_vm6, %v4189_v33, %v3644_v31  ;;  %v19157_v31 = vld [vmem:[#allocation51_spill] sm:$0xff]  ;;  %v4051_v13 = vsel %vm1629_vm2, %v19167_v52, %v9554_v28  ;;  %v19174_v28 = vld [vmem:[#allocation50_spill] sm:$0xff]  ;;  %v19177_v52 = vld [vmem:[#allocation80_spill] sm:$0xff] }
 0x537   : > { %3377 = vrot.lane.b32.xlu1 %v19143_v23, %s9989_s29  ;;  %v4285_v63 = vsel %vm1874_vm7, %v4237_v6, %v3788_v54  ;;  %v19159_v54 = vld [vmem:[#allocation219_spill] sm:$0xff] }
 0x538   : > { %v3924_v37 = vpop.permute.xlu0 %3923  ;;  %v9715_v33 = vpack.i.bf16 %v19168_v1, %v19159_v54 }
 0x539   : > { %v3786_v16 = vpop.permute.xlu1 %3785 }
 0x53a   : > { %3675 = vrot.lane.b32.xlu0 %v19149_v4, %s9991_s10 }
 0x53b   : > { %3525 = vrot.lane.b32.xlu1 %v19120_v20, %s9990_s30  ;;  %v4284_v20 = vsel %vm1874_vm7, %v4236_v49, %v3786_v16 }
 0x53c   : > { %v3928_v18 = vpop.permute.xlu0 %3927  ;;  %v4332_v42 = vsel %vm1923_vm8, %v4284_v20, %v3924_v37  ;;  %v19160_v37 = vld [vmem:[#allocation90_spill] sm:$0xff] }
 0x53d   : > { %v3790_v27 = vpop.permute.xlu1 %3789  ;;  %v9710_v60 = vpack.i.bf16 %v19161_v32, %v19160_v37 }
 0x53e   : > { %3817 = vrot.lane.b32.xlu0 %v19143_v23, %s9992_s15  ;;  %v4286_v10 = vsel %vm1874_vm7, %v4238_v17, %v3790_v27  ;;  %v4097_v17 = vsel %vm1678_vm3, %v4051_v13, %v9584_v43 }
 0x53f   : > { %v4334_v24 = vsel %vm1923_vm8, %v4286_v10, %v3928_v18  ;;  %3673 = vrot.lane.b32.xlu1 %v19155_v45, %s9991_s10  ;;  %v19165_v18 = vld [vmem:[#allocation194_spill] sm:$0xff]  ;;  %v4143_v6 = vsel %vm1727_vm4, %v4097_v17, %v9613_v53 }
 0x540   : > { %v14345_v48 = vpop.permute.xlu0 %9661  ;;  %v4438_v59 = vcombine.low %v4334_v24, %v19156_v0 }
 0x541   : > { %v3926_v46 = vpop.permute.xlu1 %3925 }
 0x542   : > { %3821 = vrot.lane.b32.xlu0 %v19157_v31, %s9992_s15  ;;  %v4333_v55 = vsel %vm1923_vm8, %v4285_v63, %v3926_v46  ;;  %v9153_v51 = vcombine.high %v19138_v57, %v4438_v59  ;;  %v19169_v46 = vld [vmem:[#allocation240_spill] sm:$0xff] }
 0x543   : > { %v4437_v36 = vcombine.high %v4333_v55, %v19138_v57  ;;  %v9150_v39 = vcombine.low %v4332_v42, %v4333_v55  ;;  %3677 = vrot.lane.b32.xlu1 %v19158_v12, %s9991_s10  ;;  %v19162_v57 = vld [vmem:[#allocation104_spill] sm:$0xff] }
 0x544   : > { %v14356_v56 = vpop.permute.xlu0 %3501 }
 0x545   : > { %v14359_v62 = vpop.permute.xlu1 %9656  ;;  %4807 = vmatmul.mubr.f32.gmra.mxu1 %v9150_v39  ;;  %v9152_v7 = vcombine.low %v4437_v36, %v4334_v24  ;;  %v9663_v24 = vunpack.i.l.bf16 %v14345_v48  ;;  %v19170_v36 = vld [vmem:[#allocation144_spill] sm:$0xff] }
 0x546   : > { %3957 = vrot.lane.b32.xlu0 %v19159_v54, %s9994_s17  ;;  %9197 = vmatprep.mubr.msk.f32.mxu1 %vm1629_vm2, %v9153_v51  ;;  %v9658_v14 = vunpack.i.l.bf16 %v14359_v62  ;;  %v9725_v39 = vpack.i.bf16 %v19170_v36, %v19169_v46  ;;  %v19171_v54 = vld [vmem:[#allocation149_spill] sm:$0xff] }
 0x547   : > { %3819 = vrot.lane.b32.xlu1 %v19160_v37, %s9992_s15 }
 0x548   : > { %v3504_v47 = vpop.permute.xlu0 %3503  ;;  %v4191_v49 = vsel %vm1776_vm5, %v4143_v6, %v9658_v14  ;;  %v19175_v14 = vld [vmem:[#allocation44_spill] sm:$0xff]  ;;  %v19179_v6 = vld [vmem:[#allocation122_spill] sm:$0xff] }
 0x549   : > { %v3500_v16 = vpop.permute.xlu1 %3499  ;;  %4812 = vmatmul.mubr.f32.gmra.mxu1 %v9152_v7  ;;  %v4239_v63 = vsel %vm1825_vm6, %v4191_v49, %v9663_v24  ;;  %v19172_v7 = vld [vmem:[#allocation59_spill] sm:$0xff] }
 0x54a   : > { %9711 = vrot.lane.b32.xlu0 %v9710_v60, %s9989_s29  ;;  %9198 = vmatprep.mubr.msk.f32.mxu1 %vm1629_vm2, %v19162_v57  ;;  %v9155_v60 = vcombine.low %v19172_v7, %v19171_v54  ;;  %v19173_v57 = vld [vmem:[#allocation177_spill] sm:$0xff] }
 0x54b   : > { %3955 = vrot.lane.b32.xlu1 %v19140_v25, %s9994_s17  ;;  %v19166_v25 = vld [vmem:[#allocation153_spill] sm:$0xff]  ;;  %v4054_v43 = vsel %vm1629_vm2, %v19174_v28, %v19173_v57 }
 0x54c   : > { %v3652_v35 = vpop.permute.xlu0 %3651  ;;  %v9720_v34 = vpack.i.bf16 %v19166_v25, %v19165_v18  ;;  %v4100_v13 = vsel %vm1678_vm3, %v4054_v43, %v19177_v52 }
 0x54d   : > { %v14375_v30 = vpop.permute.xlu1 %9666  ;;  %v4146_v49 = vsel %vm1727_vm4, %v4100_v13, %v19179_v6 }
 0x54e   : > { %3381 = vrot.lane.b32.xlu0 %v19157_v31, %s9989_s29  ;;  %v9668_v10 = vunpack.i.l.bf16 %v14375_v30  ;;  %v4194_v7 = vsel %vm1776_vm5, %v4146_v49, %v3504_v47  ;;  %v19188_v49 = vld [vmem:[#allocation58_spill] sm:$0xff] }
 0x54f   : > { %3959 = vrot.lane.b32.xlu1 %v19164_v22, %s9994_s17 }
 0x550   : > { %v3654_v61 = vpop.permute.xlu0 %3653  ;;  %v4287_v55 = vsel %vm1874_vm7, %v4239_v63, %v9668_v10  ;;  %v19180_v10 = vld [vmem:[#allocation54_spill] sm:$0xff]  ;;  %v19182_v63 = vld [vmem:[#allocation53_spill] sm:$0xff] }
 0x551   : > { %v3650_v27 = vpop.permute.xlu1 %3649  ;;  %v4242_v43 = vsel %vm1825_vm6, %v4194_v7, %v3654_v61  ;;  %v19187_v61 = vld [vmem:[#allocation212_spill] sm:$0xff] }
 0x552   : > { %9721 = vrot.lane.b32.xlu0 %v9720_v34, %s9991_s10 }
 0x553   : > { %9716 = vrot.lane.b32.xlu1 %v9715_v33, %s9990_s30  ;;  %v19178_v33 = vld [vmem:[#allocation85_spill] sm:$0xff] }
 0x554   : > { %v3796_v20 = vpop.permute.xlu0 %3795 }
 0x555   : > { %v14396_v0 = vpop.permute.xlu1 %9671 }
 0x556   : > { %3531 = vrot.lane.b32.xlu0 %v19164_v22, %s9990_s30  ;;  %v9673_v59 = vunpack.i.l.bf16 %v14396_v0  ;;  %v19176_v22 = vld [vmem:[#allocation20_spill] sm:$0xff] }
 0x557   : > { %3383 = vrot.lane.b32.xlu1 %v19169_v46, %s9989_s29  ;;  %v4052_v34 = vsel %vm1629_vm2, %v19176_v22, %v19175_v14  ;;  %v19185_v22 = vld [vmem:[#allocation35_spill] sm:$0xff] }
 0x558   : > { %v3932_v42 = vpop.permute.xlu0 %3931  ;;  %v4335_v51 = vsel %vm1923_vm8, %v4287_v55, %v9673_v59  ;;  %v4098_v17 = vsel %vm1678_vm3, %v4052_v34, %v19178_v33  ;;  %v19181_v59 = vld [vmem:[#allocation248_spill] sm:$0xff]  ;;  %v19186_v34 = vld [vmem:[#allocation270_spill] sm:$0xff] }
 0x559   : > { %v3794_v53 = vpop.permute.xlu1 %3793  ;;  %4817 = vmatmul.mubr.f32.gmra.mxu1 %v4335_v51  ;;  %v4053_v55 = vsel %vm1629_vm2, %v19182_v63, %v19181_v59  ;;  %v9730_v59 = vpack.i.bf16 %v19188_v49, %v19187_v61  ;;  %v19189_v63 = vld [vmem:[#allocation179_spill] sm:$0xff] }
 0x55a   : > { %9726 = vrot.lane.b32.xlu0 %v9725_v39, %s9992_s15  ;;  %9199 = vmatprep.mubr.msk.f32.mxu1 %vm1629_vm2, %v9155_v60  ;;  %v19183_v39 = vld [vmem:[#allocation6_spill] sm:$0xff]  ;;  %v19184_v60 = vld [vmem:[#allocation252_spill] sm:$0xff] }
 0x55b   : > { %3385 = vrot.lane.b32.xlu1 %v19180_v10, %s9989_s29  ;;  %v4144_v51 = vsel %vm1727_vm4, %v4098_v17, %v19183_v39  ;;  %v4099_v57 = vsel %vm1678_vm3, %v4053_v55, %v19184_v60  ;;  %v9558_v55 = vunpack.i.l.bf16 %v19189_v63 }
 0x55c   : > { %v3936_v24 = vpop.permute.xlu0 %3935  ;;  %v4192_v28 = vsel %vm1776_vm5, %v4144_v51, %v3500_v16  ;;  %v4145_v52 = vsel %vm1727_vm4, %v4099_v57, %v19186_v34  ;;  %v19190_v51 = vld [vmem:[#allocation118_spill] sm:$0xff]  ;;  %v19192_v34 = vld [vmem:[#allocation211_spill] sm:$0xff] }
 0x55d   : > { %v3798_v14 = vpop.permute.xlu1 %3797  ;;  %v4240_v13 = vsel %vm1825_vm6, %v4192_v28, %v3650_v27  ;;  %v4193_v47 = vsel %vm1776_vm5, %v4145_v52, %v14356_v56  ;;  %v9588_v7 = vunpack.i.l.bf16 %v19190_v51  ;;  %v9659_v28 = vunpack.i.h.bf16 %v14359_v62 }
 0x55e   : > { %3681 = vrot.lane.b32.xlu0 %v19185_v22, %s9991_s10  ;;  %v4290_v33 = vsel %vm1874_vm7, %v4242_v43, %v3798_v14  ;;  %v4288_v17 = vsel %vm1874_vm7, %v4240_v13, %v3794_v53  ;;  %v4241_v27 = vsel %vm1825_vm6, %v4193_v47, %v3652_v35  ;;  %v19193_v47 = vld [vmem:[#allocation37_spill] sm:$0xff] }
 0x55f   : > { %v4338_v16 = vsel %vm1923_vm8, %v4290_v33, %v3936_v24  ;;  %3533 = vrot.lane.b32.xlu1 %v19187_v61, %s9990_s30  ;;  %v4289_v56 = vsel %vm1874_vm7, %v4241_v27, %v3796_v20  ;;  %v9614_v24 = vunpack.i.h.bf16 %v19163_v44  ;;  %v4336_v60 = vsel %vm1923_vm8, %v4288_v17, %v3932_v42  ;;  %v19194_v27 = vld [vmem:[#allocation220_spill] sm:$0xff] }
 0x560   : > { %v3362_v6 = vpop.permute.xlu0 %3361  ;;  %v4444_v39 = vcombine.low %v4338_v16, %v13411_v8  ;;  %v19191_v8 = vld [vmem:[#allocation57_spill] sm:$0xff]  ;;  %v4055_v20 = vsel %vm1629_vm2, %v19192_v34, %v9558_v55  ;;  %v9669_v33 = vunpack.i.h.bf16 %v14375_v30  ;;  %v9664_v61 = vunpack.i.h.bf16 %v14345_v48  ;;  %v19195_v30 = vld [vmem:[#allocation107_spill] sm:$0xff]  ;;  %v19201_v34 = vld [vmem:[#allocation160_spill] sm:$0xff] }
 0x561   : > { %v3934_v53 = vpop.permute.xlu1 %3933  ;;  %v4101_v44 = vsel %vm1678_vm3, %v4055_v20, %v9588_v7 }
 0x562   : > { %9731 = vrot.lane.b32.xlu0 %v9730_v59, %s9994_s17  ;;  %v4337_v57 = vsel %vm1923_vm8, %v4289_v56, %v3934_v53  ;;  %v9157_v52 = vcombine.high %v19171_v54, %v4444_v39  ;;  %v4147_v62 = vsel %vm1727_vm4, %v4101_v44, %v9614_v24  ;;  %v9674_v59 = vunpack.i.h.bf16 %v14396_v0  ;;  %v19196_v56 = vld [vmem:[#allocation227_spill] sm:$0xff]  ;;  %v19197_v24 = vld [vmem:[#allocation156_spill] sm:$0xff] }
 0x563   : > { %v4443_v43 = vcombine.high %v4337_v57, %v19171_v54  ;;  %v9154_v35 = vcombine.low %v4336_v60, %v4337_v57  ;;  %3535 = vrot.lane.b32.xlu1 %v19191_v8, %s9990_s30  ;;  %v4195_v42 = vsel %vm1776_vm5, %v4147_v62, %v9659_v28  ;;  %v9159_v0 = vcombine.low %v14091_v2, %v19196_v56  ;;  %v19198_v60 = vld [vmem:[#allocation195_spill] sm:$0xff] }
 0x564   : > { %v3510_v14 = vpop.permute.xlu0 %3509  ;;  %v4243_v39 = vsel %vm1825_vm6, %v4195_v42, %v9664_v61  ;;  %v19199_v57 = vld [vmem:[#allocation139_spill] sm:$0xff] }
 0x565   : > { %v3360_v13 = vpop.permute.xlu1 %3359  ;;  %4822 = vmatmul.mubr.f32.gmra.mxu1 %v9154_v35  ;;  %v9156_v54 = vcombine.low %v4443_v43, %v4338_v16  ;;  %v4291_v16 = vsel %vm1874_vm7, %v4243_v39, %v9669_v33  ;;  %v4057_v28 = vsel %vm1629_vm2, %v19199_v57, %v19198_v60  ;;  %v19200_v43 = vld [vmem:[#allocation89_spill] sm:$0xff]  ;;  %v19207_v60 = vld [vmem:[#allocation187_spill] sm:$0xff] }
 0x566   : > { %3825 = vrot.lane.b32.xlu0 %v19180_v10, %s9992_s15  ;;  %9200 = vmatprep.mubr.msk.f32.mxu1 %vm1629_vm2, %v9157_v52  ;;  %v4339_v48 = vsel %vm1923_vm8, %v4291_v16, %v9674_v59  ;;  %v4103_v2 = vsel %vm1678_vm3, %v4057_v28, %v19201_v34  ;;  %v19203_v52 = vld [vmem:[#allocation111_spill] sm:$0xff]  ;;  %v19205_v59 = vld [vmem:[#allocation121_spill] sm:$0xff] }
 0x567   : > { %3683 = vrot.lane.b32.xlu1 %v19193_v47, %s9991_s10  ;;  %v4056_v44 = vsel %vm1629_vm2, %v12973_v26, %v19203_v52  ;;  %v19208_v57 = vld [vmem:[#allocation241_spill] sm:$0xff] }
 0x568   : > { %v3658_v17 = vpop.permute.xlu0 %3657 }
 0x569   : > { %v3508_v55 = vpop.permute.xlu1 %3507  ;;  %4827 = vmatmul.mubr.f32.gmra.mxu1 %v9156_v54  ;;  %v19204_v54 = vld [vmem:[#allocation269_spill] sm:$0xff] }
 0x56a   : > { %3829 = vrot.lane.b32.xlu0 %v19194_v27, %s9992_s15  ;;  %9201 = vmatprep.mubr.msk.f32.mxu1 %vm1629_vm2, %v14113_v41  ;;  %v4058_v41 = vsel %vm1629_vm2, %v12985_v40, %v19197_v24  ;;  %v4149_v40 = vsel %vm1727_vm4, %v4103_v2, %v3360_v13  ;;  %v4102_v61 = vsel %vm1678_vm3, %v4056_v44, %v19204_v54  ;;  %v19210_v54 = vld [vmem:[#allocation41_spill] sm:$0xff] }
 0x56b   : > { %3685 = vrot.lane.b32.xlu1 %v19195_v30, %s9991_s10  ;;  %v4104_v35 = vsel %vm1678_vm3, %v4058_v41, %v19200_v43  ;;  %v4197_v39 = vsel %vm1776_vm5, %v4149_v40, %v3510_v14 }
 0x56c   : > { %v3662_v7 = vpop.permute.xlu0 %3661  ;;  %v4150_v20 = vsel %vm1727_vm4, %v4104_v35, %v3362_v6  ;;  %v4148_v6 = vsel %vm1727_vm4, %v4102_v61, %v19205_v59 }
 0x56d   : > { %v3512_v53 = vpop.permute.xlu1 %3511  ;;  %4832 = vmatmul.mubr.f32.gmra.mxu1 %v4339_v48  ;;  %v4196_v24 = vsel %vm1776_vm5, %v4148_v6, %v3508_v55  ;;  %v19209_v55 = vld [vmem:[#allocation25_spill] sm:$0xff]  ;;  %v19211_v6 = vld [vmem:[#allocation114_spill] sm:$0xff] }
 0x56e   : > { %3965 = vrot.lane.b32.xlu0 %v19168_v1, %s9994_s17  ;;  %9202 = vmatprep.mubr.msk.f32.mxu1 %vm1629_vm2, %v9159_v0  ;;  %v4198_v62 = vsel %vm1776_vm5, %v4150_v20, %v3512_v53  ;;  %v4244_v35 = vsel %vm1825_vm6, %v4196_v24, %v3658_v17  ;;  %v19213_v24 = vld [vmem:[#allocation65_spill] sm:$0xff] }
 0x56f   : > { %3827 = vrot.lane.b32.xlu1 %v19161_v32, %s9992_s15  ;;  %v4246_v16 = vsel %vm1825_vm6, %v4198_v62, %v3662_v7 }
 0x570   : > { %v14503_v1 = vpop.permute.xlu0 %9676 }
 0x571   : > { %19202 = vst [vmem:[#allocation13_spill] sm:$0xff] %v14503_v1  ;;  %v18091_v42 = vunpack.i.h.bf16 %v14503_v1  ;;  %v3660_v33 = vpop.permute.xlu1 %3659  ;;  %v18090_v13 = vunpack.i.l.bf16 %v14503_v1 }
 0x572   : > { %3389 = vrot.lane.b32.xlu0 %v19194_v27, %s9989_s29  ;;  %v4245_v48 = vsel %vm1825_vm6, %v4197_v39, %v3660_v33  ;;  %v19212_v39 = vld [vmem:[#allocation40_spill] sm:$0xff] }
 0x573   : > { %3963 = vrot.lane.b32.xlu1 %v19191_v8, %s9994_s17  ;;  %v4294_v41 = vsel %vm1874_vm7, %v4246_v16, %v18091_v42  ;;  %v4293_v7 = vsel %vm1874_vm7, %v4245_v48, %v18090_v13  ;;  %v19220_v42 = vld [vmem:[#allocation188_spill] sm:$0xff] }
 0x574   : > { %v14522_v26 = vpop.permute.xlu0 %9681 }
 0x575   : > { %19206 = vst [vmem:[#allocation18_spill] sm:$0xff] %v14522_v26  ;;  %v18089_v0 = vunpack.i.h.bf16 %v14522_v26  ;;  %v18088_v53 = vunpack.i.l.bf16 %v14522_v26  ;;  %v3802_v14 = vpop.permute.xlu1 %3801 }
 0x576   : > { %3393 = vrot.lane.b32.xlu0 %v19207_v60, %s9989_s29  ;;  %v4292_v2 = vsel %vm1874_vm7, %v4244_v35, %v3802_v14  ;;  %v19216_v35 = vld [vmem:[#allocation223_spill] sm:$0xff] }
 0x577   : > { %v4342_v8 = vsel %vm1923_vm8, %v4294_v41, %v18089_v0  ;;  %3967 = vrot.lane.b32.xlu1 %v19209_v55, %s9994_s17  ;;  %v4341_v34 = vsel %vm1923_vm8, %v4293_v7, %v18088_v53  ;;  %v19214_v41 = vld [vmem:[#allocation42_spill] sm:$0xff] }
 0x578   : > { %v4450_v28 = vcombine.low %v4342_v8, %v19208_v57  ;;  %v14543_v43 = vpop.permute.xlu0 %9691  ;;  %v4449_v44 = vcombine.high %v4341_v34, %v19196_v56 }
 0x579   : > { %v3940_v20 = vpop.permute.xlu1 %3939 }
 0x57a   : > { %3541 = vrot.lane.b32.xlu0 %v19188_v49, %s9990_s30  ;;  %v4340_v40 = vsel %vm1923_vm8, %v4292_v2, %v3940_v20  ;;  %v9161_v52 = vcombine.high %v19196_v56, %v4450_v28  ;;  %v9160_v61 = vcombine.low %v4449_v44, %v4342_v8  ;;  %v19215_v28 = vld [vmem:[#allocation61_spill] sm:$0xff]  ;;  %v19219_v44 = vld [vmem:[#allocation170_spill] sm:$0xff] }
 0x57b   : > { %v9158_v62 = vcombine.low %v4340_v40, %v4341_v34  ;;  %3391 = vrot.lane.b32.xlu1 %v19170_v36, %s9989_s29  ;;  %v19217_v34 = vld [vmem:[#allocation101_spill] sm:$0xff]  ;;  %v19222_v36 = vld [vmem:[#allocation198_spill] sm:$0xff] }
 0x57c   : > { %v14557_v17 = vpop.permute.xlu0 %3367  ;;  %v9740_v2 = vpack.i.bf16 %v19217_v34, %v19216_v35  ;;  %v19218_v20 = vld [vmem:[#allocation141_spill] sm:$0xff] }
 0x57d   : > { %v14559_v33 = vpop.permute.xlu1 %9686  ;;  %4837 = vmatmul.mubr.f32.gmra.mxu1 %v9158_v62 }
 0x57e   : > { %3689 = vrot.lane.b32.xlu0 %v19210_v54, %s9991_s10  ;;  %9203 = vmatprep.mubr.msk.f32.mxu1 %vm1629_vm2, %v9161_v52 }
 0x57f   : > { %3539 = vrot.lane.b32.xlu1 %v19209_v55, %s9990_s30  ;;  %v9688_v55 = vunpack.i.l.bf16 %v14559_v33 }
 0x580   : > { %v3370_v49 = vpop.permute.xlu0 %3369 }
 0x581   : > { %v3366_v59 = vpop.permute.xlu1 %3365  ;;  %4842 = vmatmul.mubr.f32.gmra.mxu1 %v9160_v61  ;;  %v4151_v62 = vsel %vm1727_vm4, %v19219_v44, %v9688_v55 }
 0x582   : > { %3693 = vrot.lane.b32.xlu0 %v19211_v6, %s9991_s10  ;;  %9204 = vmatprep.mubr.msk.f32.mxu1 %vm1629_vm2, %v19112_v58 }
 0x583   : > { %3543 = vrot.lane.b32.xlu1 %v19212_v39, %s9990_s30 }
 0x584   : > { %v3518_v16 = vpop.permute.xlu0 %3517 }
 0x585   : > { %v14572_v48 = vpop.permute.xlu1 %9696 }
 0x586   : > { %3835 = vrot.lane.b32.xlu0 %v19213_v24, %s9992_s15  ;;  %v9698_v61 = vunpack.i.l.bf16 %v14572_v48 }
 0x587   : > { %3691 = vrot.lane.b32.xlu1 %v19214_v41, %s9991_s10 }
 0x588   : > { %v3520_v14 = vpop.permute.xlu0 %3519 }
 0x589   : > { %v3516_v8 = vpop.permute.xlu1 %3515 }
 0x58a   : > { %3971 = vrot.lane.b32.xlu0 %v19212_v39, %s9994_s17  ;;  %v9693_v39 = vunpack.i.l.bf16 %v14543_v43 }
 0x58b   : > { %3833 = vrot.lane.b32.xlu1 %v19207_v60, %s9992_s15  ;;  %v9163_v60 = vcombine.low %v19114_v3, %v19106_v21 }
 0x58c   : > { %v3668_v58 = vpop.permute.xlu0 %3667  ;;  %v4199_v55 = vsel %vm1776_vm5, %v4151_v62, %v9693_v39  ;;  %v19223_v62 = vld [vmem:[#allocation28_spill] sm:$0xff]  ;;  %v19226_v39 = vld [vmem:[#allocation11_spill] sm:$0xff] }
 0x58d   : > { %v14582_v7 = vpop.permute.xlu1 %9701  ;;  %v4247_v56 = vsel %vm1825_vm6, %v4199_v55, %v9698_v61  ;;  %v19224_v61 = vld [vmem:[#allocation38_spill] sm:$0xff] }
 0x58e   : > { %3975 = vrot.lane.b32.xlu0 %v19215_v28, %s9994_s17  ;;  %v9703_v53 = vunpack.i.l.bf16 %v14582_v7 }
 0x58f   : > { %3837 = vrot.lane.b32.xlu1 %v19218_v20, %s9992_s15 }
 0x590   : > { %v3670_v40 = vpop.permute.xlu0 %3669 }
 0x591   : > { %v3666_v52 = vpop.permute.xlu1 %3665 }
 0x592   : > { %9741 = vrot.lane.b32.xlu0 %v9740_v2, %s9990_s30  ;;  %v19221_v2 = vld [vmem:[#allocation63_spill] sm:$0xff] }
 0x593   : > { %3973 = vrot.lane.b32.xlu1 %v19216_v35, %s9994_s17  ;;  %v9735_v57 = vpack.i.bf16 %v19221_v2, %v19213_v24  ;;  %v4295_v35 = vsel %vm1874_vm7, %v4247_v56, %v9703_v53  ;;  %v4060_v24 = vsel %vm1629_vm2, %v13013_v9, %v19222_v36  ;;  %v19225_v53 = vld [vmem:[#allocation163_spill] sm:$0xff]  ;;  %v4152_v36 = vsel %vm1727_vm4, %v14033_v50, %v3366_v59 }
 0x594   : > { %v3812_v0 = vpop.permute.xlu0 %3811  ;;  %v4059_v9 = vsel %vm1629_vm2, %v13063_v11, %v19225_v53  ;;  %v9559_v53 = vunpack.i.h.bf16 %v19189_v63 }
 0x595   : > { %v14599_v13 = vpop.permute.xlu1 %9706 }
 0x596   : > { %3399 = vrot.lane.b32.xlu0 %v19220_v42, %s9989_s29  ;;  %v9708_v44 = vunpack.i.l.bf16 %v14599_v13 }
 0x597   : > { %9736 = vrot.lane.b32.xlu1 %v9735_v57, %s9989_s29  ;;  %v4106_v57 = vsel %vm1678_vm3, %v4060_v24, %v19224_v61  ;;  %v4105_v24 = vsel %vm1678_vm3, %v4059_v9, %v19226_v39  ;;  %v19229_v61 = vld [vmem:[#allocation202_spill] sm:$0xff] }
 0x598   : > { %v3948_v26 = vpop.permute.xlu0 %3947  ;;  %v4343_v1 = vsel %vm1923_vm8, %v4295_v35, %v9708_v44  ;;  %v4154_v56 = vsel %vm1727_vm4, %v4106_v57, %v3370_v49  ;;  %v19227_v44 = vld [vmem:[#allocation185_spill] sm:$0xff]  ;;  %v19228_v35 = vld [vmem:[#allocation199_spill] sm:$0xff]  ;;  %v4153_v11 = vsel %vm1727_vm4, %v4105_v24, %v14557_v17  ;;  %v9589_v17 = vunpack.i.h.bf16 %v19190_v51 }
 0x599   : > { %v3810_v10 = vpop.permute.xlu1 %3809  ;;  %4847 = vmatmul.mubr.f32.gmra.mxu1 %v4343_v1  ;;  %v4202_v1 = vsel %vm1776_vm5, %v4154_v56, %v3520_v14  ;;  %v9745_v57 = vpack.i.bf16 %v19229_v61, %v19228_v35  ;;  %v4201_v14 = vsel %vm1776_vm5, %v4153_v11, %v3518_v16  ;;  %v19230_v16 = vld [vmem:[#allocation243_spill] sm:$0xff]  ;;  %v4061_v51 = vsel %vm1629_vm2, %v19104_v19, %v9559_v53 }
 0x59a   : > { %3401 = vrot.lane.b32.xlu0 %v19223_v62, %s9989_s29  ;;  %9205 = vmatprep.mubr.msk.f32.mxu1 %vm1629_vm2, %v9163_v60  ;;  %v4200_v60 = vsel %vm1776_vm5, %v4152_v36, %v3516_v8  ;;  %v4250_v49 = vsel %vm1825_vm6, %v4202_v1, %v3670_v40  ;;  %v4249_v9 = vsel %vm1825_vm6, %v4201_v14, %v3668_v58  ;;  %v9694_v19 = vunpack.i.h.bf16 %v14543_v43 }
 0x59b   : > { %3397 = vrot.lane.b32.xlu1 %v19218_v20, %s9989_s29  ;;  %v4248_v50 = vsel %vm1825_vm6, %v4200_v60, %v3666_v52  ;;  %v4297_v52 = vsel %vm1874_vm7, %v4249_v9, %v3812_v0  ;;  %v4107_v58 = vsel %vm1678_vm3, %v4061_v51, %v9589_v17 }
 0x59c   : > { %v3952_v3 = vpop.permute.xlu0 %3951  ;;  %v4296_v8 = vsel %vm1874_vm7, %v4248_v50, %v3810_v10  ;;  %v9689_v10 = vunpack.i.h.bf16 %v14559_v33  ;;  %v19232_v33 = vld [vmem:[#allocation96_spill] sm:$0xff]  ;;  %v9709_v50 = vunpack.i.h.bf16 %v14599_v13 }
 0x59d   : > { %v3814_v55 = vpop.permute.xlu1 %3813 }
 0x59e   : > { %3549 = vrot.lane.b32.xlu0 %v19227_v44, %s9990_s30  ;;  %v4298_v59 = vsel %vm1874_vm7, %v4250_v49, %v3814_v55  ;;  %v9750_v49 = vpack.i.bf16 %v19232_v33, %v19220_v42  ;;  %v4155_v55 = vsel %vm1727_vm4, %v4107_v58, %v9689_v10  ;;  %v19239_v58 = vld [vmem:[#allocation146_spill] sm:$0xff] }
 0x59f   : > { %v4346_v40 = vsel %vm1923_vm8, %v4298_v59, %v3952_v3  ;;  %9746 = vrot.lane.b32.xlu1 %v9745_v57, %s9991_s10  ;;  %v4344_v3 = vsel %vm1923_vm8, %v4296_v8, %v3948_v26  ;;  %v19231_v26 = vld [vmem:[#allocation249_spill] sm:$0xff]  ;;  %v19233_v8 = vld [vmem:[#allocation110_spill] sm:$0xff] }
 0x5a0   : > { %v3376_v56 = vpop.permute.xlu0 %3375  ;;  %v4456_v36 = vcombine.low %v4346_v40, %v19155_v45 }
 0x5a1   : > { %v3950_v1 = vpop.permute.xlu1 %3949 }
 0x5a2   : > { %3551 = vrot.lane.b32.xlu0 %v19230_v16, %s9990_s30  ;;  %v4345_v39 = vsel %vm1923_vm8, %v4297_v52, %v3950_v1  ;;  %v9165_v0 = vcombine.high %v19106_v21, %v4456_v36  ;;  %v9167_v36 = vcombine.low %v19158_v12, %v19165_v18  ;;  %v19235_v12 = vld [vmem:[#allocation250_spill] sm:$0xff] }
 0x5a3   : > { %v4455_v63 = vcombine.high %v4345_v39, %v19106_v21  ;;  %v9162_v24 = vcombine.low %v4344_v3, %v4345_v39  ;;  %3547 = vrot.lane.b32.xlu1 %v19215_v28, %s9990_s30  ;;  %v9699_v28 = vunpack.i.h.bf16 %v14572_v48  ;;  %v9704_v21 = vunpack.i.h.bf16 %v14582_v7  ;;  %v19234_v7 = vld [vmem:[#allocation154_spill] sm:$0xff]  ;;  %v19236_v3 = vld [vmem:[#allocation251_spill] sm:$0xff] }
 0x5a4   : > { %v3524_v45 = vpop.permute.xlu0 %3523  ;;  %v4203_v48 = vsel %vm1776_vm5, %v4155_v55, %v9694_v19  ;;  %v4063_v10 = vsel %vm1629_vm2, %v13052_v5, %v19235_v12  ;;  %v4062_v39 = vsel %vm1629_vm2, %v19105_v29, %v19236_v3  ;;  %v19240_v29 = vld [vmem:[#allocation97_spill] sm:$0xff] }
 0x5a5   : > { %v3374_v60 = vpop.permute.xlu1 %3373  ;;  %4852 = vmatmul.mubr.f32.gmra.mxu1 %v9162_v24  ;;  %v9164_v11 = vcombine.low %v4455_v63, %v4346_v40  ;;  %v4251_v43 = vsel %vm1825_vm6, %v4203_v48, %v9699_v28  ;;  %v19237_v63 = vld [vmem:[#allocation119_spill] sm:$0xff]  ;;  %v19238_v24 = vld [vmem:[#allocation117_spill] sm:$0xff] }
 0x5a6   : > { %3699 = vrot.lane.b32.xlu0 %v19231_v26, %s9991_s10  ;;  %9206 = vmatprep.mubr.msk.f32.mxu1 %vm1629_vm2, %v9165_v0  ;;  %v4299_v13 = vsel %vm1874_vm7, %v4251_v43, %v9704_v21  ;;  %v4108_v51 = vsel %vm1678_vm3, %v4062_v39, %v19238_v24  ;;  %v19241_v21 = vld [vmem:[#allocation84_spill] sm:$0xff] }
 0x5a7   : > { %9751 = vrot.lane.b32.xlu1 %v9750_v49, %s9992_s15  ;;  %v4347_v9 = vsel %vm1923_vm8, %v4299_v13, %v9709_v50  ;;  %v4156_v5 = vsel %vm1727_vm4, %v4108_v51, %v3374_v60  ;;  %v19242_v50 = vld [vmem:[#allocation207_spill] sm:$0xff] }
 0x5a8   : > { %v3528_v57 = vpop.permute.xlu0 %3527  ;;  %v4204_v43 = vsel %vm1776_vm5, %v4156_v5, %v3524_v45 }
 0x5a9   : > { %v3378_v59 = vpop.permute.xlu1 %3377  ;;  %v14674_v14 = vpop.f32.mrf.mxu1  ;;  %4857 = vmatmul.mubr.f32.gmra.mxu1 %v9164_v11  ;;  %v4064_v11 = vsel %vm1629_vm2, %v19135_v15, %v19241_v21 }
 0x5aa   : > { %3701 = vrot.lane.b32.xlu0 %v19233_v8, %s9991_s10  ;;  %9207 = vmatprep.mubr.msk.f32.mxu1 %vm1629_vm2, %v19149_v4  ;;  %v4110_v48 = vsel %vm1678_vm3, %v4064_v11, %v19242_v50 }
 0x5ab   : > { %3697 = vrot.lane.b32.xlu1 %v19234_v7, %s9991_s10  ;;  %v4760_v40 = vpop.f32.mrf.mxu1  ;;  %v4158_v60 = vsel %vm1727_vm4, %v4110_v48, %v3378_v59  ;;  %v19247_v48 = vld [vmem:[#allocation165_spill] sm:$0xff] }
 0x5ac   : > { %v3676_v53 = vpop.permute.xlu0 %3675  ;;  %v4206_v45 = vsel %vm1776_vm5, %v4158_v60, %v3528_v57 }
 0x5ad   : > { %v3526_v17 = vpop.permute.xlu1 %3525  ;;  %4862 = vmatmul.mubr.f32.gmra.mxu1 %v4347_v9 }
 0x5ae   : > { %3843 = vrot.lane.b32.xlu0 %v19221_v2, %s9992_s15  ;;  %9208 = vmatprep.mubr.msk.f32.mxu1 %vm1629_vm2, %v9167_v36 }
 0x5af   : > { %3977 = vrot.lane.b32.xlu1 %v19227_v44, %s9994_s17  ;;  %v4109_v44 = vsel %vm1678_vm3, %v4063_v10, %v19237_v63  ;;  %v19243_v63 = vld [vmem:[#allocation147_spill] sm:$0xff] }
 0x5b0   : > { %v3818_v4 = vpop.permute.xlu0 %3817  ;;  %v4157_v49 = vsel %vm1727_vm4, %v4109_v44, %v3376_v56  ;;  %v14749_v44 = vrot.slane %v19243_v63, 2 }
 0x5b1   : > { %v3674_v52 = vpop.permute.xlu1 %3673  ;;  %v4205_v55 = vsel %vm1776_vm5, %v4157_v49, %v3526_v17 }
 0x5b2   : > { %3979 = vrot.lane.b32.xlu0 %v19230_v16, %s9994_s17  ;;  %v4252_v13 = vsel %vm1825_vm6, %v4204_v43, %v3674_v52  ;;  %v4253_v9 = vsel %vm1825_vm6, %v4205_v55, %v3676_v53  ;;  %v9593_v43 = vunpack.i.l.bf16 %v19247_v48 }
 0x5b3   : > { %3841 = vrot.lane.b32.xlu1 %v19223_v62, %s9992_s15  ;;  %v4300_v12 = vsel %vm1874_vm7, %v4252_v13, %v3818_v4  ;;  %v3612_v4 = vrot.slane %v19232_v33, 2 }
 0x5b4   : > { %v3822_v1 = vpop.permute.xlu0 %3821 }
 0x5b5   : > { %v3678_v0 = vpop.permute.xlu1 %3677  ;;  %v14707_v16 = vpop.f32.mrf.mxu1  ;;  %v14763_v55 = vsel %vm660_vm1, %v3612_v4, %v14749_v44 }
 0x5b6   : > { %3983 = vrot.lane.b32.xlu0 %v19239_v58, %s9994_s17  ;;  %v4254_v59 = vsel %vm1825_vm6, %v4206_v45, %v3678_v0  ;;  %v19244_v0 = vld [vmem:[#allocation34_spill] sm:$0xff] }
 0x5b7   : > { %3845 = vrot.lane.b32.xlu1 %v19240_v29, %s9992_s15  ;;  %v4765_v28 = vpop.f32.mrf.mxu1  ;;  %v4302_v24 = vsel %vm1874_vm7, %v4254_v59, %v3822_v1 }
 0x5b8   : > { %v3958_v19 = vpop.permute.xlu0 %3957 }
 0x5b9   : > { %v3820_v40 = vpop.permute.xlu1 %3819  ;;  %v14722_v56 = vpop.f32.mrf.mxu1 }
 0x5ba   : > { %3407 = vrot.lane.b32.xlu0 %v19232_v33, %s9989_s29  ;;  %v4301_v36 = vsel %vm1874_vm7, %v4253_v9, %v3820_v40  ;;  %v19248_v40 = vld [vmem:[#allocation43_spill] sm:$0xff] }
 0x5bb   : > { %3981 = vrot.lane.b32.xlu1 %v19217_v34, %s9994_s17  ;;  %v4770_v15 = vpop.f32.mrf.mxu1  ;;  %v4349_v53 = vsel %vm1923_vm8, %v4301_v36, %v3958_v19 }
 0x5bc   : > { %v14732_v17 = vpop.permute.xlu0 %9711  ;;  %v4461_v33 = vcombine.high %v4349_v53, %v19165_v18 }
 0x5bd   : > { %v3956_v10 = vpop.permute.xlu1 %3955  ;;  %v14736_v3 = vpop.f32.mrf.mxu1  ;;  %v9713_v13 = vunpack.i.l.bf16 %v14732_v17 }
 0x5be   : > { %3555 = vrot.lane.b32.xlu0 %v19239_v58, %s9990_s30  ;;  %v4348_v52 = vsel %vm1923_vm8, %v4300_v12, %v3956_v10 }
 0x5bf   : > { %v9166_v34 = vcombine.low %v4348_v52, %v4349_v53  ;;  %3405 = vrot.lane.b32.xlu1 %v19240_v29, %s9989_s29  ;;  %v4775_v39 = vpop.f32.mrf.mxu1 }
 0x5c0   : > { %v14745_v57 = vpop.permute.xlu0 %3381 }
 0x5c1   : > { %v3960_v51 = vpop.permute.xlu1 %3959  ;;  %4867 = vmatmul.mubr.f32.gmra.mxu1 %v9166_v34 }
 0x5c2   : > { %3559 = vrot.lane.b32.xlu0 %v19244_v0, %s9990_s30  ;;  %v4350_v58 = vsel %vm1923_vm8, %v4302_v24, %v3960_v51 }
 0x5c3   : > { %v4462_v49 = vcombine.low %v4350_v58, %v19185_v22  ;;  %3409 = vrot.lane.b32.xlu1 %v19243_v63, %s9989_s29  ;;  %v9168_v19 = vcombine.low %v4461_v33, %v4350_v58  ;;  %v19245_v22 = vld [vmem:[#allocation213_spill] sm:$0xff] }
 0x5c4   : > { %v14758_v5 = vpop.permute.xlu0 %9721 }
 0x5c5   : > { %v9169_v1 = vcombine.high %v19165_v18, %v4462_v49  ;;  %v14766_v28 = vpop.permute.xlu1 %9716  ;;  %v19246_v18 = vld [vmem:[#allocation70_spill] sm:$0xff]  ;;  %v9723_v53 = vunpack.i.l.bf16 %v14758_v5 }
 0x5c6   : > { %3707 = vrot.lane.b32.xlu0 %v14763_v55, %s9991_s10  ;;  %v9563_v50 = vunpack.i.l.bf16 %v19246_v18  ;;  %v9718_v9 = vunpack.i.l.bf16 %v14766_v28 }
 0x5c7   : > { %3557 = vrot.lane.b32.xlu1 %v19245_v22, %s9990_s30  ;;  %9209 = vmatprep.mubr.msk.f32.mxu1 %vm1629_vm2, %v9169_v1  ;;  %v9171_v1 = vcombine.low %v19195_v30, %v19166_v25 }
 0x5c8   : > { %v3532_v21 = vpop.permute.xlu0 %3531  ;;  %4872 = vmatmul.mubr.f32.gmra.mxu1 %v9168_v19 }
 0x5c9   : > { %v3384_v11 = vpop.permute.xlu1 %3383  ;;  %9210 = vmatprep.mubr.msk.f32.mxu1 %vm1629_vm2, %v19193_v47  ;;  %v4065_v47 = vsel %vm1629_vm2, %v19113_v38, %v9563_v50 }
 0x5ca   : > { %3709 = vrot.lane.b32.xlu0 %v14749_v44, %s9991_s10  ;;  %v4111_v45 = vsel %vm1678_vm3, %v4065_v47, %v9593_v43  ;;  %v19249_v43 = vld [vmem:[#allocation66_spill] sm:$0xff] }
 0x5cb   : > { %3705 = vrot.lane.b32.xlu1 %v19248_v40, %s9991_s10  ;;  %v4159_v59 = vsel %vm1727_vm4, %v4111_v45, %v9713_v13  ;;  %v4067_v13 = vsel %vm1629_vm2, %v19160_v37, %v19249_v43 }
 0x5cc   : > { %v14781_v60 = vpop.permute.xlu0 %9726  ;;  %v4207_v52 = vsel %vm1776_vm5, %v4159_v59, %v9718_v9  ;;  %v19250_v9 = vld [vmem:[#allocation21_spill] sm:$0xff] }
 0x5cd   : > { %v3386_v36 = vpop.permute.xlu1 %3385  ;;  %v14785_v15 = vpop.f32.mrf.mxu1  ;;  %v9728_v34 = vunpack.i.l.bf16 %v14781_v60  ;;  %v4113_v47 = vsel %vm1678_vm3, %v4067_v13, %v19250_v9 }
 0x5ce   : > { %3987 = vrot.lane.b32.xlu0 %v19244_v0, %s9994_s17  ;;  %v4255_v0 = vsel %vm1825_vm6, %v4207_v52, %v9723_v53  ;;  %v4161_v30 = vsel %vm1727_vm4, %v4113_v47, %v3384_v11  ;;  %v19252_v53 = vld [vmem:[#allocation208_spill] sm:$0xff] }
 0x5cf   : > { %3985 = vrot.lane.b32.xlu1 %v19245_v22, %s9994_s17  ;;  %v4780_v12 = vpop.f32.mrf.mxu1  ;;  %v4303_v49 = vsel %vm1874_vm7, %v4255_v0, %v9728_v34  ;;  %v19253_v0 = vld [vmem:[#allocation115_spill] sm:$0xff] }
 0x5d0   : > { %v3682_v10 = vpop.permute.xlu0 %3681  ;;  %v19251_v12 = vld [vmem:[#allocation39_spill] sm:$0xff]  ;;  %v4068_v37 = vsel %vm1629_vm2, %v19157_v31, %v19253_v0 }
 0x5d1   : > { %v3534_v39 = vpop.permute.xlu1 %3533  ;;  %v14798_v4 = vpop.f32.mrf.mxu1  ;;  %v4066_v59 = vsel %vm1629_vm2, %v19143_v23, %v19251_v12  ;;  %v19254_v23 = vld [vmem:[#allocation161_spill] sm:$0xff] }
 0x5d2   : > { %v4112_v52 = vsel %vm1678_vm3, %v4066_v59, %v19252_v53  ;;  %v4209_v34 = vsel %vm1776_vm5, %v4161_v30, %v3534_v39  ;;  %v4114_v11 = vsel %vm1678_vm3, %v4068_v37, %v19254_v23  ;;  %v9564_v30 = vunpack.i.h.bf16 %v19246_v18 }
 0x5d3   : > { %3849 = vrot.lane.b32.xlu1 %v19243_v63, %s9992_s15  ;;  %v4785_v38 = vpop.f32.mrf.mxu1  ;;  %v4162_v9 = vsel %vm1727_vm4, %v4114_v11, %v3386_v36  ;;  %v9714_v36 = vunpack.i.h.bf16 %v14732_v17 }
 0x5d4   : > { %v14802_v24 = vpop.permute.xlu0 %9731 }
 0x5d5   : > { %v9733_v51 = vunpack.i.l.bf16 %v14802_v24  ;;  %v3536_v58 = vpop.permute.xlu1 %3535 }
 0x5d6   : > { %v4210_v31 = vsel %vm1776_vm5, %v4162_v9, %v3536_v58 }
 0x5d7   : > { %v4351_v33 = vsel %vm1923_vm8, %v4303_v49, %v9733_v51  ;;  %v4160_v49 = vsel %vm1727_vm4, %v4112_v52, %v14745_v57 }
 0x5d8   : > { %v3826_v19 = vpop.permute.xlu0 %3825  ;;  %4877 = vmatmul.mubr.f32.gmra.mxu1 %v4351_v33 }
 0x5d9   : > { %9211 = vmatprep.mubr.msk.f32.mxu1 %vm1629_vm2, %v9171_v1  ;;  %v3684_v63 = vpop.permute.xlu1 %3683  ;;  %v4208_v1 = vsel %vm1776_vm5, %v4160_v49, %v3532_v21 }
 0x5da   : > { %v4257_v33 = vsel %vm1825_vm6, %v4209_v34, %v3684_v63  ;;  %v4256_v47 = vsel %vm1825_vm6, %v4208_v1, %v3682_v10  ;;  %v9594_v34 = vunpack.i.h.bf16 %v19247_v48 }
 0x5db   : > { %v4304_v57 = vsel %vm1874_vm7, %v4256_v47, %v3826_v19  ;;  %v9719_v19 = vunpack.i.h.bf16 %v14766_v28 }
 0x5dc   : > { %v3830_v22 = vpop.permute.xlu0 %3829 }
 0x5dd   : > { %v3686_v50 = vpop.permute.xlu1 %3685 }
 0x5de   : > { %v4258_v63 = vsel %vm1825_vm6, %v4210_v31, %v3686_v50 }
 0x5df   : > { %v4306_v10 = vsel %vm1874_vm7, %v4258_v63, %v3830_v22  ;;  %v9724_v22 = vunpack.i.h.bf16 %v14758_v5 }
 0x5e0   : > { %v3966_v45 = vpop.permute.xlu0 %3965 }
 0x5e1   : > { %v3828_v38 = vpop.permute.xlu1 %3827  ;;  %v14823_v51 = vpop.f32.mrf.mxu1 }
 0x5e2   : > { %v4305_v43 = vsel %vm1874_vm7, %v4257_v33, %v3828_v38 }
 0x5e3   : > { %v4790_v39 = vpop.f32.mrf.mxu1  ;;  %v4353_v59 = vsel %vm1923_vm8, %v4305_v43, %v3966_v45  ;;  %v4069_v45 = vsel %vm1629_vm2, %v19169_v46, %v9564_v30  ;;  %v9729_v46 = vunpack.i.h.bf16 %v14781_v60 }
 0x5e4   : > { %v14835_v13 = vpop.permute.xlu0 %3389  ;;  %v4115_v0 = vsel %vm1678_vm3, %v4069_v45, %v9594_v34  ;;  %v4467_v48 = vcombine.high %v4353_v59, %v19166_v25 }
 0x5e5   : > { %v3964_v12 = vpop.permute.xlu1 %3963  ;;  %v4163_v17 = vsel %vm1727_vm4, %v4115_v0, %v9714_v36  ;;  %v19257_v36 = vld [vmem:[#allocation46_spill] sm:$0xff] }
 0x5e6   : > { %v4352_v21 = vsel %vm1923_vm8, %v4304_v57, %v3964_v12  ;;  %v4211_v33 = vsel %vm1776_vm5, %v4163_v17, %v9719_v19 }
 0x5e7   : > { %v9170_v53 = vcombine.low %v4352_v21, %v4353_v59  ;;  %v19255_v59 = vld [vmem:[#allocation79_spill] sm:$0xff] }
 0x5e8   : > { %v3394_v52 = vpop.permute.xlu0 %3393  ;;  %v4072_v21 = vsel %vm1629_vm2, %v19194_v27, %v19255_v59 }
 0x5e9   : > { %v3968_v58 = vpop.permute.xlu1 %3967  ;;  %4882 = vmatmul.mubr.f32.gmra.mxu1 %v9170_v53  ;;  %v19256_v53 = vld [vmem:[#allocation113_spill] sm:$0xff] }
 0x5ea   : > { %v4354_v50 = vsel %vm1923_vm8, %v4306_v10, %v3968_v58  ;;  %v4071_v34 = vsel %vm1629_vm2, %v19161_v32, %v19256_v53  ;;  %v19259_v58 = vld [vmem:[#allocation256_spill] sm:$0xff] }
 0x5eb   : > { %v4468_v38 = vcombine.low %v4354_v50, %v19210_v54  ;;  %v9172_v23 = vcombine.low %v4467_v48, %v4354_v50  ;;  %v9734_v54 = vunpack.i.h.bf16 %v14802_v24  ;;  %v9175_v24 = vcombine.low %v19211_v6, %v19228_v35  ;;  %v19258_v6 = vld [vmem:[#allocation54_spill] sm:$0xff]  ;;  %v19260_v50 = vld [vmem:[#allocation120_spill] sm:$0xff] }
 0x5ec   : > { %v3542_v18 = vpop.permute.xlu0 %3541  ;;  %v4070_v10 = vsel %vm1629_vm2, %v19258_v6, %v19257_v36  ;;  %v4118_v19 = vsel %vm1678_vm3, %v4072_v21, %v19259_v58 }
 0x5ed   : > { %v9173_v37 = vcombine.high %v19166_v25, %v4468_v38  ;;  %v3392_v49 = vpop.permute.xlu1 %3391  ;;  %v14858_v28 = vpop.f32.mrf.mxu1  ;;  %v4259_v25 = vsel %vm1825_vm6, %v4211_v33, %v9724_v22  ;;  %v4116_v45 = vsel %vm1678_vm3, %v4070_v10, %v19260_v50  ;;  %v19261_v38 = vld [vmem:[#allocation271_spill] sm:$0xff]  ;;  %v4166_v27 = vsel %vm1727_vm4, %v4118_v19, %v3394_v52  ;;  %v19263_v50 = vld [vmem:[#allocation116_spill] sm:$0xff] }
 0x5ee   : > { %v4307_v5 = vsel %vm1874_vm7, %v4259_v25, %v9729_v46  ;;  %v4117_v0 = vsel %vm1678_vm3, %v4071_v34, %v19261_v38  ;;  %v4164_v17 = vsel %vm1727_vm4, %v4116_v45, %v14835_v13  ;;  %v9568_v45 = vunpack.i.l.bf16 %v19263_v50  ;;  %v19264_v38 = vld [vmem:[#allocation272_spill] sm:$0xff] }
 0x5ef   : > { %v4795_v11 = vpop.f32.mrf.mxu1  ;;  %9212 = vmatprep.mubr.msk.f32.mxu1 %vm1629_vm2, %v9173_v37  ;;  %v4355_v60 = vsel %vm1923_vm8, %v4307_v5, %v9734_v54  ;;  %v4165_v32 = vsel %vm1727_vm4, %v4117_v0, %v3392_v49  ;;  %v9598_v0 = vunpack.i.l.bf16 %v19264_v38 }
 0x5f0   : > { %v3690_v1 = vpop.permute.xlu0 %3689  ;;  %4887 = vmatmul.mubr.f32.gmra.mxu1 %v9172_v23  ;;  %v4213_v46 = vsel %vm1776_vm5, %v4165_v32, %v3542_v18 }
 0x5f1   : > { %v3540_v43 = vpop.permute.xlu1 %3539  ;;  %v14864_v39 = vpop.f32.mrf.mxu1  ;;  %9213 = vmatprep.mubr.msk.f32.mxu1 %vm1629_vm2, %v19214_v41 }
 0x5f2   : > { %v4212_v37 = vsel %vm1776_vm5, %v4164_v17, %v3540_v43 }
 0x5f3   : > { %v4800_v9 = vpop.f32.mrf.mxu1  ;;  %v4260_v52 = vsel %vm1825_vm6, %v4212_v37, %v3690_v1 }
 0x5f4   : > { %v3694_v47 = vpop.permute.xlu0 %3693  ;;  %4892 = vmatmul.mubr.f32.gmra.mxu1 %v4355_v60 }
 0x5f5   : > { %v3544_v31 = vpop.permute.xlu1 %3543  ;;  %v14873_v57 = vpop.f32.mrf.mxu1  ;;  %9214 = vmatprep.mubr.msk.f32.mxu1 %vm1629_vm2, %v9175_v24 }
 0x5f6   : > { %v4214_v22 = vsel %vm1776_vm5, %v4166_v27, %v3544_v31 }
 0x5f7   : > { %v4805_v12 = vpop.f32.mrf.mxu1  ;;  %v4262_v23 = vsel %vm1825_vm6, %v4214_v22, %v3694_v47  ;;  %v19265_v22 = vld [vmem:[#allocation144_spill] sm:$0xff] }
 0x5f8   : > { %v3836_v63 = vpop.permute.xlu0 %3835 }
 0x5f9   : > { %v3692_v41 = vpop.permute.xlu1 %3691 }
 0x5fa   : > { %v4261_v11 = vsel %vm1825_vm6, %v4213_v46, %v3692_v41 }
 0x5fb   : > { %v4309_v9 = vsel %vm1874_vm7, %v4261_v11, %v3836_v63 }
 0x5fc   : > { %v3972_v30 = vpop.permute.xlu0 %3971 }
 0x5fd   : > { %v3834_v48 = vpop.permute.xlu1 %3833 }
 0x5fe   : > { %v4308_v13 = vsel %vm1874_vm7, %v4260_v52, %v3834_v48 }
 0x5ff   : > { %v4356_v47 = vsel %vm1923_vm8, %v4308_v13, %v3972_v30  ;;  %v5023_v30 = vld [vmem:[%s17638_s5 + $0x8] sm:$0xff] }
 0x600   : > { %v3976_v33 = vpop.permute.xlu0 %3975  ;;  %9263 = vmatpush3.msra.mxu0 %v5023_v30  ;;  %v19268_v30 = vld [vmem:[#allocation187_spill] sm:$0xff] }
 0x601   : > { %v3838_v54 = vpop.permute.xlu1 %3837 }
 0x602   : > { %v4310_v25 = vsel %vm1874_vm7, %v4262_v23, %v3838_v54 }
 0x603   : > { %v4358_v49 = vsel %vm1923_vm8, %v4310_v25, %v3976_v33 }
 0x604   : > { %v14904_v5 = vpop.permute.xlu0 %9741  ;;  %v4474_v43 = vcombine.low %v4358_v49, %v19234_v7 }
 0x605   : > { %v3974_v18 = vpop.permute.xlu1 %3973  ;;  %v14908_v60 = vpop.f32.mrf.mxu1  ;;  %v9743_v11 = vunpack.i.l.bf16 %v14904_v5 }
 0x606   : > { %v4357_v24 = vsel %vm1923_vm8, %v4309_v9, %v3974_v18  ;;  %v9177_v59 = vcombine.high %v19228_v35, %v4474_v43 }
 0x607   : > { %v4473_v1 = vcombine.high %v4357_v24, %v19228_v35  ;;  %v9174_v31 = vcombine.low %v4356_v47, %v4357_v24  ;;  %v4810_v12 = vpop.f32.mrf.mxu1  ;;  %v19262_v35 = vmov 0.0   ;;  %v9179_v24 = vcombine.low %v19233_v8, %v19229_v61 }
 0x608   : > { %v3400_v41 = vpop.permute.xlu0 %3399  ;;  %9264 = vmatprep.subr.mxu0 %v19262_v35  ;;  %9266 = vmatprep.mubr.msk.f32.mxu0 %vm9995_vm11, %v19262_v35 }
 0x609   : > { %v14914_v21 = vpop.permute.xlu1 %9736  ;;  %v14916_v53 = vpop.f32.mrf.mxu1  ;;  %4897 = vmatmul.mubr.f32.gmra.mxu1 %v9174_v31  ;;  %v9176_v34 = vcombine.low %v4473_v1, %v4358_v49  ;;  %v19266_v31 = vld [vmem:[#allocation49_spill] sm:$0xff] }
 0x60a   : > { %9215 = vmatprep.mubr.msk.f32.mxu1 %vm1629_vm2, %v9177_v59  ;;  %v9738_v48 = vunpack.i.l.bf16 %v14914_v21  ;;  %v4076_v12 = vsel %vm1629_vm2, %v19218_v20, %v19266_v31 }
 0x60b   : > { %v4815_v7 = vpop.f32.mrf.mxu1 }
 0x60c   : > { %v3402_v63 = vpop.permute.xlu0 %3401 }
 0x60d   : > { %v3398_v36 = vpop.permute.xlu1 %3397  ;;  %4902 = vmatmul.mubr.f32.gmra.mxu1 %v9176_v34  ;;  %v19267_v34 = vld [vmem:[#allocation157_spill] sm:$0xff] }
 0x60e   : > { %9216 = vmatprep.mubr.msk.f32.mxu1 %vm1629_vm2, %v19231_v26  ;;  %v4073_v26 = vsel %vm1629_vm2, %v19265_v22, %v9568_v45  ;;  %v4074_v45 = vsel %vm1629_vm2, %v19268_v30, %v19267_v34  ;;  %v19270_v22 = vld [vmem:[#allocation257_spill] sm:$0xff] }
 0x60f   : > { %v4119_v37 = vsel %vm1678_vm3, %v4073_v26, %v9598_v0  ;;  %v19269_v0 = vld [vmem:[#allocation166_spill] sm:$0xff]  ;;  %v4120_v8 = vsel %vm1678_vm3, %v4074_v45, %v19270_v22 }
 0x610   : > { %v3550_v6 = vpop.permute.xlu0 %3549  ;;  %v4167_v23 = vsel %vm1727_vm4, %v4119_v37, %v9738_v48  ;;  %v4122_v48 = vsel %vm1678_vm3, %v4076_v12, %v19269_v0 }
 0x611   : > { %v14925_v10 = vpop.permute.xlu1 %9746  ;;  %v4215_v49 = vsel %vm1776_vm5, %v4167_v23, %v9743_v11  ;;  %v4170_v26 = vsel %vm1727_vm4, %v4122_v48, %v3402_v63  ;;  %v19271_v23 = vld [vmem:[#allocation158_spill] sm:$0xff]  ;;  %v4168_v11 = vsel %vm1727_vm4, %v4120_v8, %v3398_v36 }
 0x612   : > { %v9748_v54 = vunpack.i.l.bf16 %v14925_v10 }
 0x614   : > { %v3552_v58 = vpop.permute.xlu0 %3551  ;;  %v4263_v43 = vsel %vm1825_vm6, %v4215_v49, %v9748_v54  ;;  %v19272_v54 = vld [vmem:[#allocation65_spill] sm:$0xff] }
 0x615   : > { %v3548_v19 = vpop.permute.xlu1 %3547  ;;  %v4075_v20 = vsel %vm1629_vm2, %v19272_v54, %v19271_v23  ;;  %v19273_v49 = vld [vmem:[#allocation209_spill] sm:$0xff]  ;;  %v9569_v23 = vunpack.i.h.bf16 %v19263_v50 }
 0x618   : > { %v3700_v27 = vpop.permute.xlu0 %3699 }
 0x619   : > { %v14930_v17 = vpop.permute.xlu1 %9751  ;;  %v14932_v32 = vpop.f32.mrf.mxu1 }
 0x61a   : > { %v9753_v52 = vunpack.i.l.bf16 %v14930_v17 }
 0x61b   : > { %v4820_v33 = vpop.f32.mrf.mxu1 }
 0x61c   : > { %v3702_v46 = vpop.permute.xlu0 %3701  ;;  %v4311_v18 = vsel %vm1874_vm7, %v4263_v43, %v9753_v52  ;;  %v4218_v52 = vsel %vm1776_vm5, %v4170_v26, %v3552_v58  ;;  %v4121_v43 = vsel %vm1678_vm3, %v4075_v20, %v19273_v49  ;;  %v9599_v20 = vunpack.i.h.bf16 %v19264_v38 }
 0x61d   : > { %v3698_v25 = vpop.permute.xlu1 %3697  ;;  %v4169_v63 = vsel %vm1727_vm4, %v4121_v43, %v3400_v41  ;;  %v9739_v49 = vunpack.i.h.bf16 %v14914_v21 }
 0x61e   : > { %v4217_v36 = vsel %vm1776_vm5, %v4169_v63, %v3550_v6 }
 0x620   : > { %v3844_v13 = vpop.permute.xlu0 %3843 }
 0x621   : > { %v3978_v9 = vpop.permute.xlu1 %3977 }
 0x622   : > { %v4359_v47 = vsel %vm1923_vm8, %v4311_v18, %v3978_v9  ;;  %v4216_v9 = vsel %vm1776_vm5, %v4168_v11, %v3548_v19  ;;  %v4266_v18 = vsel %vm1825_vm6, %v4218_v52, %v3702_v46  ;;  %v4265_v19 = vsel %vm1825_vm6, %v4217_v36, %v3700_v27 }
 0x623   : > { %4907 = vmatmul.mubr.f32.gmra.mxu1 %v4359_v47  ;;  %v4264_v31 = vsel %vm1825_vm6, %v4216_v9, %v3698_v25  ;;  %v4313_v0 = vsel %vm1874_vm7, %v4265_v19, %v3844_v13  ;;  %v19276_v9 = vld [vmem:[#allocation204_spill] sm:$0xff]  ;;  %v9749_v36 = vunpack.i.h.bf16 %v14925_v10 }
 0x624   : > { %v3980_v1 = vpop.permute.xlu0 %3979  ;;  %9217 = vmatprep.mubr.msk.f32.mxu1 %vm1629_vm2, %v9179_v24  ;;  %v4079_v50 = vsel %vm1629_vm2, %v19221_v2, %v19276_v9 }
 0x625   : > { %v3842_v59 = vpop.permute.xlu1 %3841  ;;  %v14951_v7 = vpop.f32.mrf.mxu1 }
 0x626   : > { %v4312_v58 = vsel %vm1874_vm7, %v4264_v31, %v3842_v59 }
 0x627   : > { %v4825_v37 = vpop.f32.mrf.mxu1  ;;  %v4360_v25 = vsel %vm1923_vm8, %v4312_v58, %v3980_v1  ;;  %v19274_v1 = vld [vmem:[#allocation164_spill] sm:$0xff] }
 0x628   : > { %v3984_v33 = vpop.permute.xlu0 %3983  ;;  %v4080_v54 = vsel %vm1629_vm2, %v19240_v29, %v19274_v1  ;;  %v4077_v29 = vsel %vm1629_vm2, %v19220_v42, %v9569_v23  ;;  %v9744_v42 = vunpack.i.h.bf16 %v14904_v5  ;;  %v19283_v23 = vld [vmem:[#allocation18_spill] sm:$0xff] }
 0x629   : > { %v3846_v47 = vpop.permute.xlu1 %3845  ;;  %v14970_v24 = vpop.f32.mrf.mxu1  ;;  %v4123_v38 = vsel %vm1678_vm3, %v4077_v29, %v9599_v20  ;;  %v19284_v1 = vunpack.i.h.bf16 %v19283_v23 }
 0x62a   : > { %v4314_v12 = vsel %vm1874_vm7, %v4266_v18, %v3846_v47  ;;  %v19277_v47 = vld [vmem:[#allocation159_spill] sm:$0xff] }
 0x62b   : > { %v4362_v34 = vsel %vm1923_vm8, %v4314_v12, %v3984_v33  ;;  %v4830_v30 = vpop.f32.mrf.mxu1  ;;  %v4171_v12 = vsel %vm1727_vm4, %v4123_v38, %v9739_v49  ;;  %v19286_v49 = vld [vmem:[#allocation241_spill] sm:$0xff] }
 0x62c   : > { %v3408_v45 = vpop.permute.xlu0 %3407  ;;  %v4480_v46 = vcombine.low %v4362_v34, %v19248_v40 }
 0x62d   : > { %v3982_v48 = vpop.permute.xlu1 %3981  ;;  %v14981_v41 = vpop.f32.mrf.mxu1 }
 0x62e   : > { %v4361_v22 = vsel %vm1923_vm8, %v4313_v0, %v3982_v48  ;;  %v9181_v37 = vcombine.high %v19229_v61, %v4480_v46  ;;  %v19278_v46 = vld [vmem:[#allocation253_spill] sm:$0xff] }
 0x62f   : > { %v4479_v6 = vcombine.high %v4361_v22, %v19229_v61  ;;  %v9178_v59 = vcombine.low %v4360_v25, %v4361_v22  ;;  %v4835_v8 = vpop.f32.mrf.mxu1  ;;  %v19275_v61 = vld [vmem:[#allocation258_spill] sm:$0xff]  ;;  %v19279_v48 = vld [vmem:[#allocation13_spill] sm:$0xff] }
 0x630   : > { %v3556_v26 = vpop.permute.xlu0 %3555  ;;  %v4126_v11 = vsel %vm1678_vm3, %v4080_v54, %v19275_v61  ;;  %v19280_v25 = vunpack.i.h.bf16 %v19279_v48  ;;  %v19285_v61 = vld [vmem:[#allocation227_spill] sm:$0xff] }
 0x631   : > { %v3406_v33 = vpop.permute.xlu1 %3405  ;;  %4912 = vmatmul.mubr.f32.gmra.mxu1 %v9178_v59  ;;  %v9180_v27 = vcombine.low %v4479_v6, %v4362_v34  ;;  %v9754_v34 = vunpack.i.h.bf16 %v14930_v17  ;;  %v4219_v6 = vsel %vm1776_vm5, %v4171_v12, %v9744_v42  ;;  %v19281_v59 = vld [vmem:[#allocation47_spill] sm:$0xff] }
 0x632   : > { %9218 = vmatprep.mubr.msk.f32.mxu1 %vm1629_vm2, %v9181_v37  ;;  %v4267_v17 = vsel %vm1825_vm6, %v4219_v6, %v9749_v36  ;;  %v5108_v6 = vld [vmem:[%s17640_s7] sm:$0x1] }
 0x633   : > { %9270 = vmatpush3.msk.msra.mxu1 %vm2675_vm9, %v5108_v6 }
 0x634   : > { %v3560_v40 = vpop.permute.xlu0 %3559 }
 0x635   : > { %v3410_v13 = vpop.permute.xlu1 %3409  ;;  %4917 = vmatmul.mubr.f32.gmra.mxu1 %v9180_v27  ;;  %v19282_v27 = vunpack.i.l.bf16 %v19279_v48 }
 0x636   : > { %9219 = vmatprep.mubr.msk.f32.mxu1 %vm1629_vm2, %v14763_v55  ;;  %v4174_v43 = vsel %vm1727_vm4, %v4126_v11, %v3410_v13  ;;  %v4125_v55 = vsel %vm1678_vm3, %v4079_v50, %v19277_v47  ;;  %v9183_v11 = vcombine.low %v14749_v44, %v19285_v61 }
 0x637   : > { %v4173_v63 = vsel %vm1727_vm4, %v4125_v55, %v3408_v45  ;;  %v4222_v21 = vsel %vm1776_vm5, %v4174_v43, %v3560_v40  ;;  %v4078_v45 = vsel %vm1629_vm2, %v19223_v62, %v19278_v46  ;;  %v4315_v62 = vsel %vm1874_vm7, %v4267_v17, %v9754_v34 }
 0x638   : > { %v3708_v52 = vpop.permute.xlu0 %3707  ;;  %v4124_v5 = vsel %vm1678_vm3, %v4078_v45, %v19281_v59 }
 0x639   : > { %v3558_v18 = vpop.permute.xlu1 %3557  ;;  %v4172_v8 = vsel %vm1727_vm4, %v4124_v5, %v3406_v33 }
 0x63a   : > { %v4221_v2 = vsel %vm1776_vm5, %v4173_v63, %v3558_v18  ;;  %v4220_v33 = vsel %vm1776_vm5, %v4172_v8, %v3556_v26  ;;  %v19287_v18 = vunpack.i.l.bf16 %v19283_v23 }
 0x63b   : > { %v4269_v0 = vsel %vm1825_vm6, %v4221_v2, %v3708_v52 }
 0x63c   : > { %v3710_v31 = vpop.permute.xlu0 %3709  ;;  %v4317_v13 = vsel %vm1874_vm7, %v4269_v0, %v19282_v27 }
 0x63d   : > { %v4270_v58 = vsel %vm1825_vm6, %v4222_v21, %v3710_v31  ;;  %v3706_v30 = vpop.permute.xlu1 %3705  ;;  %v15015_v19 = vpop.f32.mrf.mxu1  ;;  %v4365_v29 = vsel %vm1923_vm8, %v4317_v13, %v19287_v18  ;;  %v5022_v21 = vld [vmem:[%s17638_s5] sm:$0xff] }
 0x63e   : > { %v4318_v10 = vsel %vm1874_vm7, %v4270_v58, %v19280_v25  ;;  %v4268_v9 = vsel %vm1825_vm6, %v4220_v33, %v3706_v30  ;;  %v4485_v63 = vcombine.high %v4365_v29, %v19285_v61  ;;  %9265 = vmatpush3.msra.mxu0 %v5022_v21 }
 0x63f   : > { %v4840_v22 = vpop.f32.mrf.mxu1  ;;  %v4366_v54 = vsel %vm1923_vm8, %v4318_v10, %v19284_v1 }
 0x640   : > { %v4486_v43 = vcombine.low %v4366_v54, %v19286_v49  ;;  %v3988_v47 = vpop.permute.xlu0 %3987  ;;  %v9184_v31 = vcombine.low %v4485_v63, %v4366_v54  ;;  %v15079_v54 = vld [vmem:[%s17637_s4] ss:$0 sm:$0xff] }
 0x641   : > { %v3986_v37 = vpop.permute.xlu1 %3985  ;;  %v15029_v40 = vpop.f32.mrf.mxu1  ;;  %v15097_v33 = vadd.f32 %v15079_v54, %v14736_v3  ;;  %v15113_v3 = vadd.f32 %v15079_v54, %v14798_v4  ;;  %v15131_v63 = vadd.f32 %v15079_v54, %v14864_v39 }
 0x642   : > { %v4363_v20 = vsel %vm1923_vm8, %v4315_v62, %v3986_v37  ;;  %v9185_v26 = vcombine.high %v19285_v61, %v4486_v43  ;;  %v15087_v61 = vadd.f32 %v15079_v54, %v14674_v14  ;;  %v15105_v14 = vadd.f32 %v15079_v54, %v14785_v15 }
 0x643   : > { %v4845_v52 = vpop.f32.mrf.mxu1  ;;  %4922 = vmatmul.mubr.f32.gmra.mxu1 %v4363_v20  ;;  %v15083_v20 = vadd.f32 %v15079_v54, %v14707_v16  ;;  %v4952_v39 = vsel %vm1629_vm2, %v15131_v63, 0.0 }
 0x644   : > { %9220 = vmatprep.mubr.msk.f32.mxu1 %vm1629_vm2, %v9183_v11  ;;  %v15091_v11 = vadd.f32 %v15079_v54, %v14722_v56  ;;  %v4937_v49 = vsel %vm1629_vm2, %v15087_v61, 0.0 }
 0x645   : > { %v3850_v50 = vpop.permute.xlu1 %3849  ;;  %v4938_v52 = vsel %vm1629_vm2, %v15083_v20, 0.0 }
 0x646   : > { %v4316_v55 = vsel %vm1874_vm7, %v4268_v9, %v3850_v50  ;;  %v4940_v16 = vsel %vm1629_vm2, %v15091_v11, 0.0  ;;  %v4939_v56 = vadd.f32 %v4938_v52, %v4937_v49  ;;  %v4942_v9 = vsel %vm1629_vm2, %v15097_v33, 0.0 }
 0x647   : > { %v4364_v44 = vsel %vm1923_vm8, %v4316_v55, %v3988_v47  ;;  %v15119_v47 = vadd.f32 %v15079_v54, %v14823_v51  ;;  %v4946_v55 = vsel %vm1629_vm2, %v15113_v3, 0.0  ;;  %v15188_v49 = vadd.f32 %v15079_v54, %v14951_v7 }
 0x648   : > { %v9182_v38 = vcombine.low %v4364_v44, %v4365_v29  ;;  %v4941_v18 = vadd.f32 %v4940_v16, %v4939_v56  ;;  %v4944_v29 = vsel %vm1629_vm2, %v15105_v14, 0.0  ;;  %v15125_v44 = vadd.f32 %v15079_v54, %v14858_v28 }
 0x649   : > { %v4948_v4 = vsel %vm1629_vm2, %v15119_v47, 0.0  ;;  %19288 = vst [vmem:[#allocation218_spill] sm:$0xff] %v15188_v49 }
 0x64a   : > { %4927 = vmatmul.mubr.f32.gmra.mxu1 %v9182_v38  ;;  %v4943_v15 = vadd.f32 %v4942_v9, %v4941_v18  ;;  %v4950_v28 = vsel %vm1629_vm2, %v15125_v44, 0.0  ;;  %v15200_v18 = vadd.f32 %v15079_v54, %v14970_v24 }
 0x64b   : > { %9221 = vmatprep.mubr.msk.f32.mxu1 %vm1629_vm2, %v9185_v26 }
 0x64c   : > { %v4945_v38 = vadd.f32 %v4944_v29, %v4943_v15  ;;  %19289 = vst [vmem:[#allocation262_spill] sm:$0xff] %v15200_v18 }
 0x64e   : > { %4932 = vmatmul.mubr.f32.gmra.mxu1 %v9184_v31  ;;  %v4947_v51 = vadd.f32 %v4946_v55, %v4945_v38  ;;  %v15138_v31 = vadd.f32 %v15079_v54, %v14873_v57  ;;  %v4962_v38 = vsel %vm1629_vm2, %v15188_v49, 0.0 }
 0x64f   : > { %9271 = vmatprep.mubr.msk.f32.mxu1 %vm9995_vm11, %v19262_v35 }
 0x659   : > { %v4848_v12 = vpop.f32.mrf.mxu1 }
 0x65a   : > { %v15143_v21 = vadd.f32 %v15079_v54, %v4848_v12  ;;  %v4954_v12 = vsel %vm1629_vm2, %v15138_v31, 0.0 }
 0x65b   : > { %v4850_v36 = vpop.f32.mrf.mxu1 }
 0x665   : > { %v4853_v2 = vpop.f32.mrf.mxu1 }
 0x666   : > { %v15134_v26 = vadd.f32 %v15079_v54, %v4853_v2  ;;  %v15152_v2 = vadd.f32 %v15079_v54, %v14908_v60 }
 0x667   : > { %v4855_v58 = vpop.f32.mrf.mxu1 }
 0x668   : > { %v4949_v58 = vadd.f32 %v4948_v4, %v4947_v51  ;;  %v4979_v57 = vsel %vm1629_vm2, %v15134_v26, 0.0  ;;  %v15212_v4 = vadd.f32 %v15079_v54, %v14981_v41 }
 0x669   : > { %v4858_v42 = vpop.f32.mrf.mxu1 }
 0x66a   : > { %v15146_v36 = vadd.f32 %v15079_v54, %v4858_v42  ;;  %v15163_v42 = vadd.f32 %v15079_v54, %v14916_v53  ;;  %19290 = vst [vmem:[#allocation167_spill] sm:$0xff] %v15212_v4 }
 0x66b   : > { %v4860_v34 = vpop.f32.mrf.mxu1 }
 0x66c   : > { %v4981_v60 = vsel %vm1629_vm2, %v15146_v36, 0.0  ;;  %v4958_v52 = vsel %vm1629_vm2, %v15163_v42, 0.0 }
 0x66d   : > { %v4863_v30 = vpop.f32.mrf.mxu1 }
 0x66e   : > { %v15157_v34 = vadd.f32 %v15079_v54, %v4863_v30 }
 0x66f   : > { %v4865_v46 = vpop.f32.mrf.mxu1 }
 0x670   : > { %v4951_v46 = vadd.f32 %v4950_v28, %v4949_v58  ;;  %v4983_v53 = vsel %vm1629_vm2, %v15157_v34, 0.0  ;;  %v4964_v58 = vsel %vm1629_vm2, %v15200_v18, 0.0 }
 0x672   : > { %v4953_v30 = vadd.f32 %v4952_v39, %v4951_v46  ;;  %v15224_v39 = vadd.f32 %v15079_v54, %v15015_v19 }
 0x674   : > { %19291 = vst [vmem:[#allocation168_spill] sm:$0xff] %v15224_v39 }
 0x681   : > { %v4868_v45 = vpop.f32.mrf.mxu1 }
 0x683   : > { %v4870_v0 = vpop.f32.mrf.mxu1 }
 0x684   : > { %v4978_v0 = vsel %vm1629_vm2, %v15143_v21, 0.0 }
 0x685   : > { %v4980_v6 = vadd.f32 %v4979_v57, %v4978_v0  ;;  %v15236_v0 = vadd.f32 %v15079_v54, %v15029_v40 }
 0x687   : > { %19292 = vst [vmem:[#allocation277_spill] sm:$0xff] %v15236_v0 }
 0x688   : > { %v15056_v48 = vpop.f32.mrf.mxu1 }
 0x68a   : > { %v4875_v25 = vpop.f32.mrf.mxu1 }
 0x68b   : > { %v15170_v25 = vadd.f32 %v15079_v54, %v4868_v45  ;;  %v4955_v45 = vadd.f32 %v4954_v12, %v4953_v30 }
 0x698   : > { %v15058_v10 = vpop.f32.mrf.mxu1 }
 0x699   : > { %v15194_v16 = vadd.f32 %v15079_v54, %v15058_v10 }
 0x69a   : > { %v4880_v22 = vpop.f32.mrf.mxu1 }
 0x69b   : > { %v4989_v24 = vsel %vm1629_vm2, %v15194_v16, 0.0 }
 0x6a9   : > { %v15066_v59 = vpop.f32.mrf.mxu1 }
 0x6aa   : > { %v15206_v29 = vadd.f32 %v15079_v54, %v15066_v59 }
 0x6ab   : > { %v4885_v5 = vpop.f32.mrf.mxu1 }
 0x6ac   : > { %v4956_v5 = vsel %vm1629_vm2, %v15152_v2, 0.0  ;;  %v4991_v41 = vsel %vm1629_vm2, %v15206_v29, 0.0 }
 0x6b0   : > { %v15068_v17 = vpop.f32.mrf.mxu1 }
 0x6b1   : > { %v15218_v51 = vadd.f32 %v15079_v54, %v15068_v17  ;;  %v4966_v17 = vsel %vm1629_vm2, %v15212_v4, 0.0 }
 0x6b2   : > { %v4890_v8 = vpop.f32.mrf.mxu1 }
 0x6b3   : > { %v15176_v8 = vadd.f32 %v15079_v54, %v14932_v32  ;;  %v4985_v32 = vsel %vm1629_vm2, %v15170_v25, 0.0  ;;  %v4993_v19 = vsel %vm1629_vm2, %v15218_v51, 0.0 }
 0x6b4   : > { %v15070_v37 = vpop.f32.mrf.mxu1 }
 0x6b5   : > { %v15230_v57 = vadd.f32 %v15079_v54, %v15070_v37  ;;  %v4968_v37 = vsel %vm1629_vm2, %v15224_v39, 0.0 }
 0x6b6   : > { %v4895_v62 = vpop.f32.mrf.mxu1 }
 0x6b7   : > { %v15182_v62 = vadd.f32 %v15079_v54, %v15056_v48  ;;  %v4957_v48 = vadd.f32 %v4956_v5, %v4955_v45  ;;  %v4995_v5 = vsel %vm1629_vm2, %v15230_v57, 0.0  ;;  %v4970_v45 = vsel %vm1629_vm2, %v15236_v0, 0.0 }
 0x6b9   : > { %v4987_v7 = vsel %vm1629_vm2, %v15182_v62, 0.0  ;;  %v4959_v10 = vadd.f32 %v4958_v52, %v4957_v48 }
 0x6c9   : > { %v15072_v27 = vpop.f32.mrf.mxu1 }
 0x6cb   : > { %v4900_v13 = vpop.f32.mrf.mxu1 }
 0x6cd   : > { %v15074_v23 = vpop.f32.mrf.mxu1 }
 0x6cf   : > { %v4905_v1 = vpop.f32.mrf.mxu1 }
 0x6d0   : > { %v4982_v1 = vadd.f32 %v4981_v60, %v4980_v6  ;;  %v15242_v60 = vadd.f32 %v15079_v54, %v15072_v27 }
 0x6d2   : > { %v4984_v9 = vadd.f32 %v4983_v53, %v4982_v1  ;;  %v15250_v53 = vadd.f32 %v15079_v54, %v15074_v23  ;;  %v4997_v27 = vsel %vm1629_vm2, %v15242_v60, 0.0 }
 0x6d4   : > { %v4986_v55 = vadd.f32 %v4985_v32, %v4984_v9  ;;  %v4999_v48 = vsel %vm1629_vm2, %v15250_v53, 0.0 }
 0x6d6   : > { %v4988_v59 = vadd.f32 %v4987_v7, %v4986_v55 }
 0x6d8   : > { %v4990_v12 = vadd.f32 %v4989_v24, %v4988_v59 }
 0x6da   : > { %v4992_v6 = vadd.f32 %v4991_v41, %v4990_v12 }
 0x6e3   : > { %v15107_v43 = vpop.f32.mrf.mxu1 }
 0x6e4   : > { %v15258_v1 = vadd.f32 %v15079_v54, %v15107_v43 }
 0x6e5   : > { %v4910_v50 = vpop.f32.mrf.mxu1 }
 0x6e6   : > { %v4960_v50 = vsel %vm1629_vm2, %v15176_v8, 0.0 }
 0x6e7   : > { %v4961_v28 = vadd.f32 %v4960_v50, %v4959_v10 }
 0x6e9   : > { %v4963_v46 = vadd.f32 %v4962_v38, %v4961_v28 }
 0x6eb   : > { %v4965_v30 = vadd.f32 %v4964_v58, %v4963_v46 }
 0x6ed   : > { %v4967_v40 = vadd.f32 %v4966_v17, %v4965_v30 }
 0x6ef   : > { %v4969_v52 = vadd.f32 %v4968_v37, %v4967_v40 }
 0x6f1   : > { %v4913_v22 = vpop.f32.mrf.mxu1  ;;  %v4971_v50 = vadd.f32 %v4970_v45, %v4969_v52 }
 0x6f2   : > { %v15263_v23 = vadd.f32 %v15079_v54, %v4913_v22 }
 0x6f3   : > { %v4915_v13 = vpop.f32.mrf.mxu1  ;;  %v4972_v28 = vrot.slane %v4971_v50, 4 }
 0x6f4   : > { %v4994_v13 = vadd.f32 %v4993_v19, %v4992_v6  ;;  %19293 = vst [vmem:[#allocation214_spill] sm:$0xff] %v15263_v23  ;;  %v5003_v38 = vsel %vm1629_vm2, %v15263_v23, 0.0 }
 0x6f5   : > { %v4918_v56 = vpop.f32.mrf.mxu1  ;;  %v4973_v12 = vadd.f32 %v4972_v28, %v4971_v50 }
 0x6f6   : > { %v4996_v32 = vadd.f32 %v4995_v5, %v4994_v13  ;;  %v15268_v10 = vadd.f32 %v15079_v54, %v4918_v56 }
 0x6f7   : > { %v4920_v15 = vpop.f32.mrf.mxu1  ;;  %v4974_v40 = vrot.slane %v4973_v12, 2 }
 0x6f8   : > { %v4998_v7 = vadd.f32 %v4997_v27, %v4996_v32  ;;  %v5001_v15 = vsel %vm1629_vm2, %v15258_v1, 0.0  ;;  %19294 = vst [vmem:[#allocation215_spill] sm:$0xff] %v15268_v10  ;;  %v5005_v59 = vsel %vm1629_vm2, %v15268_v10, 0.0 }
 0x6f9   : > { %v4975_v32 = vadd.f32 %v4974_v40, %v4973_v12 }
 0x6fa   : > { %v5000_v43 = vadd.f32 %v4999_v48, %v4998_v7 }
 0x6fb   : > { %v4976_v50 = vrot.slane %v4975_v32, 1 }
 0x6fc   : > { %v5002_v22 = vadd.f32 %v5001_v15, %v5000_v43 }
 0x6fe   : > { %v5004_v58 = vadd.f32 %v5003_v38, %v5002_v22 }
 0x700   : > { %v5006_v17 = vadd.f32 %v5005_v59, %v5004_v58  ;;  %v9222_v59 = vld [vmem:[#allocation2] ss:$0 sm:$0xff] }
 0x703   : > { %v4923_v9 = vpop.f32.mrf.mxu1 }
 0x704   : > { %v15273_v24 = vadd.f32 %v15079_v54, %v4923_v9 }
 0x705   : > { %v4925_v55 = vpop.f32.mrf.mxu1 }
 0x706   : > { %19295 = vst [vmem:[#allocation259_spill] sm:$0xff] %v15273_v24  ;;  %v5007_v46 = vsel %vm1629_vm2, %v15273_v24, 0.0  ;;  %v4977_v55 = vadd.f32 %v4976_v50, %v4975_v32  ;;  %v9877_v32 = vld [vmem:[%s10107_s26 + $0x10] sm:$0xff] }
 0x707   : > { %v5008_v6 = vadd.f32 %v5007_v46, %v5006_v17  ;;  %v9224_v17 = vld [vmem:[%s17641_s8] ss:$0 sm:$0xff] }
 0x708   : > { %v5020_v28 = vmul.f32 0.0069444445, %v4977_v55 }
 0x70a   : > { %v4928_v41 = vpop.f32.mrf.mxu1 }
 0x70b   : > { %v15280_v56 = vadd.f32 %v15079_v54, %v4928_v41 }
 0x70c   : > { %v4930_v19 = vpop.f32.mrf.mxu1 }
 0x70d   : > { %19296 = vst [vmem:[#allocation260_spill] sm:$0xff] %v15280_v56  ;;  %v5009_v30 = vsel %vm1629_vm2, %v15280_v56, 0.0  ;;  %v9882_v56 = vld [vmem:[%s10107_s26 + $0x100] sm:$0xff] }
 0x70e   : > { %v4933_v37 = vpop.f32.mrf.mxu1  ;;  %v5010_v13 = vadd.f32 %v5009_v30, %v5008_v6  ;;  %v5225_v39 = vcombine.high %v9882_v56, %v9882_v56 }
 0x70f   : > { %v15285_v5 = vadd.f32 %v15079_v54, %v4933_v37 }
 0x710   : > { %v4935_v45 = vpop.f32.mrf.mxu1 }
 0x711   : > { %19297 = vst [vmem:[#allocation99_spill] sm:$0xff] %v15285_v5  ;;  %v5011_v27 = vsel %vm1629_vm2, %v15285_v5, 0.0  ;;  %v9996_v45 = vmov 1966171168  }
 0x712   : > { %v5012_v52 = vadd.f32 %v5011_v27, %v5010_v13  ;;  %v5492_v27 = vunpack.c.l.s4 %v9996_v45  ;;  %v9880_v45 = vld [vmem:[%s10107_s26 + $0x20] sm:$0xff] }
 0x713   : > { %v9229_v0 = vrot.slane %v9880_v45, 9 }
 0x714   : > { %v5013_v48 = vrot.slane %v5012_v52, 4 }
 0x716   : > { %v5014_v9 = vadd.f32 %v5013_v48, %v5012_v52  ;;  %v18101_v52 = vlaneseq  ;;  %v5199_v48 = vcombine.high %v9877_v32, %v9877_v32 }
 0x718   : > { %v5015_v7 = vrot.slane %v5014_v9, 2  ;;  %v5252_v55 = vrot.slane %v5199_v48, 5 }
 0x71a   : > { %v5016_v15 = vadd.f32 %v5015_v7, %v5014_v9  ;;  %v9878_v9 = vld [vmem:[%s10107_s26 + $0xf0] sm:$0xff]  ;;  %v5493_v7 = vunpack.c.0.s8 %v5492_v27  ;;  %v5201_v27 = vcombine.high %v9880_v45, %v9880_v45  ;;  %v5382_v45 = vrot.slane %v5225_v39, 5 }
 0x71b   : > { %v5223_v50 = vcombine.high %v9878_v9, %v9878_v9 }
 0x71c   : > { %v5017_v43 = vrot.slane %v5016_v15, 1 }
 0x71e   : > { %v5018_v38 = vadd.f32 %v5017_v43, %v5016_v15  ;;  %v5495_v15 = vshrl.u32 %v18101_v52, 7  ;;  %v5372_v43 = vrot.slane %v5223_v50, 5 }
 0x720   : > { %v5021_v54 = vmul.f32 0.0069444445, %v5018_v38  ;;  %v9228_v38 = vrot.slane %v9877_v32, 9 }
 0x722   : > { %v5034_v22 = vsel %vm5033_vm12, %v5021_v54, %v5020_v28  ;;  %v15296_v28 = vsub.s32 %v5493_v7, %v5495_v15  ;;  %v9997_v54 = vmov 1983009808   ;;  %v9881_v7 = vld [vmem:[%s10107_s26 + $0xf8] sm:$0x3f] }
 0x723   : > { %9267 = vmatmul.mubr.msk.f32.vlgmr.msra.gmra.mxu0 %vm1629_vm2, %v5034_v22  ;;  %v5669_v22 = vunpack.c.l.s4 %v9997_v54 }
 0x724   : > { %19298 = vst [vmem:[#allocation106_spill] sm:$0xff] %v15296_v28 }
 0x725   : > { %v5670_v48 = vunpack.c.0.s8 %v5669_v22  ;;  %v5262_v22 = vrot.slane %v5201_v27, 5 }
 0x727   : > { %v15319_v4 = vsub.s32 %v5670_v48, %v5495_v15 }
 0x729   : > { %19303 = vst [vmem:[#allocation274_spill] sm:$0xff] %v15319_v4 }
 0x7e3   : > { %v5103_v58 = vpop.f32.mrf.mxu0 }
 0x7e4   : > { %v5104_v41 = vadd.f32 %v9222_v59, %v5103_v58  ;;  %v19299_v59 = vmov 0  ;;  %v5254_v58 = vrot.slane %v5252_v55, 4 }
 0x7e5   : > { %v9268_v46 = vpop.f32.mrf.mxu0  ;;  %v19300_v59 = vsel %vm15298_vm0, 4294967295, %v19299_v59 }
 0x7e6   : > { %v5107_v12 = vmax.f32 %v5104_v41, 0.0  ;;  %19301 = vst [vmem:[#allocation94_spill] sm:$0xff] %v19300_v59  ;;  %v9879_v41 = vld [vmem:[%s10107_s26 + $0x18] sm:$0x3f] }
 0x7e7   : > { %v5255_v46 = vrot.slane %v9879_v41, 5 }
 0x7e8   : > { %9272 = vmatmul.mubr.msk.f32.vlgmr.msra.gmra.mxu1 %vm5116_vm13, %v5107_v12  ;;  %v9240_v12 = vrot.slane %v9878_v9, 9  ;;  %v5375_v9 = vrot.slane %v9881_v7, 5 }
 0x7e9   : > { %v5256_v50 = vsel %vm15298_vm0, %v5254_v58, %v5255_v46 }
 0x7ea   : > { %v5373_v54 = vsel %vm15298_vm0, %v9240_v12, %v5372_v43  ;;  %v5377_v12 = vrot.slane %v5375_v9, 4 }
 0x8a8   : > { %v5189_v19 = vpop.f32.mrf.mxu1 }
 0x8a9   : > { %v5190_v30 = vadd.f32 %v9224_v17, %v5189_v19  ;;  %v5200_v17 = vcombine.high %v9879_v41, %v9879_v41  ;;  %v5374_v19 = vrot.slane %v5372_v43, 4  ;;  %v5257_v41 = vrot.slane %v5255_v46, 4 }
 0x8aa   : > { %v9273_v6 = vpop.f32.mrf.mxu1 }
 0x8ab   : > { %v9227_v37 = vmul.f32 -1.442695, %v5190_v30  ;;  %v5515_v6 = vsub.s32 0, %v5495_v15  ;;  %v5258_v52 = vrot.slane %v5200_v17, 5 }
 0x8ad   : > { %9803 = vpow2.f32 %v9227_v37  ;;  %v9998_v37 = vmov 1934713408  }
 0x8ba   : > { %v9804_v40 = vpop.eup %9803 }
 0x8bb   : > { %v5196_v13 = vadd.f32 1.0, %v9804_v40  ;;  %v5684_v40 = vunpack.c.l.s4 %v9998_v37  ;;  %v5224_v37 = vcombine.high %v9881_v7, %v9881_v7 }
 0x8bd   : > { %9805 = vrcp.f32 %v5196_v13  ;;  %v5253_v13 = vsel %vm15298_vm0, %v9228_v38, %v5252_v55  ;;  %v5376_v38 = vsel %vm15298_vm0, %v5374_v19, %v5375_v9  ;;  %v5378_v17 = vrot.slane %v5224_v37, 5 }
 0x8be   : > { %v5559_v43 = vcombine.low %v5253_v13, %v5256_v50  ;;  %v5577_v46 = vcombine.low %v5373_v54, %v5376_v38 }
 0x8ca   : > { %v9806_v30 = vpop.eup %9805 }
 0x8cb   : > { %v5497_v32 = vrot.slane %v9806_v30, %v15296_v28  ;;  %v5685_v30 = vunpack.c.0.s8 %v5684_v40  ;;  %v5259_v40 = vsel %vm15298_vm0, %v5257_v41, %v5258_v52 }
 0x8cd   : > { %v5498_v5 = vcombine.high %v5497_v32, %v5497_v32  ;;  %v5505_v55 = vrot.slane %v5497_v32, %v15296_v28  ;;  %v9241_v32 = vrot.slane %v9882_v56, 9  ;;  %v15329_v27 = vsub.s32 %v5685_v30, %v5495_v15  ;;  %v9883_v15 = vld [vmem:[%s10107_s26 + $0x28] sm:$0x3f] }
 0x8ce   : > { %v5202_v50 = vcombine.high %v9883_v15, %v9883_v15  ;;  %v5265_v9 = vrot.slane %v9883_v15, 5 }
 0x8cf   : > { %v5512_v58 = vrot.slane %v5498_v5, %v15296_v28  ;;  %v15317_v24 = vrot.slane %v5505_v55, %v5515_v6  ;;  %v5263_v5 = vsel %vm15298_vm0, %v9229_v0, %v5262_v22  ;;  %v5383_v52 = vsel %vm15298_vm0, %v9241_v32, %v5382_v45  ;;  %v9884_v55 = vld [vmem:[%s10107_s26 + $0x108] sm:$0x3f] }
 0x8d0   : > { %v5226_v38 = vcombine.high %v9884_v55, %v9884_v55  ;;  %v5385_v30 = vrot.slane %v9884_v55, 5  ;;  %v5267_v32 = vrot.slane %v5265_v9, 4  ;;  %v9886_v55 = vld [vmem:[%s10107_s26 + $0x110] sm:$0xff] }
 0x8d1   : > { %19302 = vst [vmem:[#allocation123_spill] sm:$0xff] %v15317_v24  ;;  %v15321_v7 = vrot.slane %v5512_v58, %v5515_v6  ;;  %v5523_v19 = vmul.f32 %v15317_v24, %v15087_v61  ;;  %v5524_v56 = vmul.f32 %v15317_v24, %v15083_v20  ;;  %v5560_v6 = vcombine.low %v5259_v40, %v5263_v5 }
 0x8d2   : > { %v5379_v61 = vsel %vm15298_vm0, %v5377_v12, %v5378_v17  ;;  %v5264_v17 = vrot.slane %v5262_v22, 4  ;;  %v9242_v10 = vrot.slane %v9886_v55, 9 }
 0x8d3   : > { %19304 = vst [vmem:[#allocation275_spill] sm:$0xff] %v15321_v7  ;;  %v5631_v13 = vadd.f32 %v5559_v43, %v5523_v19  ;;  %v5541_v48 = vmul.f32 %v15321_v7, %v15143_v21  ;;  %v5542_v20 = vmul.f32 %v15321_v7, %v15134_v26  ;;  %v5578_v41 = vcombine.low %v5379_v61, %v5383_v52 }
 0x8d4   : > { %v5632_v37 = vadd.f32 %v5560_v6, %v5524_v56  ;;  %v5268_v19 = vrot.slane %v5202_v50, 5  ;;  %v5384_v56 = vrot.slane %v5382_v45, 4  ;;  %v5387_v6 = vrot.slane %v5385_v30, 4  ;;  %v9885_v45 = vld [vmem:[%s10107_s26 + $0x30] sm:$0xff] }
 0x8d5   : > { %v5674_v0 = vrot.slane %v5631_v13, %v15319_v4  ;;  %v5649_v39 = vadd.f32 %v5577_v46, %v5541_v48  ;;  %v5667_v12 = vcombine.high %v5631_v13, %v19262_v35  ;;  %v5650_v48 = vadd.f32 %v5578_v41, %v5542_v20 }
 0x8d6   : > { %v5388_v61 = vrot.slane %v5226_v38, 5  ;;  %v5723_v52 = vrot.slane %v5632_v37, %v15319_v4  ;;  %v5203_v15 = vcombine.high %v9885_v45, %v9885_v45  ;;  %v5386_v41 = vsel %vm15298_vm0, %v5384_v56, %v5385_v30 }
 0x8d7   : > { %v15342_v54 = vrot.slane %v5674_v0, %v15329_v27  ;;  %v6556_v21 = vrot.slane %v5649_v39, %v15319_v4  ;;  %v5682_v46 = vcombine.high %v5674_v0, %v19262_v35  ;;  %v6549_v5 = vcombine.high %v5649_v39, %v19262_v35 }
 0x8d8   : > { %v15365_v13 = vrot.slane %v5667_v12, %v15319_v4  ;;  %v5266_v0 = vsel %vm15298_vm0, %v5264_v17, %v5265_v9  ;;  %v5269_v39 = vsel %vm15298_vm0, %v5267_v32, %v5268_v19  ;;  %v6605_v20 = vrot.slane %v5650_v48, %v15319_v4 }
 0x8d9   : > { %v5712_v58 = vcombine.high %v15342_v54, %v19262_v35  ;;  %v15351_v43 = vrot.slane %v6556_v21, %v15329_v27  ;;  %v6564_v40 = vcombine.high %v6556_v21, %v19262_v35  ;;  %v15362_v22 = vrot.slane %v5682_v46, %v15329_v27 }
 0x8da   : > { %v15379_v21 = vrot.slane %v6549_v5, %v15319_v4  ;;  %v5389_v9 = vsel %vm15298_vm0, %v5387_v6, %v5388_v61  ;;  %v5227_v38 = vcombine.high %v9886_v55, %v9886_v55  ;;  %v15394_v46 = vrot.slane %v5723_v52, %v15329_v27  ;;  %v15439_v55 = vld [vmem:[%s10107_s26 + $0x118] sm:$0x3f] }
 0x8db   : > { %7433 = vrot.lane.b32.xlu1 %v5712_v58, %s9987_s27  ;;  %v6594_v26 = vcombine.high %v15351_v43, %v19262_v35  ;;  %v15376_v50 = vrot.slane %v6564_v40, %v15329_v27  ;;  %v15391_v58 = vrot.slane %v15365_v13, %v15329_v27  ;;  %v5525_v12 = vmul.f32 %v15317_v24, %v15091_v11 }
 0x8dc   : > { %v5561_v17 = vcombine.low %v5266_v0, %v5269_v39  ;;  %v5272_v30 = vrot.slane %v5203_v15, 5  ;;  %v15402_v32 = vrot.slane %v15379_v21, %v15329_v27  ;;  %v15405_v19 = vrot.slane %v6605_v20, %v15329_v27 }
 0x8dd   : > { %7435 = vrot.lane.b32.xlu0 %v6594_v26, %s9987_s27  ;;  %v5543_v26 = vmul.f32 %v15321_v7, %v15146_v36  ;;  %v5579_v40 = vcombine.low %v5386_v41, %v5389_v9  ;;  %v5392_v5 = vrot.slane %v5227_v38, 5  ;;  %v5761_v11 = vcombine.high %v15394_v46, %v19262_v35  ;;  %v15421_v38 = vld [vmem:[%s10107_s26 + $0x38] sm:$0x3f] }
 0x8de   : > { %v5731_v56 = vcombine.high %v5723_v52, %v19262_v35  ;;  %v5716_v6 = vcombine.high %v5632_v37, %v19262_v35  ;;  %v5633_v61 = vadd.f32 %v5561_v17, %v5525_v12  ;;  %v9230_v0 = vrot.slane %v9885_v45, 9 }
 0x8df   : > { %7441 = vrot.lane.b32.xlu1 %v15362_v22, %s19305_s24  ;;  %v5274_v39 = vrot.slane %v5272_v30, 4  ;;  %v6643_v36 = vcombine.high %v15405_v19, %v19262_v35  ;;  %v6613_v15 = vcombine.high %v6605_v20, %v19262_v35  ;;  %v6598_v41 = vcombine.high %v5650_v48, %v19262_v35 }
 0x8e0   : > { %v5651_v9 = vadd.f32 %v5579_v40, %v5543_v26  ;;  %v18110_v52 = vrot.slane %v15421_v38, 5  ;;  %v5394_v37 = vrot.slane %v5392_v5, 4  ;;  %v15426_v45 = vrot.slane %v5731_v56, %v15329_v27 }
 0x8e1   : > { %7443 = vrot.lane.b32.xlu0 %v15376_v50, %s19305_s24  ;;  %v15429_v12 = vrot.slane %v5716_v6, %v15319_v4  ;;  %v5772_v17 = vrot.slane %v5633_v61, %v15319_v4  ;;  %v5273_v48 = vsel %vm15298_vm0, %v9230_v0, %v5272_v30  ;;  %v18109_v26 = vrot.slane %v15439_v55, 5 }
 0x8e2   : > { %v5276_v20 = vsel %vm15298_vm0, %v5274_v39, %v18110_v52  ;;  %v15445_v40 = vrot.slane %v6613_v15, %v15329_v27  ;;  %v6654_v30 = vrot.slane %v5651_v9, %v15319_v4  ;;  %v5393_v56 = vsel %vm15298_vm0, %v9242_v10, %v5392_v5 }
 0x8e3   : > { %7457 = vrot.lane.b32.xlu1 %v15391_v58, %s9990_s30  ;;  %v5396_v6 = vsel %vm15298_vm0, %v5394_v37, %v18109_v26  ;;  %v15461_v0 = vrot.slane %v15429_v12, %v15329_v27  ;;  %v15464_v39 = vrot.slane %v5772_v17, %v15329_v27  ;;  %v5562_v15 = vcombine.low %v5273_v48, %v5276_v20 }
 0x8e4   : > { %v15475_v5 = vrot.slane %v6654_v30, %v15329_v27  ;;  %v5580_v37 = vcombine.low %v5393_v56, %v5396_v6  ;;  %v5780_v48 = vcombine.high %v5772_v17, %v19262_v35  ;;  %v5765_v20 = vcombine.high %v5633_v61, %v19262_v35 }
 0x8e5   : > { %7459 = vrot.lane.b32.xlu0 %v15402_v32, %s9990_s30  ;;  %v6662_v18 = vcombine.high %v6654_v30, %v19262_v35 }
 0x8e6   : > { %v6692_v52 = vcombine.high %v15475_v5, %v19262_v35  ;;  %v5794_v6 = vrot.slane %v5780_v48, %v15329_v27  ;;  %v15493_v23 = vrot.slane %v5765_v20, %v15319_v4 }
 0x8e7   : > { %7489 = vrot.lane.b32.xlu1 %v5761_v11, %s9987_s27  ;;  %v15448_v11 = vrot.slane %v6598_v41, %v15319_v4  ;;  %v5544_v41 = vmul.f32 %v15321_v7, %v15157_v34  ;;  %v6647_v34 = vcombine.high %v5651_v9, %v19262_v35  ;;  %v6676_v17 = vrot.slane %v6662_v18, %v15329_v27 }
 0x8e8   : > { %v5802_v9 = vrot.slane %v15493_v23, %v15329_v27 }
 0x8e9   : > { %7491 = vrot.lane.b32.xlu0 %v6643_v36, %s9987_s27  ;;  %v5526_v36 = vmul.f32 %v15317_v24, %v15097_v33  ;;  %v15472_v10 = vrot.slane %v15448_v11, %v15329_v27  ;;  %v5810_v33 = vcombine.high %v15464_v39, %v19262_v35  ;;  %v5652_v56 = vadd.f32 %v5580_v37, %v5544_v41 }
 0x8eb   : > { %7497 = vrot.lane.b32.xlu1 %v15426_v45, %s19305_s24  ;;  %v5634_v26 = vadd.f32 %v5562_v15, %v5526_v36  ;;  %v15499_v36 = vrot.slane %v6647_v34, %v15319_v4  ;;  %v6703_v30 = vrot.slane %v5652_v56, %v15319_v4  ;;  %v6696_v34 = vcombine.high %v5652_v56, %v19262_v35 }
 0x8ed   : > { %7499 = vrot.lane.b32.xlu0 %v15445_v40, %s19305_s24  ;;  %v5821_v61 = vrot.slane %v5634_v26, %v15319_v4  ;;  %v6684_v15 = vrot.slane %v15499_v36, %v15329_v27  ;;  %v15512_v18 = vrot.slane %v6703_v30, %v15329_v27  ;;  %v6711_v20 = vcombine.high %v6703_v30, %v19262_v35 }
 0x8ee   : > { %v5713_v30 = vcombine.high %v15362_v22, %v19262_v35  ;;  %v6579_v22 = vcombine.high %v15379_v21, %v19262_v35  ;;  %v6644_v21 = vcombine.high %v15445_v40, %v19262_v35 }
 0x8ef   : > { %7513 = vrot.lane.b32.xlu1 %v15461_v0, %s9990_s30  ;;  %v5829_v37 = vcombine.high %v5821_v61, %v19262_v35  ;;  %v6741_v48 = vcombine.high %v15512_v18, %v19262_v35 }
 0x8f1   : > { %7515 = vrot.lane.b32.xlu0 %v15472_v10, %s9990_s30  ;;  %v5843_v49 = vrot.slane %v5829_v37, %v15329_v27  ;;  %v6595_v37 = vcombine.high %v15376_v50, %v19262_v35 }
 0x8f3   : > { %7545 = vrot.lane.b32.xlu1 %v5810_v33, %s9987_s27  ;;  %v5814_v33 = vcombine.high %v5634_v26, %v19262_v35  ;;  %v15530_v26 = vrot.slane %v6696_v34, %v15319_v4  ;;  %v5746_v34 = vcombine.high %v15429_v12, %v19262_v35  ;;  %v5811_v12 = vcombine.high %v5794_v6, %v19262_v35 }
 0x8f5   : > { %7547 = vrot.lane.b32.xlu0 %v6692_v52, %s9987_s27  ;;  %v15506_v52 = vrot.slane %v5821_v61, %v15329_v27  ;;  %v5828_v28 = vrot.slane %v5814_v33, %v15319_v4  ;;  %v6725_v61 = vrot.slane %v6711_v20, %v15329_v27  ;;  %v6733_v56 = vrot.slane %v15530_v26, %v15329_v27 }
 0x8f6   : > { %v5714_v33 = vcombine.high %v15391_v58, %v19262_v35  ;;  %v6596_v20 = vcombine.high %v15402_v32, %v19262_v35  ;;  %v15560_v58 = vrot.slane %v6579_v22, %v15329_v27  ;;  %v5763_v32 = vcombine.high %v15461_v0, %v19262_v35 }
 0x8f7   : > { %7553 = vrot.lane.b32.xlu1 %v5794_v6, %s19305_s24  ;;  %v5859_v41 = vcombine.high %v15506_v52, %v19262_v35  ;;  %v5760_v40 = vrot.slane %v5746_v34, %v15329_v27  ;;  %v6693_v0 = vcombine.high %v6676_v17, %v19262_v35  ;;  %v5228_v22 = vcombine.high %v15439_v55, %v15439_v55 }
 0x8f9   : > { %7555 = vrot.lane.b32.xlu0 %v6676_v17, %s19305_s24 }
 0x8fb   : > { %7569 = vrot.lane.b32.xlu1 %v5802_v9, %s9990_s30 }
 0x8fd   : > { %7571 = vrot.lane.b32.xlu0 %v6684_v15, %s9990_s30 }
 0x8ff   : > { %7601 = vrot.lane.b32.xlu1 %v5859_v41, %s9987_s27  ;;  %v5851_v41 = vrot.slane %v5828_v28, %v15329_v27 }
 0x901   : > { %7603 = vrot.lane.b32.xlu0 %v6741_v48, %s9987_s27  ;;  %v5697_v48 = vcombine.high %v15365_v13, %v19262_v35  ;;  %v5762_v13 = vcombine.high %v15426_v45, %v19262_v35  ;;  %v6628_v45 = vcombine.high %v15448_v11, %v19262_v35  ;;  %v5812_v11 = vcombine.high %v5802_v9, %v19262_v35 }
 0x902   : > { %v5204_v9 = vcombine.high %v15421_v38, %v15421_v38 }
 0x903   : > { %7609 = vrot.lane.b32.xlu1 %v5843_v49, %s19305_s24  ;;  %v15555_v50 = vrot.slane %v5697_v48, %v15329_v27  ;;  %v6677_v48 = vcombine.high %v15499_v36, %v19262_v35  ;;  %v6742_v36 = vcombine.high %v6725_v61, %v19262_v35 }
 0x904   : > { %v5278_v34 = vrot.slane %v5204_v9, 5 }
 0x905   : > { %7611 = vrot.lane.b32.xlu0 %v6725_v61, %s19305_s24  ;;  %v6691_v17 = vrot.slane %v6677_v48, %v15329_v27  ;;  %v6743_v61 = vcombine.high %v6733_v56, %v19262_v35 }
 0x907   : > { %7625 = vrot.lane.b32.xlu1 %v5851_v41, %s9990_s30 }
 0x909   : > { %7627 = vrot.lane.b32.xlu0 %v6733_v56, %s9990_s30 }
 0x90b   : > { %7449 = vrot.lane.b32.xlu1 %v5713_v30, %s9989_s29  ;;  %v6645_v30 = vcombine.high %v15472_v10, %v19262_v35  ;;  %v5795_v10 = vcombine.high %v15493_v23, %v19262_v35  ;;  %v5860_v23 = vcombine.high %v5843_v49, %v19262_v35  ;;  %v19306_v49 = vrot.slane %v15421_v38, 5 }
 0x90d   : > { %7451 = vrot.lane.b32.xlu0 %v6595_v37, %s9989_s29  ;;  %v6642_v37 = vrot.slane %v6628_v45, %v15329_v27  ;;  %v5809_v6 = vrot.slane %v5795_v10, %v15329_v27  ;;  %v9890_v45 = vld [vmem:[%s10107_s26 + $0x120] sm:$0xff] }
 0x90f   : > { %7465 = vrot.lane.b32.xlu1 %v5714_v33, %s9991_s10  ;;  %v6694_v33 = vcombine.high %v6684_v15, %v19262_v35  ;;  %v9889_v15 = vld [vmem:[%s10107_s26 + $0x40] sm:$0xff] }
 0x911   : > { %7467 = vrot.lane.b32.xlu0 %v6596_v20, %s9991_s10  ;;  %v5205_v20 = vcombine.high %v9889_v15, %v9889_v15 }
 0x913   : > { %7473 = vrot.lane.b32.xlu1 %v15555_v50, %s9992_s15 }
 0x915   : > { %7475 = vrot.lane.b32.xlu0 %v15560_v58, %s9992_s15 }
 0x917   : > { %7505 = vrot.lane.b32.xlu1 %v5762_v13, %s9989_s29  ;;  %v5861_v13 = vcombine.high %v5851_v41, %v19262_v35  ;;  %v19307_v41 = vrot.slane %v15439_v55, 5 }
 0x919   : > { %7507 = vrot.lane.b32.xlu0 %v6644_v21, %s9989_s29  ;;  %v5844_v21 = vcombine.high %v5828_v28, %v19262_v35  ;;  %v5397_v10 = vrot.slane %v19307_v41, 4  ;;  %v5398_v28 = vrot.slane %v5228_v22, 5  ;;  %v6597_v22 = vcombine.high %v15560_v58, %v19262_v35 }
 0x91b   : > { %7521 = vrot.lane.b32.xlu1 %v5763_v32, %s9991_s10  ;;  %v5277_v32 = vrot.slane %v19306_v49, 4  ;;  %v5858_v38 = vrot.slane %v5844_v21, %v15329_v27  ;;  %v5764_v49 = vcombine.high %v5760_v40, %v19262_v35 }
 0x91d   : > { %7523 = vrot.lane.b32.xlu0 %v6645_v30, %s9991_s10  ;;  %v9231_v30 = vrot.slane %v9889_v15, 9  ;;  %v5279_v48 = vsel %vm15298_vm0, %v5277_v32, %v5278_v34  ;;  %v5527_v15 = vmul.f32 %v15317_v24, %v15105_v14  ;;  %v5813_v34 = vcombine.high %v5809_v6, %v19262_v35 }
 0x91f   : > { %7529 = vrot.lane.b32.xlu1 %v5760_v40, %s9992_s15  ;;  %v5862_v40 = vcombine.high %v5858_v38, %v19262_v35 }
 0x921   : > { %7531 = vrot.lane.b32.xlu0 %v6642_v37, %s9992_s15 }
 0x923   : > { %7561 = vrot.lane.b32.xlu1 %v5811_v12, %s9989_s29  ;;  %v5229_v12 = vcombine.high %v9890_v45, %v9890_v45 }
 0x925   : > { %7563 = vrot.lane.b32.xlu0 %v6693_v0, %s9989_s29  ;;  %v6726_v0 = vcombine.high %v15530_v26, %v19262_v35  ;;  %v5399_v26 = vsel %vm15298_vm0, %v5397_v10, %v5398_v28 }
 0x927   : > { %7577 = vrot.lane.b32.xlu1 %v5812_v11, %s9991_s10  ;;  %v15618_v11 = vrot.slane %v5205_v20, 5  ;;  %v6740_v55 = vrot.slane %v6726_v0, %v15329_v27 }
 0x929   : > { %7579 = vrot.lane.b32.xlu0 %v6694_v33, %s9991_s10  ;;  %v9243_v33 = vrot.slane %v9890_v45, 9  ;;  %v5283_v56 = vsel %vm15298_vm0, %v9231_v30, %v15618_v11 }
 0x92a   : > { %v5563_v20 = vcombine.low %v5279_v48, %v5283_v56 }
 0x92b   : > { %7585 = vrot.lane.b32.xlu1 %v5809_v6, %s9992_s15  ;;  %v6744_v6 = vcombine.high %v6740_v55, %v19262_v35 }
 0x92c   : > { %v5635_v32 = vadd.f32 %v5563_v20, %v5527_v15 }
 0x92d   : > { %7587 = vrot.lane.b32.xlu0 %v6691_v17, %s9992_s15 }
 0x92e   : > { %v5870_v58 = vrot.slane %v5635_v32, %v15319_v4 }
 0x92f   : > { %7617 = vrot.lane.b32.xlu1 %v5860_v23, %s9989_s29  ;;  %v15629_v23 = vrot.slane %v5229_v12, 5 }
 0x930   : > { %v5878_v12 = vcombine.high %v5870_v58, %v19262_v35 }
 0x931   : > { %7619 = vrot.lane.b32.xlu0 %v6742_v36, %s9989_s29  ;;  %v5403_v9 = vsel %vm15298_vm0, %v9243_v33, %v15629_v23  ;;  %v5715_v36 = vcombine.high %v15555_v50, %v19262_v35  ;;  %v6646_v50 = vcombine.high %v6642_v37, %v19262_v35  ;;  %v15661_v37 = vrot.slane %v5870_v58, %v15329_v27  ;;  %v9892_v33 = vld [vmem:[%s10107_s26 + $0x128] sm:$0x3f] }
 0x932   : > { %v5581_v21 = vcombine.low %v5399_v26, %v5403_v9  ;;  %v5405_v48 = vrot.slane %v9892_v33, 5  ;;  %v5863_v26 = vcombine.high %v5635_v32, %v19262_v35  ;;  %v5284_v9 = vrot.slane %v15618_v11, 4 }
 0x933   : > { %7633 = vrot.lane.b32.xlu1 %v5861_v13, %s9991_s10  ;;  %v5545_v13 = vmul.f32 %v15321_v7, %v15170_v25  ;;  %v6695_v25 = vcombine.high %v6691_v17, %v19262_v35  ;;  %19308 = vst [vmem:[#allocation103_spill] sm:$0xff] %v15661_v37  ;;  %v5908_v17 = vcombine.high %v15661_v37, %v19262_v35 }
 0x934   : > { %v5877_v32 = vrot.slane %v5863_v26, %v15319_v4 }
 0x935   : > { %7635 = vrot.lane.b32.xlu0 %v6743_v61, %s9991_s10  ;;  %v5653_v14 = vadd.f32 %v5581_v21, %v5545_v13  ;;  %v9891_v61 = vld [vmem:[%s10107_s26 + $0x48] sm:$0x3f]  ;;  %v5404_v21 = vrot.slane %v15629_v23, 4 }
 0x936   : > { %v5206_v0 = vcombine.high %v9891_v61, %v9891_v61  ;;  %v5285_v41 = vrot.slane %v9891_v61, 5  ;;  %v5528_v61 = vmul.f32 %v15317_v24, %v15113_v3 }
 0x937   : > { %7641 = vrot.lane.b32.xlu1 %v5858_v38, %s9992_s15  ;;  %v6752_v30 = vrot.slane %v5653_v14, %v15319_v4  ;;  %v5230_v38 = vcombine.high %v9892_v33, %v9892_v33  ;;  %v6745_v13 = vcombine.high %v5653_v14, %v19262_v35 }
 0x938   : > { %v5288_v15 = vrot.slane %v5206_v0, 5  ;;  %v5286_v58 = vsel %vm15298_vm0, %v5284_v9, %v5285_v41 }
 0x939   : > { %7643 = vrot.lane.b32.xlu0 %v6740_v55, %s9992_s15  ;;  %v15666_v45 = vrot.slane %v6752_v30, %v15329_v27  ;;  %v6760_v28 = vcombine.high %v6752_v30, %v19262_v35  ;;  %v5892_v55 = vrot.slane %v5878_v12, %v15329_v27  ;;  %v6759_v30 = vrot.slane %v6745_v13, %v15319_v4 }
 0x93a   : > { %v5900_v12 = vrot.slane %v5877_v32, %v15329_v27 }
 0x93b   : > { %7481 = vrot.lane.b32.xlu1 %v5715_v36, %s9994_s17  ;;  %19309 = vst [vmem:[#allocation9_spill] sm:$0xff] %v15666_v45  ;;  %v6790_v10 = vcombine.high %v15666_v45, %v19262_v35  ;;  %v5287_v36 = vrot.slane %v5285_v41, 4  ;;  %v5909_v11 = vcombine.high %v5892_v55, %v19262_v35 }
 0x93d   : > { %7483 = vrot.lane.b32.xlu0 %v6597_v22, %s9994_s17  ;;  %v6774_v22 = vrot.slane %v6760_v28, %v15329_v27  ;;  %v5546_v28 = vmul.f32 %v15321_v7, %v15182_v62 }
 0x93f   : > { %7537 = vrot.lane.b32.xlu1 %v5764_v49, %s9994_s17  ;;  %v5407_v49 = vrot.slane %v5405_v48, 4  ;;  %v6791_v23 = vcombine.high %v6774_v22, %v19262_v35 }
 0x941   : > { %7539 = vrot.lane.b32.xlu0 %v6646_v50, %s9994_s17  ;;  %v5408_v50 = vrot.slane %v5230_v38, 5 }
 0x943   : > { %7593 = vrot.lane.b32.xlu1 %v5813_v34, %s9994_s17 }
 0x945   : > { %7595 = vrot.lane.b32.xlu0 %v6695_v25, %s9994_s17  ;;  %v5289_v25 = vsel %vm15298_vm0, %v5287_v36, %v5288_v15  ;;  %v6775_v36 = vcombine.high %v6759_v30, %v19262_v35 }
 0x946   : > { %v5564_v0 = vcombine.low %v5286_v58, %v5289_v25  ;;  %v9893_v25 = vld [vmem:[%s10107_s26 + $0x50] sm:$0xff] }
 0x947   : > { %7649 = vrot.lane.b32.xlu1 %v5862_v40, %s9994_s17  ;;  %v5406_v40 = vsel %vm15298_vm0, %v5404_v21, %v5405_v48  ;;  %v5910_v48 = vcombine.high %v5900_v12, %v19262_v35 }
 0x948   : > { %v5636_v3 = vadd.f32 %v5564_v0, %v5528_v61 }
 0x949   : > { %7651 = vrot.lane.b32.xlu0 %v6744_v6, %s9994_s17  ;;  %v5409_v6 = vsel %vm15298_vm0, %v5407_v49, %v5408_v50  ;;  %v6789_v49 = vrot.slane %v6775_v36, %v15329_v27 }
 0x94a   : > { %v5582_v33 = vcombine.low %v5406_v40, %v5409_v6  ;;  %v5919_v13 = vrot.slane %v5636_v3, %v15319_v4 }
 0x94b   : > { %7657 = vrot.lane.b32.xlu1 %v5908_v17, %s9987_s27  ;;  %v6793_v40 = vcombine.high %v6789_v49, %v19262_v35 }
 0x94c   : > { %v5654_v62 = vadd.f32 %v5582_v33, %v5546_v28  ;;  %v15745_v58 = vrot.slane %v5919_v13, %v15329_v27  ;;  %v5927_v28 = vcombine.high %v5919_v13, %v19262_v35  ;;  %v5912_v13 = vcombine.high %v5636_v3, %v19262_v35 }
 0x94d   : > { %v15678_v56 = vpop.permute.xlu1 %7433  ;;  %7659 = vrot.lane.b32.xlu0 %v6790_v10, %s9987_s27  ;;  %v6782_v10 = vrot.slane %v6759_v30, %v15329_v27 }
 0x94e   : > { %v6801_v50 = vrot.slane %v5654_v62, %v15319_v4  ;;  %19313 = vst [vmem:[#allocation126_spill] sm:$0xff] %v15745_v58 }
 0x94f   : > { %7665 = vrot.lane.b32.xlu1 %v5892_v55, %s19305_s24  ;;  %v15685_v20 = vpop.permute.xlu0 %7435  ;;  %v5893_v55 = vcombine.high %v5877_v32, %v19262_v35  ;;  %v6792_v9 = vcombine.high %v6782_v10, %v19262_v35 }
 0x950   : > { %v15753_v6 = vrot.slane %v6801_v50, %v15329_v27 }
 0x951   : > { %v15690_v34 = vpop.permute.xlu1 %7441  ;;  %7667 = vrot.lane.b32.xlu0 %v6774_v22, %s19305_s24  ;;  %v5907_v22 = vrot.slane %v5893_v55, %v15329_v27 }
 0x952   : > { %19315 = vst [vmem:[#allocation174_spill] sm:$0xff] %v15753_v6  ;;  %v6839_v55 = vcombine.high %v15753_v6, %v19262_v35 }
 0x953   : > { %7673 = vrot.lane.b32.xlu1 %v5909_v11, %s9989_s29  ;;  %v15700_v14 = vpop.permute.xlu0 %7443  ;;  %v5911_v32 = vcombine.high %v5907_v22, %v19262_v35 }
 0x955   : > { %v15708_v17 = vpop.permute.xlu1 %7457  ;;  %7675 = vrot.lane.b32.xlu0 %v6791_v23, %s9989_s29  ;;  %v5207_v23 = vcombine.high %v9893_v25, %v9893_v25 }
 0x956   : > { %19310 = vst [vmem:[#allocation128_spill] sm:$0xff] %v15708_v17 }
 0x957   : > { %7681 = vrot.lane.b32.xlu1 %v5900_v12, %s9990_s30  ;;  %v15715_v41 = vpop.permute.xlu0 %7459  ;;  %v9894_v12 = vld [vmem:[%s10107_s26 + $0x130] sm:$0xff]  ;;  %v5292_v33 = vrot.slane %v5207_v23, 5 }
 0x958   : > { %19311 = vst [vmem:[#allocation169_spill] sm:$0xff] %v15715_v41  ;;  %v5231_v61 = vcombine.high %v9894_v12, %v9894_v12  ;;  %v9897_v41 = vld [vmem:[%s10107_s26 + $0x60] sm:$0xff] }
 0x959   : > { %v15720_v38 = vpop.permute.xlu1 %7489  ;;  %7683 = vrot.lane.b32.xlu0 %v6782_v10, %s9990_s30  ;;  %v5957_v10 = vcombine.high %v15745_v58, %v19262_v35  ;;  %v5294_v23 = vrot.slane %v5292_v33, 4 }
 0x95a   : > { %v5412_v36 = vrot.slane %v5231_v61, 5  ;;  %v15779_v61 = vld [vmem:[%s10107_s26 + $0x58] sm:$0x3f] }
 0x95b   : > { %7689 = vrot.lane.b32.xlu1 %v5910_v48, %s9991_s10  ;;  %v15726_v26 = vpop.permute.xlu0 %7491  ;;  %v18120_v6 = vrot.slane %v15779_v61, 5 }
 0x95c   : > { %v5414_v45 = vrot.slane %v5412_v36, 4 }
 0x95d   : > { %v15730_v15 = vpop.permute.xlu1 %7497  ;;  %7691 = vrot.lane.b32.xlu0 %v6792_v9, %s9991_s10  ;;  %v6809_v9 = vcombine.high %v6801_v50, %v19262_v35  ;;  %v6794_v50 = vcombine.high %v5654_v62, %v19262_v35  ;;  %v5296_v62 = vsel %vm15298_vm0, %v5294_v23, %v18120_v6  ;;  %v5529_v6 = vmul.f32 %v15317_v24, %v15119_v47 }
 0x95f   : > { %7697 = vrot.lane.b32.xlu1 %v5907_v22, %s9992_s15  ;;  %v15736_v21 = vpop.permute.xlu0 %7499 }
 0x961   : > { %v15740_v11 = vpop.permute.xlu1 %7513  ;;  %7699 = vrot.lane.b32.xlu0 %v6789_v49, %s9992_s15  ;;  %v5941_v49 = vrot.slane %v5927_v28, %v15329_v27 }
 0x962   : > { %19312 = vst [vmem:[#allocation125_spill] sm:$0xff] %v15740_v11  ;;  %v9898_v11 = vld [vmem:[%s10107_s26 + $0x140] sm:$0xff] }
 0x963   : > { %7705 = vrot.lane.b32.xlu1 %v5911_v32, %s9994_s17  ;;  %v15749_v30 = vpop.permute.xlu0 %7515  ;;  %v9232_v32 = vrot.slane %v9893_v25, 9  ;;  %v5958_v3 = vcombine.high %v5941_v49, %v19262_v35  ;;  %v5926_v25 = vrot.slane %v5912_v13, %v15319_v4  ;;  %v6808_v13 = vrot.slane %v6794_v50, %v15319_v4 }
 0x964   : > { %19314 = vst [vmem:[#allocation14_spill] sm:$0xff] %v15749_v30 }
 0x965   : > { %v15756_v0 = vpop.permute.xlu1 %7545  ;;  %7707 = vrot.lane.b32.xlu0 %v6793_v40, %s9994_s17  ;;  %v5293_v37 = vsel %vm15298_vm0, %v9232_v32, %v5292_v33  ;;  %v6824_v30 = vcombine.high %v6808_v13, %v19262_v35 }
 0x967   : > { %7713 = vrot.lane.b32.xlu1 %v5957_v10, %s9987_s27  ;;  %v15763_v48 = vpop.permute.xlu0 %7547  ;;  %v6823_v10 = vrot.slane %v6809_v9, %v15329_v27  ;;  %v15794_v9 = vld [vmem:[%s10107_s26 + $0x138] sm:$0x3f] }
 0x969   : > { %v15768_v22 = vpop.permute.xlu1 %7553  ;;  %7715 = vrot.lane.b32.xlu0 %v6839_v55, %s9987_s27  ;;  %v9244_v55 = vrot.slane %v9894_v12, 9  ;;  %v18121_v12 = vrot.slane %v15794_v9, 5 }
 0x96b   : > { %7721 = vrot.lane.b32.xlu1 %v5941_v49, %s19305_s24  ;;  %v15774_v40 = vpop.permute.xlu0 %7555  ;;  %v6840_v49 = vcombine.high %v6823_v10, %v19262_v35  ;;  %v5413_v33 = vsel %vm15298_vm0, %v9244_v55, %v5412_v36  ;;  %v5416_v32 = vsel %vm15298_vm0, %v5414_v45, %v18121_v12  ;;  %v6831_v36 = vrot.slane %v6808_v13, %v15329_v27 }
 0x96c   : > { %19316 = vst [vmem:[#allocation217_spill] sm:$0xff] %v15774_v40  ;;  %v5547_v55 = vmul.f32 %v15321_v7, %v15194_v16  ;;  %v5583_v45 = vcombine.low %v5413_v33, %v5416_v32 }
 0x96d   : > { %v15782_v28 = vpop.permute.xlu1 %7569  ;;  %7723 = vrot.lane.b32.xlu0 %v6823_v10, %s19305_s24  ;;  %v5565_v10 = vcombine.low %v5293_v37, %v5296_v62  ;;  %v6841_v62 = vcombine.high %v6831_v36, %v19262_v35 }
 0x96e   : > { %19317 = vst [vmem:[#allocation7_spill] sm:$0xff] %v15782_v28  ;;  %v5655_v28 = vadd.f32 %v5583_v45, %v5547_v55 }
 0x96f   : > { %7729 = vrot.lane.b32.xlu1 %v5958_v3, %s9989_s29  ;;  %v15798_v58 = vpop.permute.xlu0 %7571  ;;  %v5949_v3 = vrot.slane %v5926_v25, %v15329_v27  ;;  %v5637_v47 = vadd.f32 %v5565_v10, %v5529_v6 }
 0x970   : > { %19318 = vst [vmem:[#allocation10_spill] sm:$0xff] %v15798_v58  ;;  %v5942_v58 = vcombine.high %v5926_v25, %v19262_v35  ;;  %v6838_v25 = vrot.slane %v6824_v30, %v15329_v27 }
 0x971   : > { %v15808_v23 = vpop.permute.xlu1 %7601  ;;  %7731 = vrot.lane.b32.xlu0 %v6840_v49, %s9989_s29  ;;  %v5959_v49 = vcombine.high %v5949_v3, %v19262_v35  ;;  %v5968_v32 = vrot.slane %v5637_v47, %v15319_v4 }
 0x972   : > { %v5956_v33 = vrot.slane %v5942_v58, %v15329_v27  ;;  %v6842_v55 = vcombine.high %v6838_v25, %v19262_v35 }
 0x973   : > { %7737 = vrot.lane.b32.xlu1 %v5949_v3, %s9990_s30  ;;  %v15815_v50 = vpop.permute.xlu0 %7603  ;;  %v6850_v3 = vrot.slane %v5655_v28, %v15319_v4 }
 0x974   : > { %v5960_v13 = vcombine.high %v5956_v33, %v19262_v35 }
 0x975   : > { %v15820_v12 = vpop.permute.xlu1 %7609  ;;  %7739 = vrot.lane.b32.xlu0 %v6831_v36, %s9990_s30  ;;  %v15845_v36 = vrot.slane %v5968_v32, %v15329_v27  ;;  %v15852_v30 = vrot.slane %v6850_v3, %v15329_v27 }
 0x977   : > { %7745 = vrot.lane.b32.xlu1 %v5959_v49, %s9991_s10  ;;  %v15826_v37 = vpop.permute.xlu0 %7611  ;;  %19322 = vst [vmem:[#allocation276_spill] sm:$0xff] %v15845_v36  ;;  %19324 = vst [vmem:[#allocation172_spill] sm:$0xff] %v15852_v30  ;;  %v6006_v49 = vcombine.high %v15845_v36, %v19262_v35  ;;  %v5232_v36 = vcombine.high %v15794_v9, %v15794_v9 }
 0x978   : > { %19319 = vst [vmem:[#allocation226_spill] sm:$0xff] %v15826_v37 }
 0x979   : > { %v15830_v16 = vpop.permute.xlu1 %7625  ;;  %7747 = vrot.lane.b32.xlu0 %v6841_v62, %s9991_s10  ;;  %v5976_v62 = vcombine.high %v5968_v32, %v19262_v35 }
 0x97a   : > { %19320 = vst [vmem:[#allocation261_spill] sm:$0xff] %v15830_v16 }
 0x97b   : > { %7753 = vrot.lane.b32.xlu1 %v5956_v33, %s9992_s15  ;;  %v15836_v6 = vpop.permute.xlu0 %7627  ;;  %v5208_v33 = vcombine.high %v15779_v61, %v15779_v61  ;;  %v5990_v32 = vrot.slane %v5976_v62, %v15329_v27  ;;  %v19330_v62 = vrot.slane %v15794_v9, 5 }
 0x97c   : > { %19321 = vst [vmem:[#allocation266_spill] sm:$0xff] %v15836_v6  ;;  %v6858_v6 = vcombine.high %v6850_v3, %v19262_v35  ;;  %v5233_v3 = vcombine.high %v9898_v11, %v9898_v11 }
 0x97d   : > { %v15840_v10 = vpop.permute.xlu1 %7449  ;;  %7755 = vrot.lane.b32.xlu0 %v6838_v25, %s9992_s15  ;;  %v6888_v25 = vcombine.high %v15852_v30, %v19262_v35  ;;  %v5298_v17 = vrot.slane %v5208_v33, 5  ;;  %v9233_v30 = vrot.slane %v9897_v41, 9 }
 0x97e   : > { %v6872_v40 = vrot.slane %v6858_v6, %v15329_v27 }
 0x97f   : > { %7761 = vrot.lane.b32.xlu1 %v5960_v13, %s9994_s17  ;;  %v15848_v58 = vpop.permute.xlu0 %7451 }
 0x980   : > { %19323 = vst [vmem:[#allocation171_spill] sm:$0xff] %v15848_v58  ;;  %v5418_v58 = vrot.slane %v5232_v36, 5  ;;  %v6889_v9 = vcombine.high %v6872_v40, %v19262_v35 }
 0x981   : > { %v15854_v45 = vpop.permute.xlu1 %7465  ;;  %7763 = vrot.lane.b32.xlu0 %v6842_v55, %s9994_s17  ;;  %v5209_v55 = vcombine.high %v9897_v41, %v9897_v41  ;;  %v6007_v41 = vcombine.high %v5990_v32, %v19262_v35 }
 0x982   : > { %19325 = vst [vmem:[#allocation281_spill] sm:$0xff] %v15854_v45 }
 0x983   : > { %7769 = vrot.lane.b32.xlu1 %v6006_v49, %s9987_s27  ;;  %v15863_v13 = vpop.permute.xlu0 %7467  ;;  %v5961_v49 = vcombine.high %v5637_v47, %v19262_v35  ;;  %v5417_v47 = vrot.slane %v19330_v62, 4 }
 0x984   : > { %19326 = vst [vmem:[#allocation221_spill] sm:$0xff] %v15863_v13  ;;  %v19328_v13 = vrot.slane %v15779_v61, 5  ;;  %v9245_v61 = vrot.slane %v9898_v11, 9 }
 0x985   : > { %v15871_v45 = vpop.permute.xlu1 %7473  ;;  %7771 = vrot.lane.b32.xlu0 %v6888_v25, %s9987_s27  ;;  %v15884_v25 = vrot.slane %v5209_v55, 5  ;;  %v5975_v33 = vrot.slane %v5961_v49, %v15319_v4  ;;  %v15898_v55 = vrot.slane %v5233_v3, 5  ;;  %v5530_v49 = vmul.f32 %v15317_v24, %v15125_v44 }
 0x986   : > { %19327 = vst [vmem:[#allocation222_spill] sm:$0xff] %v15871_v45  ;;  %v5297_v16 = vrot.slane %v19328_v13, 4  ;;  %v6843_v45 = vcombine.high %v5655_v28, %v19262_v35 }
 0x987   : > { %7777 = vrot.lane.b32.xlu1 %v5990_v32, %s19305_s24  ;;  %v15880_v37 = vpop.permute.xlu0 %7475  ;;  %v5303_v28 = vsel %vm15298_vm0, %v9233_v30, %v15884_v25  ;;  %v5419_v32 = vsel %vm15298_vm0, %v5417_v47, %v5418_v58  ;;  %v5998_v30 = vrot.slane %v5975_v33, %v15329_v27 }
 0x988   : > { %19329 = vst [vmem:[#allocation263_spill] sm:$0xff] %v15880_v37  ;;  %v5299_v6 = vsel %vm15298_vm0, %v5297_v16, %v5298_v17  ;;  %v6857_v36 = vrot.slane %v6843_v45, %v15319_v4  ;;  %v5423_v17 = vsel %vm15298_vm0, %v9245_v61, %v15898_v55  ;;  %v5548_v45 = vmul.f32 %v15321_v7, %v15206_v29 }
 0x989   : > { %v15888_v13 = vpop.permute.xlu1 %7505  ;;  %7779 = vrot.lane.b32.xlu0 %v6872_v40, %s19305_s24  ;;  %v5566_v3 = vcombine.low %v5299_v6, %v5303_v28  ;;  %v5584_v62 = vcombine.low %v5419_v32, %v5423_v17  ;;  %v6008_v61 = vcombine.high %v5998_v30, %v19262_v35 }
 0x98a   : > { %v6880_v58 = vrot.slane %v6857_v36, %v15329_v27 }
 0x98b   : > { %7785 = vrot.lane.b32.xlu1 %v6007_v41, %s9989_s29  ;;  %v15901_v11 = vpop.permute.xlu0 %7507  ;;  %v5991_v41 = vcombine.high %v5975_v33, %v19262_v35  ;;  %v5638_v44 = vadd.f32 %v5566_v3, %v5530_v49  ;;  %v5656_v37 = vadd.f32 %v5584_v62, %v5548_v45 }
 0x98c   : > { %19331 = vst [vmem:[#allocation264_spill] sm:$0xff] %v15901_v11  ;;  %v6890_v28 = vcombine.high %v6880_v58, %v19262_v35 }
 0x98d   : > { %v15910_v16 = vpop.permute.xlu1 %7521  ;;  %7787 = vrot.lane.b32.xlu0 %v6889_v9, %s9989_s29  ;;  %v6873_v9 = vcombine.high %v6857_v36, %v19262_v35  ;;  %v6005_v32 = vrot.slane %v5991_v41, %v15329_v27  ;;  %v6017_v17 = vrot.slane %v5638_v44, %v15319_v4  ;;  %v6899_v49 = vrot.slane %v5656_v37, %v15319_v4 }
 0x98e   : > { %19332 = vst [vmem:[#allocation100_spill] sm:$0xff] %v15910_v16 }
 0x98f   : > { %7793 = vrot.lane.b32.xlu1 %v5998_v30, %s9990_s30  ;;  %v15917_v40 = vpop.permute.xlu0 %7523  ;;  %v6887_v30 = vrot.slane %v6873_v9, %v15329_v27  ;;  %v6009_v36 = vcombine.high %v6005_v32, %v19262_v35  ;;  %v6025_v9 = vcombine.high %v6017_v17, %v19262_v35 }
 0x990   : > { %19333 = vst [vmem:[#allocation112_spill] sm:$0xff] %v15917_v40 }
 0x991   : > { %v15922_v47 = vpop.permute.xlu1 %7529  ;;  %7795 = vrot.lane.b32.xlu0 %v6880_v58, %s9990_s30  ;;  %v15947_v58 = vrot.slane %v6017_v17, %v15329_v27  ;;  %v6891_v62 = vcombine.high %v6887_v30, %v19262_v35  ;;  %v6039_v17 = vrot.slane %v6025_v9, %v15329_v27 }
 0x992   : > { %19334 = vst [vmem:[#allocation95_spill] sm:$0xff] %v15922_v47  ;;  %v5424_v47 = vrot.slane %v15898_v55, 4 }
 0x993   : > { %7801 = vrot.lane.b32.xlu1 %v6008_v61, %s9991_s10  ;;  %v15928_v6 = vpop.permute.xlu0 %7531  ;;  %19338 = vst [vmem:[#allocation129_spill] sm:$0xff] %v15947_v58  ;;  %v15954_v61 = vrot.slane %v6899_v49, %v15329_v27 }
 0x994   : > { %19335 = vst [vmem:[#allocation278_spill] sm:$0xff] %v15928_v6 }
 0x995   : > { %v15932_v29 = vpop.permute.xlu1 %7561  ;;  %7803 = vrot.lane.b32.xlu0 %v6890_v28, %s9991_s10  ;;  %19340 = vst [vmem:[#allocation8_spill] sm:$0xff] %v15954_v61  ;;  %v6055_v28 = vcombine.high %v15947_v58, %v19262_v35 }
 0x997   : > { %7809 = vrot.lane.b32.xlu1 %v6005_v32, %s9992_s15  ;;  %v15938_v33 = vpop.permute.xlu0 %7563  ;;  %v9899_v32 = vld [vmem:[%s10107_s26 + $0x68] sm:$0x3f] }
 0x998   : > { %19336 = vst [vmem:[#allocation279_spill] sm:$0xff] %v15938_v33  ;;  %v5210_v6 = vcombine.high %v9899_v32, %v9899_v32  ;;  %v5305_v33 = vrot.slane %v9899_v32, 5  ;;  %v6010_v32 = vcombine.high %v5638_v44, %v19262_v35 }
 0x999   : > { %v15942_v3 = vpop.permute.xlu1 %7577  ;;  %7811 = vrot.lane.b32.xlu0 %v6887_v30, %s9992_s15  ;;  %v6937_v30 = vcombine.high %v15954_v61, %v19262_v35 }
 0x99a   : > { %19337 = vst [vmem:[#allocation109_spill] sm:$0xff] %v15942_v3  ;;  %v5307_v58 = vrot.slane %v5305_v33, 4  ;;  %v6024_v44 = vrot.slane %v6010_v32, %v15319_v4 }
 0x99b   : > { %7817 = vrot.lane.b32.xlu1 %v6009_v36, %s9994_s17  ;;  %v15950_v45 = vpop.permute.xlu0 %7579 }
 0x99c   : > { %19339 = vst [vmem:[#allocation127_spill] sm:$0xff] %v15950_v45  ;;  %v6907_v45 = vcombine.high %v6899_v49, %v19262_v35 }
 0x99d   : > { %v15956_v41 = vpop.permute.xlu1 %7585  ;;  %7819 = vrot.lane.b32.xlu0 %v6891_v62, %s9994_s17 }
 0x99e   : > { %19341 = vst [vmem:[#allocation130_spill] sm:$0xff] %v15956_v41  ;;  %v9900_v41 = vld [vmem:[%s10107_s26 + $0x148] sm:$0x3f]  ;;  %v6921_v49 = vrot.slane %v6907_v45, %v15329_v27 }
 0x99f   : > { %7825 = vrot.lane.b32.xlu1 %v6055_v28, %s9987_s27  ;;  %v15964_v36 = vpop.permute.xlu0 %7587  ;;  %v5234_v40 = vcombine.high %v9900_v41, %v9900_v41  ;;  %v5425_v62 = vrot.slane %v9900_v41, 5  ;;  %v5304_v28 = vrot.slane %v15884_v25, 4  ;;  %v6892_v41 = vcombine.high %v5656_v37, %v19262_v35 }
 0x9a0   : > { %19342 = vst [vmem:[#allocation175_spill] sm:$0xff] %v15964_v36  ;;  %v5308_v36 = vrot.slane %v5210_v6, 5  ;;  %v6056_v25 = vcombine.high %v6039_v17, %v19262_v35  ;;  %v6938_v55 = vcombine.high %v6921_v49, %v19262_v35 }
 0x9a1   : > { %v15970_v3 = vpop.permute.xlu1 %7617  ;;  %7827 = vrot.lane.b32.xlu0 %v6937_v30, %s9987_s27  ;;  %v5427_v16 = vrot.slane %v5425_v62, 4  ;;  %v5428_v30 = vrot.slane %v5234_v40, 5  ;;  %v5306_v6 = vsel %vm15298_vm0, %v5304_v28, %v5305_v33  ;;  %v6906_v40 = vrot.slane %v6892_v41, %v15319_v4 }
 0x9a2   : > { %v5309_v45 = vsel %vm15298_vm0, %v5307_v58, %v5308_v36  ;;  %v5426_v9 = vsel %vm15298_vm0, %v5424_v47, %v5425_v62  ;;  %v6047_v33 = vrot.slane %v6024_v44, %v15329_v27  ;;  %v5531_v58 = vmul.f32 %v15317_v24, %v15131_v63 }
 0x9a3   : > { %7833 = vrot.lane.b32.xlu1 %v6039_v17, %s19305_s24  ;;  %v15977_v61 = vpop.permute.xlu0 %7619  ;;  %v5429_v17 = vsel %vm15298_vm0, %v5427_v16, %v5428_v30  ;;  %v5567_v36 = vcombine.low %v5306_v6, %v5309_v45  ;;  %v5549_v47 = vmul.f32 %v15321_v7, %v15218_v51  ;;  %v6040_v30 = vcombine.high %v6024_v44, %v19262_v35 }
 0x9a4   : > { %v5585_v16 = vcombine.low %v5426_v9, %v5429_v17  ;;  %v6057_v41 = vcombine.high %v6047_v33, %v19262_v35  ;;  %v6922_v45 = vcombine.high %v6906_v40, %v19262_v35 }
 0x9a5   : > { %v15982_v11 = vpop.permute.xlu1 %7633  ;;  %7835 = vrot.lane.b32.xlu0 %v6921_v49, %s19305_s24  ;;  %v6929_v49 = vrot.slane %v6906_v40, %v15329_v27  ;;  %v5639_v63 = vadd.f32 %v5567_v36, %v5531_v58  ;;  %v6054_v9 = vrot.slane %v6040_v30, %v15329_v27 }
 0x9a6   : > { %v5657_v51 = vadd.f32 %v5585_v16, %v5549_v47  ;;  %v9901_v47 = vld [vmem:[%s10107_s26 + $0x70] sm:$0xff] }
 0x9a7   : > { %7841 = vrot.lane.b32.xlu1 %v6056_v25, %s9989_s29  ;;  %v15992_v37 = vpop.permute.xlu0 %7635  ;;  %v6939_v6 = vcombine.high %v6929_v49, %v19262_v35  ;;  %v6066_v44 = vrot.slane %v5639_v63, %v15319_v4  ;;  %v6058_v40 = vcombine.high %v6054_v9, %v19262_v35  ;;  %v5211_v16 = vcombine.high %v9901_v47, %v9901_v47 }
 0x9a8   : > { %19343 = vst [vmem:[#allocation12_spill] sm:$0xff] %v15992_v37  ;;  %v6948_v58 = vrot.slane %v5657_v51, %v15319_v4 }
 0x9a9   : > { %v16000_v32 = vpop.permute.xlu1 %7641  ;;  %7843 = vrot.lane.b32.xlu0 %v6938_v55, %s9989_s29  ;;  %v5312_v37 = vrot.slane %v5211_v16, 5  ;;  %v9234_v16 = vrot.slane %v9901_v47, 9 }
 0x9aa   : > { %19344 = vst [vmem:[#allocation230_spill] sm:$0xff] %v16000_v32 }
 0x9ab   : > { %7849 = vrot.lane.b32.xlu1 %v6047_v33, %s9990_s30  ;;  %v16007_v28 = vpop.permute.xlu0 %7643  ;;  %v6936_v33 = vrot.slane %v6922_v45, %v15329_v27  ;;  %v9902_v45 = vld [vmem:[%s10107_s26 + $0x150] sm:$0xff] }
 0x9ac   : > { %19345 = vst [vmem:[#allocation24_spill] sm:$0xff] %v16007_v28 }
 0x9ad   : > { %v16012_v62 = vpop.permute.xlu1 %7481  ;;  %7851 = vrot.lane.b32.xlu0 %v6929_v49, %s9990_s30  ;;  %v16037_v49 = vrot.slane %v6066_v44, %v15329_v27  ;;  %v6940_v30 = vcombine.high %v6936_v33, %v19262_v35 }
 0x9ae   : > { %19346 = vst [vmem:[#allocation267_spill] sm:$0xff] %v16012_v62 }
 0x9af   : > { %7857 = vrot.lane.b32.xlu1 %v6057_v41, %s9991_s10  ;;  %v16018_v25 = vpop.permute.xlu0 %7483  ;;  %19351 = vst [vmem:[#allocation268_spill] sm:$0xff] %v16037_v49 }
 0x9b0   : > { %19347 = vst [vmem:[#allocation176_spill] sm:$0xff] %v16018_v25  ;;  %v5235_v25 = vcombine.high %v9902_v45, %v9902_v45 }
 0x9b1   : > { %v16022_v55 = vpop.permute.xlu1 %7537  ;;  %7859 = vrot.lane.b32.xlu0 %v6939_v6, %s9991_s10  ;;  %v16045_v6 = vrot.slane %v6948_v58, %v15329_v27 }
 0x9b2   : > { %19348 = vst [vmem:[#allocation78_spill] sm:$0xff] %v16022_v55 }
 0x9b3   : > { %7865 = vrot.lane.b32.xlu1 %v6054_v9, %s9992_s15  ;;  %v16028_v17 = vpop.permute.xlu0 %7539  ;;  %19353 = vst [vmem:[#allocation197_spill] sm:$0xff] %v16045_v6  ;;  %v6104_v9 = vcombine.high %v16037_v49, %v19262_v35  ;;  %v5314_v49 = vrot.slane %v5312_v37, 4 }
 0x9b4   : > { %19349 = vst [vmem:[#allocation231_spill] sm:$0xff] %v16028_v17  ;;  %v6074_v17 = vcombine.high %v6066_v44, %v19262_v35  ;;  %v6059_v44 = vcombine.high %v5639_v63, %v19262_v35 }
 0x9b5   : > { %v16032_v36 = vpop.permute.xlu1 %7593  ;;  %7867 = vrot.lane.b32.xlu0 %v6936_v33, %s9992_s15  ;;  %v6986_v33 = vcombine.high %v16045_v6, %v19262_v35 }
 0x9b6   : > { %19350 = vst [vmem:[#allocation173_spill] sm:$0xff] %v16032_v36  ;;  %v5432_v36 = vrot.slane %v5235_v25, 5  ;;  %v16071_v25 = vld [vmem:[%s10107_s26 + $0x78] sm:$0x3f]  ;;  %v6073_v47 = vrot.slane %v6059_v44, %v15319_v4 }
 0x9b7   : > { %7873 = vrot.lane.b32.xlu1 %v6058_v40, %s9994_s17  ;;  %v16041_v41 = vpop.permute.xlu0 %7595 }
 0x9b8   : > { %19352 = vst [vmem:[#allocation200_spill] sm:$0xff] %v16041_v41  ;;  %v6956_v41 = vcombine.high %v6948_v58, %v19262_v35  ;;  %v6941_v58 = vcombine.high %v5657_v51, %v19262_v35 }
 0x9b9   : > { %v16048_v28 = vpop.permute.xlu1 %7649  ;;  %7875 = vrot.lane.b32.xlu0 %v6940_v30, %s9994_s17  ;;  %v6088_v30 = vrot.slane %v6074_v17, %v15329_v27 }
 0x9ba   : > { %19354 = vst [vmem:[#allocation225_spill] sm:$0xff] %v16048_v28  ;;  %v6970_v6 = vrot.slane %v6956_v41, %v15329_v27  ;;  %v16086_v41 = vld [vmem:[%s10107_s26 + $0x158] sm:$0x3f]  ;;  %v6955_v44 = vrot.slane %v6941_v58, %v15319_v4 }
 0x9bb   : > { %7881 = vrot.lane.b32.xlu1 %v6104_v9, %s9987_s27  ;;  %v16055_v40 = vpop.permute.xlu0 %7651  ;;  %v6105_v63 = vcombine.high %v6088_v30, %v19262_v35 }
 0x9bc   : > { %19355 = vst [vmem:[#allocation132_spill] sm:$0xff] %v16055_v40  ;;  %v5434_v40 = vrot.slane %v5432_v36, 4 }
 0x9bd   : > { %v16060_v62 = vpop.permute.xlu1 %7657  ;;  %7883 = vrot.lane.b32.xlu0 %v6986_v33, %s9987_s27  ;;  %v9246_v33 = vrot.slane %v9902_v45, 9  ;;  %v18129_v45 = vrot.slane %v16086_v41, 5 }
 0x9be   : > { %19356 = vst [vmem:[#allocation265_spill] sm:$0xff] %v16060_v62  ;;  %v18128_v62 = vrot.slane %v16071_v25, 5 }
 0x9bf   : > { %7889 = vrot.lane.b32.xlu1 %v6088_v30, %s19305_s24  ;;  %v16066_v9 = vpop.permute.xlu0 %7659  ;;  %v6987_v30 = vcombine.high %v6970_v6, %v19262_v35 }
 0x9c0   : > { %19357 = vst [vmem:[#allocation280_spill] sm:$0xff] %v16066_v9  ;;  %v5313_v9 = vsel %vm15298_vm0, %v9234_v16, %v5312_v37  ;;  %v5316_v51 = vsel %vm15298_vm0, %v5314_v49, %v18128_v62  ;;  %v5433_v37 = vsel %vm15298_vm0, %v9246_v33, %v5432_v36  ;;  %v5436_v49 = vsel %vm15298_vm0, %v5434_v40, %v18129_v45 }
 0x9c1   : > { %v16074_v17 = vpop.permute.xlu1 %7665  ;;  %7891 = vrot.lane.b32.xlu0 %v6970_v6, %s19305_s24  ;;  %v5532_v62 = vmul.f32 %v15317_v24, %v15138_v31  ;;  %v5568_v6 = vcombine.low %v5313_v9, %v5316_v51  ;;  %v6978_v36 = vrot.slane %v6955_v44, %v15329_v27  ;;  %v5550_v33 = vmul.f32 %v15321_v7, %v15230_v57 }
 0x9c2   : > { %19358 = vst [vmem:[#allocation133_spill] sm:$0xff] %v16074_v17  ;;  %v5586_v40 = vcombine.low %v5433_v37, %v5436_v49 }
 0x9c3   : > { %7897 = vrot.lane.b32.xlu1 %v6105_v63, %s9989_s29  ;;  %v16090_v17 = vpop.permute.xlu0 %7667  ;;  %v6096_v63 = vrot.slane %v6073_v47, %v15329_v27  ;;  %v5640_v31 = vadd.f32 %v5568_v6, %v5532_v62  ;;  %v6988_v51 = vcombine.high %v6978_v36, %v19262_v35 }
 0x9c4   : > { %19359 = vst [vmem:[#allocation131_spill] sm:$0xff] %v16090_v17  ;;  %v5658_v17 = vadd.f32 %v5586_v40, %v5550_v33 }
 0x9c5   : > { %v16100_v16 = vpop.permute.xlu1 %7673  ;;  %7899 = vrot.lane.b32.xlu0 %v6987_v30, %s9989_s29  ;;  %v6106_v30 = vcombine.high %v6096_v63, %v19262_v35  ;;  %v6115_v49 = vrot.slane %v5640_v31, %v15319_v4 }
 0x9c6   : > { %19360 = vst [vmem:[#allocation138_spill] sm:$0xff] %v16100_v16  ;;  %v6089_v16 = vcombine.high %v6073_v47, %v19262_v35 }
 0x9c7   : > { %7905 = vrot.lane.b32.xlu1 %v6096_v63, %s9990_s30  ;;  %v16107_v58 = vpop.permute.xlu0 %7675  ;;  %v6997_v63 = vrot.slane %v5658_v17, %v15319_v4 }
 0x9c8   : > { %19361 = vst [vmem:[#allocation52_spill] sm:$0xff] %v16107_v58  ;;  %v6971_v58 = vcombine.high %v6955_v44, %v19262_v35  ;;  %v6103_v37 = vrot.slane %v6089_v16, %v15329_v27 }
 0x9c9   : > { %v16112_v45 = vpop.permute.xlu1 %7681  ;;  %7907 = vrot.lane.b32.xlu0 %v6978_v36, %s9990_s30  ;;  %v16137_v36 = vrot.slane %v6115_v49, %v15329_v27 }
 0x9ca   : > { %19362 = vst [vmem:[#allocation134_spill] sm:$0xff] %v16112_v45  ;;  %v6985_v47 = vrot.slane %v6971_v58, %v15329_v27  ;;  %v6107_v44 = vcombine.high %v6103_v37, %v19262_v35  ;;  %v16144_v58 = vrot.slane %v6997_v63, %v15329_v27 }
 0x9cb   : > { %7913 = vrot.lane.b32.xlu1 %v6106_v30, %s9991_s10  ;;  %v16118_v9 = vpop.permute.xlu0 %7683  ;;  %19367 = vst [vmem:[#allocation178_spill] sm:$0xff] %v16137_v36  ;;  %v6153_v30 = vcombine.high %v16137_v36, %v19262_v35  ;;  %v5236_v36 = vcombine.high %v16086_v41, %v16086_v41 }
 0x9cc   : > { %19363 = vst [vmem:[#allocation71_spill] sm:$0xff] %v16118_v9  ;;  %v6989_v33 = vcombine.high %v6985_v47, %v19262_v35  ;;  %19369 = vst [vmem:[#allocation75_spill] sm:$0xff] %v16144_v58  ;;  %v9906_v9 = vld [vmem:[%s10107_s26 + $0x160] sm:$0xff] }
 0x9cd   : > { %v16122_v57 = vpop.permute.xlu1 %7689  ;;  %7915 = vrot.lane.b32.xlu0 %v6988_v51, %s9991_s10  ;;  %v6123_v51 = vcombine.high %v6115_v49, %v19262_v35  ;;  %v5438_v55 = vrot.slane %v5236_v36, 5 }
 0x9ce   : > { %19364 = vst [vmem:[#allocation72_spill] sm:$0xff] %v16122_v57 }
 0x9cf   : > { %7921 = vrot.lane.b32.xlu1 %v6103_v37, %s9992_s15  ;;  %v16128_v62 = vpop.permute.xlu0 %7691  ;;  %v5212_v37 = vcombine.high %v16071_v25, %v16071_v25  ;;  %v6137_v49 = vrot.slane %v6123_v51, %v15329_v27  ;;  %v19375_v51 = vrot.slane %v16086_v41, 5 }
 0x9d0   : > { %19365 = vst [vmem:[#allocation26_spill] sm:$0xff] %v16128_v62 }
 0x9d1   : > { %v16132_v6 = vpop.permute.xlu1 %7697  ;;  %7923 = vrot.lane.b32.xlu0 %v6985_v47, %s9992_s15  ;;  %v7035_v47 = vcombine.high %v16144_v58, %v19262_v35  ;;  %v5318_v57 = vrot.slane %v5212_v37, 5 }
 0x9d2   : > { %19366 = vst [vmem:[#allocation17_spill] sm:$0xff] %v16132_v6 }
 0x9d3   : > { %7929 = vrot.lane.b32.xlu1 %v6107_v44, %s9994_s17  ;;  %v16140_v16 = vpop.permute.xlu0 %7699 }
 0x9d4   : > { %19368 = vst [vmem:[#allocation74_spill] sm:$0xff] %v16140_v16  ;;  %v9905_v16 = vld [vmem:[%s10107_s26 + $0x80] sm:$0xff] }
 0x9d5   : > { %v16146_v40 = vpop.permute.xlu1 %7705  ;;  %7931 = vrot.lane.b32.xlu0 %v6989_v33, %s9994_s17  ;;  %v5213_v33 = vcombine.high %v9905_v16, %v9905_v16  ;;  %v9235_v58 = vrot.slane %v9905_v16, 9  ;;  %v6154_v16 = vcombine.high %v6137_v49, %v19262_v35 }
 0x9d6   : > { %19370 = vst [vmem:[#allocation137_spill] sm:$0xff] %v16146_v40  ;;  %v7005_v40 = vcombine.high %v6997_v63, %v19262_v35  ;;  %v5237_v63 = vcombine.high %v9906_v9, %v9906_v9 }
 0x9d7   : > { %7937 = vrot.lane.b32.xlu1 %v6153_v30, %s9987_s27  ;;  %v16155_v44 = vpop.permute.xlu0 %7707  ;;  %v6108_v30 = vcombine.high %v5640_v31, %v19262_v35  ;;  %v5437_v31 = vrot.slane %v19375_v51, 4 }
 0x9d8   : > { %19371 = vst [vmem:[#allocation235_spill] sm:$0xff] %v16155_v44  ;;  %v19373_v44 = vrot.slane %v16071_v25, 5  ;;  %v7019_v28 = vrot.slane %v7005_v40, %v15329_v27  ;;  %v9247_v25 = vrot.slane %v9906_v9, 9 }
 0x9d9   : > { %v16163_v6 = vpop.permute.xlu1 %7713  ;;  %7939 = vrot.lane.b32.xlu0 %v7035_v47, %s9987_s27  ;;  %v16176_v47 = vrot.slane %v5213_v33, 5  ;;  %v6122_v37 = vrot.slane %v6108_v30, %v15319_v4  ;;  %v16190_v33 = vrot.slane %v5237_v63, 5  ;;  %v5533_v30 = vmul.f32 %v15317_v24, %v15152_v2 }
 0x9da   : > { %19372 = vst [vmem:[#allocation33_spill] sm:$0xff] %v16163_v6  ;;  %v5317_v62 = vrot.slane %v19373_v44, 4  ;;  %v6990_v6 = vcombine.high %v5658_v17, %v19262_v35  ;;  %v7036_v9 = vcombine.high %v7019_v28, %v19262_v35 }
 0x9db   : > { %7945 = vrot.lane.b32.xlu1 %v6137_v49, %s19305_s24  ;;  %v16172_v45 = vpop.permute.xlu0 %7715  ;;  %v5323_v17 = vsel %vm15298_vm0, %v9235_v58, %v16176_v47  ;;  %v5439_v49 = vsel %vm15298_vm0, %v5437_v31, %v5438_v55  ;;  %v6145_v58 = vrot.slane %v6122_v37, %v15329_v27  ;;  %v6138_v2 = vcombine.high %v6122_v37, %v19262_v35 }
 0x9dc   : > { %19374 = vst [vmem:[#allocation190_spill] sm:$0xff] %v16172_v45  ;;  %v5319_v40 = vsel %vm15298_vm0, %v5317_v62, %v5318_v57  ;;  %v7004_v36 = vrot.slane %v6990_v6, %v15319_v4  ;;  %v5443_v57 = vsel %vm15298_vm0, %v9247_v25, %v16190_v33  ;;  %v5551_v6 = vmul.f32 %v15321_v7, %v15242_v60 }
 0x9dd   : > { %v16180_v44 = vpop.permute.xlu1 %7721  ;;  %7947 = vrot.lane.b32.xlu0 %v7019_v28, %s19305_s24  ;;  %v5569_v63 = vcombine.low %v5319_v40, %v5323_v17  ;;  %v5587_v51 = vcombine.low %v5439_v49, %v5443_v57  ;;  %v6155_v25 = vcombine.high %v6145_v58, %v19262_v35  ;;  %v9907_v49 = vld [vmem:[%s10107_s26 + $0x88] sm:$0x3f] }
 0x9de   : > { %19376 = vst [vmem:[#allocation56_spill] sm:$0xff] %v16180_v44  ;;  %v7027_v55 = vrot.slane %v7004_v36, %v15329_v27  ;;  %v5214_v57 = vcombine.high %v9907_v49, %v9907_v49 }
 0x9df   : > { %7953 = vrot.lane.b32.xlu1 %v6154_v16, %s9989_s29  ;;  %v16193_v41 = vpop.permute.xlu0 %7723  ;;  %v5641_v16 = vadd.f32 %v5569_v63, %v5533_v30  ;;  %v5659_v60 = vadd.f32 %v5587_v51, %v5551_v6  ;;  %v9908_v30 = vld [vmem:[%s10107_s26 + $0x168] sm:$0x3f]  ;;  %v5324_v51 = vrot.slane %v16176_v47, 4 }
 0x9e0   : > { %19377 = vst [vmem:[#allocation76_spill] sm:$0xff] %v16193_v41  ;;  %v7037_v17 = vcombine.high %v7027_v55, %v19262_v35  ;;  %v5238_v63 = vcombine.high %v9908_v30, %v9908_v30 }
 0x9e1   : > { %v16202_v62 = vpop.permute.xlu1 %7729  ;;  %7955 = vrot.lane.b32.xlu0 %v7036_v9, %s9989_s29  ;;  %v7020_v9 = vcombine.high %v7004_v36, %v19262_v35  ;;  %v6164_v37 = vrot.slane %v5641_v16, %v15319_v4  ;;  %v7046_v6 = vrot.slane %v5659_v60, %v15319_v4 }
 0x9e2   : > { %19378 = vst [vmem:[#allocation236_spill] sm:$0xff] %v16202_v62  ;;  %v9910_v62 = vld [vmem:[%s10107_s26 + $0x170] sm:$0xff] }
 0x9e3   : > { %7961 = vrot.lane.b32.xlu1 %v6145_v58, %s9990_s30  ;;  %v16209_v28 = vpop.permute.xlu0 %7731  ;;  %v6152_v58 = vrot.slane %v6138_v2, %v15329_v27  ;;  %v7034_v36 = vrot.slane %v7020_v9, %v15329_v27  ;;  %v5444_v2 = vrot.slane %v16190_v33, 4  ;;  %v5239_v44 = vcombine.high %v9910_v62, %v9910_v62 }
 0x9e4   : > { %19379 = vst [vmem:[#allocation238_spill] sm:$0xff] %v16209_v28  ;;  %v5325_v28 = vrot.slane %v9907_v49, 5 }
 0x9e5   : > { %v16214_v31 = vpop.permute.xlu1 %7737  ;;  %7963 = vrot.lane.b32.xlu0 %v7027_v55, %s9990_s30  ;;  %v5452_v32 = vrot.slane %v5239_v44, 5  ;;  %v7039_v44 = vcombine.high %v5659_v60, %v19262_v35 }
 0x9e6   : > { %19380 = vst [vmem:[#allocation77_spill] sm:$0xff] %v16214_v31  ;;  %v5327_v49 = vrot.slane %v5325_v28, 4  ;;  %v16250_v31 = vrot.slane %v7046_v6, %v15329_v27  ;;  %v5326_v33 = vsel %vm15298_vm0, %v5324_v51, %v5325_v28 }
 0x9e7   : > { %7969 = vrot.lane.b32.xlu1 %v6155_v25, %s9991_s10  ;;  %v16220_v40 = vpop.permute.xlu0 %7739  ;;  %v5445_v25 = vrot.slane %v9908_v30, 5  ;;  %v6156_v30 = vcombine.high %v6152_v58, %v19262_v35 }
 0x9e8   : > { %19381 = vst [vmem:[#allocation55_spill] sm:$0xff] %v16220_v40  ;;  %19387 = vst [vmem:[#allocation67_spill] sm:$0xff] %v16250_v31 }
 0x9e9   : > { %v16225_v41 = vpop.permute.xlu1 %7745  ;;  %7971 = vrot.lane.b32.xlu0 %v7037_v17, %s9991_s10  ;;  %v5328_v17 = vrot.slane %v5214_v57, 5  ;;  %v5447_v9 = vrot.slane %v5445_v25, 4  ;;  %v7038_v57 = vcombine.high %v7034_v36, %v19262_v35 }
 0x9ea   : > { %19382 = vst [vmem:[#allocation27_spill] sm:$0xff] %v16225_v41  ;;  %v5448_v41 = vrot.slane %v5238_v63, 5 }
 0x9eb   : > { %7977 = vrot.lane.b32.xlu1 %v6152_v58, %s9992_s15  ;;  %v16232_v55 = vpop.permute.xlu0 %7747  ;;  %v5329_v58 = vsel %vm15298_vm0, %v5327_v49, %v5328_v17  ;;  %v7084_v49 = vcombine.high %v16250_v31, %v19262_v35  ;;  %v7054_v17 = vcombine.high %v7046_v6, %v19262_v35 }
 0x9ec   : > { %19383 = vst [vmem:[#allocation140_spill] sm:$0xff] %v16232_v55  ;;  %v16243_v55 = vrot.slane %v6164_v37, %v15329_v27  ;;  %v5449_v28 = vsel %vm15298_vm0, %v5447_v9, %v5448_v41  ;;  %v6157_v41 = vcombine.high %v5641_v16, %v19262_v35  ;;  %v5552_v9 = vmul.f32 %v15321_v7, %v15250_v53 }
 0x9ed   : > { %v16238_v40 = vpop.permute.xlu1 %7753  ;;  %7979 = vrot.lane.b32.xlu0 %v7034_v36, %s9992_s15  ;;  %v5454_v16 = vrot.slane %v5452_v32, 4 }
 0x9ee   : > { %19384 = vst [vmem:[#allocation203_spill] sm:$0xff] %v16238_v40  ;;  %19385 = vst [vmem:[#allocation88_spill] sm:$0xff] %v16243_v55  ;;  %v9909_v40 = vld [vmem:[%s10107_s26 + $0x90] sm:$0xff]  ;;  %v6202_v36 = vcombine.high %v16243_v55, %v19262_v35  ;;  %v6171_v53 = vrot.slane %v6157_v41, %v15319_v4 }
 0x9ef   : > { %7985 = vrot.lane.b32.xlu1 %v6156_v30, %s9994_s17  ;;  %v16246_v47 = vpop.permute.xlu0 %7755  ;;  %v5215_v45 = vcombine.high %v9909_v40, %v9909_v40  ;;  %v6172_v30 = vcombine.high %v6164_v37, %v19262_v35 }
 0x9f0   : > { %19386 = vst [vmem:[#allocation191_spill] sm:$0xff] %v16246_v47  ;;  %v5446_v47 = vsel %vm15298_vm0, %v5444_v2, %v5445_v25  ;;  %v5534_v2 = vmul.f32 %v15317_v24, %v15163_v42 }
 0x9f1   : > { %v16258_v63 = vpop.permute.xlu1 %7761  ;;  %7987 = vrot.lane.b32.xlu0 %v7038_v57, %s9994_s17  ;;  %v5570_v57 = vcombine.low %v5326_v33, %v5329_v58  ;;  %v5332_v55 = vrot.slane %v5215_v45, 5  ;;  %v6186_v25 = vrot.slane %v6172_v30, %v15329_v27  ;;  %v7068_v45 = vrot.slane %v7054_v17, %v15329_v27  ;;  %v16300_v17 = vld [vmem:[%s10107_s26 + $0x178] sm:$0x3f] }
 0x9f2   : > { %19388 = vst [vmem:[#allocation210_spill] sm:$0xff] %v16258_v63  ;;  %v5588_v63 = vcombine.low %v5446_v47, %v5449_v28  ;;  %v9236_v47 = vrot.slane %v9909_v40, 9  ;;  %v9248_v58 = vrot.slane %v9910_v62, 9  ;;  %v7053_v62 = vrot.slane %v7039_v44, %v15319_v4  ;;  %19390 = vst [vmem:[#allocation29_spill] sm:$0xff] %v16300_v17 }
 0x9f3   : > { %7993 = vrot.lane.b32.xlu1 %v6202_v36, %s9987_s27  ;;  %v16269_v51 = vpop.permute.xlu0 %7763  ;;  %v5334_v33 = vrot.slane %v5332_v55, 4  ;;  %v6203_v42 = vcombine.high %v6186_v25, %v19262_v35  ;;  %v5642_v30 = vadd.f32 %v5570_v57, %v5534_v2  ;;  %v7085_v40 = vcombine.high %v7068_v45, %v19262_v35 }
 0x9f4   : > { %v5660_v28 = vadd.f32 %v5588_v63, %v5552_v9  ;;  %v5453_v57 = vsel %vm15298_vm0, %v9248_v58, %v5452_v32  ;;  %v6194_v2 = vrot.slane %v6171_v53, %v15329_v27  ;;  %v5535_v58 = vmul.f32 %v15317_v24, %v15176_v8 }
 0x9f5   : > { %v16274_v37 = vpop.permute.xlu1 %7769  ;;  %7995 = vrot.lane.b32.xlu0 %v7084_v49, %s9987_s27  ;;  %v9911_v49 = vld [vmem:[%s10107_s26 + $0x98] sm:$0x3f]  ;;  %v6206_v9 = vcombine.high %v5642_v30, %v19262_v35  ;;  %v6213_v44 = vrot.slane %v5642_v30, %v15319_v4  ;;  %v7069_v8 = vcombine.high %v7053_v62, %v19262_v35 }
 0x9f6   : > { %v5335_v31 = vrot.slane %v9911_v49, 5  ;;  %v6204_v30 = vcombine.high %v6194_v2, %v19262_v35 }
 0x9f7   : > { %8001 = vrot.lane.b32.xlu1 %v6186_v25, %s19305_s24  ;;  %v16284_v6 = vpop.permute.xlu0 %7771  ;;  %v5333_v25 = vsel %vm15298_vm0, %v9236_v47, %v5332_v55  ;;  %v7076_v47 = vrot.slane %v7053_v62, %v15329_v27  ;;  %v7083_v24 = vrot.slane %v7069_v8, %v15329_v27 }
 0x9f8   : > { %19389 = vst [vmem:[#allocation145_spill] sm:$0xff] %v16284_v6  ;;  %v18136_v6 = vrot.slane %v16300_v17, 5  ;;  %v5336_v63 = vsel %vm15298_vm0, %v5334_v33, %v5335_v31  ;;  %v7095_v33 = vrot.slane %v5660_v28, %v15319_v4  ;;  %v8439_v17 = vsel %vm1629_vm2, %v15342_v54, %v15678_v56 }
 0x9f9   : > { %v16288_v36 = vpop.permute.xlu1 %7777  ;;  %8003 = vrot.lane.b32.xlu0 %v7068_v45, %s19305_s24  ;;  %v7088_v45 = vcombine.high %v5660_v28, %v19262_v35  ;;  %v8440_v54 = vsel %vm1629_vm2, %v15351_v43, %v15685_v20  ;;  %v8441_v56 = vsel %vm1678_vm3, %v8439_v17, %v15690_v34 }
 0x9fa   : > { %v5456_v55 = vsel %vm15298_vm0, %v5454_v16, %v18136_v6  ;;  %v6187_v6 = vcombine.high %v6171_v53, %v19262_v35 }
 0x9fb   : > { %8009 = vrot.lane.b32.xlu1 %v6203_v42, %s9989_s29  ;;  %v16295_v60 = vpop.permute.xlu0 %7779  ;;  %v5571_v42 = vcombine.low %v5333_v25, %v5336_v63  ;;  %v5589_v59 = vcombine.low %v5453_v57, %v5456_v55  ;;  %v7102_v28 = vrot.slane %v7088_v45, %v15319_v4  ;;  %v6221_v25 = vcombine.high %v6213_v44, %v19262_v35  ;;  %v16344_v55 = vld [vmem:[%s10107_s26 + $0xa0] sm:$0xff] }
 0x9fc   : > { %v7086_v63 = vcombine.high %v7076_v47, %v19262_v35  ;;  %v7103_v57 = vcombine.high %v7095_v33, %v19262_v35  ;;  %19393 = vst [vmem:[#allocation216_spill] sm:$0xff] %v16344_v55  ;;  %v5217_v53 = vcombine.high %v16344_v55, %v16344_v55  ;;  %v5216_v45 = vcombine.high %v9911_v49, %v9911_v49 }
 0x9fd   : > { %v16309_v41 = vpop.permute.xlu1 %7785  ;;  %8011 = vrot.lane.b32.xlu0 %v7085_v40, %s9989_s29  ;;  %v5553_v40 = vmul.f32 %v15321_v7, %v15258_v1 }
 0x9ff   : > { %8017 = vrot.lane.b32.xlu1 %v6194_v2, %s9990_s30  ;;  %v16321_v32 = vpop.permute.xlu0 %7787  ;;  %v5643_v2 = vadd.f32 %v5571_v42, %v5535_v58  ;;  %v16361_v58 = vrot.slane %v7095_v33, %v15329_v27 }
 0xa00   : > { %19391 = vst [vmem:[#allocation15_spill] sm:$0xff] %v16321_v32  ;;  %v6220_v32 = vrot.slane %v6206_v9, %v15319_v4  ;;  %v16348_v9 = vadd.f32 %v5589_v59, %v5553_v40  ;;  %v16364_v59 = vrot.slane %v6221_v25, %v15329_v27  ;;  %v16376_v40 = vrot.slane %v7102_v28, %v15329_v27 }
 0xa01   : > { %v16329_v16 = vpop.permute.xlu1 %7793  ;;  %8019 = vrot.lane.b32.xlu0 %v7076_v47, %s9990_s30  ;;  %v7118_v47 = vcombine.high %v7102_v28, %v19262_v35  ;;  %19395 = vst [vmem:[#allocation82_spill] sm:$0xff] %v16361_v58  ;;  %v6262_v33 = vrot.slane %v5643_v2, %v15319_v4  ;;  %v16383_v25 = vrot.slane %v5335_v31, 4  ;;  %v7087_v31 = vcombine.high %v7083_v24, %v19262_v35 }
 0xa02   : > { %v6236_v7 = vcombine.high %v6220_v32, %v19262_v35  ;;  %v16373_v42 = vrot.slane %v6220_v32, %v15329_v27  ;;  %v7144_v8 = vrot.slane %v16348_v9, %v15319_v4 }
 0xa03   : > { %8025 = vrot.lane.b32.xlu1 %v6204_v30, %s9991_s10  ;;  %v16339_v1 = vpop.permute.xlu0 %7795  ;;  %v6201_v30 = vrot.slane %v6187_v6, %v15329_v27  ;;  %v16370_v6 = vrot.slane %v7103_v57, %v15329_v27  ;;  %19397 = vst [vmem:[#allocation192_spill] sm:$0xff] %v16383_v25  ;;  %v16395_v57 = vrot.slane %v7118_v47, %v15329_v27 }
 0xa04   : > { %19392 = vst [vmem:[#allocation148_spill] sm:$0xff] %v16339_v1  ;;  %v16358_v1 = vrot.slane %v6213_v44, %v15329_v27  ;;  %v16378_v44 = vrot.slane %v5217_v53, 5  ;;  %v16392_v28 = vrot.slane %v6236_v7, %v15329_v27  ;;  %v16421_v53 = vcombine.high %v16376_v40, %v19262_v35 }
 0xa05   : > { %v16350_v62 = vpop.permute.xlu1 %7801  ;;  %8027 = vrot.lane.b32.xlu0 %v7086_v63, %s9991_s10  ;;  %v16385_v63 = vrot.slane %v5216_v45, 5  ;;  %v6205_v32 = vcombine.high %v6201_v30, %v19262_v35  ;;  %v16413_v47 = vcombine.high %v16370_v6, %v19262_v35  ;;  %v16433_v25 = vcombine.high %v6262_v33, %v19262_v35 }
 0xa06   : > { %19394 = vst [vmem:[#allocation32_spill] sm:$0xff] %v16358_v1  ;;  %19396 = vst [vmem:[#allocation69_spill] sm:$0xff] %v16378_v44  ;;  %v6251_v45 = vcombine.high %v16358_v1, %v19262_v35  ;;  %v7133_v44 = vcombine.high %v16361_v58, %v19262_v35  ;;  %v16424_v58 = vcombine.high %v5643_v2, %v19262_v35 }
 0xa07   : > { %8033 = vrot.lane.b32.xlu1 %v6201_v30, %s9992_s15  ;;  %v16367_v49 = vpop.permute.xlu0 %7803  ;;  %19398 = vst [vmem:[#allocation68_spill] sm:$0xff] %v16385_v63  ;;  %v16406_v30 = vcombine.high %v16364_v59, %v19262_v35  ;;  %v16427_v1 = vrot.slane %v6262_v33, %v15329_v27  ;;  %v16436_v63 = vcombine.high %v7144_v8, %v19262_v35 }
 0xa08   : > { %19399 = vst [vmem:[#allocation31_spill] sm:$0xff] %v16424_v58  ;;  %v8453_v2 = vsel %vm1629_vm2, %v15394_v46, %v15720_v38  ;;  %v16449_v4 = vcombine.high %v16392_v28, %v19262_v35  ;;  %v16453_v33 = vcombine.high %v16395_v57, %v19262_v35  ;;  %v8481_v38 = vsel %vm1629_vm2, %v15506_v52, %v15808_v23  ;;  %v19400_v23 = vld [vmem:[#allocation171_spill] sm:$0xff] }
 0xa09   : > { %v16387_v55 = vpop.permute.xlu1 %7809  ;;  %8035 = vrot.lane.b32.xlu0 %v7083_v24, %s9992_s15  ;;  %v16417_v24 = vcombine.high %v16373_v42, %v19262_v35  ;;  %v8455_v46 = vsel %vm1678_vm3, %v8453_v2, %v15730_v15  ;;  %v8483_v43 = vsel %vm1678_vm3, %v8481_v38, %v15820_v12  ;;  %v8468_v15 = vsel %vm1629_vm2, %v15475_v5, %v15763_v48  ;;  %v19403_v48 = vld [vmem:[#allocation125_spill] sm:$0xff] }
 0xa0a   : > { %v8457_v20 = vsel %vm1727_vm4, %v8455_v46, %v15888_v13 }
 0xa0b   : > { %8041 = vrot.lane.b32.xlu1 %v6205_v32, %s9994_s17  ;;  %v16409_v7 = vpop.permute.xlu0 %7811  ;;  %v16430_v32 = vrot.slane %v7144_v8, %v15329_v27  ;;  %v8442_v8 = vsel %vm1678_vm3, %v8440_v54, %v15700_v14  ;;  %v8467_v14 = vsel %vm1629_vm2, %v15464_v39, %v15756_v0  ;;  %v19406_v54 = vld [vmem:[#allocation100_spill] sm:$0xff] }
 0xa0c   : > { %v8469_v12 = vsel %vm1678_vm3, %v8467_v14, %v15768_v22  ;;  %v8444_v39 = vsel %vm1727_vm4, %v8442_v8, %v19400_v23  ;;  %v8459_v22 = vsel %vm1776_vm5, %v8457_v20, %v19403_v48  ;;  %v19408_v8 = vld [vmem:[#allocation281_spill] sm:$0xff]  ;;  %v19410_v20 = vld [vmem:[#allocation95_spill] sm:$0xff] }
 0xa0d   : > { %v16444_v58 = vpop.permute.xlu1 %7817  ;;  %8043 = vrot.lane.b32.xlu0 %v7087_v31, %s9994_s17  ;;  %v8454_v31 = vsel %vm1629_vm2, %v15405_v19, %v15726_v26  ;;  %v8443_v19 = vsel %vm1727_vm4, %v8441_v56, %v15840_v10  ;;  %v8485_v26 = vsel %vm1727_vm4, %v8483_v43, %v15970_v3  ;;  %v19401_v10 = vld [vmem:[#allocation217_spill] sm:$0xff]  ;;  %v19402_v3 = vld [vmem:[#allocation226_spill] sm:$0xff]  ;;  %v8471_v17 = vsel %vm1727_vm4, %v8469_v12, %v15932_v29 }
 0xa0e   : > { %v8456_v52 = vsel %vm1678_vm3, %v8454_v31, %v15736_v21  ;;  %v8482_v21 = vsel %vm1629_vm2, %v15512_v18, %v15815_v50  ;;  %v8470_v13 = vsel %vm1678_vm3, %v8468_v15, %v19401_v10  ;;  %v19404_v18 = vld [vmem:[#allocation128_spill] sm:$0xff]  ;;  %v19407_v56 = vld [vmem:[#allocation261_spill] sm:$0xff]  ;;  %v19412_v15 = vld [vmem:[#allocation230_spill] sm:$0xff] }
 0xa0f   : > { %8049 = vrot.lane.b32.xlu1 %v6251_v45, %s9987_s27  ;;  %v16475_v34 = vpop.permute.xlu0 %7819  ;;  %v8484_v5 = vsel %vm1678_vm3, %v8482_v21, %v19402_v3  ;;  %v8445_v50 = vsel %vm1776_vm5, %v8443_v19, %v19404_v18  ;;  %v19405_v45 = vld [vmem:[#allocation264_spill] sm:$0xff]  ;;  %v8487_v46 = vsel %vm1776_vm5, %v8485_v26, %v19407_v56  ;;  %v19409_v31 = vld [vmem:[#allocation169_spill] sm:$0xff]  ;;  %v19411_v19 = vld [vmem:[#allocation7_spill] sm:$0xff] }
 0xa10   : > { %v8458_v2 = vsel %vm1727_vm4, %v8456_v52, %v19405_v45  ;;  %v8447_v29 = vsel %vm1825_vm6, %v8445_v50, %v19408_v8  ;;  %v8446_v43 = vsel %vm1776_vm5, %v8444_v39, %v19409_v31  ;;  %v8489_v14 = vsel %vm1825_vm6, %v8487_v46, %v15982_v11  ;;  %v19413_v21 = vld [vmem:[#allocation78_spill] sm:$0xff]  ;;  %v19418_v18 = vld [vmem:[#allocation112_spill] sm:$0xff]  ;;  %v19419_v45 = vld [vmem:[#allocation279_spill] sm:$0xff] }
 0xa11   : > { %v16496_v0 = vpop.permute.xlu1 %7825  ;;  %8051 = vrot.lane.b32.xlu0 %v7133_v44, %s9987_s27  ;;  %v8461_v44 = vsel %vm1825_vm6, %v8459_v22, %v19406_v54  ;;  %v8473_v26 = vsel %vm1776_vm5, %v8471_v17, %v19411_v19  ;;  %v8491_v12 = vsel %vm1874_vm7, %v8489_v14, %v19412_v15  ;;  %v19414_v39 = vld [vmem:[#allocation222_spill] sm:$0xff]  ;;  %v19416_v22 = vld [vmem:[#allocation109_spill] sm:$0xff]  ;;  %v8472_v54 = vsel %vm1727_vm4, %v8470_v13, %v19419_v45  ;;  %v19421_v56 = vld [vmem:[#allocation267_spill] sm:$0xff] }
 0xa12   : > { %v8463_v52 = vsel %vm1874_vm7, %v8461_v44, %v19410_v20  ;;  %v8449_v11 = vsel %vm1874_vm7, %v8447_v29, %v19414_v39  ;;  %v19415_v3 = vld [vmem:[#allocation14_spill] sm:$0xff]  ;;  %v19424_v14 = vld [vmem:[#allocation173_spill] sm:$0xff]  ;;  %v19426_v15 = vld [vmem:[#allocation12_spill] sm:$0xff] }
 0xa13   : > { %8057 = vrot.lane.b32.xlu1 %v16364_v59, %s19305_s24  ;;  %v16517_v38 = vpop.permute.xlu0 %7827  ;;  %v8486_v59 = vsel %vm1727_vm4, %v8484_v5, %v15977_v61  ;;  %v8465_v23 = vsel %vm1923_vm8, %v8463_v52, %v19413_v21  ;;  %v8460_v48 = vsel %vm1776_vm5, %v8458_v2, %v19415_v3  ;;  %v8475_v61 = vsel %vm1825_vm6, %v8473_v26, %v19416_v22  ;;  %v19417_v5 = vld [vmem:[#allocation225_spill] sm:$0xff]  ;;  %v19420_v44 = vld [vmem:[#allocation130_spill] sm:$0xff]  ;;  %v19427_v21 = vld [vmem:[#allocation231_spill] sm:$0xff] }
 0xa14   : > { %v8493_v17 = vsel %vm1923_vm8, %v8491_v12, %v19417_v5  ;;  %v8462_v50 = vsel %vm1825_vm6, %v8460_v48, %v19418_v18  ;;  %v8451_v46 = vsel %vm1923_vm8, %v8449_v11, %v19421_v56  ;;  %v19422_v8 = vld [vmem:[#allocation278_spill] sm:$0xff]  ;;  %v19425_v19 = vld [vmem:[#allocation221_spill] sm:$0xff]  ;;  %v19431_v5 = vld [vmem:[#allocation127_spill] sm:$0xff] }
 0xa15   : > { %v16535_v10 = vpop.permute.xlu1 %7833  ;;  %8059 = vrot.lane.b32.xlu0 %v16370_v6, %s19305_s24  ;;  %v8477_v6 = vsel %vm1874_vm7, %v8475_v61, %v19420_v44  ;;  %v8464_v29 = vsel %vm1874_vm7, %v8462_v50, %v19422_v8  ;;  %v19423_v31 = vld [vmem:[#allocation266_spill] sm:$0xff]  ;;  %v8727_v52 = vcombine.low %v8451_v46, %v8465_v23  ;;  %v8448_v26 = vsel %vm1825_vm6, %v8446_v43, %v19425_v19  ;;  %v19430_v43 = vld [vmem:[#allocation24_spill] sm:$0xff] }
 0xa16   : > { %v8488_v20 = vsel %vm1776_vm5, %v8486_v59, %v19423_v31  ;;  %v8479_v13 = vsel %vm1923_vm8, %v8477_v6, %v19424_v14  ;;  %v19428_v59 = vld [vmem:[#allocation263_spill] sm:$0xff]  ;;  %v19429_v3 = vld [vmem:[#allocation10_spill] sm:$0xff]  ;;  %v16585_v61 = vcombine.high %v16427_v1, %v19262_v35  ;;  %v19432_v18 = vld [vmem:[#allocation176_spill] sm:$0xff]  ;;  %v16601_v44 = vcombine.high %v16430_v32, %v19262_v35 }
 0xa17   : > { %8065 = vrot.lane.b32.xlu1 %v16406_v30, %s9989_s29  ;;  %v16557_v2 = vpop.permute.xlu0 %7835  ;;  %v8490_v12 = vsel %vm1825_vm6, %v8488_v20, %v19426_v15  ;;  %v16571_v30 = vsel %vm1923_vm8, %v8464_v29, %v19427_v21  ;;  %v8728_v39 = vcombine.low %v8479_v13, %v8493_v17  ;;  %v8450_v23 = vsel %vm1874_vm7, %v8448_v26, %v19428_v59  ;;  %v19434_v6 = vld [vmem:[#allocation175_spill] sm:$0xff]  ;;  %v19435_v46 = vld [vmem:[#allocation106_spill] sm:$0xff]  ;;  %v19436_v31 = vld [vmem:[#allocation33_spill] sm:$0xff] }
 0xa18   : > { %v8474_v48 = vsel %vm1776_vm5, %v8472_v54, %v19429_v3  ;;  %v8492_v22 = vsel %vm1874_vm7, %v8490_v12, %v19430_v43  ;;  %v16591_v50 = vsel %vm1923_vm8, %v8450_v23, %v19432_v18  ;;  %v16606_v8 = vrot.slane %v8727_v52, %v19435_v46  ;;  %v19437_v20 = vld [vmem:[#allocation126_spill] sm:$0xff]  ;;  %v19439_v26 = vld [vmem:[#allocation265_spill] sm:$0xff]  ;;  %v19440_v15 = vld [vmem:[#allocation103_spill] sm:$0xff] }
 0xa19   : > { %v16573_v11 = vpop.permute.xlu1 %7841  ;;  %8067 = vrot.lane.b32.xlu0 %v16413_v47, %s9989_s29  ;;  %v8476_v17 = vsel %vm1825_vm6, %v8474_v48, %v19431_v5  ;;  %v19433_v47 = vld [vmem:[#allocation132_spill] sm:$0xff]  ;;  %v8840_v29 = vcombine.low %v16591_v50, %v16571_v30  ;;  %v8509_v14 = vsel %vm1629_vm2, %v19437_v20, %v19436_v31  ;;  %v16616_v19 = vrot.slane %v8728_v39, %v19435_v46  ;;  %v19443_v48 = vld [vmem:[#allocation9_spill] sm:$0xff]  ;;  %v19446_v18 = vld [vmem:[#allocation131_spill] sm:$0xff] }
 0xa1a   : > { %v8494_v45 = vsel %vm1923_vm8, %v8492_v22, %v19433_v47  ;;  %v8478_v56 = vsel %vm1874_vm7, %v8476_v17, %v19434_v6  ;;  %v8495_v12 = vsel %vm1629_vm2, %v19440_v15, %v19439_v26  ;;  %v19441_v21 = vld [vmem:[#allocation56_spill] sm:$0xff]  ;;  %v19444_v22 = vld [vmem:[#allocation133_spill] sm:$0xff]  ;;  %v19447_v6 = vld [vmem:[#allocation138_spill] sm:$0xff] }
 0xa1b   : > { %8073 = vrot.lane.b32.xlu1 %v16373_v42, %s9990_s30  ;;  %v16597_v54 = vpop.permute.xlu0 %7843  ;;  %v19438_v42 = vld [vmem:[#allocation200_spill] sm:$0xff]  ;;  %v8511_v52 = vsel %vm1678_vm3, %v8509_v14, %v19441_v21  ;;  %v8497_v39 = vsel %vm1678_vm3, %v8495_v12, %v19444_v22  ;;  %v19448_v31 = vld [vmem:[#allocation190_spill] sm:$0xff] }
 0xa1c   : > { %v8480_v13 = vsel %vm1923_vm8, %v8478_v56, %v19438_v42  ;;  %v19442_v3 = vld [vmem:[#allocation280_spill] sm:$0xff]  ;;  %v8499_v56 = vsel %vm1727_vm4, %v8497_v39, %v19447_v6  ;;  %v19449_v20 = vld [vmem:[#allocation174_spill] sm:$0xff] }
 0xa1d   : > { %v7850_v59 = vpop.permute.xlu1 %7849  ;;  %8075 = vrot.lane.b32.xlu0 %v16376_v40, %s9990_s30  ;;  %v8841_v23 = vcombine.low %v8480_v13, %v8494_v45  ;;  %v8496_v43 = vsel %vm1629_vm2, %v19443_v48, %v19442_v3  ;;  %v19445_v5 = vld [vmem:[#allocation236_spill] sm:$0xff]  ;;  %v8510_v40 = vsel %vm1629_vm2, %v19449_v20, %v19448_v31  ;;  %v19450_v45 = vld [vmem:[#allocation77_spill] sm:$0xff]  ;;  %v19452_v15 = vld [vmem:[#allocation134_spill] sm:$0xff] }
 0xa1e   : > { %v8513_v17 = vsel %vm1727_vm4, %v8511_v52, %v19445_v5  ;;  %v8498_v47 = vsel %vm1678_vm3, %v8496_v43, %v19446_v18  ;;  %v19451_v13 = vld [vmem:[#allocation52_spill] sm:$0xff]  ;;  %v8501_v12 = vsel %vm1776_vm5, %v8499_v56, %v19452_v15  ;;  %v19454_v3 = vld [vmem:[#allocation27_spill] sm:$0xff]  ;;  %v19459_v56 = vld [vmem:[#allocation26_spill] sm:$0xff] }
 0xa1f   : > { %v8515_v14 = vsel %vm1776_vm5, %v8513_v17, %v19450_v45  ;;  %8081 = vrot.lane.b32.xlu1 %v16417_v24, %s9991_s10  ;;  %v7852_v42 = vpop.permute.xlu0 %7851  ;;  %v8500_v26 = vsel %vm1727_vm4, %v8498_v47, %v19451_v13  ;;  %v19453_v21 = vld [vmem:[#allocation76_spill] sm:$0xff]  ;;  %v19455_v43 = vld [vmem:[#allocation71_spill] sm:$0xff]  ;;  %v19457_v24 = vld [vmem:[#allocation238_spill] sm:$0xff]  ;;  %v16670_v15 = vrot.slane %v8841_v23, %v19435_v46 }
 0xa20   : > { %v8512_v52 = vsel %vm1678_vm3, %v8510_v40, %v19453_v21  ;;  %v8517_v48 = vsel %vm1825_vm6, %v8515_v14, %v19454_v3  ;;  %v8502_v22 = vsel %vm1776_vm5, %v8500_v26, %v19455_v43  ;;  %v19456_v39 = vld [vmem:[#allocation72_spill] sm:$0xff]  ;;  %v19458_v18 = vld [vmem:[#allocation203_spill] sm:$0xff]  ;;  %v19460_v20 = vld [vmem:[#allocation17_spill] sm:$0xff] }
 0xa21   : > { %v8503_v5 = vsel %vm1825_vm6, %v8501_v12, %v19456_v39  ;;  %v8514_v17 = vsel %vm1727_vm4, %v8512_v52, %v19457_v24  ;;  %v8519_v47 = vsel %vm1874_vm7, %v8517_v48, %v19458_v18  ;;  %v7858_v6 = vpop.permute.xlu1 %7857  ;;  %8083 = vrot.lane.b32.xlu0 %v16421_v53, %s9991_s10  ;;  %v8504_v31 = vsel %vm1825_vm6, %v8502_v22, %v19459_v56  ;;  %v19461_v45 = vld [vmem:[#allocation55_spill] sm:$0xff]  ;;  %v19462_v13 = vld [vmem:[#allocation210_spill] sm:$0xff]  ;;  %v19464_v52 = vld [vmem:[#allocation137_spill] sm:$0xff] }
 0xa22   : > { %v8505_v40 = vsel %vm1874_vm7, %v8503_v5, %v19460_v20  ;;  %v8516_v14 = vsel %vm1776_vm5, %v8514_v17, %v19461_v45  ;;  %v8521_v26 = vsel %vm1923_vm8, %v8519_v47, %v19462_v13  ;;  %v19463_v12 = vld [vmem:[#allocation74_spill] sm:$0xff]  ;;  %v19465_v3 = vld [vmem:[#allocation140_spill] sm:$0xff]  ;;  %v19466_v22 = vld [vmem:[#allocation235_spill] sm:$0xff] }
 0xa23   : > { %v8506_v21 = vsel %vm1874_vm7, %v8504_v31, %v19463_v12  ;;  %v8507_v53 = vsel %vm1923_vm8, %v8505_v40, %v19464_v52  ;;  %v8518_v48 = vsel %vm1825_vm6, %v8516_v14, %v19465_v3  ;;  %8089 = vrot.lane.b32.xlu1 %v16392_v28, %s9992_s15  ;;  %v7860_v43 = vpop.permute.xlu0 %7859  ;;  %v19467_v5 = vld [vmem:[#allocation191_spill] sm:$0xff]  ;;  %v19468_v24 = vld [vmem:[#allocation276_spill] sm:$0xff]  ;;  %v19469_v18 = vld [vmem:[#allocation129_spill] sm:$0xff] }
 0xa24   : > { %v8508_v39 = vsel %vm1923_vm8, %v8506_v21, %v19466_v22  ;;  %v8520_v23 = vsel %vm1874_vm7, %v8518_v48, %v19467_v5  ;;  %v8523_v17 = vsel %vm1629_vm2, %v19468_v24, %v16274_v37  ;;  %v8537_v47 = vsel %vm1629_vm2, %v19469_v18, %v16496_v0  ;;  %v19470_v45 = vld [vmem:[#allocation145_spill] sm:$0xff]  ;;  %v19471_v37 = vld [vmem:[#allocation172_spill] sm:$0xff]  ;;  %v19473_v21 = vld [vmem:[#allocation15_spill] sm:$0xff] }
 0xa25   : > { %v8729_v56 = vcombine.low %v8507_v53, %v8521_v26  ;;  %v8522_v31 = vsel %vm1923_vm8, %v8520_v23, %v16269_v51  ;;  %v8525_v28 = vsel %vm1678_vm3, %v8523_v17, %v16288_v36  ;;  %v8539_v20 = vsel %vm1678_vm3, %v8537_v47, %v16535_v10  ;;  %v7866_v40 = vpop.permute.xlu1 %7865  ;;  %8091 = vrot.lane.b32.xlu0 %v16395_v57, %s9992_s15  ;;  %v19472_v13 = vld [vmem:[#allocation8_spill] sm:$0xff] }
 0xa26   : > { %v8524_v14 = vsel %vm1629_vm2, %v19471_v37, %v19470_v45  ;;  %v8527_v0 = vsel %vm1727_vm4, %v8525_v28, %v16309_v41  ;;  %v8538_v51 = vsel %vm1629_vm2, %v19472_v13, %v16517_v38  ;;  %v8541_v36 = vsel %vm1727_vm4, %v8539_v20, %v16573_v11  ;;  %v19474_v52 = vld [vmem:[#allocation148_spill] sm:$0xff]  ;;  %v19478_v20 = vld [vmem:[#allocation29_spill] sm:$0xff] }
 0xa27   : > { %v8526_v10 = vsel %vm1678_vm3, %v8524_v14, %v16295_v60  ;;  %v8529_v57 = vsel %vm1776_vm5, %v8527_v0, %v16329_v16  ;;  %v8540_v26 = vsel %vm1678_vm3, %v8538_v51, %v16557_v2  ;;  %v8543_v12 = vsel %vm1776_vm5, %v8541_v36, %v7850_v59  ;;  %8097 = vrot.lane.b32.xlu1 %v16449_v4, %s9994_s17  ;;  %v7868_v41 = vpop.permute.xlu0 %7867  ;;  %v19475_v30 = vld [vmem:[#allocation216_spill] sm:$0xff] }
 0xa28   : > { %v8528_v38 = vsel %vm1727_vm4, %v8526_v10, %v19473_v21  ;;  %v8531_v11 = vsel %vm1825_vm6, %v8529_v57, %v16350_v62  ;;  %v8542_v60 = vsel %vm1727_vm4, %v8540_v26, %v16597_v54  ;;  %v8545_v16 = vsel %vm1825_vm6, %v8543_v12, %v7858_v6  ;;  %v19481_v57 = vld [vmem:[#allocation68_spill] sm:$0xff]  ;;  %v19484_v21 = vld [vmem:[#allocation69_spill] sm:$0xff] }
 0xa29   : > { %v8530_v2 = vsel %vm1776_vm5, %v8528_v38, %v19474_v52  ;;  %v8533_v59 = vsel %vm1874_vm7, %v8531_v11, %v16387_v55  ;;  %v8544_v4 = vsel %vm1776_vm5, %v8542_v60, %v7852_v42  ;;  %v8547_v53 = vsel %vm1874_vm7, %v8545_v16, %v7866_v40  ;;  %v7874_v3 = vpop.permute.xlu1 %7873  ;;  %8099 = vrot.lane.b32.xlu0 %v16453_v33, %s9994_s17  ;;  %v19482_v26 = vld [vmem:[#allocation192_spill] sm:$0xff] }
 0xa2a   : > { %v8532_v62 = vsel %vm1825_vm6, %v8530_v2, %v16367_v49  ;;  %v8535_v54 = vsel %vm1923_vm8, %v8533_v59, %v16444_v58  ;;  %v8546_v6 = vsel %vm1825_vm6, %v8544_v4, %v7860_v43  ;;  %v8549_v48 = vsel %vm1923_vm8, %v8547_v53, %v7874_v3 }
 0xa2b   : > { %v8842_v22 = vcombine.low %v8508_v39, %v8522_v31  ;;  %v8534_v55 = vsel %vm1874_vm7, %v8532_v62, %v16409_v7  ;;  %v8548_v42 = vsel %vm1874_vm7, %v8546_v6, %v7868_v41  ;;  %v8730_v5 = vcombine.low %v8535_v54, %v8549_v48  ;;  %8105 = vrot.lane.b32.xlu1 %v16585_v61, %s9987_s27  ;;  %v7876_v49 = vpop.permute.xlu0 %7875  ;;  %v19476_v31 = vld [vmem:[#allocation274_spill] sm:$0xff]  ;;  %v19486_v48 = vld [vmem:[#allocation123_spill] sm:$0xff] }
 0xa2c   : > { %v8850_v58 = vrot.slane %v8840_v29, %v19435_v46  ;;  %v8536_v33 = vsel %vm1923_vm8, %v8534_v55, %v16475_v34  ;;  %v8550_v7 = vsel %vm1923_vm8, %v8548_v42, %v7876_v49  ;;  %v6284_v43 = vrot.slane %v16433_v25, %v15329_v27  ;;  %v19485_v6 = vld [vmem:[#allocation218_spill] sm:$0xff] }
 0xa2d   : > { %v8759_v39 = vcombine.low %v16606_v8, %v16616_v19  ;;  %v8751_v61 = vrot.slane %v8729_v56, %v19435_v46  ;;  %v8758_v23 = vrot.slane %v8730_v5, %v19435_v46  ;;  %v8843_v24 = vcombine.low %v8536_v33, %v8550_v7  ;;  %v16757_v17 = vpop.permute.xlu1 %7881  ;;  %8107 = vrot.lane.b32.xlu0 %v16601_v44, %s9987_s27  ;;  %v9914_v8 = vld [vmem:[%s10107_s26 + $0x180] sm:$0xff]  ;;  %v19487_v49 = vld [vmem:[#allocation214_spill] sm:$0xff] }
 0xa2e   : > { %v7166_v34 = vrot.slane %v16436_v63, %v15329_v27  ;;  %v7137_v25 = vcombine.high %v16348_v9, %v19262_v35  ;;  %v9237_v50 = vrot.slane %v19475_v30, 9  ;;  %v5241_v29 = vcombine.high %v9914_v8, %v9914_v8  ;;  %v19477_v63 = vld [vmem:[#allocation31_spill] sm:$0xff] }
 0xa2f   : > { %v8872_v19 = vcombine.low %v8850_v58, %v16670_v15  ;;  %v8864_v18 = vrot.slane %v8842_v22, %v19435_v46  ;;  %v8760_v47 = vcombine.low %v8751_v61, %v8758_v23  ;;  %v8871_v44 = vrot.slane %v8843_v24, %v19435_v46  ;;  %8113 = vrot.lane.b32.xlu1 %v6284_v43, %s19305_s24  ;;  %v16775_v56 = vpop.permute.xlu0 %7883  ;;  %v19488_v58 = vld [vmem:[#allocation275_spill] sm:$0xff] }
 0xa30   : > { %v6269_v28 = vrot.slane %v19477_v63, %v19476_v31  ;;  %v19479_v9 = vrot.slane %v19478_v20, 5  ;;  %v19480_v45 = vcombine.high %v19478_v20, %v19478_v20  ;;  %v9249_v15 = vrot.slane %v9914_v8, 9 }
 0xa31   : > { %v8767_v14 = vrot.slane %v8759_v39, %v19435_v46  ;;  %v8774_v0 = vrot.slane %v8760_v47, %v19435_v46  ;;  %v8873_v13 = vcombine.low %v8864_v18, %v8871_v44  ;;  %v16786_v51 = vpop.permute.xlu1 %7889  ;;  %8115 = vrot.lane.b32.xlu0 %v7166_v34, %s19305_s24  ;;  %v6301_v36 = vcombine.high %v6284_v43, %v19262_v35 }
 0xa32   : > { %v5457_v40 = vrot.slane %v19479_v9, 4  ;;  %v5458_v37 = vrot.slane %v19480_v45, 5  ;;  %v7151_v10 = vrot.slane %v7137_v25, %v19476_v31  ;;  %v5339_v41 = vsel %vm15298_vm0, %v19482_v26, %v19481_v57  ;;  %v9916_v26 = vld [vmem:[%s10107_s26 + $0x188] sm:$0x3f] }
 0xa33   : > { %v5343_v38 = vsel %vm15298_vm0, %v9237_v50, %v19484_v21  ;;  %v16798_v11 = vrot.slane %v5241_v29, 5  ;;  %v8880_v60 = vrot.slane %v8872_v19, %v19435_v46  ;;  %v8775_v16 = vcombine.low %v8767_v14, %v8774_v0  ;;  %8121 = vrot.lane.b32.xlu1 %v6301_v36, %s9989_s29  ;;  %v16803_v2 = vpop.permute.xlu0 %7891  ;;  %v9915_v14 = vld [vmem:[%s10107_s26 + $0xa8] sm:$0x3f] }
 0xa34   : > { %v8887_v52 = vrot.slane %v8873_v13, %v19435_v46  ;;  %v7183_v59 = vcombine.high %v7166_v34, %v19262_v35  ;;  %v5459_v4 = vsel %vm15298_vm0, %v5457_v40, %v5458_v37  ;;  %v6292_v54 = vrot.slane %v6269_v28, %v15329_v27 }
 0xa35   : > { %v5463_v53 = vsel %vm15298_vm0, %v9249_v15, %v16798_v11  ;;  %8959 = vst [vmem:[%s16812_s18] sm:$0xff] %v8775_v16  ;;  %v16815_v62 = vpop.permute.xlu1 %7897  ;;  %v5536_v22 = vmul.f32 %v19486_v48, %v19485_v6  ;;  %v5572_v55 = vcombine.low %v5339_v41, %v5343_v38  ;;  %v7174_v5 = vrot.slane %v7151_v10, %v15329_v27 }
 0xa36   : > { %v8888_v3 = vcombine.low %v8880_v60, %v8887_v52  ;;  %8123 = vrot.lane.b32.xlu0 %v7183_v59, %s9989_s29  ;;  %v5554_v33 = vmul.f32 %v19488_v58, %v19487_v49  ;;  %v5590_v7 = vcombine.low %v5459_v4, %v5463_v53  ;;  %v6302_v39 = vcombine.high %v6292_v54, %v19262_v35 }
 0xa37   : > { %8129 = vrot.lane.b32.xlu1 %v6292_v54, %s9990_s30  ;;  %v16823_v42 = vpop.permute.xlu0 %7899  ;;  %v6285_v61 = vcombine.high %v6269_v28, %v19262_v35  ;;  %v5644_v23 = vadd.f32 %v5572_v55, %v5536_v22  ;;  %v7184_v34 = vcombine.high %v7174_v5, %v19262_v35  ;;  %v7167_v25 = vcombine.high %v7151_v10, %v19262_v35 }
 0xa38   : > { %8966 = vst [vmem:[%s16812_s18 + $0x12] sm:$0xff] %v8888_v3  ;;  %v5662_v30 = vadd.f32 %v5590_v7, %v5554_v33  ;;  %v5218_v0 = vcombine.high %v9915_v14, %v9915_v14  ;;  %v5345_v13 = vrot.slane %v9915_v14, 5  ;;  %v5242_v41 = vcombine.high %v9916_v26, %v9916_v26 }
 0xa39   : > { %v16828_v43 = vpop.permute.xlu1 %7905  ;;  %v6299_v8 = vrot.slane %v6285_v61, %v15329_v27  ;;  %v6311_v29 = vrot.slane %v5644_v23, %v19476_v31  ;;  %v7181_v18 = vrot.slane %v7167_v25, %v15329_v27  ;;  %v5465_v38 = vrot.slane %v9916_v26, 5 }
 0xa3a   : > { %8131 = vrot.lane.b32.xlu0 %v7174_v5, %s9990_s30  ;;  %v7193_v47 = vrot.slane %v5662_v30, %v19476_v31  ;;  %v6304_v52 = vcombine.high %v5644_v23, %v19262_v35  ;;  %v5344_v59 = vrot.slane %v19484_v21, 4  ;;  %v5347_v4 = vrot.slane %v5345_v13, 4 }
 0xa3b   : > { %8137 = vrot.lane.b32.xlu1 %v6302_v39, %s9991_s10  ;;  %v16834_v24 = vpop.permute.xlu0 %7907  ;;  %v6303_v63 = vcombine.high %v6299_v8, %v19262_v35  ;;  %v16853_v28 = vrot.slane %v6311_v29, %v15329_v27  ;;  %v7185_v9 = vcombine.high %v7181_v18, %v19262_v35  ;;  %v6319_v15 = vcombine.high %v6311_v29, %v19262_v35  ;;  %v19494_v29 = vld [vmem:[#allocation262_spill] sm:$0xff] }
 0xa3c   : > { %19489 = vst [vmem:[#allocation73_spill] sm:$0xff] %v16834_v24  ;;  %v16860_v40 = vrot.slane %v7193_v47, %v15329_v27  ;;  %v7201_v57 = vcombine.high %v7193_v47, %v19262_v35  ;;  %v5348_v53 = vrot.slane %v5218_v0, 5  ;;  %v7186_v6 = vcombine.high %v5662_v30, %v19262_v35 }
 0xa3d   : > { %v16838_v50 = vpop.permute.xlu1 %7913  ;;  %v6349_v37 = vcombine.high %v16853_v28, %v19262_v35  ;;  %v6333_v16 = vrot.slane %v6319_v15, %v15329_v27  ;;  %v5464_v22 = vrot.slane %v16798_v11, 4  ;;  %v5467_v55 = vrot.slane %v5465_v38, 4 }
 0xa3e   : > { %8139 = vrot.lane.b32.xlu0 %v7184_v34, %s9991_s10  ;;  %v7231_v10 = vcombine.high %v16860_v40, %v19262_v35  ;;  %v7215_v54 = vrot.slane %v7201_v57, %v15329_v27  ;;  %v5468_v5 = vrot.slane %v5242_v41, 5  ;;  %v6318_v33 = vrot.slane %v6304_v52, %v19476_v31 }
 0xa3f   : > { %8145 = vrot.lane.b32.xlu1 %v6299_v8, %s9992_s15  ;;  %v16844_v19 = vpop.permute.xlu0 %7915  ;;  %v6350_v21 = vcombine.high %v6333_v16, %v19262_v35  ;;  %v5346_v7 = vsel %vm15298_vm0, %v5344_v59, %v5345_v13  ;;  %v5349_v39 = vsel %vm15298_vm0, %v5347_v4, %v5348_v53  ;;  %v7200_v23 = vrot.slane %v7186_v6, %v19476_v31 }
 0xa40   : > { %19490 = vst [vmem:[#allocation23_spill] sm:$0xff] %v16844_v19  ;;  %v7232_v11 = vcombine.high %v7215_v54, %v19262_v35  ;;  %v5466_v34 = vsel %vm15298_vm0, %v5464_v22, %v5465_v38  ;;  %v5469_v25 = vsel %vm15298_vm0, %v5467_v55, %v5468_v5  ;;  %v6341_v8 = vrot.slane %v6318_v33, %v15329_v27 }
 0xa41   : > { %v16848_v44 = vpop.permute.xlu1 %7921  ;;  %v5573_v47 = vcombine.low %v5346_v7, %v5349_v39  ;;  %v5591_v14 = vcombine.low %v5466_v34, %v5469_v25  ;;  %v7216_v38 = vcombine.high %v7200_v23, %v19262_v35 }
 0xa42   : > { %8147 = vrot.lane.b32.xlu0 %v7181_v18, %s9992_s15  ;;  %v5537_v18 = vmul.f32 %v19486_v48, %v19494_v29  ;;  %v6351_v13 = vcombine.high %v6341_v8, %v19262_v35 }
 0xa43   : > { %8153 = vrot.lane.b32.xlu1 %v6303_v63, %s9994_s17  ;;  %v16856_v20 = vpop.permute.xlu0 %7923 }
 0xa44   : > { %19491 = vst [vmem:[#allocation142_spill] sm:$0xff] %v16856_v20  ;;  %v5645_v57 = vadd.f32 %v5573_v47, %v5537_v18 }
 0xa45   : > { %v16862_v45 = vpop.permute.xlu1 %7929 }
 0xa46   : > { %19492 = vst [vmem:[#allocation30_spill] sm:$0xff] %v16862_v45  ;;  %8155 = vrot.lane.b32.xlu0 %v7185_v9, %s9994_s17  ;;  %v7223_v9 = vrot.slane %v7200_v23, %v15329_v27  ;;  %v6360_v4 = vrot.slane %v5645_v57, %v19476_v31  ;;  %v9918_v23 = vld [vmem:[%s10107_s26 + $0x190] sm:$0xff] }
 0xa47   : > { %8161 = vrot.lane.b32.xlu1 %v6349_v37, %s9987_s27  ;;  %v16870_v36 = vpop.permute.xlu0 %7931  ;;  %v19495_v37 = vld [vmem:[#allocation215_spill] sm:$0xff]  ;;  %v5243_v34 = vcombine.high %v9918_v23, %v9918_v23 }
 0xa48   : > { %19493 = vst [vmem:[#allocation150_spill] sm:$0xff] %v16870_v36  ;;  %v5555_v15 = vmul.f32 %v19488_v58, %v19495_v37  ;;  %v7233_v41 = vcombine.high %v7223_v9, %v19262_v35  ;;  %v16943_v5 = vrot.slane %v6360_v4, %v15329_v27  ;;  %v6368_v29 = vcombine.high %v6360_v4, %v19262_v35 }
 0xa49   : > { %v16876_v60 = vpop.permute.xlu1 %7937 }
 0xa4a   : > { %8163 = vrot.lane.b32.xlu0 %v7231_v10, %s9987_s27  ;;  %v6334_v10 = vcombine.high %v6318_v33, %v19262_v35  ;;  %19498 = vst [vmem:[#allocation81_spill] sm:$0xff] %v16943_v5 }
 0xa4b   : > { %8169 = vrot.lane.b32.xlu1 %v6333_v16, %s19305_s24  ;;  %v16883_v3 = vpop.permute.xlu0 %7939  ;;  %v5663_v16 = vadd.f32 %v5591_v14, %v5555_v15  ;;  %v5472_v15 = vrot.slane %v5243_v34, 5 }
 0xa4c   : > { %v6348_v59 = vrot.slane %v6334_v10, %v15329_v27  ;;  %v6353_v10 = vcombine.high %v5645_v57, %v19262_v35 }
 0xa4d   : > { %v16888_v49 = vpop.permute.xlu1 %7945  ;;  %v7242_v6 = vrot.slane %v5663_v16, %v19476_v31 }
 0xa4e   : > { %8171 = vrot.lane.b32.xlu0 %v7215_v54, %s19305_s24  ;;  %v7230_v54 = vrot.slane %v7216_v38, %v15329_v27  ;;  %v6352_v55 = vcombine.high %v6348_v59, %v19262_v35 }
 0xa4f   : > { %8177 = vrot.lane.b32.xlu1 %v6350_v21, %s9989_s29  ;;  %v16898_v61 = vpop.permute.xlu0 %7947  ;;  %v9917_v21 = vld [vmem:[%s10107_s26 + $0xb0] sm:$0xff]  ;;  %v7250_v37 = vcombine.high %v7242_v6, %v19262_v35 }
 0xa50   : > { %v5219_v33 = vcombine.high %v9917_v21, %v9917_v21  ;;  %v7234_v39 = vcombine.high %v7230_v54, %v19262_v35 }
 0xa51   : > { %v16906_v30 = vpop.permute.xlu1 %7953  ;;  %v7264_v4 = vrot.slane %v7250_v37, %v15329_v27 }
 0xa52   : > { %8179 = vrot.lane.b32.xlu0 %v7232_v11, %s9989_s29  ;;  %v16951_v11 = vrot.slane %v7242_v6, %v15329_v27  ;;  %v5352_v18 = vrot.slane %v5219_v33, 5  ;;  %v16977_v6 = vld [vmem:[%s10107_s26 + $0xb8] sm:$0x3f]  ;;  %v9250_v33 = vrot.slane %v9918_v23, 9 }
 0xa53   : > { %8185 = vrot.lane.b32.xlu1 %v6341_v8, %s9990_s30  ;;  %v16913_v63 = vpop.permute.xlu0 %7955  ;;  %v6398_v8 = vcombine.high %v16943_v5, %v19262_v35  ;;  %v7281_v37 = vcombine.high %v7264_v4, %v19262_v35 }
 0xa54   : > { %19500 = vst [vmem:[#allocation19_spill] sm:$0xff] %v16951_v11  ;;  %v5354_v38 = vrot.slane %v5352_v18, 4 }
 0xa55   : > { %v16918_v0 = vpop.permute.xlu1 %7961 }
 0xa56   : > { %8187 = vrot.lane.b32.xlu0 %v7223_v9, %s9990_s30  ;;  %v7280_v9 = vcombine.high %v16951_v11, %v19262_v35 }
 0xa57   : > { %8193 = vrot.lane.b32.xlu1 %v6351_v13, %s9991_s10  ;;  %v16924_v26 = vpop.permute.xlu0 %7963  ;;  %v6382_v13 = vrot.slane %v6368_v29, %v15329_v27  ;;  %v16992_v29 = vld [vmem:[%s10107_s26 + $0x198] sm:$0x3f] }
 0xa58   : > { %19496 = vst [vmem:[#allocation186_spill] sm:$0xff] %v16924_v26  ;;  %v5475_v23 = vrot.slane %v16992_v29, 5 }
 0xa59   : > { %v16928_v52 = vpop.permute.xlu1 %7969  ;;  %v6399_v57 = vcombine.high %v6382_v13, %v19262_v35 }
 0xa5a   : > { %8195 = vrot.lane.b32.xlu0 %v7233_v41, %s9991_s10  ;;  %v9238_v41 = vrot.slane %v9917_v21, 9  ;;  %v6367_v21 = vrot.slane %v6353_v10, %v19476_v31 }
 0xa5b   : > { %8201 = vrot.lane.b32.xlu1 %v6348_v59, %s9992_s15  ;;  %v16934_v53 = vpop.permute.xlu0 %7971 }
 0xa5c   : > { %19497 = vst [vmem:[#allocation182_spill] sm:$0xff] %v16934_v53 }
 0xa5d   : > { %v16938_v22 = vpop.permute.xlu1 %7977 }
 0xa5e   : > { %8203 = vrot.lane.b32.xlu0 %v7230_v54, %s9992_s15  ;;  %v7235_v54 = vcombine.high %v5663_v16, %v19262_v35 }
 0xa5f   : > { %8209 = vrot.lane.b32.xlu1 %v6352_v55, %s9994_s17  ;;  %v16947_v7 = vpop.permute.xlu0 %7979  ;;  %v18149_v55 = vrot.slane %v16977_v6, 5 }
 0xa60   : > { %19499 = vst [vmem:[#allocation83_spill] sm:$0xff] %v16947_v7 }
 0xa61   : > { %v16954_v25 = vpop.permute.xlu1 %7985  ;;  %v5356_v16 = vsel %vm15298_vm0, %v5354_v38, %v18149_v55  ;;  %v6390_v38 = vrot.slane %v6367_v21, %v15329_v27  ;;  %v19504_v55 = vld [vmem:[#allocation167_spill] sm:$0xff] }
 0xa62   : > { %8211 = vrot.lane.b32.xlu0 %v7234_v39, %s9994_s17  ;;  %v5474_v39 = vrot.slane %v5472_v15, 4 }
 0xa63   : > { %8217 = vrot.lane.b32.xlu1 %v6398_v8, %s9987_s27  ;;  %v16961_v47 = vpop.permute.xlu0 %7987  ;;  %v5353_v8 = vsel %vm15298_vm0, %v9238_v41, %v5352_v18  ;;  %v5473_v18 = vsel %vm15298_vm0, %v9250_v33, %v5472_v15 }
 0xa64   : > { %19501 = vst [vmem:[#allocation229_spill] sm:$0xff] %v16961_v47  ;;  %v5476_v10 = vsel %vm15298_vm0, %v5474_v39, %v5475_v23  ;;  %v5574_v11 = vcombine.low %v5353_v8, %v5356_v16 }
 0xa65   : > { %v16966_v14 = vpop.permute.xlu1 %7993  ;;  %v5592_v39 = vcombine.low %v5473_v18, %v5476_v10  ;;  %v9921_v18 = vld [vmem:[%s10107_s26 + $0xc0] sm:$0xff] }
 0xa66   : > { %8219 = vrot.lane.b32.xlu0 %v7280_v9, %s9987_s27  ;;  %v5221_v10 = vcombine.high %v9921_v18, %v9921_v18 }
 0xa67   : > { %8225 = vrot.lane.b32.xlu1 %v6382_v13, %s19305_s24  ;;  %v16972_v59 = vpop.permute.xlu0 %7995  ;;  %v7249_v13 = vrot.slane %v7235_v54, %v19476_v31  ;;  %v19506_v54 = vld [vmem:[#allocation259_spill] sm:$0xff] }
 0xa68   : > { %19502 = vst [vmem:[#allocation184_spill] sm:$0xff] %v16972_v59  ;;  %v5556_v33 = vmul.f32 %v19488_v58, %v19506_v54  ;;  %v5477_v59 = vrot.slane %v5475_v23, 4 }
 0xa69   : > { %v16980_v34 = vpop.permute.xlu1 %8001  ;;  %v7272_v15 = vrot.slane %v7249_v13, %v15329_v27  ;;  %v7265_v36 = vcombine.high %v7249_v13, %v19262_v35 }
 0xa6a   : > { %8227 = vrot.lane.b32.xlu0 %v7264_v4, %s19305_s24  ;;  %v17026_v54 = vadd.f32 %v5592_v39, %v5556_v33 }
 0xa6b   : > { %8233 = vrot.lane.b32.xlu1 %v6399_v57, %s9989_s29  ;;  %v16996_v9 = vpop.permute.xlu0 %8003  ;;  %v5538_v57 = vmul.f32 %v19486_v48, %v19504_v55  ;;  %v6383_v55 = vcombine.high %v6367_v21, %v19262_v35  ;;  %v7282_v46 = vcombine.high %v7272_v15, %v19262_v35  ;;  %v7279_v33 = vrot.slane %v7265_v36, %v15329_v27 }
 0xa6c   : > { %19503 = vst [vmem:[#allocation62_spill] sm:$0xff] %v16996_v9  ;;  %v7291_v39 = vrot.slane %v17026_v54, %v19476_v31 }
 0xa6d   : > { %v17004_v41 = vpop.permute.xlu1 %8009  ;;  %v5646_v8 = vadd.f32 %v5574_v11, %v5538_v57  ;;  %v6397_v11 = vrot.slane %v6383_v55, %v15329_v27  ;;  %v5362_v55 = vrot.slane %v5221_v10, 5 }
 0xa6e   : > { %8235 = vrot.lane.b32.xlu0 %v7281_v37, %s9989_s29  ;;  %v6400_v37 = vcombine.high %v6390_v38, %v19262_v35 }
 0xa6f   : > { %8241 = vrot.lane.b32.xlu1 %v6390_v38, %s9990_s30  ;;  %v17011_v4 = vpop.permute.xlu0 %8011  ;;  %v6409_v21 = vrot.slane %v5646_v8, %v19476_v31  ;;  %v9922_v38 = vld [vmem:[%s10107_s26 + $0x1a0] sm:$0xff]  ;;  %v6401_v36 = vcombine.high %v6397_v11, %v19262_v35  ;;  %v5364_v26 = vrot.slane %v5362_v55, 4 }
 0xa70   : > { %19505 = vst [vmem:[#allocation232_spill] sm:$0xff] %v17011_v4  ;;  %v5245_v57 = vcombine.high %v9922_v38, %v9922_v38  ;;  %v9924_v4 = vld [vmem:[%s10107_s26 + $0x1a8] sm:$0x3f]  ;;  %v9251_v53 = vrot.slane %v9922_v38, 9 }
 0xa71   : > { %v17016_v5 = vpop.permute.xlu1 %8017  ;;  %v5246_v7 = vcombine.high %v9924_v4, %v9924_v4  ;;  %v5485_v24 = vrot.slane %v9924_v4, 5  ;;  %v7283_v4 = vcombine.high %v7279_v33, %v19262_v35 }
 0xa72   : > { %19507 = vst [vmem:[#allocation246_spill] sm:$0xff] %v17016_v5  ;;  %8243 = vrot.lane.b32.xlu0 %v7272_v15, %s9990_s30  ;;  %v5220_v15 = vcombine.high %v16977_v6, %v16977_v6 }
 0xa73   : > { %8249 = vrot.lane.b32.xlu1 %v6400_v37, %s9991_s10  ;;  %v17022_v16 = vpop.permute.xlu0 %8019  ;;  %v9239_v37 = vrot.slane %v9921_v18, 9  ;;  %v5487_v38 = vrot.slane %v5485_v24, 4 }
 0xa74   : > { %19508 = vst [vmem:[#allocation102_spill] sm:$0xff] %v17022_v16  ;;  %v9923_v16 = vld [vmem:[%s10107_s26 + $0xc8] sm:$0x3f]  ;;  %v5358_v10 = vrot.slane %v5220_v15, 5  ;;  %v6417_v15 = vcombine.high %v6409_v21, %v19262_v35  ;;  %s9276_s26 = smul.u32 576, %s10076_s6  ;;  %s17593_s6 = scalar_lea.sflag [#allocation4], %s328_s25 }
 0xa75   : > { %v17029_v20 = vpop.permute.xlu1 %8025  ;;  %v5222_v47 = vcombine.high %v9923_v16, %v9923_v16  ;;  %v5365_v19 = vrot.slane %v9923_v16, 5  ;;  %v5363_v23 = vsel %vm15298_vm0, %v9239_v37, %v5362_v55 }
 0xa76   : > { %19509 = vst [vmem:[#allocation105_spill] sm:$0xff] %v17029_v20  ;;  %8251 = vrot.lane.b32.xlu0 %v7282_v46, %s9991_s10  ;;  %v5244_v46 = vcombine.high %v16992_v29, %v16992_v29  ;;  %v5482_v20 = vrot.slane %v5245_v57, 5  ;;  %v19512_v29 = vrot.slane %v16977_v6, 5 }
 0xa77   : > { %8257 = vrot.lane.b32.xlu1 %v6397_v11, %s9992_s15  ;;  %v17038_v13 = vpop.permute.xlu0 %8027  ;;  %v5367_v45 = vrot.slane %v5365_v19, 4  ;;  %v5368_v5 = vrot.slane %v5222_v47, 5  ;;  %v5366_v37 = vsel %vm15298_vm0, %v5364_v26, %v5365_v19  ;;  %v19515_v26 = vld [vmem:[#allocation260_spill] sm:$0xff] }
 0xa78   : > { %19510 = vst [vmem:[#allocation48_spill] sm:$0xff] %v17038_v13  ;;  %v17052_v13 = vrot.slane %v6409_v21, %v15329_v27  ;;  %v5357_v18 = vrot.slane %v19512_v29, 4  ;;  %v5478_v11 = vrot.slane %v5244_v46, 5 }
 0xa79   : > { %v17047_v9 = vpop.permute.xlu1 %8033 }
 0xa7a   : > { %19511 = vst [vmem:[#allocation224_spill] sm:$0xff] %v17047_v9  ;;  %8259 = vrot.lane.b32.xlu0 %v7279_v33, %s9992_s15  ;;  %v17061_v9 = vrot.slane %v7291_v39, %v15329_v27  ;;  %v6447_v6 = vcombine.high %v17052_v13, %v19262_v35  ;;  %v5484_v33 = vrot.slane %v5482_v20, 4  ;;  %v5359_v29 = vsel %vm15298_vm0, %v5357_v18, %v5358_v10 }
 0xa7b   : > { %8265 = vrot.lane.b32.xlu1 %v6401_v36, %s9994_s17  ;;  %v17057_v16 = vpop.permute.xlu0 %8035  ;;  %v5488_v36 = vrot.slane %v5246_v7, 5  ;;  %v5479_v21 = vsel %vm15298_vm0, %v5477_v59, %v5478_v11  ;;  %v5483_v7 = vsel %vm15298_vm0, %v9251_v53, %v5482_v20  ;;  %v6402_v18 = vcombine.high %v5646_v8, %v19262_v35 }
 0xa7c   : > { %19513 = vst [vmem:[#allocation189_spill] sm:$0xff] %v17061_v9  ;;  %v7329_v46 = vcombine.high %v17061_v9, %v19262_v35  ;;  %v6431_v10 = vrot.slane %v6417_v15, %v15329_v27  ;;  %v5369_v59 = vsel %vm15298_vm0, %v5367_v45, %v5368_v5  ;;  %v7284_v20 = vcombine.high %v17026_v54, %v19262_v35 }
 0xa7d   : > { %v17063_v57 = vpop.permute.xlu1 %8041  ;;  %v5593_v53 = vcombine.low %v5479_v21, %v5483_v7  ;;  %v5557_v11 = vmul.f32 %v19488_v58, %v19515_v26  ;;  %v5486_v15 = vsel %vm15298_vm0, %v5484_v33, %v5485_v24  ;;  %v6416_v45 = vrot.slane %v6402_v18, %v19476_v31  ;;  %v19517_v7 = vld [vmem:[#allocation277_spill] sm:$0xff] }
 0xa7e   : > { %8267 = vrot.lane.b32.xlu0 %v7283_v4, %s9994_s17  ;;  %v7299_v4 = vcombine.high %v7291_v39, %v19262_v35  ;;  %v5575_v39 = vcombine.low %v5359_v29, %v5363_v23  ;;  %v5489_v29 = vsel %vm15298_vm0, %v5487_v38, %v5488_v36  ;;  %v5576_v5 = vcombine.low %v5366_v37, %v5369_v59  ;;  %v19516_v23 = vld [vmem:[#allocation32_spill] sm:$0xff]  ;;  %v19518_v36 = vld [vmem:[#allocation82_spill] sm:$0xff] }
 0xa7f   : > { %8273 = vrot.lane.b32.xlu1 %v6447_v6, %s9987_s27  ;;  %v17074_v47 = vpop.permute.xlu0 %8043  ;;  %v19514_v6 = vld [vmem:[#allocation168_spill] sm:$0xff]  ;;  %v7298_v12 = vrot.slane %v7284_v20, %v19476_v31  ;;  %v5594_v38 = vcombine.low %v5486_v15, %v5489_v29  ;;  %v6439_v59 = vrot.slane %v6416_v45, %v15329_v27 }
 0xa80   : > { %v5539_v9 = vmul.f32 %v19486_v48, %v19514_v6  ;;  %v7313_v19 = vrot.slane %v7299_v4, %v15329_v27  ;;  %v6448_v4 = vcombine.high %v6431_v10, %v19262_v35  ;;  %v5540_v6 = vmul.f32 %v19486_v48, %v19517_v7 }
 0xa81   : > { %v8050_v55 = vpop.permute.xlu1 %8049 }
 0xa82   : > { %8275 = vrot.lane.b32.xlu0 %v7329_v46, %s9987_s27  ;;  %v8593_v54 = vsel %vm1629_vm2, %v19516_v23, %v8050_v55  ;;  %v17107_v21 = vadd.f32 %v5575_v39, %v5539_v9  ;;  %v7330_v37 = vcombine.high %v7313_v19, %v19262_v35  ;;  %v17117_v55 = vadd.f32 %v5593_v53, %v5557_v11  ;;  %v19519_v9 = vld [vmem:[#allocation99_spill] sm:$0xff] }
 0xa83   : > { %8281 = vrot.lane.b32.xlu1 %v6431_v10, %s19305_s24  ;;  %v8052_v8 = vpop.permute.xlu0 %8051  ;;  %v5558_v10 = vmul.f32 %v19488_v58, %v19519_v9 }
 0xa84   : > { %v8594_v33 = vsel %vm1629_vm2, %v19518_v36, %v8052_v8  ;;  %v6458_v20 = vrot.slane %v17107_v21, %v19476_v31  ;;  %v17126_v8 = vadd.f32 %v5576_v5, %v5540_v6  ;;  %v7340_v58 = vrot.slane %v17117_v55, %v19476_v31 }
 0xa85   : > { %v8058_v46 = vpop.permute.xlu1 %8057  ;;  %v17133_v11 = vadd.f32 %v5594_v38, %v5558_v10  ;;  %v6449_v5 = vcombine.high %v6439_v59, %v19262_v35 }
 0xa86   : > { %8283 = vrot.lane.b32.xlu0 %v7313_v19, %s19305_s24  ;;  %v8595_v24 = vsel %vm1678_vm3, %v8593_v54, %v8058_v46  ;;  %v7321_v19 = vrot.slane %v7298_v12, %v15329_v27  ;;  %v17139_v23 = vrot.slane %v6458_v20, %v15329_v27  ;;  %v6507_v54 = vrot.slane %v17126_v8, %v19476_v31 }
 0xa87   : > { %8289 = vrot.lane.b32.xlu1 %v6448_v4, %s9989_s29  ;;  %v8060_v18 = vpop.permute.xlu0 %8059  ;;  %v17147_v6 = vrot.slane %v7340_v58, %v15329_v27 }
 0xa88   : > { %v8596_v48 = vsel %vm1678_vm3, %v8594_v33, %v8060_v18  ;;  %19520 = vst [vmem:[#allocation22_spill] sm:$0xff] %v17139_v23  ;;  %v7331_v7 = vcombine.high %v7321_v19, %v19262_v35  ;;  %v6496_v33 = vcombine.high %v17139_v23, %v19262_v35  ;;  %v17156_v18 = vrot.slane %v6507_v54, %v15329_v27 }
 0xa89   : > { %v8066_v39 = vpop.permute.xlu1 %8065  ;;  %19521 = vst [vmem:[#allocation254_spill] sm:$0xff] %v17147_v6  ;;  %v7378_v10 = vcombine.high %v17147_v6, %v19262_v35  ;;  %v19528_v6 = vld [vmem:[#allocation268_spill] sm:$0xff] }
 0xa8a   : > { %8291 = vrot.lane.b32.xlu0 %v7330_v37, %s9989_s29  ;;  %v8597_v26 = vsel %vm1727_vm4, %v8595_v24, %v8066_v39  ;;  %v7389_v24 = vrot.slane %v17133_v11, %v19476_v31  ;;  %19522 = vst [vmem:[#allocation205_spill] sm:$0xff] %v17156_v18 }
 0xa8b   : > { %8297 = vrot.lane.b32.xlu1 %v6439_v59, %s9990_s30  ;;  %v8068_v53 = vpop.permute.xlu0 %8067 }
 0xa8c   : > { %v8598_v15 = vsel %vm1727_vm4, %v8596_v48, %v8068_v53  ;;  %v17163_v48 = vrot.slane %v7389_v24, %v15329_v27  ;;  %v6432_v53 = vcombine.high %v6416_v45, %v19262_v35 }
 0xa8d   : > { %v8074_v29 = vpop.permute.xlu1 %8073 }
 0xa8e   : > { %8299 = vrot.lane.b32.xlu0 %v7321_v19, %s9990_s30  ;;  %v8599_v46 = vsel %vm1776_vm5, %v8597_v26, %v8074_v29  ;;  %19523 = vst [vmem:[#allocation98_spill] sm:$0xff] %v17163_v48  ;;  %v6545_v26 = vcombine.high %v17156_v18, %v19262_v35  ;;  %v7427_v29 = vcombine.high %v17163_v48, %v19262_v35 }
 0xa8f   : > { %8305 = vrot.lane.b32.xlu1 %v6449_v5, %s9991_s10  ;;  %v8076_v4 = vpop.permute.xlu0 %8075  ;;  %v7314_v5 = vcombine.high %v7298_v12, %v19262_v35  ;;  %v8551_v18 = vsel %vm1629_vm2, %v19528_v6, %v16757_v17  ;;  %v19530_v6 = vld [vmem:[#allocation88_spill] sm:$0xff] }
 0xa90   : > { %v8600_v38 = vsel %vm1776_vm5, %v8598_v15, %v8076_v4 }
 0xa91   : > { %v8082_v36 = vpop.permute.xlu1 %8081 }
 0xa92   : > { %8307 = vrot.lane.b32.xlu0 %v7331_v7, %s9991_s10  ;;  %v8601_v37 = vsel %vm1825_vm6, %v8599_v46, %v8082_v36  ;;  %v6446_v7 = vrot.slane %v6432_v53, %v15329_v27 }
 0xa93   : > { %8329 = vrot.lane.b32.xlu1 %v6496_v33, %s9987_s27  ;;  %v8084_v9 = vpop.permute.xlu0 %8083  ;;  %v7328_v33 = vrot.slane %v7314_v5, %v15329_v27 }
 0xa94   : > { %v8602_v39 = vsel %vm1825_vm6, %v8600_v38, %v8084_v9  ;;  %v6466_v38 = vcombine.high %v6458_v20, %v19262_v35  ;;  %v6515_v20 = vcombine.high %v6507_v54, %v19262_v35 }
 0xa95   : > { %v8090_v59 = vpop.permute.xlu1 %8089 }
 0xa96   : > { %8331 = vrot.lane.b32.xlu0 %v7378_v10, %s9987_s27  ;;  %v8603_v19 = vsel %vm1874_vm7, %v8601_v37, %v8090_v59  ;;  %v7348_v37 = vcombine.high %v7340_v58, %v19262_v35  ;;  %v6480_v10 = vrot.slane %v6466_v38, %v15329_v27 }
 0xa97   : > { %8385 = vrot.lane.b32.xlu1 %v6545_v26, %s9987_s27  ;;  %v8092_v15 = vpop.permute.xlu0 %8091  ;;  %v7397_v26 = vcombine.high %v7389_v24, %v19262_v35 }
 0xa98   : > { %v8604_v46 = vsel %vm1874_vm7, %v8602_v39, %v8092_v15  ;;  %v7362_v59 = vrot.slane %v7348_v37, %v15329_v27 }
 0xa99   : > { %v8098_v4 = vpop.permute.xlu1 %8097  ;;  %v7411_v5 = vrot.slane %v7397_v26, %v15329_v27 }
 0xa9a   : > { %8387 = vrot.lane.b32.xlu0 %v7427_v29, %s9987_s27  ;;  %v17180_v45 = vsel %vm1923_vm8, %v8603_v19, %v8098_v4  ;;  %v6529_v19 = vrot.slane %v6515_v20, %v15329_v27  ;;  %v6451_v20 = vcombine.high %v17107_v21, %v19262_v35  ;;  %v7379_v26 = vcombine.high %v7362_v59, %v19262_v35  ;;  %s8984_s27 = sshll.u32 %s16812_s18, 4  ;;  %s17581_s27 = int_to_ptr.vmem [resolvable:$true] %s8984_s27 }
 0xa9b   : > { %8313 = vrot.lane.b32.xlu1 %v6446_v7, %s9992_s15  ;;  %v8100_v36 = vpop.permute.xlu0 %8099  ;;  %v6500_v21 = vcombine.high %v17126_v8, %v19262_v35 }
 0xa9c   : > { %v17186_v12 = vsel %vm1923_vm8, %v8604_v46, %v8100_v36  ;;  %v7332_v36 = vcombine.high %v7328_v33, %v19262_v35 }
 0xa9d   : > { %v8106_v9 = vpop.permute.xlu1 %8105  ;;  %v6514_v8 = vrot.slane %v6500_v21, %v19476_v31 }
 0xa9e   : > { %8315 = vrot.lane.b32.xlu0 %v7328_v33, %s9992_s15  ;;  %v8607_v58 = vsel %vm1629_vm2, %v16427_v1, %v8106_v9  ;;  %v6450_v1 = vcombine.high %v6446_v7, %v19262_v35  ;;  %v6497_v9 = vcombine.high %v6480_v10, %v19262_v35  ;;  %v7333_v33 = vcombine.high %v17117_v55, %v19262_v35 }
 0xa9f   : > { %8337 = vrot.lane.b32.xlu1 %v6480_v10, %s19305_s24  ;;  %v8108_v39 = vpop.permute.xlu0 %8107  ;;  %v6546_v10 = vcombine.high %v6529_v19, %v19262_v35 }
 0xaa0   : > { %v8608_v54 = vsel %vm1629_vm2, %v16430_v32, %v8108_v39  ;;  %v7347_v55 = vrot.slane %v7333_v33, %v19476_v31 }
 0xaa1   : > { %v8114_v53 = vpop.permute.xlu1 %8113 }
 0xaa2   : > { %8339 = vrot.lane.b32.xlu0 %v7362_v59, %s19305_s24  ;;  %v8609_v15 = vsel %vm1678_vm3, %v8607_v58, %v8114_v53 }
 0xaa3   : > { %8393 = vrot.lane.b32.xlu1 %v6529_v19, %s19305_s24  ;;  %v8116_v29 = vpop.permute.xlu0 %8115 }
 0xaa4   : > { %v8610_v24 = vsel %vm1678_vm3, %v8608_v54, %v8116_v29  ;;  %v7428_v29 = vcombine.high %v7411_v5, %v19262_v35 }
 0xaa5   : > { %v8122_v46 = vpop.permute.xlu1 %8121 }
 0xaa6   : > { %8395 = vrot.lane.b32.xlu0 %v7411_v5, %s19305_s24  ;;  %v8611_v4 = vsel %vm1727_vm4, %v8609_v15, %v8122_v46  ;;  %v6465_v15 = vrot.slane %v6451_v20, %v19476_v31  ;;  %v7370_v5 = vrot.slane %v7347_v55, %v15329_v27 }
 0xaa7   : > { %8321 = vrot.lane.b32.xlu1 %v6450_v1, %s9994_s17 }
 0xaa8   : > { %v8124_v38 = vpop.permute.xlu0 %8123  ;;  %v6488_v1 = vrot.slane %v6465_v15, %v15329_v27 }
 0xaa9   : > { %v8612_v32 = vsel %vm1727_vm4, %v8610_v24, %v8124_v38  ;;  %v8130_v37 = vpop.permute.xlu1 %8129  ;;  %v7382_v24 = vcombine.high %v17133_v11, %v19262_v35 }
 0xaaa   : > { %8323 = vrot.lane.b32.xlu0 %v7332_v36, %s9994_s17  ;;  %v8613_v39 = vsel %vm1776_vm5, %v8611_v4, %v8130_v37  ;;  %v6537_v37 = vrot.slane %v6514_v8, %v15329_v27 }
 0xaab   : > { %8345 = vrot.lane.b32.xlu1 %v6497_v9, %s9989_s29  ;;  %v7396_v36 = vrot.slane %v7382_v24, %v19476_v31  ;;  %v6498_v31 = vcombine.high %v6488_v1, %v19262_v35 }
 0xaac   : > { %v8132_v7 = vpop.permute.xlu0 %8131  ;;  %v6547_v21 = vcombine.high %v6537_v37, %v19262_v35 }
 0xaad   : > { %v8614_v58 = vsel %vm1776_vm5, %v8612_v32, %v8132_v7  ;;  %v8138_v53 = vpop.permute.xlu1 %8137 }
 0xaae   : > { %8347 = vrot.lane.b32.xlu0 %v7379_v26, %s9989_s29  ;;  %v8615_v54 = vsel %vm1825_vm6, %v8613_v39, %v8138_v53  ;;  %v7419_v39 = vrot.slane %v7396_v36, %v15329_v27 }
 0xaaf   : > { %8401 = vrot.lane.b32.xlu1 %v6546_v10, %s9989_s29 }
 0xab0   : > { %v8140_v59 = vpop.permute.xlu0 %8139 }
 0xab1   : > { %v8616_v46 = vsel %vm1825_vm6, %v8614_v58, %v8140_v59  ;;  %v8146_v19 = vpop.permute.xlu1 %8145  ;;  %v7380_v58 = vcombine.high %v7370_v5, %v19262_v35 }
 0xab2   : > { %8403 = vrot.lane.b32.xlu0 %v7428_v29, %s9989_s29  ;;  %v8617_v4 = vsel %vm1874_vm7, %v8615_v54, %v8146_v19  ;;  %v6481_v54 = vcombine.high %v6465_v15, %v19262_v35  ;;  %v7363_v19 = vcombine.high %v7347_v55, %v19262_v35  ;;  %v6530_v15 = vcombine.high %v6514_v8, %v19262_v35 }
 0xab3   : > { %8353 = vrot.lane.b32.xlu1 %v6488_v1, %s9990_s30 }
 0xab4   : > { %v8148_v38 = vpop.permute.xlu0 %8147 }
 0xab5   : > { %v8618_v11 = vsel %vm1874_vm7, %v8616_v46, %v8148_v38  ;;  %v8154_v32 = vpop.permute.xlu1 %8153  ;;  %v7429_v46 = vcombine.high %v7419_v39, %v19262_v35 }
 0xab6   : > { %8355 = vrot.lane.b32.xlu0 %v7370_v5, %s9990_s30  ;;  %v17243_v9 = vsel %vm1923_vm8, %v8617_v4, %v8154_v32  ;;  %v6495_v4 = vrot.slane %v6481_v54, %v15329_v27  ;;  %v7377_v5 = vrot.slane %v7363_v19, %v15329_v27 }
 0xab7   : > { %8409 = vrot.lane.b32.xlu1 %v6537_v37, %s9990_s30  ;;  %v6544_v37 = vrot.slane %v6530_v15, %v15329_v27 }
 0xab8   : > { %v8156_v20 = vpop.permute.xlu0 %8155 }
 0xab9   : > { %v17248_v7 = vsel %vm1923_vm8, %v8618_v11, %v8156_v20  ;;  %v8162_v26 = vpop.permute.xlu1 %8161  ;;  %v7412_v11 = vcombine.high %v7396_v36, %v19262_v35  ;;  %v6499_v36 = vcombine.high %v6495_v4, %v19262_v35 }
 0xaba   : > { %19524 = vst [vmem:[#allocation244_spill] sm:$0xff] %v17248_v7  ;;  %8411 = vrot.lane.b32.xlu0 %v7419_v39, %s9990_s30  ;;  %v8621_v53 = vsel %vm1629_vm2, %v16853_v28, %v8162_v26  ;;  %v8553_v7 = vsel %vm1678_vm3, %v8551_v18, %v16786_v51 }
 0xabb   : > { %8361 = vrot.lane.b32.xlu1 %v6498_v31, %s9991_s10  ;;  %v7426_v39 = vrot.slane %v7412_v11, %v15329_v27  ;;  %v6548_v27 = vcombine.high %v6544_v37, %v19262_v35  ;;  %v8555_v17 = vsel %vm1727_vm4, %v8553_v7, %v16815_v62 }
 0xabc   : > { %v8164_v33 = vpop.permute.xlu0 %8163  ;;  %v8557_v51 = vsel %vm1776_vm5, %v8555_v17, %v16828_v43  ;;  %v19538_v17 = vld [vmem:[#allocation182_spill] sm:$0xff] }
 0xabd   : > { %v8170_v10 = vpop.permute.xlu1 %8169  ;;  %v8622_v29 = vsel %vm1629_vm2, %v16860_v40, %v8164_v33 }
 0xabe   : > { %8363 = vrot.lane.b32.xlu0 %v7380_v58, %s9991_s10  ;;  %v8623_v59 = vsel %vm1678_vm3, %v8621_v53, %v8170_v10  ;;  %v7381_v53 = vcombine.high %v7377_v5, %v19262_v35 }
 0xabf   : > { %8417 = vrot.lane.b32.xlu1 %v6547_v21, %s9991_s10 }
 0xac0   : > { %v8172_v24 = vpop.permute.xlu0 %8171 }
 0xac1   : > { %v8624_v28 = vsel %vm1678_vm3, %v8622_v29, %v8172_v24  ;;  %v8178_v1 = vpop.permute.xlu1 %8177  ;;  %v7430_v29 = vcombine.high %v7426_v39, %v19262_v35 }
 0xac2   : > { %8419 = vrot.lane.b32.xlu0 %v7429_v46, %s9991_s10  ;;  %v8625_v38 = vsel %vm1727_vm4, %v8623_v59, %v8178_v1  ;;  %s17588_s10 = scalar_lea.hbm %s17642_s9, %s9276_s26 }
 0xac3   : > { %8369 = vrot.lane.b32.xlu1 %v6495_v4, %s9992_s15 }
 0xac4   : > { %v8180_v40 = vpop.permute.xlu0 %8179 }
 0xac5   : > { %v8626_v55 = vsel %vm1727_vm4, %v8624_v28, %v8180_v40  ;;  %v8186_v32 = vpop.permute.xlu1 %8185 }
 0xac6   : > { %8371 = vrot.lane.b32.xlu0 %v7377_v5, %s9992_s15  ;;  %v8627_v20 = vsel %vm1776_vm5, %v8625_v38, %v8186_v32 }
 0xac7   : > { %8425 = vrot.lane.b32.xlu1 %v6544_v37, %s9992_s15 }
 0xac8   : > { %v8188_v8 = vpop.permute.xlu0 %8187 }
 0xac9   : > { %v8628_v26 = vsel %vm1776_vm5, %v8626_v55, %v8188_v8  ;;  %v8194_v31 = vpop.permute.xlu1 %8193 }
 0xaca   : > { %8427 = vrot.lane.b32.xlu0 %v7426_v39, %s9992_s15  ;;  %v8629_v33 = vsel %vm1825_vm6, %v8627_v20, %v8194_v31  ;;  %s9925_s15 = scalar_lea.vmem %s17581_s27, 576 }
 0xacb   : > { %8377 = vrot.lane.b32.xlu1 %v6499_v36, %s9994_s17  ;;  %p9926_p11 = scmp.ne.s32.totalorder %s17581_s27, %s9925_s15 }
 0xacc   : > { %v8196_v58 = vpop.permute.xlu0 %8195 }
 0xacd   : > { %v8630_v10 = vsel %vm1825_vm6, %v8628_v26, %v8196_v58  ;;  %v8202_v21 = vpop.permute.xlu1 %8201  ;;  %p9927_p12 = pnand %p9926_p11, %p10093_p5 }
 0xace   : > { %8379 = vrot.lane.b32.xlu0 %v7381_v53, %s9994_s17  ;;  %v8631_v54 = vsel %vm1874_vm7, %v8629_v33, %v8202_v21 }
 0xacf   : > { %8433 = vrot.lane.b32.xlu1 %v6548_v27, %s9994_s17  ;;  %p9928_p13 = pneg %p9927_p12 }
 0xad0   : > { %v8204_v59 = vpop.permute.xlu0 %8203 }
 0xad1   : > { %v8632_v24 = vsel %vm1874_vm7, %v8630_v10, %v8204_v59  ;;  %v8210_v46 = vpop.permute.xlu1 %8209 }
 0xad2   : > { %8435 = vrot.lane.b32.xlu0 %v7430_v29, %s9994_s17  ;;  %v17294_v19 = vsel %vm1923_vm8, %v8631_v54, %v8210_v46  ;;  %s9999_s17 = smov [#allocation3]  }
 0xad3   : > { %s9929_s22 = sshll.u32 %s9999_s17, 4  ;;  %s9930_s22 = int_to_ptr.vmem [resolvable:$false] %s9929_s22 }
 0xad4   : > { %v8212_v1 = vpop.permute.xlu0 %8211  ;;  %s9931_s23 = scalar_lea.vmem %s9930_s22, 1152  ;;  %p9932_p0 = scmp.lt.s32.totalorder %s17581_s27, %s9930_s22 }
 0xad5   : > { %v17299_v4 = vsel %vm1923_vm8, %v8632_v24, %v8212_v1  ;;  %v17303_v38 = vpop.permute.xlu1 %8217  ;;  %v19527_v1 = vld [vmem:[#allocation178_spill] sm:$0xff]  ;;  %p9933_p1 = scmp.lt.s32.totalorder %s9931_s23, %s9925_s15 }
 0xad6   : > { %19525 = vst [vmem:[#allocation180_spill] sm:$0xff] %v17299_v4  ;;  %v8565_v15 = vsel %vm1629_vm2, %v19527_v1, %v16876_v60  ;;  %v19529_v4 = vld [vmem:[#allocation197_spill] sm:$0xff] }
 0xad7   : > { %v8567_v28 = vsel %vm1678_vm3, %v8565_v15, %v16888_v49  ;;  %p9934_p2 = por %p9933_p1, %p9932_p0 }
 0xad8   : > { %v17305_v35 = vpop.permute.xlu0 %8219  ;;  %v8569_v23 = vsel %vm1727_vm4, %v8567_v28, %v16906_v30  ;;  %v19532_v28 = vld [vmem:[#allocation246_spill] sm:$0xff] }
 0xad9   : > { %v17307_v40 = vpop.permute.xlu1 %8225  ;;  %v8571_v60 = vsel %vm1776_vm5, %v8569_v23, %v16918_v0  ;;  %v19531_v0 = vld [vmem:[#allocation75_spill] sm:$0xff]  ;;  %p9935_p3 = pnand %p9934_p2, %p9928_p13 }
 0xada   : > { %v8573_v30 = vsel %vm1825_vm6, %v8571_v60, %v16928_v52  ;;  %v8566_v23 = vsel %vm1629_vm2, %v19531_v0, %v16883_v3  ;;  %v8559_v52 = vsel %vm1825_vm6, %v8557_v51, %v16838_v50  ;;  %v19536_v60 = vld [vmem:[#allocation67_spill] sm:$0xff]  ;;  %v19540_v51 = vld [vmem:[#allocation224_spill] sm:$0xff] }
 0xadc   : > { %v17309_v5 = vpop.permute.xlu0 %8227 }
 0xadd   : > { %v17311_v11 = vpop.permute.xlu1 %8233 }
 0xae0   : > { %v17313_v55 = vpop.permute.xlu0 %8235 }
 0xae1   : > { %v17315_v32 = vpop.permute.xlu1 %8241 }
 0xae4   : > { %v17317_v37 = vpop.permute.xlu0 %8243 }
 0xae5   : > { %v17319_v20 = vpop.permute.xlu1 %8249 }
 0xae8   : > { %v17321_v8 = vpop.permute.xlu0 %8251 }
 0xae9   : > { %v17323_v39 = vpop.permute.xlu1 %8257 }
 0xaec   : > { %v17325_v26 = vpop.permute.xlu0 %8259 }
 0xaed   : > { %v17327_v31 = vpop.permute.xlu1 %8265 }
 0xaf0   : > { %v17329_v36 = vpop.permute.xlu0 %8267 }
 0xaf1   : > { %v17331_v33 = vpop.permute.xlu1 %8273 }
 0xaf4   : > { %v17333_v58 = vpop.permute.xlu0 %8275 }
 0xaf5   : > { %v17335_v53 = vpop.permute.xlu1 %8281 }
 0xaf8   : > { %v17337_v10 = vpop.permute.xlu0 %8283 }
 0xaf9   : > { %v17339_v21 = vpop.permute.xlu1 %8289 }
 0xafc   : > { %v17341_v27 = vpop.permute.xlu0 %8291 }
 0xafd   : > { %v17343_v54 = vpop.permute.xlu1 %8297 }
 0xb00   : > { %v17345_v59 = vpop.permute.xlu0 %8299 }
 0xb01   : > { %v17347_v29 = vpop.permute.xlu1 %8305 }
 0xb04   : > { %v17349_v24 = vpop.permute.xlu0 %8307 }
 0xb05   : > { %v17351_v46 = vpop.permute.xlu1 %8329 }
 0xb06   : > { %19526 = vst [vmem:[#allocation86_spill] sm:$0xff] %v17351_v46  ;;  %v8552_v46 = vsel %vm1629_vm2, %v19529_v4, %v16775_v56  ;;  %v8579_v56 = vsel %vm1629_vm2, %v19530_v6, %v16966_v14  ;;  %v8568_v14 = vsel %vm1678_vm3, %v8566_v23, %v16898_v61  ;;  %v19533_v61 = vld [vmem:[#allocation30_spill] sm:$0xff] }
 0xb07   : > { %v8554_v15 = vsel %vm1678_vm3, %v8552_v46, %v16803_v2  ;;  %v8575_v2 = vsel %vm1874_vm7, %v8573_v30, %v16938_v22  ;;  %v8581_v62 = vsel %vm1678_vm3, %v8579_v56, %v16980_v34  ;;  %v8561_v34 = vsel %vm1874_vm7, %v8559_v52, %v16848_v44  ;;  %v19539_v6 = vld [vmem:[#allocation62_spill] sm:$0xff]  ;;  %v19542_v52 = vld [vmem:[#allocation83_spill] sm:$0xff] }
 0xb08   : > { %v17358_v48 = vpop.permute.xlu0 %8331  ;;  %v8577_v43 = vsel %vm1923_vm8, %v8575_v2, %v16954_v25  ;;  %v8583_v3 = vsel %vm1727_vm4, %v8581_v62, %v17004_v41  ;;  %v8556_v22 = vsel %vm1727_vm4, %v8554_v15, %v16823_v42  ;;  %v8570_v7 = vsel %vm1727_vm4, %v8568_v14, %v16913_v63  ;;  %v19534_v25 = vld [vmem:[#allocation186_spill] sm:$0xff]  ;;  %v19535_v41 = vld [vmem:[#allocation184_spill] sm:$0xff]  ;;  %v19537_v15 = vld [vmem:[#allocation105_spill] sm:$0xff] }
 0xb09   : > { %v17372_v49 = vpop.permute.xlu1 %8385  ;;  %v8585_v50 = vsel %vm1776_vm5, %v8583_v3, %v19532_v28  ;;  %v8563_v46 = vsel %vm1923_vm8, %v8561_v34, %v19533_v61  ;;  %v8572_v1 = vsel %vm1776_vm5, %v8570_v7, %v19534_v25  ;;  %v8580_v42 = vsel %vm1629_vm2, %v19536_v60, %v19535_v41  ;;  %v19541_v2 = vld [vmem:[#allocation73_spill] sm:$0xff]  ;;  %v19543_v3 = vld [vmem:[#allocation232_spill] sm:$0xff]  ;;  %v19547_v41 = vld [vmem:[#allocation142_spill] sm:$0xff] }
 0xb0a   : > { %v8587_v44 = vsel %vm1825_vm6, %v8585_v50, %v19537_v15  ;;  %v8574_v63 = vsel %vm1825_vm6, %v8572_v1, %v19538_v17  ;;  %v8776_v30 = vcombine.low %v8563_v46, %v8577_v43  ;;  %v8582_v56 = vsel %vm1678_vm3, %v8580_v42, %v19539_v6  ;;  %v19544_v43 = vld [vmem:[#allocation23_spill] sm:$0xff]  ;;  %v19545_v50 = vld [vmem:[#allocation229_spill] sm:$0xff]  ;;  %v19546_v46 = vld [vmem:[#allocation102_spill] sm:$0xff] }
 0xb0b   : > { %v8589_v0 = vsel %vm1874_vm7, %v8587_v44, %v19540_v51  ;;  %v8558_v62 = vsel %vm1776_vm5, %v8556_v22, %v19541_v2  ;;  %v8576_v14 = vsel %vm1874_vm7, %v8574_v63, %v19542_v52  ;;  %v8584_v34 = vsel %vm1727_vm4, %v8582_v56, %v19543_v3  ;;  %v19548_v42 = vld [vmem:[#allocation48_spill] sm:$0xff]  ;;  %v19550_v17 = vld [vmem:[#allocation106_spill] sm:$0xff] }
 0xb0c   : > { %v17392_v18 = vpop.permute.xlu0 %8387  ;;  %v8591_v7 = vsel %vm1923_vm8, %v8589_v0, %v17063_v57  ;;  %v8560_v28 = vsel %vm1825_vm6, %v8558_v62, %v19544_v43  ;;  %v8578_v61 = vsel %vm1923_vm8, %v8576_v14, %v19545_v50  ;;  %v8586_v25 = vsel %vm1776_vm5, %v8584_v34, %v19546_v46  ;;  %v19549_v57 = vld [vmem:[#allocation150_spill] sm:$0xff]  ;;  %v19551_v0 = vld [vmem:[#allocation81_spill] sm:$0xff] }
 0xb0d   : > { %v8314_v4 = vpop.permute.xlu1 %8313  ;;  %v8777_v22 = vcombine.low %v8591_v7, %v17180_v45  ;;  %v8562_v60 = vsel %vm1874_vm7, %v8560_v28, %v19547_v41  ;;  %v8588_v15 = vsel %vm1825_vm6, %v8586_v25, %v19548_v42  ;;  %v8786_v63 = vrot.slane %v8776_v30, %v19550_v17  ;;  %v19555_v42 = vld [vmem:[#allocation244_spill] sm:$0xff] }
 0xb0e   : > { %v8564_v44 = vsel %vm1923_vm8, %v8562_v60, %v19549_v57  ;;  %v8590_v6 = vsel %vm1874_vm7, %v8588_v15, %v17057_v16  ;;  %v8635_v2 = vsel %vm1629_vm2, %v19551_v0, %v17303_v38  ;;  %v8649_v62 = vsel %vm1629_vm2, %v17052_v13, %v17331_v33  ;;  %v19553_v13 = vld [vmem:[#allocation189_spill] sm:$0xff]  ;;  %v19556_v15 = vld [vmem:[#allocation180_spill] sm:$0xff] }
 0xb0f   : > { %v8889_v51 = vcombine.low %v8564_v44, %v8578_v61  ;;  %v8592_v45 = vsel %vm1923_vm8, %v8590_v6, %v17074_v47  ;;  %v8793_v52 = vrot.slane %v8777_v22, %v19550_v17  ;;  %v8637_v16 = vsel %vm1678_vm3, %v8635_v2, %v17307_v40  ;;  %v19552_v47 = vld [vmem:[#allocation19_spill] sm:$0xff] }
 0xb10   : > { %v8316_v23 = vpop.permute.xlu0 %8315  ;;  %v8890_v30 = vcombine.low %v8592_v45, %v17186_v12  ;;  %v8651_v14 = vsel %vm1678_vm3, %v8649_v62, %v17335_v53  ;;  %v8636_v38 = vsel %vm1629_vm2, %v19552_v47, %v17305_v35  ;;  %v8639_v34 = vsel %vm1727_vm4, %v8637_v16, %v17311_v11 }
 0xb11   : > { %v17440_v1 = vpop.permute.xlu1 %8337  ;;  %v8650_v33 = vsel %vm1629_vm2, %v19553_v13, %v17333_v58  ;;  %v8653_v12 = vsel %vm1727_vm4, %v8651_v14, %v17339_v21  ;;  %v8638_v40 = vsel %vm1678_vm3, %v8636_v38, %v17309_v5  ;;  %v8641_v53 = vsel %vm1776_vm5, %v8639_v34, %v17315_v32 }
 0xb12   : > { %v8652_v7 = vsel %vm1678_vm3, %v8650_v33, %v17337_v10  ;;  %v8655_v35 = vsel %vm1776_vm5, %v8653_v12, %v17343_v54  ;;  %v8640_v58 = vsel %vm1727_vm4, %v8638_v40, %v17313_v55  ;;  %v8643_v21 = vsel %vm1825_vm6, %v8641_v53, %v17319_v20 }
 0xb13   : > { %v8654_v5 = vsel %vm1727_vm4, %v8652_v7, %v17341_v27  ;;  %v8657_v32 = vsel %vm1825_vm6, %v8655_v35, %v17347_v29  ;;  %v8642_v10 = vsel %vm1776_vm5, %v8640_v58, %v17317_v37  ;;  %v8645_v54 = vsel %vm1874_vm7, %v8643_v21, %v17323_v39  ;;  %v19558_v58 = vld [vmem:[#allocation86_spill] sm:$0xff] }
 0xb14   : > { %v17451_v56 = vpop.permute.xlu0 %8339  ;;  %v8656_v43 = vsel %vm1776_vm5, %v8654_v5, %v17345_v59  ;;  %v8659_v55 = vsel %vm1874_vm7, %v8657_v32, %v8314_v4  ;;  %v8644_v20 = vsel %vm1825_vm6, %v8642_v10, %v17321_v8  ;;  %v8647_v27 = vsel %vm1923_vm8, %v8645_v54, %v17327_v31  ;;  %v19559_v21 = vld [vmem:[#allocation22_spill] sm:$0xff]  ;;  %v19560_v32 = vld [vmem:[#allocation205_spill] sm:$0xff] }
 0xb15   : > { %v17467_v3 = vpop.permute.xlu1 %8393  ;;  %v8658_v29 = vsel %vm1825_vm6, %v8656_v43, %v17349_v24  ;;  %v8906_v50 = vrot.slane %v8890_v30, %v19550_v17  ;;  %v8646_v39 = vsel %vm1874_vm7, %v8644_v20, %v17325_v26  ;;  %v8899_v46 = vrot.slane %v8889_v51, %v19550_v17 }
 0xb16   : > { %v8660_v59 = vsel %vm1874_vm7, %v8658_v29, %v8316_v23  ;;  %v8648_v8 = vsel %vm1923_vm8, %v8646_v39, %v17329_v36  ;;  %v8808_v25 = vcombine.low %v8786_v63, %v8793_v52  ;;  %v19554_v24 = vcombine.low %v17243_v9, %v17294_v19 }
 0xb17   : > { %v8921_v60 = vcombine.low %v8899_v46, %v8906_v50  ;;  %v19557_v57 = vcombine.low %v19555_v42, %v19556_v15  ;;  %v8663_v5 = vsel %vm1629_vm2, %v19559_v21, %v19558_v58  ;;  %v8677_v10 = vsel %vm1629_vm2, %v19560_v32, %v17372_v49 }
 0xb18   : > { %v17487_v11 = vpop.permute.xlu0 %8395  ;;  %v8800_v22 = vrot.slane %v19554_v24, %v19550_v17  ;;  %v8816_v51 = vrot.slane %v8808_v25, %v19550_v17  ;;  %v8665_v54 = vsel %vm1678_vm3, %v8663_v5, %v17440_v1  ;;  %v8679_v43 = vsel %vm1678_vm3, %v8677_v10, %v17467_v3 }
 0xb19   : > { %v8322_v28 = vpop.permute.xlu1 %8321  ;;  %v8913_v36 = vrot.slane %v19557_v57, %v19550_v17  ;;  %v8929_v0 = vrot.slane %v8921_v60, %v19550_v17 }
 0xb1a   : > { %v8661_v37 = vsel %vm1923_vm8, %v8659_v55, %v8322_v28  ;;  %v19561_v28 = vld [vmem:[#allocation254_spill] sm:$0xff] }
 0xb1b   : > { %v8779_v4 = vcombine.low %v8647_v27, %v8661_v37  ;;  %v8664_v20 = vsel %vm1629_vm2, %v19561_v28, %v17358_v48  ;;  %v19562_v27 = vld [vmem:[#allocation98_spill] sm:$0xff] }
 0xb1c   : > { %v8324_v61 = vpop.permute.xlu0 %8323  ;;  %v8678_v29 = vsel %vm1629_vm2, %v19562_v27, %v17392_v18  ;;  %v8666_v49 = vsel %vm1678_vm3, %v8664_v20, %v17451_v56 }
 0xb1d   : > { %v8662_v31 = vsel %vm1923_vm8, %v8660_v59, %v8324_v61  ;;  %v8807_v41 = vrot.slane %v8779_v4, %v19550_v17  ;;  %v8346_v23 = vpop.permute.xlu1 %8345  ;;  %v8680_v1 = vsel %vm1678_vm3, %v8678_v29, %v17487_v11 }
 0xb1e   : > { %v8892_v26 = vcombine.low %v8648_v8, %v8662_v31  ;;  %v8667_v37 = vsel %vm1727_vm4, %v8665_v54, %v8346_v23 }
 0xb1f   : > { %v8809_v44 = vcombine.low %v8800_v22, %v8807_v41 }
 0xb20   : > { %v8920_v63 = vrot.slane %v8892_v26, %v19550_v17  ;;  %v8348_v6 = vpop.permute.xlu0 %8347 }
 0xb21   : > { %v8823_v9 = vrot.slane %v8809_v44, %v19550_v17  ;;  %v8402_v45 = vpop.permute.xlu1 %8401  ;;  %v8668_v48 = vsel %vm1727_vm4, %v8666_v49, %v8348_v6 }
 0xb22   : > { %v8922_v19 = vcombine.low %v8913_v36, %v8920_v63  ;;  %v8681_v50 = vsel %vm1727_vm4, %v8679_v43, %v8402_v45  ;;  %v19563_v63 = vlaneseq }
 0xb23   : > { %v8824_v2 = vcombine.low %v8816_v51, %v8823_v9 }
 0xb24   : > { %v8936_v62 = vrot.slane %v8922_v19, %v19550_v17  ;;  %v8404_v52 = vpop.permute.xlu0 %8403  ;;  %vm8963_vm1 = vcmp.lt.s32.totalorder %v19563_v63, 256 }
 0xb25   : > { %8960 = vst [vmem:[%s16812_s18 + $0x8] sm:$0xff] %v8824_v2  ;;  %v8354_v16 = vpop.permute.xlu1 %8353  ;;  %v8682_v4 = vsel %vm1727_vm4, %v8680_v1, %v8404_v52 }
 0xb26   : > { %v8937_v30 = vcombine.low %v8929_v0, %v8936_v62  ;;  %v8669_v3 = vsel %vm1776_vm5, %v8667_v37, %v8354_v16 }
 0xb28   : > { %8967 = vst [vmem:[%s16812_s18 + $0x1a] sm:$0xff] %v8937_v30  ;;  %v8356_v14 = vpop.permute.xlu0 %8355 }
 0xb29   : > { %v8410_v47 = vpop.permute.xlu1 %8409  ;;  %v8670_v46 = vsel %vm1776_vm5, %v8668_v48, %v8356_v14 }
 0xb2a   : > { %v8683_v39 = vsel %vm1776_vm5, %v8681_v50, %v8410_v47 }
 0xb2c   : > { %v8412_v38 = vpop.permute.xlu0 %8411 }
 0xb2d   : > { %v8362_v34 = vpop.permute.xlu1 %8361  ;;  %v8684_v56 = vsel %vm1776_vm5, %v8682_v4, %v8412_v38 }
 0xb2e   : > { %v8671_v18 = vsel %vm1825_vm6, %v8669_v3, %v8362_v34 }
 0xb30   : > { %v8364_v13 = vpop.permute.xlu0 %8363 }
 0xb31   : > { %v8418_v33 = vpop.permute.xlu1 %8417  ;;  %v8672_v25 = vsel %vm1825_vm6, %v8670_v46, %v8364_v13 }
 0xb32   : > { %v8685_v61 = vsel %vm1825_vm6, %v8683_v39, %v8418_v33 }
 0xb34   : > { %v8420_v12 = vpop.permute.xlu0 %8419 }
 0xb35   : > { %v8370_v40 = vpop.permute.xlu1 %8369  ;;  %v8686_v24 = vsel %vm1825_vm6, %v8684_v56, %v8420_v12 }
 0xb36   : > { %v8673_v11 = vsel %vm1874_vm7, %v8671_v18, %v8370_v40 }
 0xb38   : > { %v8372_v53 = vpop.permute.xlu0 %8371 }
 0xb39   : > { %v8426_v7 = vpop.permute.xlu1 %8425  ;;  %v8674_v26 = vsel %vm1874_vm7, %v8672_v25, %v8372_v53 }
 0xb3a   : > { %v8687_v8 = vsel %vm1874_vm7, %v8685_v61, %v8426_v7 }
 0xb3c   : > { %v8428_v35 = vpop.permute.xlu0 %8427 }
 0xb3d   : > { %v8378_v55 = vpop.permute.xlu1 %8377  ;;  %v8688_v23 = vsel %vm1874_vm7, %v8686_v24, %v8428_v35 }
 0xb3e   : > { %v8675_v22 = vsel %vm1923_vm8, %v8673_v11, %v8378_v55 }
 0xb40   : > { %v8380_v59 = vpop.permute.xlu0 %8379 }
 0xb41   : > { %v8434_v31 = vpop.permute.xlu1 %8433  ;;  %v8676_v15 = vsel %vm1923_vm8, %v8674_v26, %v8380_v59 }
 0xb42   : > { %v8689_v41 = vsel %vm1923_vm8, %v8687_v8, %v8434_v31 }
 0xb43   : > { %v8825_v60 = vcombine.low %v8675_v22, %v8689_v41 }
 0xb44   : > { %v8436_v42 = vpop.permute.xlu0 %8435 }
 0xb45   : > { %v8690_v57 = vsel %vm1923_vm8, %v8688_v23, %v8436_v42  ;;  %v8832_v36 = vrot.slane %v8825_v60, %v19550_v17 }
 0xb46   : > { %v8938_v44 = vcombine.low %v8676_v15, %v8690_v57 }
 0xb47   : > { %v8839_v6 = vrot.slane %v8832_v36, %v19550_v17 }
 0xb48   : > { %v8945_v51 = vrot.slane %v8938_v44, %v19550_v17 }
 0xb49   : > { %8965 = vst.msk [vmem:[%s16812_s18 + $0x10] sm:$0x3] %vm8963_vm1, %v8839_v6 }
 0xb4a   : > { %v8952_v9 = vrot.slane %v8945_v51, %v19550_v17 }
 0xb4c   : > { %8968 = vst.msk [vmem:[%s16812_s18 + $0x22] sm:$0x3] %vm8963_vm1, %v8952_v9 }
 0xb4d   : > { %9938 = shalt.err (!%p9935_p3)
}
 0xb4e   : > { %s9939_s24 = scalar_lea.hbm %s17588_s10, 576  ;;  %s9943_s18 = scalar_lea.hbm %s17642_s9, 1152 }
 0xb4f   : > { %p9940_p4 = scmp.ne.s32.totalorder %s17588_s10, %s9939_s24  ;;  %p9944_p9 = scmp.lt.s32.totalorder %s17588_s10, %s17642_s9 }
 0xb50   : > { %p9945_p10 = scmp.lt.s32.totalorder %s9943_s18, %s9939_s24 }
 0xb51   : > { %p9941_p7 = pnand %p9940_p4, %p10093_p5 }
 0xb52   : > { %p9946_p11 = por %p9945_p10, %p9944_p9 }
 0xb53   : > { %p9942_p8 = pneg %p9941_p7 }
 0xb55   : > { %p9947_p12 = pnand %p9946_p11, %p9942_p8 }
 0xb57   : > { %9950 = shalt.err (!%p9947_p12)
}
 0xb58   : > { %s10000_s30 = smov 288   ;;  %s10001_s15 = smov 18  }
 0xb59   : > { %9277 = dma.vmem_to_hbm [thread:$0]  (%p10093_p5), %s17581_s27, 576, %s17588_s10, %s17593_s6, %s10000_s30, %s10000_s30, %s10001_s15  }
 0xb5a PF: > { %p9283_p13 = scmp.ge.s32.totalorder %s9985_s14, 2  ;;  %s8999_s17 = sand.u32 1, %s9973_s11  }
 0xb5b   : > { %s9000_s22 = scalar_lea.sflag [#allocation4], %s8999_s17 }
 0xb5c   : > { %p9280_p0 = pnand %p9283_p13, %p10097_p6 }
 0xb5e   : > { %p9281_p1 = pneg %p9280_p0 }
 0xb60   : > { %9968 = dma.done.wait (%p9281_p1), %s9000_s22, 576  }
 0xb61   : > { %9970 = vsyncadd (%p9281_p1), %s9000_s22, 4294966720  ;;  %p21_p2 = scmp.ge.s32.totalorder %s10080_s16, 4   ;;  %s19564_s11 = smov %s9977_s12 }
 0xb62   : > { %s19565_s12 = smov %s9981_s13  ;;  %s19566_s13 = smov %s10091_s19 }
 0xb63   : > { %s19567_s14 = smov %s10080_s16  ;;  %23 = sbr.rel (!%p21_p2) target bundleno = 6 (0x6), region = 91 }
 0xb68   :  { %9005 = vsyncpa [#allocation4], 1 }
 0xb69   :  { %9007 = vsyncpa [#allocation4 + $0x1], 1 }

</bundles_post_ra>
